<compile_context>
chip_gen: v7x
topology: tpu7x:2x2x1
jax: 0.10.0
libtpu: 0.0.40
codegen_flags: <defaults>
</compile_context>

<pallas_src>
import functools

import jax
import jax.numpy as jnp
from jax.experimental import pallas as pl
from jax.experimental.pallas import tpu as pltpu


def _round_up(x: int, m: int) -> int:
    return ((x + m - 1) // m) * m


# ----------------------------------------------------------------------------
# Kernel A: trunk (shared MLP K->64->128->1024) + running max-pool over points
#   grid = (B, Np // TN);  output g: (B, 1024, 1), accumulated across the
#   N axis directly in the output block (same block index for every n).
# ----------------------------------------------------------------------------
def _tnet_features_kernel(
    x_ref,
    w1_ref, b1_ref, s1_ref, t1_ref,
    w2_ref, b2_ref, s2_ref, t2_ref,
    w3_ref, b3_ref, s3_ref, t3_ref,
    g_ref,
    *, n_valid: int, tile_n: int,
):
    n = pl.program_id(1)

    @pl.when(n == 0)
    def _init():
        g_ref[...] = jnp.full(g_ref.shape, -jnp.inf, dtype=jnp.float32)

    cdt = w1_ref.dtype                      # compute dtype (f32 or bf16)
    x = x_ref[0].astype(cdt)                # (K, TN) channel-major, lane-dense

    def layer(h, w_ref, b_ref, s_ref, t_ref):
        # Conv1d(kernel=1) -> ReLU -> folded eval-mode BatchNorm
        z = jnp.dot(w_ref[...], h, preferred_element_type=jnp.float32) + b_ref[...]
        return jnp.maximum(z, 0.0) * s_ref[...] + t_ref[...]

    h = layer(x, w1_ref, b1_ref, s1_ref, t1_ref).astype(cdt)   # (64,  TN)
    h = layer(h, w2_ref, b2_ref, s2_ref, t2_ref).astype(cdt)   # (128, TN)
    h = layer(h, w3_ref, b3_ref, s3_ref, t3_ref)               # (1024,TN) f32

    # Mask padded tail columns with -inf so they never win the max-pool.
    col = n * tile_n + jax.lax.broadcasted_iota(jnp.int32, (1, tile_n), 1)
    h = jnp.where(col < n_valid, h, -jnp.inf)

    # Running max over points (lane reduction), accumulated in the output.
    g_ref[0] = jnp.maximum(g_ref[0], jnp.max(h, axis=-1, keepdims=True))


# ----------------------------------------------------------------------------
# Kernel B: batched FC head (1024 -> 512 -> 256 -> K*K, identity folded in bias)
#   Single grid step, M = B rows on the MXU.
# ----------------------------------------------------------------------------
def _tnet_head_kernel(
    g_ref,
    w4_ref, b4_ref, s4_ref, t4_ref,
    w5_ref, b5_ref, s5_ref, t5_ref,
    w6_ref, b6i_ref,
    m_ref,
):
    def layer(h, w_ref, b_ref, s_ref, t_ref):
        z = jnp.dot(h, w_ref[...], preferred_element_type=jnp.float32) + b_ref[...]
        return jnp.maximum(z, 0.0) * s_ref[...] + t_ref[...]

    f = layer(g_ref[...], w4_ref, b4_ref, s4_ref, t4_ref)      # (B, 512)
    f = layer(f, w5_ref, b5_ref, s5_ref, t5_ref)               # (B, 256)
    m_ref[...] = (jnp.dot(f, w6_ref[...], preferred_element_type=jnp.float32)
                  + b6i_ref[...])                              # (B, K*K)


# ----------------------------------------------------------------------------
# Kernel C: apply the learned transform  out = matrix @ x, tiled over points
# ----------------------------------------------------------------------------
def _apply_transform_kernel(m_ref, x_ref, o_ref):
    o_ref[0] = jnp.dot(
        m_ref[0], x_ref[0], preferred_element_type=jnp.float32
    ).astype(o_ref.dtype)


# ----------------------------------------------------------------------------
# Wrapper
# ----------------------------------------------------------------------------
def feature_transform(x, trunk_params, head_params, *, tn_max: int = 512):
    """x: (B, K, N) float32.  Returns (B, K, N) float32.

    tn_max: max points-tile size (multiple of 128).  512 is a conservative
    default that keeps per-step VMEM ~4 MB (safe on v7x's 64 MiB/TC); raise
    toward 1024-2048 on v5e/v6e if desired.
    """
    B, K, N = x.shape
    c_hidden = trunk_params[8].shape[0]        # 1024 (w3 out-channels)
    kk = head_params[-1].shape[-1]
    assert kk == K * K

    tn_max = max(128, (tn_max // 128) * 128)
    tn = min(tn_max, _round_up(N, 128))        # lane-aligned tile over points
    n_pad = _round_up(N, tn)
    x_pad = jnp.pad(x, ((0, 0), (0, 0), (0, n_pad - N))) if n_pad != N else x
    n_tiles = n_pad // tn

    # --- Kernel A: pooled global feature g (B, 1024, 1) ---
    trunk_kernel = functools.partial(_tnet_features_kernel, n_valid=N, tile_n=tn)
    g = pl.pallas_call(
        trunk_kernel,
        out_shape=jax.ShapeDtypeStruct((B, c_hidden, 1), jnp.float32),
        grid=(B, n_tiles),
        in_specs=[pl.BlockSpec((1, K, tn), lambda b, n: (b, 0, n))]
        + [pl.BlockSpec(p.shape, lambda b, n: (0, 0)) for p in trunk_params],
        out_specs=pl.BlockSpec((1, c_hidden, 1), lambda b, n: (b, 0, 0)),
        compiler_params=pltpu.CompilerParams(
            dimension_semantics=("parallel", "arbitrary")),
    )(x_pad, *trunk_params)
    g = g.reshape(B, c_hidden)                 # glue reshape (plain JAX)

    # --- Kernel B: batched FC head -> flattened transform matrices ---
    m_flat = pl.pallas_call(
        _tnet_head_kernel,
        out_shape=jax.ShapeDtypeStruct((B, kk), jnp.float32),
        grid=(1,),
        in_specs=[pl.BlockSpec((B, c_hidden), lambda i: (0, 0))]
        + [pl.BlockSpec(p.shape, lambda i: (0, 0)) for p in head_params],
        out_specs=pl.BlockSpec((B, kk), lambda i: (0, 0)),
    )(g, *head_params)
    matrix = m_flat.reshape(B, K, K)

    # --- Kernel C: out = matrix @ x ---
    out_pad = pl.pallas_call(
        _apply_transform_kernel,
        out_shape=jax.ShapeDtypeStruct((B, K, n_pad), x.dtype),
        grid=(B, n_tiles),
        in_specs=[
            pl.BlockSpec((1, K, K), lambda b, n: (b, 0, 0)),
            pl.BlockSpec((1, K, tn), lambda b, n: (b, 0, n)),
        ],
        out_specs=pl.BlockSpec((1, K, tn), lambda b, n: (b, 0, n)),
        compiler_params=pltpu.CompilerParams(
            dimension_semantics=("parallel", "parallel")),
    )(matrix, x_pad)

    return out_pad[:, :, :N]


# ----------------------------------------------------------------------------
# Deterministic parameter construction (PyTorch-default-style init, folded BN)
# ----------------------------------------------------------------------------
def make_params(key, k, compute_dtype=jnp.float32):
    dims = [(k, 64), (64, 128), (128, 1024), (1024, 512), (512, 256), (256, k * k)]
    eps = 1e-5
    bn_scale = 1.0 / jnp.sqrt(1.0 + eps)   # eval-mode BN w/ default buffers

    trunk, head = [], []
    keys = jax.random.split(key, len(dims))
    for i, (din, dout) in enumerate(dims):
        kw, kb = jax.random.split(keys[i])
        bound = 1.0 / jnp.sqrt(din)
        w = jax.random.uniform(kw, (dout, din), jnp.float32, -bound, bound)
        b = jax.random.uniform(kb, (dout,), jnp.float32, -bound, bound)
        if i < 3:
            # Conv1d SharedMlp: channel-major (C_out, C_in), per-channel columns.
            trunk += [w.astype(compute_dtype),
                      b.reshape(dout, 1),
                      jnp.full((dout, 1), bn_scale, jnp.float32),
                      jnp.zeros((dout, 1), jnp.float32)]
        elif i < 5:
            # Linear SharedMlp (head): row-major (din, dout) for (B, din) @ W.
            head += [w.T,
                     b.reshape(1, dout),
                     jnp.full((1, dout), bn_scale, jnp.float32),
                     jnp.zeros((1, dout), jnp.float32)]
        else:
            # Final Linear(256, k*k): fold the flattened identity into the bias.
            iden = jnp.eye(k, dtype=jnp.float32).reshape(1, k * k)
            head += [w.T, b.reshape(1, dout) + iden]
    return tuple(trunk), tuple(head)


# ----------------------------------------------------------------------------
# Pure-JAX reference (for correctness check)
# ----------------------------------------------------------------------------
def reference(x, trunk_params, head_params):
    (w1, b1, s1, t1, w2, b2, s2, t2, w3, b3, s3, t3) = trunk_params
    (w4, b4, s4, t4, w5, b5, s5, t5, w6, b6i) = head_params
    B, K, N = x.shape

    def conv_mlp(h, w, b, s, t):
        z = jnp.einsum('oc,bcn->bon', w.astype(jnp.float32), h) + b
        return jnp.maximum(z, 0.0) * s + t

    def fc_mlp(h, w, b, s, t):
        return jnp.maximum(h @ w + b, 0.0) * s + t

    h = conv_mlp(x, w1, b1, s1, t1)
    h = conv_mlp(h, w2, b2, s2, t2)
    h = conv_mlp(h, w3, b3, s3, t3)
    g = jnp.max(h, axis=-1)                      # (B, 1024)
    f = fc_mlp(g, w4, b4, s4, t4)
    f = fc_mlp(f, w5, b5, s5, t5)
    v = f @ w6 + b6i                             # (B, K*K)
    m = v.reshape(B, K, K)
    return jnp.einsum('bij,bjn->bin', m, x)


if __name__ == "__main__":
    B, K, N = 2, 3, 300                          # N=300 w/ tn_max=128 exercises
    key = jax.random.PRNGKey(0)                  # multiple N tiles + masked tail
    kx, kp = jax.random.split(key)
    x = jax.random.normal(kx, (B, K, N), jnp.float32)

    # f32 trunk path (tight tolerance).
    trunk, head = make_params(kp, K, compute_dtype=jnp.float32)
    out = jax.block_until_ready(feature_transform(x, trunk, head, tn_max=128))
    ref = reference(x, trunk, head)
    assert out.shape == (B, K, N)
    assert jnp.allclose(out, ref, rtol=1e-3, atol=1e-3), "f32 mismatch vs reference"

    # bf16 trunk-matmul path (f32 accumulation/BN/pool; looser tolerance).
    trunk_bf, head_bf = make_params(kp, K, compute_dtype=jnp.bfloat16)
    out_bf = jax.block_until_ready(feature_transform(x, trunk_bf, head_bf, tn_max=128))
    ref_bf = reference(x, trunk_bf, head_bf)
    assert jnp.allclose(out_bf, ref_bf, rtol=1e-1, atol=1e-1), "bf16 mismatch vs reference"

    print("KERNEL_OK")
</pallas_src>

<mosaic_0001>
module attributes {stable_mosaic.version = 11 : i64} {
  func.func @_tnet_features_kernel(%arg0: i32, %arg1: i32, %arg2: memref<1x3x128xf32, #tpu.memory_space<vmem>>, %arg3: memref<64x3xf32, #tpu.memory_space<vmem>>, %arg4: memref<64x1xf32, #tpu.memory_space<vmem>>, %arg5: memref<64x1xf32, #tpu.memory_space<vmem>>, %arg6: memref<64x1xf32, #tpu.memory_space<vmem>>, %arg7: memref<128x64xf32, #tpu.memory_space<vmem>>, %arg8: memref<128x1xf32, #tpu.memory_space<vmem>>, %arg9: memref<128x1xf32, #tpu.memory_space<vmem>>, %arg10: memref<128x1xf32, #tpu.memory_space<vmem>>, %arg11: memref<1024x128xf32, #tpu.memory_space<vmem>>, %arg12: memref<1024x1xf32, #tpu.memory_space<vmem>>, %arg13: memref<1024x1xf32, #tpu.memory_space<vmem>>, %arg14: memref<1024x1xf32, #tpu.memory_space<vmem>>, %arg15: memref<1x1024x1xf32, #tpu.memory_space<vmem>>) attributes {dimension_semantics = [#tpu.dimension_semantics<parallel>, #tpu.dimension_semantics<arbitrary>], iteration_bounds = array<i64: 2, 3>, scalar_prefetch = 0 : i64, scratch_operands = 0 : i64, tpu.core_type = #tpu.core_type<tc>, window_params = [{transform_indices = @transform_0, window_bounds = array<i64: 1, 3, 128>}, {pipeline_mode = #tpu.pipeline_mode<synchronous>, transform_indices = @transform_1, window_bounds = array<i64: 64, 3>}, {pipeline_mode = #tpu.pipeline_mode<synchronous>, transform_indices = @transform_2, window_bounds = array<i64: 64, 1>}, {pipeline_mode = #tpu.pipeline_mode<synchronous>, transform_indices = @transform_3, window_bounds = array<i64: 64, 1>}, {pipeline_mode = #tpu.pipeline_mode<synchronous>, transform_indices = @transform_4, window_bounds = array<i64: 64, 1>}, {pipeline_mode = #tpu.pipeline_mode<synchronous>, transform_indices = @transform_5, window_bounds = array<i64: 128, 64>}, {pipeline_mode = #tpu.pipeline_mode<synchronous>, transform_indices = @transform_6, window_bounds = array<i64: 128, 1>}, {pipeline_mode = #tpu.pipeline_mode<synchronous>, transform_indices = @transform_7, window_bounds = array<i64: 128, 1>}, {pipeline_mode = #tpu.pipeline_mode<synchronous>, transform_indices = @transform_8, window_bounds = array<i64: 128, 1>}, {pipeline_mode = #tpu.pipeline_mode<synchronous>, transform_indices = @transform_9, window_bounds = array<i64: 1024, 128>}, {pipeline_mode = #tpu.pipeline_mode<synchronous>, transform_indices = @transform_10, window_bounds = array<i64: 1024, 1>}, {pipeline_mode = #tpu.pipeline_mode<synchronous>, transform_indices = @transform_11, window_bounds = array<i64: 1024, 1>}, {pipeline_mode = #tpu.pipeline_mode<synchronous>, transform_indices = @transform_12, window_bounds = array<i64: 1024, 1>}, {transform_indices = @transform_13, window_bounds = array<i64: 1, 1024, 1>}]} {
    %c0_i32 = arith.constant 0 : i32
    %0 = arith.cmpi eq, %arg1, %c0_i32 : i32
    %1 = arith.extui %0 : i1 to i32
    %c0_i32_0 = arith.constant 0 : i32
    %2 = arith.cmpi ne, %1, %c0_i32_0 : i32
    scf.if %2 {
      %cst_40 = arith.constant 0xFF800000 : f32
      %62 = vector.broadcast %cst_40 : f32 to vector<1x1024x1xf32>
      %c0_41 = arith.constant 0 : index
      %c0_42 = arith.constant 0 : index
      %c0_43 = arith.constant 0 : index
      %63 = vector.load %arg15[%c0_41, %c0_42, %c0_43] : memref<1x1024x1xf32, #tpu.memory_space<vmem>>, vector<1x1024x1xf32>
      tpu.vector_store %arg15[%c0_41, %c0_42, %c0_43], %62 {strides = array<i32>} : memref<1x1024x1xf32, #tpu.memory_space<vmem>>, vector<1x1024x1xf32>,
    } else {
    }
    %c0 = arith.constant 0 : index
    %c0_1 = arith.constant 0 : index
    %c0_2 = arith.constant 0 : index
    %3 = vector.load %arg2[%c0, %c0_1, %c0_2] : memref<1x3x128xf32, #tpu.memory_space<vmem>>, vector<1x3x128xf32>
    %4 = vector.shape_cast %3 : vector<1x3x128xf32> to vector<3x128xf32>
    %c0_3 = arith.constant 0 : index
    %c0_4 = arith.constant 0 : index
    %5 = vector.load %arg3[%c0_3, %c0_4] : memref<64x3xf32, #tpu.memory_space<vmem>>, vector<64x3xf32>
    %cst = arith.constant dense<0.000000e+00> : vector<64x128xf32>
    %6 = tpu.matmul %5, %4, %cst {dimension_numbers = #tpu.dot_dimension_numbers<[1], [0], [0], [1], [0, 0, 1, 1], [], []>} : vector<64x3xf32>, vector<3x128xf32>, vector<64x128xf32> -> vector<64x128xf32>
    %c0_5 = arith.constant 0 : index
    %c0_6 = arith.constant 0 : index
    %7 = vector.load %arg4[%c0_5, %c0_6] : memref<64x1xf32, #tpu.memory_space<vmem>>, vector<64x1xf32>
    %8 = vector.broadcast %7 : vector<64x1xf32> to vector<64x128xf32>
    %9 = arith.addf %6, %8 : vector<64x128xf32>
    %cst_7 = arith.constant 0.000000e+00 : f32
    %10 = vector.broadcast %cst_7 : f32 to vector<64x128xf32>
    %11 = arith.maximumf %9, %10 : vector<64x128xf32>
    %c0_8 = arith.constant 0 : index
    %c0_9 = arith.constant 0 : index
    %12 = vector.load %arg5[%c0_8, %c0_9] : memref<64x1xf32, #tpu.memory_space<vmem>>, vector<64x1xf32>
    %13 = vector.broadcast %12 : vector<64x1xf32> to vector<64x128xf32>
    %14 = arith.mulf %11, %13 : vector<64x128xf32>
    %c0_10 = arith.constant 0 : index
    %c0_11 = arith.constant 0 : index
    %15 = vector.load %arg6[%c0_10, %c0_11] : memref<64x1xf32, #tpu.memory_space<vmem>>, vector<64x1xf32>
    %16 = vector.broadcast %15 : vector<64x1xf32> to vector<64x128xf32>
    %17 = arith.addf %14, %16 : vector<64x128xf32>
    %c0_12 = arith.constant 0 : index
    %c0_13 = arith.constant 0 : index
    %18 = vector.load %arg7[%c0_12, %c0_13] : memref<128x64xf32, #tpu.memory_space<vmem>>, vector<128x64xf32>
    %cst_14 = arith.constant dense<0.000000e+00> : vector<128x128xf32>
    %19 = tpu.matmul %18, %17, %cst_14 {dimension_numbers = #tpu.dot_dimension_numbers<[1], [0], [0], [1], [0, 0, 1, 1], [], []>} : vector<128x64xf32>, vector<64x128xf32>, vector<128x128xf32> -> vector<128x128xf32>
    %c0_15 = arith.constant 0 : index
    %c0_16 = arith.constant 0 : index
    %20 = vector.load %arg8[%c0_15, %c0_16] : memref<128x1xf32, #tpu.memory_space<vmem>>, vector<128x1xf32>
    %21 = vector.broadcast %20 : vector<128x1xf32> to vector<128x128xf32>
    %22 = arith.addf %19, %21 : vector<128x128xf32>
    %cst_17 = arith.constant 0.000000e+00 : f32
    %23 = vector.broadcast %cst_17 : f32 to vector<128x128xf32>
    %24 = arith.maximumf %22, %23 : vector<128x128xf32>
    %c0_18 = arith.constant 0 : index
    %c0_19 = arith.constant 0 : index
    %25 = vector.load %arg9[%c0_18, %c0_19] : memref<128x1xf32, #tpu.memory_space<vmem>>, vector<128x1xf32>
    %26 = vector.broadcast %25 : vector<128x1xf32> to vector<128x128xf32>
    %27 = arith.mulf %24, %26 : vector<128x128xf32>
    %c0_20 = arith.constant 0 : index
    %c0_21 = arith.constant 0 : index
    %28 = vector.load %arg10[%c0_20, %c0_21] : memref<128x1xf32, #tpu.memory_space<vmem>>, vector<128x1xf32>
    %29 = vector.broadcast %28 : vector<128x1xf32> to vector<128x128xf32>
    %30 = arith.addf %27, %29 : vector<128x128xf32>
    %c0_22 = arith.constant 0 : index
    %c0_23 = arith.constant 0 : index
    %31 = vector.load %arg11[%c0_22, %c0_23] : memref<1024x128xf32, #tpu.memory_space<vmem>>, vector<1024x128xf32>
    %cst_24 = arith.constant dense<0.000000e+00> : vector<1024x128xf32>
    %32 = tpu.matmul %31, %30, %cst_24 {dimension_numbers = #tpu.dot_dimension_numbers<[1], [0], [0], [1], [0, 0, 1, 1], [], []>} : vector<1024x128xf32>, vector<128x128xf32>, vector<1024x128xf32> -> vector<1024x128xf32>
    %c0_25 = arith.constant 0 : index
    %c0_26 = arith.constant 0 : index
    %33 = vector.load %arg12[%c0_25, %c0_26] : memref<1024x1xf32, #tpu.memory_space<vmem>>, vector<1024x1xf32>
    %34 = vector.broadcast %33 : vector<1024x1xf32> to vector<1024x128xf32>
    %35 = arith.addf %32, %34 : vector<1024x128xf32>
    %cst_27 = arith.constant 0.000000e+00 : f32
    %36 = vector.broadcast %cst_27 : f32 to vector<1024x128xf32>
    %37 = arith.maximumf %35, %36 : vector<1024x128xf32>
    %c0_28 = arith.constant 0 : index
    %c0_29 = arith.constant 0 : index
    %38 = vector.load %arg13[%c0_28, %c0_29] : memref<1024x1xf32, #tpu.memory_space<vmem>>, vector<1024x1xf32>
    %39 = vector.broadcast %38 : vector<1024x1xf32> to vector<1024x128xf32>
    %40 = arith.mulf %37, %39 : vector<1024x128xf32>
    %c0_30 = arith.constant 0 : index
    %c0_31 = arith.constant 0 : index
    %41 = vector.load %arg14[%c0_30, %c0_31] : memref<1024x1xf32, #tpu.memory_space<vmem>>, vector<1024x1xf32>
    %42 = vector.broadcast %41 : vector<1024x1xf32> to vector<1024x128xf32>
    %43 = arith.addf %40, %42 : vector<1024x128xf32>
    %c128_i32 = arith.constant 128 : i32
    %44 = arith.muli %arg1, %c128_i32 : i32
    %45 = tpu.iota {dimensions = array<i32: 1>} : vector<1x128xi32>
    %46 = vector.broadcast %44 : i32 to vector<1x128xi32>
    %47 = arith.addi %46, %45 : vector<1x128xi32>
    %c300_i32 = arith.constant 300 : i32
    %48 = vector.broadcast %c300_i32 : i32 to vector<1x128xi32>
    %49 = arith.cmpi slt, %47, %48 : vector<1x128xi32>
    %cst_32 = arith.constant 0xFF800000 : f32
    %50 = vector.shape_cast %49 : vector<1x128xi1> to vector<1x128xi1>
    %51 = vector.broadcast %50 : vector<1x128xi1> to vector<1024x128xi1>
    %52 = vector.broadcast %cst_32 : f32 to vector<1024x128xf32>
    %53 = arith.select %51, %43, %52 : vector<1024x128xi1>, vector<1024x128xf32>
    %c0_33 = arith.constant 0 : index
    %c0_34 = arith.constant 0 : index
    %c0_35 = arith.constant 0 : index
    %54 = vector.load %arg15[%c0_33, %c0_34, %c0_35] : memref<1x1024x1xf32, #tpu.memory_space<vmem>>, vector<1x1024x1xf32>
    %55 = vector.shape_cast %54 : vector<1x1024x1xf32> to vector<1024x1xf32>
    %cst_36 = arith.constant dense<0xFF800000> : vector<1024xf32>
    %56 = vector.multi_reduction <maximumf>, %53, %cst_36 [1] : vector<1024x128xf32> to vector<1024xf32>
    %57 = vector.shape_cast %56 : vector<1024xf32> to vector<1024x1xf32>
    %58 = arith.maximumf %55, %57 : vector<1024x1xf32>
    %c0_37 = arith.constant 0 : index
    %c0_38 = arith.constant 0 : index
    %c0_39 = arith.constant 0 : index
    %59 = vector.load %arg15[%c0_37, %c0_38, %c0_39] : memref<1x1024x1xf32, #tpu.memory_space<vmem>>, vector<1x1024x1xf32>
    %60 = vector.shape_cast %59 : vector<1x1024x1xf32> to vector<1024x1xf32>
    %61 = vector.shape_cast %58 : vector<1024x1xf32> to vector<1x1024x1xf32>
    tpu.vector_store %arg15[%c0_37, %c0_38, %c0_39], %61 {strides = array<i32>} : memref<1x1024x1xf32, #tpu.memory_space<vmem>>, vector<1x1024x1xf32>,
    return
  }
  func.func @transform_0(%arg0: i32, %arg1: i32) -> (i32, i32, i32) {
    %c0_i32 = arith.constant 0 : i32
    %c0_i32_0 = arith.constant 0 : i32
    return %arg0, %c0_i32, %arg1 : i32, i32, i32
  }
  func.func @transform_1(%arg0: i32, %arg1: i32) -> (i32, i32) {
    %c0_i32 = arith.constant 0 : i32
    %c0_i32_0 = arith.constant 0 : i32
    %c0_i32_1 = arith.constant 0 : i32
    return %c0_i32, %c0_i32_0 : i32, i32
  }
  func.func @transform_2(%arg0: i32, %arg1: i32) -> (i32, i32) {
    %c0_i32 = arith.constant 0 : i32
    %c0_i32_0 = arith.constant 0 : i32
    %c0_i32_1 = arith.constant 0 : i32
    return %c0_i32, %c0_i32_0 : i32, i32
  }
  func.func @transform_3(%arg0: i32, %arg1: i32) -> (i32, i32) {
    %c0_i32 = arith.constant 0 : i32
    %c0_i32_0 = arith.constant 0 : i32
    %c0_i32_1 = arith.constant 0 : i32
    return %c0_i32, %c0_i32_0 : i32, i32
  }
  func.func @transform_4(%arg0: i32, %arg1: i32) -> (i32, i32) {
    %c0_i32 = arith.constant 0 : i32
    %c0_i32_0 = arith.constant 0 : i32
    %c0_i32_1 = arith.constant 0 : i32
    return %c0_i32, %c0_i32_0 : i32, i32
  }
  func.func @transform_5(%arg0: i32, %arg1: i32) -> (i32, i32) {
    %c0_i32 = arith.constant 0 : i32
    %c0_i32_0 = arith.constant 0 : i32
    %c0_i32_1 = arith.constant 0 : i32
    return %c0_i32, %c0_i32_0 : i32, i32
  }
  func.func @transform_6(%arg0: i32, %arg1: i32) -> (i32, i32) {
    %c0_i32 = arith.constant 0 : i32
    %c0_i32_0 = arith.constant 0 : i32
    %c0_i32_1 = arith.constant 0 : i32
    return %c0_i32, %c0_i32_0 : i32, i32
  }
  func.func @transform_7(%arg0: i32, %arg1: i32) -> (i32, i32) {
    %c0_i32 = arith.constant 0 : i32
    %c0_i32_0 = arith.constant 0 : i32
    %c0_i32_1 = arith.constant 0 : i32
    return %c0_i32, %c0_i32_0 : i32, i32
  }
  func.func @transform_8(%arg0: i32, %arg1: i32) -> (i32, i32) {
    %c0_i32 = arith.constant 0 : i32
    %c0_i32_0 = arith.constant 0 : i32
    %c0_i32_1 = arith.constant 0 : i32
    return %c0_i32, %c0_i32_0 : i32, i32
  }
  func.func @transform_9(%arg0: i32, %arg1: i32) -> (i32, i32) {
    %c0_i32 = arith.constant 0 : i32
    %c0_i32_0 = arith.constant 0 : i32
    %c0_i32_1 = arith.constant 0 : i32
    return %c0_i32, %c0_i32_0 : i32, i32
  }
  func.func @transform_10(%arg0: i32, %arg1: i32) -> (i32, i32) {
    %c0_i32 = arith.constant 0 : i32
    %c0_i32_0 = arith.constant 0 : i32
    %c0_i32_1 = arith.constant 0 : i32
    return %c0_i32, %c0_i32_0 : i32, i32
  }
  func.func @transform_11(%arg0: i32, %arg1: i32) -> (i32, i32) {
    %c0_i32 = arith.constant 0 : i32
    %c0_i32_0 = arith.constant 0 : i32
    %c0_i32_1 = arith.constant 0 : i32
    return %c0_i32, %c0_i32_0 : i32, i32
  }
  func.func @transform_12(%arg0: i32, %arg1: i32) -> (i32, i32) {
    %c0_i32 = arith.constant 0 : i32
    %c0_i32_0 = arith.constant 0 : i32
    %c0_i32_1 = arith.constant 0 : i32
    return %c0_i32, %c0_i32_0 : i32, i32
  }
  func.func @transform_13(%arg0: i32, %arg1: i32) -> (i32, i32, i32) {
    %c0_i32 = arith.constant 0 : i32
    %c0_i32_0 = arith.constant 0 : i32
    %c0_i32_1 = arith.constant 0 : i32
    return %arg0, %c0_i32, %c0_i32_0 : i32, i32, i32
  }
}

</mosaic_0001>

<bundles_post_ra>
// kernel: tpu_custom_call.1
= control target key start
LH: loop header
LB: loop body
LE: loop exit
PB: predicated region body
PF: predicated region fallthrough
CT: control target
= control target key end

     0   :  { %s6538_s25 = smov 0   ;;  %s6540_s26 = smov 0   ;;  %s11227_s0 = inlined_call_operand.vmem [shape: f32[2,3,384], index: 0, kind: input, shape index: {}]   ;;  %s11228_s1 = inlined_call_operand.vmem [shape: f32[64,3], index: 1, kind: input, shape index: {}]   ;;  %s11229_s2 = inlined_call_operand.vmem [shape: f32[64,1], index: 2, kind: input, shape index: {}]   ;;  %s11230_s3 = inlined_call_operand.vmem [shape: f32[64,1], index: 3, kind: input, shape index: {}]   ;;  %s11231_s4 = inlined_call_operand.vmem [shape: f32[64,1], index: 4, kind: input, shape index: {}]   ;;  %s11232_s5 = inlined_call_operand.vmem [shape: f32[128,64], index: 5, kind: input, shape index: {}]   ;;  %s11233_s6 = inlined_call_operand.vmem [shape: f32[128,1], index: 6, kind: input, shape index: {}]   ;;  %s11234_s7 = inlined_call_operand.vmem [shape: f32[128,1], index: 7, kind: input, shape index: {}]   ;;  %s11235_s8 = inlined_call_operand.vmem [shape: f32[128,1], index: 8, kind: input, shape index: {}]   ;;  %s11236_s9 = inlined_call_operand.vmem [shape: f32[1024,128], index: 9, kind: input, shape index: {}]   ;;  %s11237_s10 = inlined_call_operand.vmem [shape: f32[1024,1], index: 10, kind: input, shape index: {}]   ;;  %s11238_s11 = inlined_call_operand.vmem [shape: f32[1024,1], index: 11, kind: input, shape index: {}]   ;;  %s11239_s12 = inlined_call_operand.vmem [shape: f32[1024,1], index: 12, kind: input, shape index: {}]   ;;  %s11240_s13 = inlined_call_operand.vmem [shape: f32[2,1024,1], index: 13, kind: output, shape index: {}]  }
   0x1   :  { %s6542_s27 = smov 0   ;;  %s6544_s28 = smov 0  }
   0x2   :  { %s6546_s29 = smov 0  }
   0x3 LB: > { %s32_s30 = sadd.s32 1, %s6456_s27  ;;  %s35_s14 = sadd.s32 1, %s6460_s28  ;;  %s6464_s29 = sphi %s6546_s29, %s23_s29   ;;  %s6460_s28 = sphi %s6544_s28, %s12088_s28   ;;  %s6456_s27 = sphi %s6542_s27, %s12087_s27   ;;  %s6452_s26 = sphi %s6540_s26, %s12086_s26   ;;  %s6448_s25 = sphi %s6538_s25, %s12085_s25  }
   0x4   : > { %p33_p0 = scmp.ge.s32.totalorder %s32_s30, 3  ;;  %p5828_p1 = scmp.ge.s32.totalorder %s6464_s29, 1 }
   0x5   : > { %p404_p2 = scmp.lt.s32.totalorder %s6464_s29, 7 }
   0x6   : > { %s12090_s30 = smov (%p33_p0, %s32_s30), 0  ;;  %s12092_s14 = smov (!%p33_p0, %s35_s14), %s6460_s28 }
   0x7   : > { %p405_p3 = pnand %p5828_p1, %p404_p2  ;;  %p37_p4 = scmp.ge.s32.totalorder %s12092_s14, 2 }
   0x9   : > { %s12094_s14 = smov (%p37_p4, %s12092_s14), 0  ;;  %408 = sbr.rel (%p405_p3) target bundleno = 1430 (0x596), region = 72 }
   0xa   : > { %11241 = sst [smem:[#allocation2_spill]] %s12094_s14 }
  0x10   : > { %p451_p5 = scmp.lt.s32.totalorder %s6452_s26, 1  ;;  %p453_p6 = scmp.lt.s32.totalorder %s6448_s25, 2 }
  0x11   : > { %p5832_p7 = scmp.ne.s32.totalorder %s6448_s25, 0 }
  0x12   : > { %s12096_s26 = smov (!%p451_p5, %s6452_s26), 1  ;;  %vm468_vm0 = vcmask (!%p5832_p7), 7168   ;;  %v6466_v0 = vmov (!%p5832_p7), -inf  }
  0x13   : > { %s454_s15 = scalar_select %p453_p6, %s6448_s25, 2 }
  0x14   : > { %s6381_s16 = smul.u32 3, %s12096_s26  ;;  %s5861_s17 = sshll.u32 %s12096_s26, 10 }
  0x15   : > { %s6575_s20 = scalar_lea.vmem %s11240_s13, %s5861_s17  ;;  %467 = sbr.rel (%p5832_p7) target bundleno = 86 (0x56), region = 76 }
  0x16   : > { %s456_s21 = sadd.s32 %s6381_s16, %s454_s15  ;;  %469 = vst.msk [vmem:[%s6575_s20] sm:$0xff] (!%p5832_p7), %vm468_vm0, %v6466_v0  ;;  %470 = vst.msk [vmem:[%s6575_s20 + $0x8] sm:$0xff] (!%p5832_p7), %vm468_vm0, %v6466_v0 }
  0x17   : > { %s5829_s22 = sshll.u32 %s456_s21, 2  ;;  %471 = vst.msk [vmem:[%s6575_s20 + $0x10] sm:$0xff] (!%p5832_p7), %vm468_vm0, %v6466_v0  ;;  %472 = vst.msk [vmem:[%s6575_s20 + $0x18] sm:$0xff] (!%p5832_p7), %vm468_vm0, %v6466_v0 }
  0x18   : > { %s6580_s14 = scalar_lea.vmem %s11227_s0, %s5829_s22  ;;  %473 = vst.msk [vmem:[%s6575_s20 + $0x20] sm:$0xff] (!%p5832_p7), %vm468_vm0, %v6466_v0  ;;  %474 = vst.msk [vmem:[%s6575_s20 + $0x28] sm:$0xff] (!%p5832_p7), %vm468_vm0, %v6466_v0 }
  0x19   : > { %475 = vst.msk [vmem:[%s6575_s20 + $0x30] sm:$0xff] (!%p5832_p7), %vm468_vm0, %v6466_v0  ;;  %476 = vst.msk [vmem:[%s6575_s20 + $0x38] sm:$0xff] (!%p5832_p7), %vm468_vm0, %v6466_v0 }
  0x1a   : > { %477 = vst.msk [vmem:[%s6575_s20 + $0x40] sm:$0xff] (!%p5832_p7), %vm468_vm0, %v6466_v0  ;;  %478 = vst.msk [vmem:[%s6575_s20 + $0x48] sm:$0xff] (!%p5832_p7), %vm468_vm0, %v6466_v0 }
  0x1b   : > { %479 = vst.msk [vmem:[%s6575_s20 + $0x50] sm:$0xff] (!%p5832_p7), %vm468_vm0, %v6466_v0  ;;  %480 = vst.msk [vmem:[%s6575_s20 + $0x58] sm:$0xff] (!%p5832_p7), %vm468_vm0, %v6466_v0 }
  0x1c   : > { %481 = vst.msk [vmem:[%s6575_s20 + $0x60] sm:$0xff] %vm468_vm0, %v6466_v0  ;;  %482 = vst.msk [vmem:[%s6575_s20 + $0x68] sm:$0xff] %vm468_vm0, %v6466_v0 }
  0x1d   : > { %483 = vst.msk [vmem:[%s6575_s20 + $0x70] sm:$0xff] %vm468_vm0, %v6466_v0  ;;  %484 = vst.msk [vmem:[%s6575_s20 + $0x78] sm:$0xff] %vm468_vm0, %v6466_v0 }
  0x1e   : > { %485 = vst.msk [vmem:[%s6575_s20 + $0x80] sm:$0xff] %vm468_vm0, %v6466_v0  ;;  %486 = vst.msk [vmem:[%s6575_s20 + $0x88] sm:$0xff] %vm468_vm0, %v6466_v0 }
  0x1f   : > { %487 = vst.msk [vmem:[%s6575_s20 + $0x90] sm:$0xff] %vm468_vm0, %v6466_v0  ;;  %488 = vst.msk [vmem:[%s6575_s20 + $0x98] sm:$0xff] %vm468_vm0, %v6466_v0 }
  0x20   : > { %489 = vst.msk [vmem:[%s6575_s20 + $0xa0] sm:$0xff] %vm468_vm0, %v6466_v0  ;;  %490 = vst.msk [vmem:[%s6575_s20 + $0xa8] sm:$0xff] %vm468_vm0, %v6466_v0 }
  0x21   : > { %491 = vst.msk [vmem:[%s6575_s20 + $0xb0] sm:$0xff] %vm468_vm0, %v6466_v0  ;;  %492 = vst.msk [vmem:[%s6575_s20 + $0xb8] sm:$0xff] %vm468_vm0, %v6466_v0 }
  0x22   : > { %493 = vst.msk [vmem:[%s6575_s20 + $0xc0] sm:$0xff] %vm468_vm0, %v6466_v0  ;;  %494 = vst.msk [vmem:[%s6575_s20 + $0xc8] sm:$0xff] %vm468_vm0, %v6466_v0 }
  0x23   : > { %495 = vst.msk [vmem:[%s6575_s20 + $0xd0] sm:$0xff] %vm468_vm0, %v6466_v0  ;;  %496 = vst.msk [vmem:[%s6575_s20 + $0xd8] sm:$0xff] %vm468_vm0, %v6466_v0 }
  0x24   : > { %497 = vst.msk [vmem:[%s6575_s20 + $0xe0] sm:$0xff] %vm468_vm0, %v6466_v0  ;;  %498 = vst.msk [vmem:[%s6575_s20 + $0xe8] sm:$0xff] %vm468_vm0, %v6466_v0 }
  0x25   : > { %499 = vst.msk [vmem:[%s6575_s20 + $0xf0] sm:$0xff] %vm468_vm0, %v6466_v0  ;;  %500 = vst.msk [vmem:[%s6575_s20 + $0xf8] sm:$0xff] %vm468_vm0, %v6466_v0 }
  0x26   : > { %501 = vst.msk [vmem:[%s6575_s20 + $0x100] sm:$0xff] %vm468_vm0, %v6466_v0  ;;  %502 = vst.msk [vmem:[%s6575_s20 + $0x108] sm:$0xff] %vm468_vm0, %v6466_v0 }
  0x27   : > { %503 = vst.msk [vmem:[%s6575_s20 + $0x110] sm:$0xff] %vm468_vm0, %v6466_v0  ;;  %504 = vst.msk [vmem:[%s6575_s20 + $0x118] sm:$0xff] %vm468_vm0, %v6466_v0 }
  0x28   : > { %505 = vst.msk [vmem:[%s6575_s20 + $0x120] sm:$0xff] %vm468_vm0, %v6466_v0  ;;  %506 = vst.msk [vmem:[%s6575_s20 + $0x128] sm:$0xff] %vm468_vm0, %v6466_v0 }
  0x29   : > { %507 = vst.msk [vmem:[%s6575_s20 + $0x130] sm:$0xff] %vm468_vm0, %v6466_v0  ;;  %508 = vst.msk [vmem:[%s6575_s20 + $0x138] sm:$0xff] %vm468_vm0, %v6466_v0 }
  0x2a   : > { %509 = vst.msk [vmem:[%s6575_s20 + $0x140] sm:$0xff] %vm468_vm0, %v6466_v0  ;;  %510 = vst.msk [vmem:[%s6575_s20 + $0x148] sm:$0xff] %vm468_vm0, %v6466_v0 }
  0x2b   : > { %511 = vst.msk [vmem:[%s6575_s20 + $0x150] sm:$0xff] %vm468_vm0, %v6466_v0  ;;  %512 = vst.msk [vmem:[%s6575_s20 + $0x158] sm:$0xff] %vm468_vm0, %v6466_v0 }
  0x2c   : > { %513 = vst.msk [vmem:[%s6575_s20 + $0x160] sm:$0xff] %vm468_vm0, %v6466_v0  ;;  %514 = vst.msk [vmem:[%s6575_s20 + $0x168] sm:$0xff] %vm468_vm0, %v6466_v0 }
  0x2d   : > { %515 = vst.msk [vmem:[%s6575_s20 + $0x170] sm:$0xff] %vm468_vm0, %v6466_v0  ;;  %516 = vst.msk [vmem:[%s6575_s20 + $0x178] sm:$0xff] %vm468_vm0, %v6466_v0 }
  0x2e   : > { %517 = vst.msk [vmem:[%s6575_s20 + $0x180] sm:$0xff] %vm468_vm0, %v6466_v0  ;;  %518 = vst.msk [vmem:[%s6575_s20 + $0x188] sm:$0xff] %vm468_vm0, %v6466_v0 }
  0x2f   : > { %519 = vst.msk [vmem:[%s6575_s20 + $0x190] sm:$0xff] %vm468_vm0, %v6466_v0  ;;  %520 = vst.msk [vmem:[%s6575_s20 + $0x198] sm:$0xff] %vm468_vm0, %v6466_v0 }
  0x30   : > { %521 = vst.msk [vmem:[%s6575_s20 + $0x1a0] sm:$0xff] %vm468_vm0, %v6466_v0  ;;  %522 = vst.msk [vmem:[%s6575_s20 + $0x1a8] sm:$0xff] %vm468_vm0, %v6466_v0 }
  0x31   : > { %523 = vst.msk [vmem:[%s6575_s20 + $0x1b0] sm:$0xff] %vm468_vm0, %v6466_v0  ;;  %524 = vst.msk [vmem:[%s6575_s20 + $0x1b8] sm:$0xff] %vm468_vm0, %v6466_v0 }
  0x32   : > { %525 = vst.msk [vmem:[%s6575_s20 + $0x1c0] sm:$0xff] %vm468_vm0, %v6466_v0  ;;  %526 = vst.msk [vmem:[%s6575_s20 + $0x1c8] sm:$0xff] %vm468_vm0, %v6466_v0 }
  0x33   : > { %527 = vst.msk [vmem:[%s6575_s20 + $0x1d0] sm:$0xff] %vm468_vm0, %v6466_v0  ;;  %528 = vst.msk [vmem:[%s6575_s20 + $0x1d8] sm:$0xff] %vm468_vm0, %v6466_v0 }
  0x34   : > { %529 = vst.msk [vmem:[%s6575_s20 + $0x1e0] sm:$0xff] %vm468_vm0, %v6466_v0  ;;  %530 = vst.msk [vmem:[%s6575_s20 + $0x1e8] sm:$0xff] %vm468_vm0, %v6466_v0 }
  0x35   : > { %531 = vst.msk [vmem:[%s6575_s20 + $0x1f0] sm:$0xff] %vm468_vm0, %v6466_v0  ;;  %532 = vst.msk [vmem:[%s6575_s20 + $0x1f8] sm:$0xff] %vm468_vm0, %v6466_v0 }
  0x36   : > { %533 = vst.msk [vmem:[%s6575_s20 + $0x200] sm:$0xff] %vm468_vm0, %v6466_v0  ;;  %534 = vst.msk [vmem:[%s6575_s20 + $0x208] sm:$0xff] %vm468_vm0, %v6466_v0 }
  0x37   : > { %535 = vst.msk [vmem:[%s6575_s20 + $0x210] sm:$0xff] %vm468_vm0, %v6466_v0  ;;  %536 = vst.msk [vmem:[%s6575_s20 + $0x218] sm:$0xff] %vm468_vm0, %v6466_v0 }
  0x38   : > { %537 = vst.msk [vmem:[%s6575_s20 + $0x220] sm:$0xff] %vm468_vm0, %v6466_v0  ;;  %538 = vst.msk [vmem:[%s6575_s20 + $0x228] sm:$0xff] %vm468_vm0, %v6466_v0 }
  0x39   : > { %539 = vst.msk [vmem:[%s6575_s20 + $0x230] sm:$0xff] %vm468_vm0, %v6466_v0  ;;  %540 = vst.msk [vmem:[%s6575_s20 + $0x238] sm:$0xff] %vm468_vm0, %v6466_v0 }
  0x3a   : > { %541 = vst.msk [vmem:[%s6575_s20 + $0x240] sm:$0xff] %vm468_vm0, %v6466_v0  ;;  %542 = vst.msk [vmem:[%s6575_s20 + $0x248] sm:$0xff] %vm468_vm0, %v6466_v0 }
  0x3b   : > { %543 = vst.msk [vmem:[%s6575_s20 + $0x250] sm:$0xff] %vm468_vm0, %v6466_v0  ;;  %544 = vst.msk [vmem:[%s6575_s20 + $0x258] sm:$0xff] %vm468_vm0, %v6466_v0 }
  0x3c   : > { %545 = vst.msk [vmem:[%s6575_s20 + $0x260] sm:$0xff] %vm468_vm0, %v6466_v0  ;;  %546 = vst.msk [vmem:[%s6575_s20 + $0x268] sm:$0xff] %vm468_vm0, %v6466_v0 }
  0x3d   : > { %547 = vst.msk [vmem:[%s6575_s20 + $0x270] sm:$0xff] %vm468_vm0, %v6466_v0  ;;  %548 = vst.msk [vmem:[%s6575_s20 + $0x278] sm:$0xff] %vm468_vm0, %v6466_v0 }
  0x3e   : > { %549 = vst.msk [vmem:[%s6575_s20 + $0x280] sm:$0xff] %vm468_vm0, %v6466_v0  ;;  %550 = vst.msk [vmem:[%s6575_s20 + $0x288] sm:$0xff] %vm468_vm0, %v6466_v0 }
  0x3f   : > { %551 = vst.msk [vmem:[%s6575_s20 + $0x290] sm:$0xff] %vm468_vm0, %v6466_v0  ;;  %552 = vst.msk [vmem:[%s6575_s20 + $0x298] sm:$0xff] %vm468_vm0, %v6466_v0 }
  0x40   : > { %553 = vst.msk [vmem:[%s6575_s20 + $0x2a0] sm:$0xff] %vm468_vm0, %v6466_v0  ;;  %554 = vst.msk [vmem:[%s6575_s20 + $0x2a8] sm:$0xff] %vm468_vm0, %v6466_v0 }
  0x41   : > { %555 = vst.msk [vmem:[%s6575_s20 + $0x2b0] sm:$0xff] %vm468_vm0, %v6466_v0  ;;  %556 = vst.msk [vmem:[%s6575_s20 + $0x2b8] sm:$0xff] %vm468_vm0, %v6466_v0 }
  0x42   : > { %557 = vst.msk [vmem:[%s6575_s20 + $0x2c0] sm:$0xff] %vm468_vm0, %v6466_v0  ;;  %558 = vst.msk [vmem:[%s6575_s20 + $0x2c8] sm:$0xff] %vm468_vm0, %v6466_v0 }
  0x43   : > { %559 = vst.msk [vmem:[%s6575_s20 + $0x2d0] sm:$0xff] %vm468_vm0, %v6466_v0  ;;  %560 = vst.msk [vmem:[%s6575_s20 + $0x2d8] sm:$0xff] %vm468_vm0, %v6466_v0 }
  0x44   : > { %561 = vst.msk [vmem:[%s6575_s20 + $0x2e0] sm:$0xff] %vm468_vm0, %v6466_v0  ;;  %562 = vst.msk [vmem:[%s6575_s20 + $0x2e8] sm:$0xff] %vm468_vm0, %v6466_v0 }
  0x45   : > { %563 = vst.msk [vmem:[%s6575_s20 + $0x2f0] sm:$0xff] %vm468_vm0, %v6466_v0  ;;  %564 = vst.msk [vmem:[%s6575_s20 + $0x2f8] sm:$0xff] %vm468_vm0, %v6466_v0 }
  0x46   : > { %565 = vst.msk [vmem:[%s6575_s20 + $0x300] sm:$0xff] %vm468_vm0, %v6466_v0  ;;  %566 = vst.msk [vmem:[%s6575_s20 + $0x308] sm:$0xff] %vm468_vm0, %v6466_v0 }
  0x47   : > { %567 = vst.msk [vmem:[%s6575_s20 + $0x310] sm:$0xff] %vm468_vm0, %v6466_v0  ;;  %568 = vst.msk [vmem:[%s6575_s20 + $0x318] sm:$0xff] %vm468_vm0, %v6466_v0 }
  0x48   : > { %569 = vst.msk [vmem:[%s6575_s20 + $0x320] sm:$0xff] %vm468_vm0, %v6466_v0  ;;  %570 = vst.msk [vmem:[%s6575_s20 + $0x328] sm:$0xff] %vm468_vm0, %v6466_v0 }
  0x49   : > { %571 = vst.msk [vmem:[%s6575_s20 + $0x330] sm:$0xff] %vm468_vm0, %v6466_v0  ;;  %572 = vst.msk [vmem:[%s6575_s20 + $0x338] sm:$0xff] %vm468_vm0, %v6466_v0 }
  0x4a   : > { %573 = vst.msk [vmem:[%s6575_s20 + $0x340] sm:$0xff] %vm468_vm0, %v6466_v0  ;;  %574 = vst.msk [vmem:[%s6575_s20 + $0x348] sm:$0xff] %vm468_vm0, %v6466_v0 }
  0x4b   : > { %575 = vst.msk [vmem:[%s6575_s20 + $0x350] sm:$0xff] %vm468_vm0, %v6466_v0  ;;  %576 = vst.msk [vmem:[%s6575_s20 + $0x358] sm:$0xff] %vm468_vm0, %v6466_v0 }
  0x4c   : > { %577 = vst.msk [vmem:[%s6575_s20 + $0x360] sm:$0xff] %vm468_vm0, %v6466_v0  ;;  %578 = vst.msk [vmem:[%s6575_s20 + $0x368] sm:$0xff] %vm468_vm0, %v6466_v0 }
  0x4d   : > { %579 = vst.msk [vmem:[%s6575_s20 + $0x370] sm:$0xff] %vm468_vm0, %v6466_v0  ;;  %580 = vst.msk [vmem:[%s6575_s20 + $0x378] sm:$0xff] %vm468_vm0, %v6466_v0 }
  0x4e   : > { %581 = vst.msk [vmem:[%s6575_s20 + $0x380] sm:$0xff] %vm468_vm0, %v6466_v0  ;;  %582 = vst.msk [vmem:[%s6575_s20 + $0x388] sm:$0xff] %vm468_vm0, %v6466_v0 }
  0x4f   : > { %583 = vst.msk [vmem:[%s6575_s20 + $0x390] sm:$0xff] %vm468_vm0, %v6466_v0  ;;  %584 = vst.msk [vmem:[%s6575_s20 + $0x398] sm:$0xff] %vm468_vm0, %v6466_v0 }
  0x50   : > { %585 = vst.msk [vmem:[%s6575_s20 + $0x3a0] sm:$0xff] %vm468_vm0, %v6466_v0  ;;  %586 = vst.msk [vmem:[%s6575_s20 + $0x3a8] sm:$0xff] %vm468_vm0, %v6466_v0 }
  0x51   : > { %587 = vst.msk [vmem:[%s6575_s20 + $0x3b0] sm:$0xff] %vm468_vm0, %v6466_v0  ;;  %588 = vst.msk [vmem:[%s6575_s20 + $0x3b8] sm:$0xff] %vm468_vm0, %v6466_v0 }
  0x52   : > { %589 = vst.msk [vmem:[%s6575_s20 + $0x3c0] sm:$0xff] %vm468_vm0, %v6466_v0  ;;  %590 = vst.msk [vmem:[%s6575_s20 + $0x3c8] sm:$0xff] %vm468_vm0, %v6466_v0 }
  0x53   : > { %591 = vst.msk [vmem:[%s6575_s20 + $0x3d0] sm:$0xff] %vm468_vm0, %v6466_v0  ;;  %592 = vst.msk [vmem:[%s6575_s20 + $0x3d8] sm:$0xff] %vm468_vm0, %v6466_v0 }
  0x54   : > { %593 = vst.msk [vmem:[%s6575_s20 + $0x3e0] sm:$0xff] %vm468_vm0, %v6466_v0  ;;  %594 = vst.msk [vmem:[%s6575_s20 + $0x3e8] sm:$0xff] %vm468_vm0, %v6466_v0 }
  0x55   : > { %595 = vst.msk [vmem:[%s6575_s20 + $0x3f0] sm:$0xff] %vm468_vm0, %v6466_v0  ;;  %596 = vst.msk [vmem:[%s6575_s20 + $0x3f8] sm:$0xff] %vm468_vm0, %v6466_v0 }
  0x56 PF: > { %v597_v1 = vld [vmem:[%s6580_s14] sm:$0x7]  ;;  %vm679_vm1 = vcmask 1042432   ;;  %v608_v2 = vld [vmem:[%s11229_s2 + $0x10] sm:$0xff]  ;;  %v6467_v4 = vmov 0   ;;  %vm654_vm2 = vcmask 23552  }
  0x57   : > { %v606_v3 = vld [vmem:[%s11229_s2] sm:$0xff]  ;;  %6425 = vset.pattern.permute.xlu1 %v6467_v4  ;;  %6424 = vset.pattern.permute.xlu0 %v6467_v4  ;;  %v599_v6 = vld [vmem:[%s11228_s1 + $0x8] sm:$0xff]  ;;  %v609_v7 = vld [vmem:[%s11229_s2 + $0x18] sm:$0xff]  ;;  %vm1020_vm3 = vcmask 523264   ;;  %s5858_s14 = sshll.u32 %s6448_s25, 7  ;;  %vm5623_vm5 = vcmask 7168  }
  0x58   : > { %v598_v5 = vld [vmem:[%s11228_s1] sm:$0xff]  ;;  %6039 = vmatprep.subr.msk.mxu0 %vm679_vm1, %v597_v1  ;;  %626 = vperm.xlu1 %6425, %v608_v2   ;;  %v600_v8 = vld [vmem:[%s11228_s1 + $0x10] sm:$0xff]  ;;  %v607_v9 = vld [vmem:[%s11229_s2 + $0x8] sm:$0xff] }
  0x59   : > { %616 = vperm.xlu0 %6424, %v606_v3   ;;  %6040 = vmatpush3.msk.msra.mxu0 %vm679_vm1, %v597_v1  ;;  %v601_v10 = vld [vmem:[%s11228_s1 + $0x18] sm:$0xff]  ;;  %v611_v11 = vld [vmem:[%s11229_s2 + $0x28] sm:$0xff]  ;;  %v602_v12 = vld [vmem:[%s11228_s1 + $0x20] sm:$0xff] }
  0x5a   : > { %6041 = vmatprep.mubr.msk.f32.mxu0 %vm654_vm2, %v598_v5  ;;  %v610_v13 = vld [vmem:[%s11229_s2 + $0x20] sm:$0xff]  ;;  %v603_v14 = vld [vmem:[%s11228_s1 + $0x28] sm:$0xff]  ;;  %v613_v15 = vld [vmem:[%s11229_s2 + $0x38] sm:$0xff] }
  0x5b   : > { %6042 = vmatmul.mubr.msk.f32.vlgmr.msra.gmra.mrb[0].mxu0 %vm654_vm2, %v599_v6  ;;  %v604_v16 = vld [vmem:[%s11228_s1 + $0x30] sm:$0xff]  ;;  %v605_v18 = vld [vmem:[%s11228_s1 + $0x38] sm:$0xff]  ;;  %v797_v19 = vld [vmem:[%s11230_s3 + $0x8] sm:$0xff] }
  0x5c   : > { %631 = vperm.xlu1 %6425, %v609_v7   ;;  %6044 = vmatprep.mubr.msk.f32.mxu0 %vm654_vm2, %v600_v8  ;;  %v612_v17 = vld [vmem:[%s11229_s2 + $0x30] sm:$0xff]  ;;  %v796_v20 = vld [vmem:[%s11230_s3] sm:$0xff]  ;;  %v799_v21 = vld [vmem:[%s11230_s3 + $0x18] sm:$0xff] }
  0x5d   : > { %621 = vperm.xlu0 %6424, %v607_v9   ;;  %v798_v22 = vld [vmem:[%s11230_s3 + $0x10] sm:$0xff]  ;;  %v801_v23 = vld [vmem:[%s11230_s3 + $0x28] sm:$0xff]  ;;  %v800_v24 = vld [vmem:[%s11230_s3 + $0x20] sm:$0xff] }
  0x5e   : > { %v803_v25 = vld [vmem:[%s11230_s3 + $0x38] sm:$0xff]  ;;  %v802_v26 = vld [vmem:[%s11230_s3 + $0x30] sm:$0xff]  ;;  %v853_v27 = vld [vmem:[%s11231_s4 + $0x8] sm:$0xff] }
  0x5f   : > { %6045 = vmatmul.mubr.msk.f32.gmra.mrb[2].mxu0 %vm654_vm2, %v601_v10  ;;  %v852_v28 = vld [vmem:[%s11231_s4] sm:$0xff]  ;;  %v855_v29 = vld [vmem:[%s11231_s4 + $0x18] sm:$0xff]  ;;  %v854_v30 = vld [vmem:[%s11231_s4 + $0x10] sm:$0xff] }
  0x60   : > { %641 = vperm.xlu1 %6425, %v611_v11   ;;  %6047 = vmatprep.mubr.msk.f32.mxu0 %vm654_vm2, %v602_v12  ;;  %v857_v31 = vld [vmem:[%s11231_s4 + $0x28] sm:$0xff]  ;;  %v856_v32 = vld [vmem:[%s11231_s4 + $0x20] sm:$0xff]  ;;  %v859_v33 = vld [vmem:[%s11231_s4 + $0x38] sm:$0xff] }
  0x61   : > { %636 = vperm.xlu0 %6424, %v610_v13   ;;  %v858_v34 = vld [vmem:[%s11231_s4 + $0x30] sm:$0xff]  ;;  %v925_v35 = vld [vmem:[%s11233_s6 + $0x8] sm:$0xff]  ;;  %v924_v36 = vld [vmem:[%s11233_s6] sm:$0xff] }
  0x62   : > { %v927_v37 = vld [vmem:[%s11233_s6 + $0x18] sm:$0xff]  ;;  %v926_v38 = vld [vmem:[%s11233_s6 + $0x10] sm:$0xff]  ;;  %v929_v39 = vld [vmem:[%s11233_s6 + $0x28] sm:$0xff] }
  0x63   : > { %6048 = vmatmul.mubr.msk.f32.gmra.mrb[4].mxu0 %vm654_vm2, %v603_v14  ;;  %v928_v40 = vld [vmem:[%s11233_s6 + $0x20] sm:$0xff]  ;;  %v931_v41 = vld [vmem:[%s11233_s6 + $0x38] sm:$0xff]  ;;  %v930_v42 = vld [vmem:[%s11233_s6 + $0x30] sm:$0xff] }
  0x64   : > { %651 = vperm.xlu1 %6425, %v613_v15   ;;  %6050 = vmatprep.mubr.msk.f32.mxu0 %vm654_vm2, %v604_v16  ;;  %v933_v43 = vld [vmem:[%s11233_s6 + $0x48] sm:$0xff]  ;;  %v932_v44 = vld [vmem:[%s11233_s6 + $0x40] sm:$0xff]  ;;  %v935_v45 = vld [vmem:[%s11233_s6 + $0x58] sm:$0xff] }
  0x65   : > { %646 = vperm.xlu0 %6424, %v612_v17   ;;  %v934_v46 = vld [vmem:[%s11233_s6 + $0x50] sm:$0xff]  ;;  %v937_v47 = vld [vmem:[%s11233_s6 + $0x68] sm:$0xff]  ;;  %v936_v48 = vld [vmem:[%s11233_s6 + $0x60] sm:$0xff] }
  0x66   : > { %v939_v49 = vld [vmem:[%s11233_s6 + $0x78] sm:$0xff]  ;;  %v938_v50 = vld [vmem:[%s11233_s6 + $0x70] sm:$0xff]  ;;  %v1231_v51 = vld [vmem:[%s11234_s7 + $0x8] sm:$0xff] }
  0x67   : > { %6051 = vmatmul.mubr.msk.f32.gmra.mrb[6].mxu0 %vm654_vm2, %v605_v18  ;;  %v1230_v52 = vld [vmem:[%s11234_s7] sm:$0xff]  ;;  %v1233_v53 = vld [vmem:[%s11234_s7 + $0x18] sm:$0xff]  ;;  %v1232_v54 = vld [vmem:[%s11234_s7 + $0x10] sm:$0xff] }
  0x68   : > { %811 = vperm.xlu1 %6425, %v797_v19   ;;  %v1235_v55 = vld [vmem:[%s11234_s7 + $0x28] sm:$0xff]  ;;  %v1234_v56 = vld [vmem:[%s11234_s7 + $0x20] sm:$0xff]  ;;  %v1237_v57 = vld [vmem:[%s11234_s7 + $0x38] sm:$0xff] }
  0x69   : > { %806 = vperm.xlu0 %6424, %v796_v20   ;;  %v1236_v58 = vld [vmem:[%s11234_s7 + $0x30] sm:$0xff]  ;;  %v1239_v59 = vld [vmem:[%s11234_s7 + $0x48] sm:$0xff]  ;;  %v1238_v60 = vld [vmem:[%s11234_s7 + $0x40] sm:$0xff] }
  0x6a   : > { %v1241_v61 = vld [vmem:[%s11234_s7 + $0x58] sm:$0xff]  ;;  %v1240_v62 = vld [vmem:[%s11234_s7 + $0x50] sm:$0xff]  ;;  %v1243_v63 = vld [vmem:[%s11234_s7 + $0x68] sm:$0xff] }
  0x6b   : > { %v1242_v0 = vld [vmem:[%s11234_s7 + $0x60] sm:$0xff]  ;;  %v1245_v1 = vld [vmem:[%s11234_s7 + $0x78] sm:$0xff]  ;;  %v1244_v2 = vld [vmem:[%s11234_s7 + $0x70] sm:$0xff] }
  0x6c   : > { %821 = vperm.xlu1 %6425, %v799_v21   ;;  %v1343_v3 = vld [vmem:[%s11235_s8 + $0x8] sm:$0xff]  ;;  %v1342_v4 = vld [vmem:[%s11235_s8] sm:$0xff]  ;;  %v1345_v6 = vld [vmem:[%s11235_s8 + $0x18] sm:$0xff] }
  0x6d   : > { %816 = vperm.xlu0 %6424, %v798_v22   ;;  %v908_v5 = vld [vmem:[%s11232_s5] sm:$0xff]  ;;  %v1344_v7 = vld [vmem:[%s11235_s8 + $0x10] sm:$0xff]  ;;  %v1347_v8 = vld [vmem:[%s11235_s8 + $0x28] sm:$0xff] }
  0x6e   : > { %6069 = vmatprep.mubr.msk.f32.mxu1 %vm1020_vm3, %v908_v5  ;;  %v1346_v9 = vld [vmem:[%s11235_s8 + $0x20] sm:$0xff]  ;;  %v1349_v10 = vld [vmem:[%s11235_s8 + $0x38] sm:$0xff]  ;;  %v1348_v11 = vld [vmem:[%s11235_s8 + $0x30] sm:$0xff] }
  0x6f   : > { %v1351_v12 = vld [vmem:[%s11235_s8 + $0x48] sm:$0xff]  ;;  %v1350_v13 = vld [vmem:[%s11235_s8 + $0x40] sm:$0xff]  ;;  %v1353_v16 = vld [vmem:[%s11235_s8 + $0x58] sm:$0xff] }
  0x70   : > { %831 = vperm.xlu1 %6425, %v801_v23   ;;  %v1352_v17 = vld [vmem:[%s11235_s8 + $0x50] sm:$0xff]  ;;  %v1355_v20 = vld [vmem:[%s11235_s8 + $0x68] sm:$0xff]  ;;  %v1354_v21 = vld [vmem:[%s11235_s8 + $0x60] sm:$0xff] }
  0x71   : > { %826 = vperm.xlu0 %6424, %v800_v24   ;;  %v1357_v24 = vld [vmem:[%s11235_s8 + $0x78] sm:$0xff]  ;;  %v1602_v5 = vld [vmem:[%s11237_s10 + $0xa0] sm:$0xff] }
  0x74   : > { %841 = vperm.xlu1 %6425, %v803_v25   ;;  %v1356_v25 = vld [vmem:[%s11235_s8 + $0x70] sm:$0xff] }
  0x75   : > { %836 = vperm.xlu0 %6424, %v802_v26  }
  0x78   : > { %867 = vperm.xlu1 %6425, %v853_v27  }
  0x79   : > { %862 = vperm.xlu0 %6424, %v852_v28   ;;  %v1583_v28 = vld [vmem:[%s11237_s10 + $0x8] sm:$0xff] }
  0x7c   : > { %877 = vperm.xlu1 %6425, %v855_v29   ;;  %v1582_v29 = vld [vmem:[%s11237_s10] sm:$0xff] }
  0x7d   : > { %872 = vperm.xlu0 %6424, %v854_v30  }
  0x80   : > { %887 = vperm.xlu1 %6425, %v857_v31  }
  0x81   : > { %882 = vperm.xlu0 %6424, %v856_v32   ;;  %v1585_v32 = vld [vmem:[%s11237_s10 + $0x18] sm:$0xff] }
  0x84   : > { %897 = vperm.xlu1 %6425, %v859_v33   ;;  %v1584_v33 = vld [vmem:[%s11237_s10 + $0x10] sm:$0xff] }
  0x85   : > { %892 = vperm.xlu0 %6424, %v858_v34  }
  0x88   : > { %947 = vperm.xlu1 %6425, %v925_v35  }
  0x89   : > { %942 = vperm.xlu0 %6424, %v924_v36   ;;  %v1587_v36 = vld [vmem:[%s11237_s10 + $0x28] sm:$0xff] }
  0x8c   : > { %957 = vperm.xlu1 %6425, %v927_v37   ;;  %v1586_v37 = vld [vmem:[%s11237_s10 + $0x20] sm:$0xff] }
  0x8d   : > { %952 = vperm.xlu0 %6424, %v926_v38  }
  0x90   : > { %967 = vperm.xlu1 %6425, %v929_v39  }
  0x91   : > { %962 = vperm.xlu0 %6424, %v928_v40   ;;  %v1589_v40 = vld [vmem:[%s11237_s10 + $0x38] sm:$0xff] }
  0x94   : > { %977 = vperm.xlu1 %6425, %v931_v41   ;;  %v1588_v41 = vld [vmem:[%s11237_s10 + $0x30] sm:$0xff] }
  0x95   : > { %972 = vperm.xlu0 %6424, %v930_v42  }
  0x98   : > { %987 = vperm.xlu1 %6425, %v933_v43  }
  0x99   : > { %982 = vperm.xlu0 %6424, %v932_v44   ;;  %v1591_v44 = vld [vmem:[%s11237_s10 + $0x48] sm:$0xff] }
  0x9c   : > { %997 = vperm.xlu1 %6425, %v935_v45   ;;  %v1590_v45 = vld [vmem:[%s11237_s10 + $0x40] sm:$0xff] }
  0x9d   : > { %992 = vperm.xlu0 %6424, %v934_v46  }
  0xa0   : > { %1007 = vperm.xlu1 %6425, %v937_v47  }
  0xa1   : > { %1002 = vperm.xlu0 %6424, %v936_v48   ;;  %v1593_v48 = vld [vmem:[%s11237_s10 + $0x58] sm:$0xff] }
  0xa4   : > { %1017 = vperm.xlu1 %6425, %v939_v49   ;;  %v1592_v49 = vld [vmem:[%s11237_s10 + $0x50] sm:$0xff] }
  0xa5   : > { %1012 = vperm.xlu0 %6424, %v938_v50  }
  0xa8   : > { %1253 = vperm.xlu1 %6425, %v1231_v51  }
  0xa9   : > { %1248 = vperm.xlu0 %6424, %v1230_v52   ;;  %v1595_v52 = vld [vmem:[%s11237_s10 + $0x68] sm:$0xff] }
  0xac   : > { %1263 = vperm.xlu1 %6425, %v1233_v53   ;;  %v1594_v53 = vld [vmem:[%s11237_s10 + $0x60] sm:$0xff] }
  0xad   : > { %1258 = vperm.xlu0 %6424, %v1232_v54  }
  0xb0   : > { %1273 = vperm.xlu1 %6425, %v1235_v55  }
  0xb1   : > { %1268 = vperm.xlu0 %6424, %v1234_v56   ;;  %v1597_v56 = vld [vmem:[%s11237_s10 + $0x78] sm:$0xff] }
  0xb4   : > { %1283 = vperm.xlu1 %6425, %v1237_v57   ;;  %v1596_v57 = vld [vmem:[%s11237_s10 + $0x70] sm:$0xff] }
  0xb5   : > { %1278 = vperm.xlu0 %6424, %v1236_v58  }
  0xb8   : > { %1293 = vperm.xlu1 %6425, %v1239_v59  }
  0xb9   : > { %1288 = vperm.xlu0 %6424, %v1238_v60   ;;  %v1599_v60 = vld [vmem:[%s11237_s10 + $0x88] sm:$0xff] }
  0xbc   : > { %1303 = vperm.xlu1 %6425, %v1241_v61   ;;  %v1598_v61 = vld [vmem:[%s11237_s10 + $0x80] sm:$0xff] }
  0xbd   : > { %1298 = vperm.xlu0 %6424, %v1240_v62  }
  0xc0   : > { %1313 = vperm.xlu1 %6425, %v1243_v63  }
  0xc1   : > { %1308 = vperm.xlu0 %6424, %v1242_v0   ;;  %v1601_v0 = vld [vmem:[%s11237_s10 + $0x98] sm:$0xff] }
  0xc4   : > { %1323 = vperm.xlu1 %6425, %v1245_v1   ;;  %v1600_v1 = vld [vmem:[%s11237_s10 + $0x90] sm:$0xff] }
  0xc5   : > { %1318 = vperm.xlu0 %6424, %v1244_v2  }
  0xc8   : > { %1365 = vperm.xlu1 %6425, %v1343_v3  }
  0xc9   : > { %1360 = vperm.xlu0 %6424, %v1342_v4   ;;  %v1603_v4 = vld [vmem:[%s11237_s10 + $0xa8] sm:$0xff] }
  0xcc   : > { %1375 = vperm.xlu1 %6425, %v1345_v6  }
  0xcd   : > { %1370 = vperm.xlu0 %6424, %v1344_v7  }
  0xd0   : > { %1385 = vperm.xlu1 %6425, %v1347_v8   ;;  %v1605_v8 = vld [vmem:[%s11237_s10 + $0xb8] sm:$0xff] }
  0xd1   : > { %1380 = vperm.xlu0 %6424, %v1346_v9   ;;  %v1604_v9 = vld [vmem:[%s11237_s10 + $0xb0] sm:$0xff] }
  0xd4   : > { %1395 = vperm.xlu1 %6425, %v1349_v10  }
  0xd5   : > { %1390 = vperm.xlu0 %6424, %v1348_v11  }
  0xd7   : > { %v7202_v14 = vpop.permute.xlu1 %626 }
  0xd8   : > { %v7204_v15 = vpop.permute.xlu0 %616  ;;  %1405 = vperm.xlu1 %6425, %v1351_v12   ;;  %v1607_v12 = vld [vmem:[%s11237_s10 + $0xc8] sm:$0xff] }
  0xd9   : > { %1400 = vperm.xlu0 %6424, %v1350_v13   ;;  %v1606_v13 = vld [vmem:[%s11237_s10 + $0xc0] sm:$0xff] }
  0xdb   : > { %v7212_v18 = vpop.permute.xlu1 %631 }
  0xdc   : > { %v7214_v19 = vpop.permute.xlu0 %621  ;;  %1415 = vperm.xlu1 %6425, %v1353_v16  }
  0xdd   : > { %1410 = vperm.xlu0 %6424, %v1352_v17  }
  0xdf   : > { %v7222_v22 = vpop.permute.xlu1 %641 }
  0xe0   : > { %v7224_v23 = vpop.permute.xlu0 %636  ;;  %1425 = vperm.xlu1 %6425, %v1355_v20   ;;  %v1609_v20 = vld [vmem:[%s11237_s10 + $0xd8] sm:$0xff] }
  0xe1   : > { %1420 = vperm.xlu0 %6424, %v1354_v21   ;;  %v1608_v21 = vld [vmem:[%s11237_s10 + $0xd0] sm:$0xff] }
  0xe3   : > { %v7232_v26 = vpop.permute.xlu1 %651 }
  0xe4   : > { %v7234_v27 = vpop.permute.xlu0 %646  ;;  %1435 = vperm.xlu1 %6425, %v1357_v24  }
  0xe5   : > { %1430 = vperm.xlu0 %6424, %v1356_v25  }
  0xe7   : > { %v7242_v30 = vpop.permute.xlu1 %811 }
  0xe8   : > { %v7244_v31 = vpop.permute.xlu0 %806  ;;  %1717 = vperm.xlu1 %6425, %v1583_v28   ;;  %v1611_v28 = vld [vmem:[%s11237_s10 + $0xe8] sm:$0xff] }
  0xe9   : > { %1712 = vperm.xlu0 %6424, %v1582_v29   ;;  %v1610_v29 = vld [vmem:[%s11237_s10 + $0xe0] sm:$0xff] }
  0xeb   : > { %v7252_v34 = vpop.permute.xlu1 %821 }
  0xec   : > { %v7254_v35 = vpop.permute.xlu0 %816  ;;  %1727 = vperm.xlu1 %6425, %v1585_v32  }
  0xed   : > { %1722 = vperm.xlu0 %6424, %v1584_v33  }
  0xef   : > { %v7262_v38 = vpop.permute.xlu1 %831 }
  0xf0   : > { %v7264_v39 = vpop.permute.xlu0 %826  ;;  %1737 = vperm.xlu1 %6425, %v1587_v36   ;;  %v1613_v36 = vld [vmem:[%s11237_s10 + $0xf8] sm:$0xff] }
  0xf1   : > { %1732 = vperm.xlu0 %6424, %v1586_v37   ;;  %v1612_v37 = vld [vmem:[%s11237_s10 + $0xf0] sm:$0xff] }
  0xf3   : > { %v7272_v42 = vpop.permute.xlu1 %841 }
  0xf4   : > { %v7274_v43 = vpop.permute.xlu0 %836  ;;  %1747 = vperm.xlu1 %6425, %v1589_v40  }
  0xf5   : > { %1742 = vperm.xlu0 %6424, %v1588_v41  }
  0xf7   : > { %v7282_v46 = vpop.permute.xlu1 %867 }
  0xf8   : > { %v7284_v47 = vpop.permute.xlu0 %862  ;;  %1757 = vperm.xlu1 %6425, %v1591_v44   ;;  %v1615_v44 = vld [vmem:[%s11237_s10 + $0x108] sm:$0xff] }
  0xf9   : > { %1752 = vperm.xlu0 %6424, %v1590_v45   ;;  %v1614_v45 = vld [vmem:[%s11237_s10 + $0x100] sm:$0xff] }
  0xfb   : > { %v7292_v50 = vpop.permute.xlu1 %877 }
  0xfc   : > { %v7294_v51 = vpop.permute.xlu0 %872  ;;  %1767 = vperm.xlu1 %6425, %v1593_v48  }
  0xfd   : > { %1762 = vperm.xlu0 %6424, %v1592_v49  }
  0xff   : > { %v7302_v54 = vpop.permute.xlu1 %887 }
 0x100   : > { %v7304_v55 = vpop.permute.xlu0 %882  ;;  %1777 = vperm.xlu1 %6425, %v1595_v52   ;;  %v1617_v52 = vld [vmem:[%s11237_s10 + $0x118] sm:$0xff] }
 0x101   : > { %1772 = vperm.xlu0 %6424, %v1594_v53   ;;  %v1616_v53 = vld [vmem:[%s11237_s10 + $0x110] sm:$0xff] }
 0x103   : > { %v7312_v58 = vpop.permute.xlu1 %897 }
 0x104   : > { %v7314_v59 = vpop.permute.xlu0 %892  ;;  %1787 = vperm.xlu1 %6425, %v1597_v56  }
 0x105   : > { %1782 = vperm.xlu0 %6424, %v1596_v57  }
 0x107   : > { %v7322_v62 = vpop.permute.xlu1 %947 }
 0x108   : > { %v7324_v63 = vpop.permute.xlu0 %942  ;;  %1797 = vperm.xlu1 %6425, %v1599_v60   ;;  %v1619_v60 = vld [vmem:[%s11237_s10 + $0x128] sm:$0xff] }
 0x109   : > { %1792 = vperm.xlu0 %6424, %v1598_v61  }
 0x10b   : > { %v7332_v2 = vpop.permute.xlu1 %957 }
 0x10c   : > { %v7334_v3 = vpop.permute.xlu0 %952  ;;  %1807 = vperm.xlu1 %6425, %v1601_v0   ;;  %v1618_v0 = vld [vmem:[%s11237_s10 + $0x120] sm:$0xff] }
 0x10d   : > { %1802 = vperm.xlu0 %6424, %v1600_v1  }
 0x10f   : > { %v7342_v6 = vpop.permute.xlu1 %967 }
 0x110   : > { %v7344_v7 = vpop.permute.xlu0 %962  ;;  %1817 = vperm.xlu1 %6425, %v1603_v4  }
 0x111   : > { %1812 = vperm.xlu0 %6424, %v1602_v5  }
 0x113   : > { %v7352_v10 = vpop.permute.xlu1 %977 }
 0x114   : > { %v7354_v11 = vpop.permute.xlu0 %972  ;;  %1827 = vperm.xlu1 %6425, %v1605_v8  }
 0x115   : > { %1822 = vperm.xlu0 %6424, %v1604_v9  }
 0x117   : > { %v7362_v16 = vpop.permute.xlu1 %987 }
 0x118   : > { %v7364_v17 = vpop.permute.xlu0 %982  ;;  %1837 = vperm.xlu1 %6425, %v1607_v12  }
 0x119   : > { %1832 = vperm.xlu0 %6424, %v1606_v13   ;;  %v1621_v13 = vld [vmem:[%s11237_s10 + $0x138] sm:$0xff] }
 0x11b   : > { %v7372_v24 = vpop.permute.xlu1 %997 }
 0x11c   : > { %v7374_v25 = vpop.permute.xlu0 %992  ;;  %1847 = vperm.xlu1 %6425, %v1609_v20  }
 0x11d   : > { %1842 = vperm.xlu0 %6424, %v1608_v21  }
 0x11f   : > { %v7382_v32 = vpop.permute.xlu1 %1007 }
 0x120   : > { %v7384_v33 = vpop.permute.xlu0 %1002  ;;  %1857 = vperm.xlu1 %6425, %v1611_v28  }
 0x121   : > { %1852 = vperm.xlu0 %6424, %v1610_v29  }
 0x123   : > { %v7392_v40 = vpop.permute.xlu1 %1017 }
 0x124   : > { %v7394_v41 = vpop.permute.xlu0 %1012  ;;  %1867 = vperm.xlu1 %6425, %v1613_v36  }
 0x125   : > { %1862 = vperm.xlu0 %6424, %v1612_v37  }
 0x127   : > { %v7402_v48 = vpop.permute.xlu1 %1253 }
 0x128   : > { %v7404_v49 = vpop.permute.xlu0 %1248  ;;  %1877 = vperm.xlu1 %6425, %v1615_v44  }
 0x129   : > { %1872 = vperm.xlu0 %6424, %v1614_v45  }
 0x12b   : > { %v7412_v56 = vpop.permute.xlu1 %1263 }
 0x12c   : > { %v7414_v57 = vpop.permute.xlu0 %1258  ;;  %1887 = vperm.xlu1 %6425, %v1617_v52  }
 0x12d   : > { %1882 = vperm.xlu0 %6424, %v1616_v53   ;;  %v1623_v53 = vld [vmem:[%s11237_s10 + $0x148] sm:$0xff] }
 0x12e   : > { %v6043_v61 = vpop.f32.mrb[0].mxu0 }
 0x12f   : > { %v755_v1 = vadd.f32 %v6043_v61, %v7214_v19  ;;  %v749_v4 = vpop.f32.mrb[1].mxu0  ;;  %v7423_v5 = vpop.permute.xlu1 %1273  ;;  %v1620_v19 = vld [vmem:[%s11237_s10 + $0x130] sm:$0xff]  ;;  %v1622_v61 = vld [vmem:[%s11237_s10 + $0x140] sm:$0xff] }
 0x130   : > { %v750_v8 = vadd.f32 %v749_v4, %v7204_v15  ;;  %v7426_v9 = vpop.permute.xlu0 %1268  ;;  %1897 = vperm.xlu1 %6425, %v1619_v60  }
 0x131   : > { %v789_v12 = vmax.f32 %v755_v1, 0.0  ;;  %1892 = vperm.xlu0 %6424, %v1618_v0  }
 0x132   : > { %v788_v20 = vmax.f32 %v750_v8, 0.0  ;;  %v6046_v21 = vpop.f32.mrb[2].mxu0 }
 0x133   : > { %v845_v28 = vmul.f32 %v7242_v30, %v789_v12  ;;  %v765_v29 = vadd.f32 %v6046_v21, %v7212_v18  ;;  %v759_v15 = vpop.f32.mrb[3].mxu0  ;;  %v7436_v36 = vpop.permute.xlu1 %1283 }
 0x134   : > { %v844_v37 = vmul.f32 %v7244_v31, %v788_v20  ;;  %v760_v44 = vadd.f32 %v759_v15, %v7202_v14  ;;  %v7440_v45 = vpop.permute.xlu0 %1278  ;;  %1907 = vperm.xlu1 %6425, %v1621_v13  }
 0x135   : > { %v791_v52 = vmax.f32 %v765_v29, 0.0  ;;  %1902 = vperm.xlu0 %6424, %v1620_v19   ;;  %v901_v30 = vadd.f32 %v7282_v46, %v845_v28 }
 0x136   : > { %v790_v60 = vmax.f32 %v760_v44, 0.0  ;;  %v6049_v18 = vpop.f32.mrb[4].mxu0  ;;  %v900_v31 = vadd.f32 %v7284_v47, %v844_v37 }
 0x137   : > { %v847_v14 = vmul.f32 %v7252_v34, %v791_v52  ;;  %v775_v0 = vadd.f32 %v6049_v18, %v7222_v22  ;;  %v769_v1 = vpop.f32.mrb[5].mxu0  ;;  %v7452_v4 = vpop.permute.xlu1 %1293  ;;  %v1625_v34 = vld [vmem:[%s11237_s10 + $0x158] sm:$0xff] }
 0x138   : > { %v846_v8 = vmul.f32 %v7254_v35, %v790_v60  ;;  %v770_v12 = vadd.f32 %v769_v1, %v7224_v23  ;;  %v7456_v46 = vpop.permute.xlu0 %1288  ;;  %1917 = vperm.xlu1 %6425, %v1623_v53   ;;  %v6317_v13 = vpack.c.bf16 %v901_v30, %v900_v31  ;;  %v1624_v23 = vld [vmem:[%s11237_s10 + $0x150] sm:$0xff] }
 0x139   : > { %v903_v20 = vadd.f32 %v7292_v50, %v847_v14  ;;  %v793_v21 = vmax.f32 %v775_v0, 0.0  ;;  %1912 = vperm.xlu0 %6424, %v1622_v61  }
 0x13a   : > { %v902_v22 = vadd.f32 %v7294_v51, %v846_v8  ;;  %v792_v47 = vmax.f32 %v770_v12, 0.0  ;;  %v6052_v19 = vpop.f32.mrb[6].mxu0  ;;  %6318 = vmatprep.subr.bf16.mxu1 %v6317_v13  ;;  %v909_v12 = vld [vmem:[%s11232_s5 + $0x8] sm:$0xff] }
 0x13b   : > { %v849_v35 = vmul.f32 %v7262_v38, %v793_v21  ;;  %v785_v28 = vadd.f32 %v6052_v19, %v7232_v26  ;;  %v779_v50 = vpop.f32.mrb[7].mxu0  ;;  %6320 = vmatpush3.bf16.msra.mxu1 %v6317_v13  ;;  %v7468_v29 = vpop.permute.xlu1 %1303  ;;  %v1627_v26 = vld [vmem:[%s11237_s10 + $0x168] sm:$0xff]  ;;  %v1633_v21 = vld [vmem:[%s11237_s10 + $0x198] sm:$0xff] }
 0x13c   : > { %v848_v15 = vmul.f32 %v7264_v39, %v792_v47  ;;  %v780_v37 = vadd.f32 %v779_v50, %v7234_v27  ;;  %v7472_v51 = vpop.permute.xlu0 %1298  ;;  %1927 = vperm.xlu1 %6425, %v1625_v34   ;;  %v6321_v44 = vpack.c.bf16 %v903_v20, %v902_v22  ;;  %v1626_v27 = vld [vmem:[%s11237_s10 + $0x160] sm:$0xff]  ;;  %v910_v20 = vld [vmem:[%s11232_s5 + $0x10] sm:$0xff]  ;;  %v911_v47 = vld [vmem:[%s11232_s5 + $0x18] sm:$0xff] }
 0x13d   : > { %v905_v52 = vadd.f32 %v7302_v54, %v849_v35  ;;  %v795_v53 = vmax.f32 %v785_v28, 0.0  ;;  %1922 = vperm.xlu0 %6424, %v1624_v23   ;;  %v1632_v34 = vld [vmem:[%s11237_s10 + $0x190] sm:$0xff]  ;;  %v912_v23 = vld [vmem:[%s11232_s5 + $0x20] sm:$0xff]  ;;  %v1635_v35 = vld [vmem:[%s11237_s10 + $0x1a8] sm:$0xff] }
 0x13e   : > { %v904_v38 = vadd.f32 %v7304_v55, %v848_v15  ;;  %v794_v30 = vmax.f32 %v780_v37, 0.0  ;;  %6322 = vmatprep.subr.bf16.mxu1 %v6321_v44  ;;  %v1629_v55 = vld [vmem:[%s11237_s10 + $0x178] sm:$0xff]  ;;  %v1634_v28 = vld [vmem:[%s11237_s10 + $0x1a0] sm:$0xff]  ;;  %v913_v15 = vld [vmem:[%s11232_s5 + $0x28] sm:$0xff] }
 0x13f   : > { %v851_v39 = vmul.f32 %v7272_v42, %v795_v53  ;;  %6324 = vmatpush3.bf16.msra.mxu1 %v6321_v44  ;;  %v7483_v60 = vpop.permute.xlu1 %1313  ;;  %v1628_v42 = vld [vmem:[%s11237_s10 + $0x170] sm:$0xff] }
 0x140   : > { %v850_v54 = vmul.f32 %v7274_v43, %v794_v30  ;;  %v7486_v18 = vpop.permute.xlu0 %1308  ;;  %1937 = vperm.xlu1 %6425, %v1627_v26   ;;  %v6325_v61 = vpack.c.bf16 %v905_v52, %v904_v38  ;;  %v914_v44 = vld [vmem:[%s11232_s5 + $0x30] sm:$0xff]  ;;  %v1637_v52 = vld [vmem:[%s11237_s10 + $0x1b8] sm:$0xff] }
 0x141   : > { %v907_v31 = vadd.f32 %v7312_v58, %v851_v39  ;;  %1932 = vperm.xlu0 %6424, %v1626_v27   ;;  %v1631_v58 = vld [vmem:[%s11237_s10 + $0x188] sm:$0xff]  ;;  %v1636_v53 = vld [vmem:[%s11237_s10 + $0x1b0] sm:$0xff]  ;;  %v915_v38 = vld [vmem:[%s11232_s5 + $0x38] sm:$0xff] }
 0x142   : > { %v906_v14 = vadd.f32 %v7314_v59, %v850_v54  ;;  %6326 = vmatprep.subr.bf16.mxu1 %v6325_v61  ;;  %v1630_v59 = vld [vmem:[%s11237_s10 + $0x180] sm:$0xff]  ;;  %v1639_v39 = vld [vmem:[%s11237_s10 + $0x1c8] sm:$0xff] }
 0x143   : > { %6328 = vmatpush3.bf16.msra.mxu1 %v6325_v61  ;;  %v7496_v43 = vpop.permute.xlu1 %1323  ;;  %v916_v27 = vld [vmem:[%s11232_s5 + $0x40] sm:$0xff] }
 0x144   : > { %v7498_v0 = vpop.permute.xlu0 %1318  ;;  %1947 = vperm.xlu1 %6425, %v1629_v55   ;;  %v6329_v1 = vpack.c.bf16 %v907_v31, %v906_v14  ;;  %v1638_v54 = vld [vmem:[%s11237_s10 + $0x1c0] sm:$0xff]  ;;  %v917_v31 = vld [vmem:[%s11232_s5 + $0x48] sm:$0xff]  ;;  %v918_v14 = vld [vmem:[%s11232_s5 + $0x50] sm:$0xff] }
 0x145   : > { %1942 = vperm.xlu0 %6424, %v1628_v42   ;;  %v1641_v42 = vld [vmem:[%s11237_s10 + $0x1d8] sm:$0xff] }
 0x146   : > { %6330 = vmatprep.subr.bf16.mxu1 %v6329_v1 }
 0x147   : > { %6332 = vmatpush3.bf16.msra.mxu1 %v6329_v1  ;;  %v7506_v8 = vpop.permute.xlu1 %1365  ;;  %v1640_v1 = vld [vmem:[%s11237_s10 + $0x1d0] sm:$0xff] }
 0x148   : > { %v7511_v13 = vpop.permute.xlu0 %1360  ;;  %1957 = vperm.xlu1 %6425, %v1631_v58  }
 0x149   : > { %1952 = vperm.xlu0 %6424, %v1630_v59   ;;  %v919_v59 = vld [vmem:[%s11232_s5 + $0x58] sm:$0xff] }
 0x14a   : > { %6070 = vmatmul.mubr.msk.f32.vlgmr.msra.gmra.mrb[0].mxu1 %vm1020_vm3, %v909_v12 }
 0x14b   : > { %v7523_v22 = vpop.permute.xlu1 %1375  ;;  %6072 = vmatprep.mubr.msk.f32.mxu1 %vm1020_vm3, %v910_v20  ;;  %v920_v20 = vld [vmem:[%s11232_s5 + $0x60] sm:$0xff] }
 0x14c   : > { %v7529_v19 = vpop.permute.xlu0 %1370  ;;  %1967 = vperm.xlu1 %6425, %v1633_v21   ;;  %v1643_v21 = vld [vmem:[%s11237_s10 + $0x1e8] sm:$0xff] }
 0x14d   : > { %1962 = vperm.xlu0 %6424, %v1632_v34   ;;  %v1642_v34 = vld [vmem:[%s11237_s10 + $0x1e0] sm:$0xff] }
 0x14e   : > { %6073 = vmatmul.mubr.msk.f32.gmra.mrb[2].mxu1 %vm1020_vm3, %v911_v47 }
 0x14f   : > { %v7541_v50 = vpop.permute.xlu1 %1385  ;;  %6075 = vmatprep.mubr.msk.f32.mxu1 %vm1020_vm3, %v912_v23  ;;  %v921_v23 = vld [vmem:[%s11232_s5 + $0x68] sm:$0xff] }
 0x150   : > { %v7547_v37 = vpop.permute.xlu0 %1380  ;;  %1977 = vperm.xlu1 %6425, %v1635_v35  }
 0x151   : > { %1972 = vperm.xlu0 %6424, %v1634_v28   ;;  %v922_v28 = vld [vmem:[%s11232_s5 + $0x70] sm:$0xff] }
 0x152   : > { %6076 = vmatmul.mubr.msk.f32.gmra.mrb[4].mxu1 %vm1020_vm3, %v913_v15  ;;  %v1645_v15 = vld [vmem:[%s11237_s10 + $0x1f8] sm:$0xff] }
 0x153   : > { %v7559_v26 = vpop.permute.xlu1 %1395  ;;  %6078 = vmatprep.mubr.msk.f32.mxu1 %vm1020_vm3, %v914_v44  ;;  %v1644_v44 = vld [vmem:[%s11237_s10 + $0x1f0] sm:$0xff] }
 0x154   : > { %v7565_v30 = vpop.permute.xlu0 %1390  ;;  %1987 = vperm.xlu1 %6425, %v1637_v52  }
 0x155   : > { %1982 = vperm.xlu0 %6424, %v1636_v53   ;;  %v923_v53 = vld [vmem:[%s11232_s5 + $0x78] sm:$0xff] }
 0x156   : > { %6079 = vmatmul.mubr.msk.f32.gmra.mrb[6].mxu1 %vm1020_vm3, %v915_v38 }
 0x157   : > { %v7577_v61 = vpop.permute.xlu1 %1405  ;;  %6081 = vmatprep.mubr.msk.f32.mxu1 %vm1020_vm3, %v916_v27  ;;  %v1647_v27 = vld [vmem:[%s11237_s10 + $0x208] sm:$0xff] }
 0x158   : > { %v7583_v55 = vpop.permute.xlu0 %1400  ;;  %1997 = vperm.xlu1 %6425, %v1639_v39   ;;  %v1646_v39 = vld [vmem:[%s11237_s10 + $0x200] sm:$0xff] }
 0x159   : > { %1992 = vperm.xlu0 %6424, %v1638_v54  }
 0x15a   : > { %6082 = vmatmul.mubr.msk.f32.gmra.mrb[8].mxu1 %vm1020_vm3, %v917_v31 }
 0x15b   : > { %v7595_v58 = vpop.permute.xlu1 %1415  ;;  %6084 = vmatprep.mubr.msk.f32.mxu1 %vm1020_vm3, %v918_v14  ;;  %v1649_v14 = vld [vmem:[%s11237_s10 + $0x218] sm:$0xff] }
 0x15c   : > { %v7601_v12 = vpop.permute.xlu0 %1410  ;;  %2007 = vperm.xlu1 %6425, %v1641_v42   ;;  %v1648_v42 = vld [vmem:[%s11237_s10 + $0x210] sm:$0xff] }
 0x15d   : > { %2002 = vperm.xlu0 %6424, %v1640_v1  }
 0x15e   : > { %6085 = vmatmul.mubr.msk.f32.gmra.mrb[10].mxu1 %vm1020_vm3, %v919_v59 }
 0x15f   : > { %v7613_v47 = vpop.permute.xlu1 %1425  ;;  %6087 = vmatprep.mubr.msk.f32.mxu1 %vm1020_vm3, %v920_v20  ;;  %v1651_v20 = vld [vmem:[%s11237_s10 + $0x228] sm:$0xff] }
 0x160   : > { %v7619_v35 = vpop.permute.xlu0 %1420  ;;  %2017 = vperm.xlu1 %6425, %v1643_v21   ;;  %v1650_v21 = vld [vmem:[%s11237_s10 + $0x220] sm:$0xff] }
 0x161   : > { %2012 = vperm.xlu0 %6424, %v1642_v34  }
 0x162   : > { %6088 = vmatmul.mubr.msk.f32.gmra.mrb[12].mxu1 %vm1020_vm3, %v921_v23 }
 0x163   : > { %v7631_v52 = vpop.permute.xlu1 %1435  ;;  %6090 = vmatprep.mubr.msk.f32.mxu1 %vm1020_vm3, %v922_v28  ;;  %v1653_v28 = vld [vmem:[%s11237_s10 + $0x238] sm:$0xff] }
 0x164   : > { %v7637_v38 = vpop.permute.xlu0 %1430  ;;  %2027 = vperm.xlu1 %6425, %v1645_v15   ;;  %v1652_v15 = vld [vmem:[%s11237_s10 + $0x230] sm:$0xff] }
 0x165   : > { %2022 = vperm.xlu0 %6424, %v1644_v44  }
 0x166   : > { %6091 = vmatmul.mubr.msk.f32.gmra.mrb[14].mxu1 %vm1020_vm3, %v923_v53 }
 0x167   : > { %v7646_v54 = vpop.permute.xlu1 %1717 }
 0x168   : > { %v7648_v31 = vpop.permute.xlu0 %1712  ;;  %2037 = vperm.xlu1 %6425, %v1647_v27   ;;  %v1655_v27 = vld [vmem:[%s11237_s10 + $0x248] sm:$0xff] }
 0x169   : > { %2032 = vperm.xlu0 %6424, %v1646_v39   ;;  %v1654_v39 = vld [vmem:[%s11237_s10 + $0x240] sm:$0xff] }
 0x16b   : > { %v7656_v1 = vpop.permute.xlu1 %1727 }
 0x16c   : > { %11242 = vst [vmem:[#allocation3_spill] sm:$0xff] %v7656_v1  ;;  %v7658_v59 = vpop.permute.xlu0 %1722  ;;  %2047 = vperm.xlu1 %6425, %v1649_v14  }
 0x16d   : > { %2042 = vperm.xlu0 %6424, %v1648_v42  }
 0x16f   : > { %v7666_v34 = vpop.permute.xlu1 %1737 }
 0x170   : > { %11243 = vst [vmem:[#allocation4_spill] sm:$0xff] %v7666_v34  ;;  %v7668_v23 = vpop.permute.xlu0 %1732  ;;  %2057 = vperm.xlu1 %6425, %v1651_v20   ;;  %v1657_v20 = vld [vmem:[%s11237_s10 + $0x258] sm:$0xff] }
 0x171   : > { %11244 = vst [vmem:[#allocation5_spill] sm:$0xff] %v7668_v23  ;;  %2052 = vperm.xlu0 %6424, %v1650_v21   ;;  %v1656_v21 = vld [vmem:[%s11237_s10 + $0x250] sm:$0xff] }
 0x173   : > { %v7676_v44 = vpop.permute.xlu1 %1747 }
 0x174   : > { %11245 = vst [vmem:[#allocation6_spill] sm:$0xff] %v7676_v44  ;;  %v7678_v53 = vpop.permute.xlu0 %1742  ;;  %2067 = vperm.xlu1 %6425, %v1653_v28  }
 0x175   : > { %11246 = vst [vmem:[#allocation7_spill] sm:$0xff] %v7678_v53  ;;  %2062 = vperm.xlu0 %6424, %v1652_v15  }
 0x177   : > { %v7686_v14 = vpop.permute.xlu1 %1757 }
 0x178   : > { %11247 = vst [vmem:[#allocation8_spill] sm:$0xff] %v7686_v14  ;;  %v7688_v42 = vpop.permute.xlu0 %1752  ;;  %2077 = vperm.xlu1 %6425, %v1655_v27   ;;  %v1659_v14 = vld [vmem:[%s11237_s10 + $0x268] sm:$0xff]  ;;  %v1658_v27 = vld [vmem:[%s11237_s10 + $0x260] sm:$0xff] }
 0x179   : > { %11248 = vst [vmem:[#allocation9_spill] sm:$0xff] %v7688_v42  ;;  %2072 = vperm.xlu0 %6424, %v1654_v39  }
 0x17b   : > { %v7696_v28 = vpop.permute.xlu1 %1767 }
 0x17c   : > { %11249 = vst [vmem:[#allocation10_spill] sm:$0xff] %v7696_v28  ;;  %v7698_v15 = vpop.permute.xlu0 %1762  ;;  %2087 = vperm.xlu1 %6425, %v1657_v20   ;;  %v1661_v28 = vld [vmem:[%s11237_s10 + $0x278] sm:$0xff]  ;;  %v1660_v20 = vld [vmem:[%s11237_s10 + $0x270] sm:$0xff] }
 0x17d   : > { %11250 = vst [vmem:[#allocation11_spill] sm:$0xff] %v7698_v15  ;;  %2082 = vperm.xlu0 %6424, %v1656_v21  }
 0x17f   : > { %v7706_v39 = vpop.permute.xlu1 %1777 }
 0x180   : > { %11251 = vst [vmem:[#allocation12_spill] sm:$0xff] %v7706_v39  ;;  %v7708_v44 = vpop.permute.xlu0 %1772  ;;  %2097 = vperm.xlu1 %6425, %v1659_v14   ;;  %v1663_v39 = vld [vmem:[%s11237_s10 + $0x288] sm:$0xff]  ;;  %v1662_v14 = vld [vmem:[%s11237_s10 + $0x280] sm:$0xff] }
 0x181   : > { %11252 = vst [vmem:[#allocation13_spill] sm:$0xff] %v7708_v44  ;;  %2092 = vperm.xlu0 %6424, %v1658_v27  }
 0x183   : > { %v7716_v21 = vpop.permute.xlu1 %1787 }
 0x184   : > { %11253 = vst [vmem:[#allocation14_spill] sm:$0xff] %v7716_v21  ;;  %v7718_v15 = vpop.permute.xlu0 %1782  ;;  %2107 = vperm.xlu1 %6425, %v1661_v28   ;;  %v1665_v21 = vld [vmem:[%s11237_s10 + $0x298] sm:$0xff]  ;;  %v1664_v28 = vld [vmem:[%s11237_s10 + $0x290] sm:$0xff] }
 0x185   : > { %11254 = vst [vmem:[#allocation15_spill] sm:$0xff] %v7718_v15  ;;  %2102 = vperm.xlu0 %6424, %v1660_v20  }
 0x187   : > { %v7726_v27 = vpop.permute.xlu1 %1797 }
 0x188   : > { %11255 = vst [vmem:[#allocation16_spill] sm:$0xff] %v7726_v27  ;;  %v7728_v44 = vpop.permute.xlu0 %1792  ;;  %2117 = vperm.xlu1 %6425, %v1663_v39   ;;  %v1667_v27 = vld [vmem:[%s11237_s10 + $0x2a8] sm:$0xff]  ;;  %v1666_v39 = vld [vmem:[%s11237_s10 + $0x2a0] sm:$0xff] }
 0x189   : > { %11256 = vst [vmem:[#allocation17_spill] sm:$0xff] %v7728_v44  ;;  %2112 = vperm.xlu0 %6424, %v1662_v14  }
 0x18b   : > { %v7736_v20 = vpop.permute.xlu1 %1807 }
 0x18c   : > { %11257 = vst [vmem:[#allocation18_spill] sm:$0xff] %v7736_v20  ;;  %v7738_v15 = vpop.permute.xlu0 %1802  ;;  %2127 = vperm.xlu1 %6425, %v1665_v21   ;;  %v1669_v20 = vld [vmem:[%s11237_s10 + $0x2b8] sm:$0xff]  ;;  %v1668_v21 = vld [vmem:[%s11237_s10 + $0x2b0] sm:$0xff] }
 0x18d   : > { %11258 = vst [vmem:[#allocation19_spill] sm:$0xff] %v7738_v15  ;;  %2122 = vperm.xlu0 %6424, %v1664_v28  }
 0x18f   : > { %v7746_v14 = vpop.permute.xlu1 %1817 }
 0x190   : > { %11259 = vst [vmem:[#allocation20_spill] sm:$0xff] %v7746_v14  ;;  %v7748_v44 = vpop.permute.xlu0 %1812  ;;  %2137 = vperm.xlu1 %6425, %v1667_v27   ;;  %v1671_v14 = vld [vmem:[%s11237_s10 + $0x2c8] sm:$0xff]  ;;  %v1670_v27 = vld [vmem:[%s11237_s10 + $0x2c0] sm:$0xff] }
 0x191   : > { %11260 = vst [vmem:[#allocation21_spill] sm:$0xff] %v7748_v44  ;;  %2132 = vperm.xlu0 %6424, %v1666_v39  }
 0x193   : > { %v7756_v28 = vpop.permute.xlu1 %1827 }
 0x194   : > { %11261 = vst [vmem:[#allocation22_spill] sm:$0xff] %v7756_v28  ;;  %v7758_v15 = vpop.permute.xlu0 %1822  ;;  %2147 = vperm.xlu1 %6425, %v1669_v20   ;;  %v1673_v28 = vld [vmem:[%s11237_s10 + $0x2d8] sm:$0xff]  ;;  %v1672_v20 = vld [vmem:[%s11237_s10 + $0x2d0] sm:$0xff] }
 0x195   : > { %11262 = vst [vmem:[#allocation23_spill] sm:$0xff] %v7758_v15  ;;  %2142 = vperm.xlu0 %6424, %v1668_v21  }
 0x197   : > { %v7766_v39 = vpop.permute.xlu1 %1837 }
 0x198   : > { %11263 = vst [vmem:[#allocation24_spill] sm:$0xff] %v7766_v39  ;;  %v7768_v44 = vpop.permute.xlu0 %1832  ;;  %2157 = vperm.xlu1 %6425, %v1671_v14   ;;  %v1675_v39 = vld [vmem:[%s11237_s10 + $0x2e8] sm:$0xff]  ;;  %v1674_v14 = vld [vmem:[%s11237_s10 + $0x2e0] sm:$0xff] }
 0x199   : > { %11264 = vst [vmem:[#allocation25_spill] sm:$0xff] %v7768_v44  ;;  %2152 = vperm.xlu0 %6424, %v1670_v27  }
 0x19b   : > { %v7776_v21 = vpop.permute.xlu1 %1847 }
 0x19c   : > { %11265 = vst [vmem:[#allocation26_spill] sm:$0xff] %v7776_v21  ;;  %v7778_v15 = vpop.permute.xlu0 %1842  ;;  %2167 = vperm.xlu1 %6425, %v1673_v28   ;;  %v1677_v21 = vld [vmem:[%s11237_s10 + $0x2f8] sm:$0xff]  ;;  %v1676_v28 = vld [vmem:[%s11237_s10 + $0x2f0] sm:$0xff] }
 0x19d   : > { %11266 = vst [vmem:[#allocation27_spill] sm:$0xff] %v7778_v15  ;;  %2162 = vperm.xlu0 %6424, %v1672_v20  }
 0x19f   : > { %v7786_v27 = vpop.permute.xlu1 %1857 }
 0x1a0   : > { %11267 = vst [vmem:[#allocation28_spill] sm:$0xff] %v7786_v27  ;;  %v7788_v44 = vpop.permute.xlu0 %1852  ;;  %2177 = vperm.xlu1 %6425, %v1675_v39   ;;  %v1679_v27 = vld [vmem:[%s11237_s10 + $0x308] sm:$0xff]  ;;  %v1678_v39 = vld [vmem:[%s11237_s10 + $0x300] sm:$0xff] }
 0x1a1   : > { %11268 = vst [vmem:[#allocation29_spill] sm:$0xff] %v7788_v44  ;;  %2172 = vperm.xlu0 %6424, %v1674_v14  }
 0x1a3   : > { %v7796_v20 = vpop.permute.xlu1 %1867 }
 0x1a4   : > { %11269 = vst [vmem:[#allocation30_spill] sm:$0xff] %v7796_v20  ;;  %v7798_v15 = vpop.permute.xlu0 %1862  ;;  %2187 = vperm.xlu1 %6425, %v1677_v21   ;;  %v1681_v20 = vld [vmem:[%s11237_s10 + $0x318] sm:$0xff]  ;;  %v1680_v21 = vld [vmem:[%s11237_s10 + $0x310] sm:$0xff] }
 0x1a5   : > { %11270 = vst [vmem:[#allocation31_spill] sm:$0xff] %v7798_v15  ;;  %2182 = vperm.xlu0 %6424, %v1676_v28  }
 0x1a7   : > { %v7806_v14 = vpop.permute.xlu1 %1877 }
 0x1a8   : > { %11271 = vst [vmem:[#allocation32_spill] sm:$0xff] %v7806_v14  ;;  %v7808_v44 = vpop.permute.xlu0 %1872  ;;  %2197 = vperm.xlu1 %6425, %v1679_v27   ;;  %v1683_v14 = vld [vmem:[%s11237_s10 + $0x328] sm:$0xff]  ;;  %v1682_v27 = vld [vmem:[%s11237_s10 + $0x320] sm:$0xff] }
 0x1a9   : > { %11272 = vst [vmem:[#allocation33_spill] sm:$0xff] %v7808_v44  ;;  %2192 = vperm.xlu0 %6424, %v1678_v39  }
 0x1ab   : > { %v7816_v28 = vpop.permute.xlu1 %1887 }
 0x1ac   : > { %11273 = vst [vmem:[#allocation34_spill] sm:$0xff] %v7816_v28  ;;  %v7818_v15 = vpop.permute.xlu0 %1882  ;;  %2207 = vperm.xlu1 %6425, %v1681_v20   ;;  %v1685_v28 = vld [vmem:[%s11237_s10 + $0x338] sm:$0xff]  ;;  %v1684_v20 = vld [vmem:[%s11237_s10 + $0x330] sm:$0xff] }
 0x1ad   : > { %11274 = vst [vmem:[#allocation35_spill] sm:$0xff] %v7818_v15  ;;  %2202 = vperm.xlu0 %6424, %v1680_v21  }
 0x1af   : > { %v7826_v39 = vpop.permute.xlu1 %1897 }
 0x1b0   : > { %11275 = vst [vmem:[#allocation36_spill] sm:$0xff] %v7826_v39  ;;  %v7828_v44 = vpop.permute.xlu0 %1892  ;;  %2217 = vperm.xlu1 %6425, %v1683_v14   ;;  %v1687_v39 = vld [vmem:[%s11237_s10 + $0x348] sm:$0xff]  ;;  %v1686_v14 = vld [vmem:[%s11237_s10 + $0x340] sm:$0xff] }
 0x1b1   : > { %11276 = vst [vmem:[#allocation37_spill] sm:$0xff] %v7828_v44  ;;  %2212 = vperm.xlu0 %6424, %v1682_v27  }
 0x1b3   : > { %v7836_v21 = vpop.permute.xlu1 %1907 }
 0x1b4   : > { %11277 = vst [vmem:[#allocation38_spill] sm:$0xff] %v7836_v21  ;;  %v7838_v15 = vpop.permute.xlu0 %1902  ;;  %2227 = vperm.xlu1 %6425, %v1685_v28   ;;  %v1689_v21 = vld [vmem:[%s11237_s10 + $0x358] sm:$0xff]  ;;  %v1688_v28 = vld [vmem:[%s11237_s10 + $0x350] sm:$0xff] }
 0x1b5   : > { %11278 = vst [vmem:[#allocation39_spill] sm:$0xff] %v7838_v15  ;;  %2222 = vperm.xlu0 %6424, %v1684_v20  }
 0x1b7   : > { %v7846_v27 = vpop.permute.xlu1 %1917 }
 0x1b8   : > { %11279 = vst [vmem:[#allocation40_spill] sm:$0xff] %v7846_v27  ;;  %v7848_v44 = vpop.permute.xlu0 %1912  ;;  %2237 = vperm.xlu1 %6425, %v1687_v39   ;;  %v1691_v27 = vld [vmem:[%s11237_s10 + $0x368] sm:$0xff]  ;;  %v1690_v39 = vld [vmem:[%s11237_s10 + $0x360] sm:$0xff] }
 0x1b9   : > { %11280 = vst [vmem:[#allocation41_spill] sm:$0xff] %v7848_v44  ;;  %2232 = vperm.xlu0 %6424, %v1686_v14  }
 0x1bb   : > { %v7856_v20 = vpop.permute.xlu1 %1927 }
 0x1bc   : > { %11281 = vst [vmem:[#allocation42_spill] sm:$0xff] %v7856_v20  ;;  %v7858_v15 = vpop.permute.xlu0 %1922  ;;  %2247 = vperm.xlu1 %6425, %v1689_v21   ;;  %v1693_v20 = vld [vmem:[%s11237_s10 + $0x378] sm:$0xff]  ;;  %v1692_v21 = vld [vmem:[%s11237_s10 + $0x370] sm:$0xff] }
 0x1bd   : > { %11282 = vst [vmem:[#allocation43_spill] sm:$0xff] %v7858_v15  ;;  %2242 = vperm.xlu0 %6424, %v1688_v28  }
 0x1bf   : > { %v7866_v14 = vpop.permute.xlu1 %1937 }
 0x1c0   : > { %11283 = vst [vmem:[#allocation44_spill] sm:$0xff] %v7866_v14  ;;  %v7868_v44 = vpop.permute.xlu0 %1932  ;;  %2257 = vperm.xlu1 %6425, %v1691_v27   ;;  %v1695_v14 = vld [vmem:[%s11237_s10 + $0x388] sm:$0xff]  ;;  %v1694_v27 = vld [vmem:[%s11237_s10 + $0x380] sm:$0xff] }
 0x1c1   : > { %11284 = vst [vmem:[#allocation45_spill] sm:$0xff] %v7868_v44  ;;  %2252 = vperm.xlu0 %6424, %v1690_v39   ;;  %v1454_v44 = vld [vmem:[%s11236_s9] sm:$0xff] }
 0x1c2   : > { %6125 = vmatprep.mubr.f32.mxu0 %v1454_v44  ;;  %v1699_v44 = vld [vmem:[%s11237_s10 + $0x3a8] sm:$0xff] }
 0x1c3   : > { %v7876_v28 = vpop.permute.xlu1 %1947 }
 0x1c4   : > { %11285 = vst [vmem:[#allocation46_spill] sm:$0xff] %v7876_v28  ;;  %v7878_v15 = vpop.permute.xlu0 %1942  ;;  %2267 = vperm.xlu1 %6425, %v1693_v20   ;;  %v1522_v28 = vld [vmem:[%s11236_s9 + $0x220] sm:$0xff] }
 0x1c5   : > { %11286 = vst [vmem:[#allocation47_spill] sm:$0xff] %v7878_v15  ;;  %2262 = vperm.xlu0 %6424, %v1692_v21   ;;  %v1697_v21 = vld [vmem:[%s11237_s10 + $0x398] sm:$0xff]  ;;  %6227 = vmatprep.mubr.f32.mxu1 %v1522_v28 }
 0x1c7   : > { %v7886_v39 = vpop.permute.xlu1 %1957 }
 0x1c8   : > { %11287 = vst [vmem:[#allocation48_spill] sm:$0xff] %v7886_v39  ;;  %v7894_v20 = vpop.permute.xlu0 %1952  ;;  %2277 = vperm.xlu1 %6425, %v1695_v14   ;;  %v1696_v39 = vld [vmem:[%s11237_s10 + $0x390] sm:$0xff]  ;;  %v1698_v14 = vld [vmem:[%s11237_s10 + $0x3a0] sm:$0xff] }
 0x1c9   : > { %11288 = vst [vmem:[#allocation49_spill] sm:$0xff] %v7894_v20  ;;  %2272 = vperm.xlu0 %6424, %v1694_v27  }
 0x1cb   : > { %v7902_v15 = vpop.permute.xlu1 %1967 }
 0x1cc   : > { %11289 = vst [vmem:[#allocation50_spill] sm:$0xff] %v7902_v15  ;;  %v7904_v42 = vpop.permute.xlu0 %1962  ;;  %2287 = vperm.xlu1 %6425, %v1697_v21   ;;  %v1701_v15 = vld [vmem:[%s11237_s10 + $0x3b8] sm:$0xff] }
 0x1cd   : > { %11290 = vst [vmem:[#allocation51_spill] sm:$0xff] %v7904_v42  ;;  %2282 = vperm.xlu0 %6424, %v1696_v39   ;;  %v1700_v39 = vld [vmem:[%s11237_s10 + $0x3b0] sm:$0xff] }
 0x1cf   : > { %v7912_v27 = vpop.permute.xlu1 %1977 }
 0x1d0   : > { %11291 = vst [vmem:[#allocation52_spill] sm:$0xff] %v7912_v27  ;;  %v7914_v28 = vpop.permute.xlu0 %1972  ;;  %2297 = vperm.xlu1 %6425, %v1699_v44   ;;  %v1703_v27 = vld [vmem:[%s11237_s10 + $0x3c8] sm:$0xff]  ;;  %v1702_v44 = vld [vmem:[%s11237_s10 + $0x3c0] sm:$0xff] }
 0x1d1   : > { %11292 = vst [vmem:[#allocation53_spill] sm:$0xff] %v7914_v28  ;;  %2292 = vperm.xlu0 %6424, %v1698_v14  }
 0x1d3   : > { %v7922_v21 = vpop.permute.xlu1 %1987 }
 0x1d4   : > { %11293 = vst [vmem:[#allocation54_spill] sm:$0xff] %v7922_v21  ;;  %v7924_v42 = vpop.permute.xlu0 %1982  ;;  %2307 = vperm.xlu1 %6425, %v1701_v15   ;;  %v1705_v21 = vld [vmem:[%s11237_s10 + $0x3d8] sm:$0xff]  ;;  %v1704_v15 = vld [vmem:[%s11237_s10 + $0x3d0] sm:$0xff] }
 0x1d5   : > { %11294 = vst [vmem:[#allocation55_spill] sm:$0xff] %v7924_v42  ;;  %2302 = vperm.xlu0 %6424, %v1700_v39  }
 0x1d7   : > { %v7932_v14 = vpop.permute.xlu1 %1997 }
 0x1d8   : > { %11295 = vst [vmem:[#allocation56_spill] sm:$0xff] %v7932_v14  ;;  %v7934_v28 = vpop.permute.xlu0 %1992  ;;  %2317 = vperm.xlu1 %6425, %v1703_v27   ;;  %v1707_v14 = vld [vmem:[%s11237_s10 + $0x3e8] sm:$0xff]  ;;  %v1706_v27 = vld [vmem:[%s11237_s10 + $0x3e0] sm:$0xff] }
 0x1d9   : > { %11296 = vst [vmem:[#allocation57_spill] sm:$0xff] %v7934_v28  ;;  %2312 = vperm.xlu0 %6424, %v1702_v44  }
 0x1db   : > { %v7942_v39 = vpop.permute.xlu1 %2007 }
 0x1dc   : > { %11297 = vst [vmem:[#allocation58_spill] sm:$0xff] %v7942_v39  ;;  %v7944_v42 = vpop.permute.xlu0 %2002  ;;  %2327 = vperm.xlu1 %6425, %v1705_v21   ;;  %v1709_v39 = vld [vmem:[%s11237_s10 + $0x3f8] sm:$0xff]  ;;  %v1708_v21 = vld [vmem:[%s11237_s10 + $0x3f0] sm:$0xff] }
 0x1dd   : > { %11298 = vst [vmem:[#allocation59_spill] sm:$0xff] %v7944_v42  ;;  %2322 = vperm.xlu0 %6424, %v1704_v15  }
 0x1df   : > { %v7952_v44 = vpop.permute.xlu1 %2017 }
 0x1e0   : > { %11299 = vst [vmem:[#allocation60_spill] sm:$0xff] %v7952_v44  ;;  %v7954_v28 = vpop.permute.xlu0 %2012  ;;  %2337 = vperm.xlu1 %6425, %v1707_v14   ;;  %v3184_v44 = vld [vmem:[%s11238_s11 + $0x8] sm:$0xff]  ;;  %v3183_v14 = vld [vmem:[%s11238_s11] sm:$0xff] }
 0x1e1   : > { %11300 = vst [vmem:[#allocation61_spill] sm:$0xff] %v7954_v28  ;;  %2332 = vperm.xlu0 %6424, %v1706_v27  }
 0x1e3   : > { %v7962_v15 = vpop.permute.xlu1 %2027 }
 0x1e4   : > { %11301 = vst [vmem:[#allocation62_spill] sm:$0xff] %v7962_v15  ;;  %v7964_v42 = vpop.permute.xlu0 %2022  ;;  %2347 = vperm.xlu1 %6425, %v1709_v39   ;;  %v3186_v15 = vld [vmem:[%s11238_s11 + $0x18] sm:$0xff]  ;;  %v3185_v39 = vld [vmem:[%s11238_s11 + $0x10] sm:$0xff] }
 0x1e5   : > { %11302 = vst [vmem:[#allocation63_spill] sm:$0xff] %v7964_v42  ;;  %2342 = vperm.xlu0 %6424, %v1708_v21  }
 0x1e7   : > { %v7972_v27 = vpop.permute.xlu1 %2037 }
 0x1e8   : > { %11303 = vst [vmem:[#allocation64_spill] sm:$0xff] %v7972_v27  ;;  %v7974_v28 = vpop.permute.xlu0 %2032  ;;  %3318 = vperm.xlu1 %6425, %v3184_v44   ;;  %v3188_v27 = vld [vmem:[%s11238_s11 + $0x28] sm:$0xff]  ;;  %v3187_v44 = vld [vmem:[%s11238_s11 + $0x20] sm:$0xff] }
 0x1e9   : > { %11304 = vst [vmem:[#allocation65_spill] sm:$0xff] %v7974_v28  ;;  %3313 = vperm.xlu0 %6424, %v3183_v14  }
 0x1eb   : > { %v7982_v21 = vpop.permute.xlu1 %2047 }
 0x1ec   : > { %11305 = vst [vmem:[#allocation66_spill] sm:$0xff] %v7982_v21  ;;  %v7984_v42 = vpop.permute.xlu0 %2042  ;;  %3328 = vperm.xlu1 %6425, %v3186_v15   ;;  %v3190_v21 = vld [vmem:[%s11238_s11 + $0x38] sm:$0xff]  ;;  %v3189_v15 = vld [vmem:[%s11238_s11 + $0x30] sm:$0xff] }
 0x1ed   : > { %11306 = vst [vmem:[#allocation67_spill] sm:$0xff] %v7984_v42  ;;  %3323 = vperm.xlu0 %6424, %v3185_v39  }
 0x1ef   : > { %v7992_v14 = vpop.permute.xlu1 %2057 }
 0x1f0   : > { %11307 = vst [vmem:[#allocation68_spill] sm:$0xff] %v7992_v14  ;;  %v7994_v28 = vpop.permute.xlu0 %2052  ;;  %3338 = vperm.xlu1 %6425, %v3188_v27   ;;  %v3192_v14 = vld [vmem:[%s11238_s11 + $0x48] sm:$0xff]  ;;  %v3191_v27 = vld [vmem:[%s11238_s11 + $0x40] sm:$0xff] }
 0x1f1   : > { %11308 = vst [vmem:[#allocation69_spill] sm:$0xff] %v7994_v28  ;;  %3333 = vperm.xlu0 %6424, %v3187_v44  }
 0x1f3   : > { %v8002_v39 = vpop.permute.xlu1 %2067 }
 0x1f4   : > { %11309 = vst [vmem:[#allocation70_spill] sm:$0xff] %v8002_v39  ;;  %v8004_v42 = vpop.permute.xlu0 %2062  ;;  %3348 = vperm.xlu1 %6425, %v3190_v21   ;;  %v3194_v39 = vld [vmem:[%s11238_s11 + $0x58] sm:$0xff]  ;;  %v3193_v21 = vld [vmem:[%s11238_s11 + $0x50] sm:$0xff] }
 0x1f5   : > { %11310 = vst [vmem:[#allocation71_spill] sm:$0xff] %v8004_v42  ;;  %3343 = vperm.xlu0 %6424, %v3189_v15  }
 0x1f7   : > { %v8012_v44 = vpop.permute.xlu1 %2077 }
 0x1f8   : > { %11311 = vst [vmem:[#allocation72_spill] sm:$0xff] %v8012_v44  ;;  %v8014_v28 = vpop.permute.xlu0 %2072  ;;  %3358 = vperm.xlu1 %6425, %v3192_v14   ;;  %v3196_v44 = vld [vmem:[%s11238_s11 + $0x68] sm:$0xff]  ;;  %v3195_v14 = vld [vmem:[%s11238_s11 + $0x60] sm:$0xff] }
 0x1f9   : > { %11312 = vst [vmem:[#allocation73_spill] sm:$0xff] %v8014_v28  ;;  %3353 = vperm.xlu0 %6424, %v3191_v27  }
 0x1fb   : > { %v8022_v15 = vpop.permute.xlu1 %2087 }
 0x1fc   : > { %11313 = vst [vmem:[#allocation74_spill] sm:$0xff] %v8022_v15  ;;  %v8024_v42 = vpop.permute.xlu0 %2082  ;;  %3368 = vperm.xlu1 %6425, %v3194_v39   ;;  %v3198_v15 = vld [vmem:[%s11238_s11 + $0x78] sm:$0xff]  ;;  %v3197_v39 = vld [vmem:[%s11238_s11 + $0x70] sm:$0xff] }
 0x1fd   : > { %11314 = vst [vmem:[#allocation75_spill] sm:$0xff] %v8024_v42  ;;  %3363 = vperm.xlu0 %6424, %v3193_v21  }
 0x1ff   : > { %v8032_v27 = vpop.permute.xlu1 %2097 }
 0x200   : > { %11315 = vst [vmem:[#allocation76_spill] sm:$0xff] %v8032_v27  ;;  %v8034_v28 = vpop.permute.xlu0 %2092  ;;  %3378 = vperm.xlu1 %6425, %v3196_v44   ;;  %v3200_v27 = vld [vmem:[%s11238_s11 + $0x88] sm:$0xff]  ;;  %v3199_v44 = vld [vmem:[%s11238_s11 + $0x80] sm:$0xff] }
 0x201   : > { %11316 = vst [vmem:[#allocation77_spill] sm:$0xff] %v8034_v28  ;;  %3373 = vperm.xlu0 %6424, %v3195_v14  }
 0x203   : > { %v8042_v21 = vpop.permute.xlu1 %2107 }
 0x204   : > { %11317 = vst [vmem:[#allocation78_spill] sm:$0xff] %v8042_v21  ;;  %v8044_v42 = vpop.permute.xlu0 %2102  ;;  %3388 = vperm.xlu1 %6425, %v3198_v15   ;;  %v3202_v21 = vld [vmem:[%s11238_s11 + $0x98] sm:$0xff]  ;;  %v3201_v15 = vld [vmem:[%s11238_s11 + $0x90] sm:$0xff] }
 0x205   : > { %11318 = vst [vmem:[#allocation79_spill] sm:$0xff] %v8044_v42  ;;  %3383 = vperm.xlu0 %6424, %v3197_v39  }
 0x207   : > { %v8052_v14 = vpop.permute.xlu1 %2117 }
 0x208   : > { %11319 = vst [vmem:[#allocation80_spill] sm:$0xff] %v8052_v14  ;;  %v8054_v28 = vpop.permute.xlu0 %2112  ;;  %3398 = vperm.xlu1 %6425, %v3200_v27   ;;  %v3204_v14 = vld [vmem:[%s11238_s11 + $0xa8] sm:$0xff]  ;;  %v3203_v27 = vld [vmem:[%s11238_s11 + $0xa0] sm:$0xff] }
 0x209   : > { %11320 = vst [vmem:[#allocation81_spill] sm:$0xff] %v8054_v28  ;;  %3393 = vperm.xlu0 %6424, %v3199_v44  }
 0x20b   : > { %v8062_v39 = vpop.permute.xlu1 %2127 }
 0x20c   : > { %11321 = vst [vmem:[#allocation82_spill] sm:$0xff] %v8062_v39  ;;  %v8064_v42 = vpop.permute.xlu0 %2122  ;;  %3408 = vperm.xlu1 %6425, %v3202_v21   ;;  %v3206_v39 = vld [vmem:[%s11238_s11 + $0xb8] sm:$0xff]  ;;  %v3205_v21 = vld [vmem:[%s11238_s11 + $0xb0] sm:$0xff] }
 0x20d   : > { %11322 = vst [vmem:[#allocation83_spill] sm:$0xff] %v8064_v42  ;;  %3403 = vperm.xlu0 %6424, %v3201_v15  }
 0x20f   : > { %v8072_v44 = vpop.permute.xlu1 %2137 }
 0x210   : > { %11323 = vst [vmem:[#allocation84_spill] sm:$0xff] %v8072_v44  ;;  %v8074_v28 = vpop.permute.xlu0 %2132  ;;  %3418 = vperm.xlu1 %6425, %v3204_v14   ;;  %v3208_v44 = vld [vmem:[%s11238_s11 + $0xc8] sm:$0xff]  ;;  %v3207_v14 = vld [vmem:[%s11238_s11 + $0xc0] sm:$0xff] }
 0x211   : > { %11324 = vst [vmem:[#allocation85_spill] sm:$0xff] %v8074_v28  ;;  %3413 = vperm.xlu0 %6424, %v3203_v27  }
 0x213   : > { %v8082_v15 = vpop.permute.xlu1 %2147 }
 0x214   : > { %11325 = vst [vmem:[#allocation86_spill] sm:$0xff] %v8082_v15  ;;  %v8084_v42 = vpop.permute.xlu0 %2142  ;;  %3428 = vperm.xlu1 %6425, %v3206_v39   ;;  %v3210_v15 = vld [vmem:[%s11238_s11 + $0xd8] sm:$0xff]  ;;  %v3209_v39 = vld [vmem:[%s11238_s11 + $0xd0] sm:$0xff] }
 0x215   : > { %11326 = vst [vmem:[#allocation87_spill] sm:$0xff] %v8084_v42  ;;  %3423 = vperm.xlu0 %6424, %v3205_v21  }
 0x217   : > { %v8092_v27 = vpop.permute.xlu1 %2157 }
 0x218   : > { %11327 = vst [vmem:[#allocation88_spill] sm:$0xff] %v8092_v27  ;;  %v8094_v28 = vpop.permute.xlu0 %2152  ;;  %3438 = vperm.xlu1 %6425, %v3208_v44   ;;  %v3212_v44 = vld [vmem:[%s11238_s11 + $0xe8] sm:$0xff] }
 0x219   : > { %11328 = vst [vmem:[#allocation89_spill] sm:$0xff] %v8094_v28  ;;  %3433 = vperm.xlu0 %6424, %v3207_v14   ;;  %v3211_v28 = vld [vmem:[%s11238_s11 + $0xe0] sm:$0xff] }
 0x21b   : > { %v8102_v21 = vpop.permute.xlu1 %2167 }
 0x21c   : > { %11329 = vst [vmem:[#allocation90_spill] sm:$0xff] %v8102_v21  ;;  %v8104_v42 = vpop.permute.xlu0 %2162  ;;  %3448 = vperm.xlu1 %6425, %v3210_v15  }
 0x21d   : > { %11330 = vst [vmem:[#allocation91_spill] sm:$0xff] %v8104_v42  ;;  %v6071_v20 = vpop.f32.mrb[0].mxu1  ;;  %3443 = vperm.xlu0 %6424, %v3209_v39  }
 0x21e   : > { %v1141_v14 = vadd.f32 %v6071_v20, %v7322_v62  ;;  %v1135_v27 = vpop.f32.mrb[1].mxu1  ;;  %v3214_v62 = vld [vmem:[%s11238_s11 + $0xf8] sm:$0xff] }
 0x21f   : > { %v1136_v34 = vadd.f32 %v1135_v27, %v7324_v63  ;;  %v8114_v53 = vpop.permute.xlu1 %2177  ;;  %v3213_v63 = vld [vmem:[%s11238_s11 + $0xf0] sm:$0xff] }
 0x220   : > { %11331 = vst [vmem:[#allocation92_spill] sm:$0xff] %v8114_v53  ;;  %v1215_v21 = vmax.f32 %v1141_v14, 0.0  ;;  %v8116_v42 = vpop.permute.xlu0 %2172  ;;  %3458 = vperm.xlu1 %6425, %v3212_v44  }
 0x221   : > { %11332 = vst [vmem:[#allocation93_spill] sm:$0xff] %v8116_v42  ;;  %v1214_v15 = vmax.f32 %v1136_v34, 0.0  ;;  %v6074_v39 = vpop.f32.mrb[2].mxu1  ;;  %3453 = vperm.xlu0 %6424, %v3211_v28  }
 0x222   : > { %v1327_v20 = vmul.f32 %v7402_v48, %v1215_v21  ;;  %v1151_v1 = vadd.f32 %v6074_v39, %v7332_v2  ;;  %v1145_v23 = vpop.f32.mrb[3].mxu1  ;;  %v3216_v39 = vld [vmem:[%s11238_s11 + $0x108] sm:$0xff] }
 0x223   : > { %v1326_v27 = vmul.f32 %v7404_v49, %v1214_v15  ;;  %v1146_v44 = vadd.f32 %v1145_v23, %v7334_v3  ;;  %v8128_v34 = vpop.permute.xlu1 %2187 }
 0x224   : > { %11333 = vst [vmem:[#allocation94_spill] sm:$0xff] %v8128_v34  ;;  %v1439_v28 = vadd.f32 %v7506_v8, %v1327_v20  ;;  %v1217_v14 = vmax.f32 %v1151_v1, 0.0  ;;  %v8131_v53 = vpop.permute.xlu0 %2182  ;;  %3468 = vperm.xlu1 %6425, %v3214_v62   ;;  %v3297_v34 = vld [vmem:[%s11238_s11 + $0x390] sm:$0xff] }
 0x225   : > { %11334 = vst [vmem:[#allocation95_spill] sm:$0xff] %v8131_v53  ;;  %v1438_v48 = vadd.f32 %v7511_v13, %v1326_v27  ;;  %v1216_v2 = vmax.f32 %v1146_v44, 0.0  ;;  %v6077_v21 = vpop.f32.mrb[4].mxu1  ;;  %3463 = vperm.xlu0 %6424, %v3213_v63   ;;  %v3215_v13 = vld [vmem:[%s11238_s11 + $0x100] sm:$0xff] }
 0x226   : > { %v1329_v49 = vmul.f32 %v7412_v56, %v1217_v14  ;;  %v1161_v3 = vadd.f32 %v6077_v21, %v7342_v6  ;;  %v1155_v23 = vpop.f32.mrb[5].mxu1  ;;  %v3217_v21 = vld [vmem:[%s11238_s11 + $0x110] sm:$0xff] }
 0x227   : > { %v6333_v15 = vpack.c.bf16 %v1439_v28, %v1438_v48  ;;  %v1328_v8 = vmul.f32 %v7414_v57, %v1216_v2  ;;  %v1156_v1 = vadd.f32 %v1155_v23, %v7344_v7  ;;  %v8141_v62 = vpop.permute.xlu1 %2197  ;;  %v3218_v7 = vld [vmem:[%s11238_s11 + $0x118] sm:$0xff] }
 0x228   : > { %11335 = vst [vmem:[#allocation96_spill] sm:$0xff] %v8141_v62  ;;  %v1441_v20 = vadd.f32 %v7523_v22, %v1329_v49  ;;  %v1219_v63 = vmax.f32 %v1161_v3, 0.0  ;;  %v8147_v27 = vpop.permute.xlu0 %2192  ;;  %3478 = vperm.xlu1 %6425, %v3216_v39   ;;  %v3295_v62 = vld [vmem:[%s11238_s11 + $0x380] sm:$0xff] }
 0x229   : > { %11336 = vst [vmem:[#allocation97_spill] sm:$0xff] %v8147_v27  ;;  %v1440_v6 = vadd.f32 %v7529_v19, %v1328_v8  ;;  %v1218_v56 = vmax.f32 %v1156_v1, 0.0  ;;  %v6080_v44 = vpop.f32.mrb[6].mxu1  ;;  %6334 = vmatprep.subr.bf16.mxu0 %v6333_v15  ;;  %6365 = vmatprep.subr.bf16.mxu1 %v6333_v15 }
 0x22a   : > { %v1331_v57 = vmul.f32 %v7423_v5, %v1219_v63  ;;  %v1171_v28 = vadd.f32 %v6080_v44, %v7352_v10  ;;  %3473 = vperm.xlu0 %6424, %v3215_v13   ;;  %v1165_v22 = vpop.f32.mrb[7].mxu1  ;;  %6336 = vmatpush3.bf16.msra.mxu0 %v6333_v15 }
 0x22b   : > { %v6337_v14 = vpack.c.bf16 %v1441_v20, %v1440_v6  ;;  %v1330_v48 = vmul.f32 %v7426_v9, %v1218_v56  ;;  %v1166_v19 = vadd.f32 %v1165_v22, %v7354_v11  ;;  %6373 = vmatpush3.bf16.msra.mxu1 %v6333_v15  ;;  %v8157_v2 = vpop.permute.xlu1 %2207  ;;  %v3220_v11 = vld [vmem:[%s11238_s11 + $0x128] sm:$0xff]  ;;  %v3219_v20 = vld [vmem:[%s11238_s11 + $0x120] sm:$0xff] }
 0x22c   : > { %11337 = vst [vmem:[#allocation98_spill] sm:$0xff] %v8157_v2  ;;  %v1443_v39 = vadd.f32 %v7541_v50, %v1331_v57  ;;  %v1221_v5 = vmax.f32 %v1171_v28, 0.0  ;;  %v8163_v49 = vpop.permute.xlu0 %2202  ;;  %3488 = vperm.xlu1 %6425, %v3218_v7   ;;  %v3293_v2 = vld [vmem:[%s11238_s11 + $0x370] sm:$0xff] }
 0x22d   : > { %11338 = vst [vmem:[#allocation99_spill] sm:$0xff] %v8163_v49  ;;  %v1442_v10 = vadd.f32 %v7547_v37, %v1330_v48  ;;  %v1220_v3 = vmax.f32 %v1166_v19, 0.0  ;;  %v6083_v23 = vpop.f32.mrb[8].mxu1  ;;  %6338 = vmatprep.subr.bf16.mxu0 %v6337_v14  ;;  %6366 = vmatprep.subr.bf16.mxu1 %v6337_v14 }
 0x22e   : > { %v1333_v9 = vmul.f32 %v7436_v36, %v1221_v5  ;;  %v1181_v15 = vadd.f32 %v6083_v23, %v7362_v16  ;;  %3483 = vperm.xlu0 %6424, %v3217_v21   ;;  %v1175_v50 = vpop.f32.mrb[9].mxu1  ;;  %6340 = vmatpush3.bf16.msra.mxu0 %v6337_v14 }
 0x22f   : > { %v6341_v8 = vpack.c.bf16 %v1443_v39, %v1442_v10  ;;  %v1332_v1 = vmul.f32 %v7440_v45, %v1220_v3  ;;  %v1176_v37 = vadd.f32 %v1175_v50, %v7364_v17  ;;  %6374 = vmatpush3.bf16.msra.mxu1 %v6337_v14  ;;  %v8173_v13 = vpop.permute.xlu1 %2217  ;;  %v3222_v17 = vld [vmem:[%s11238_s11 + $0x138] sm:$0xff]  ;;  %v3221_v14 = vld [vmem:[%s11238_s11 + $0x130] sm:$0xff] }
 0x230   : > { %11339 = vst [vmem:[#allocation100_spill] sm:$0xff] %v8173_v13  ;;  %v1445_v63 = vadd.f32 %v7559_v26, %v1333_v9  ;;  %v1223_v36 = vmax.f32 %v1181_v15, 0.0  ;;  %v8179_v6 = vpop.permute.xlu0 %2212  ;;  %3498 = vperm.xlu1 %6425, %v3220_v11   ;;  %v3223_v11 = vld [vmem:[%s11238_s11 + $0x140] sm:$0xff] }
 0x231   : > { %11340 = vst [vmem:[#allocation101_spill] sm:$0xff] %v8179_v6  ;;  %v1444_v16 = vadd.f32 %v7565_v30, %v1332_v1  ;;  %v1222_v56 = vmax.f32 %v1176_v37, 0.0  ;;  %v6086_v44 = vpop.f32.mrb[10].mxu1  ;;  %6342 = vmatprep.subr.bf16.mxu0 %v6341_v8  ;;  %6367 = vmatprep.subr.bf16.mxu1 %v6341_v8 }
 0x232   : > { %v1335_v45 = vmul.f32 %v7452_v4, %v1223_v36  ;;  %v1191_v7 = vadd.f32 %v6086_v44, %v7372_v24  ;;  %3493 = vperm.xlu0 %6424, %v3219_v20   ;;  %v1185_v26 = vpop.f32.mrb[11].mxu1  ;;  %6344 = vmatpush3.bf16.msra.mxu0 %v6341_v8  ;;  %v3225_v36 = vld [vmem:[%s11238_s11 + $0x150] sm:$0xff] }
 0x233   : > { %v6345_v57 = vpack.c.bf16 %v1445_v63, %v1444_v16  ;;  %v1334_v28 = vmul.f32 %v7456_v46, %v1222_v56  ;;  %v1186_v30 = vadd.f32 %v1185_v26, %v7374_v25  ;;  %6375 = vmatpush3.bf16.msra.mxu1 %v6341_v8  ;;  %v8189_v22 = vpop.permute.xlu1 %2227  ;;  %v3224_v25 = vld [vmem:[%s11238_s11 + $0x148] sm:$0xff] }
 0x234   : > { %11341 = vst [vmem:[#allocation102_spill] sm:$0xff] %v8189_v22  ;;  %v1447_v48 = vadd.f32 %v7577_v61, %v1335_v45  ;;  %v1225_v4 = vmax.f32 %v1191_v7, 0.0  ;;  %v8195_v19 = vpop.permute.xlu0 %2222  ;;  %3508 = vperm.xlu1 %6425, %v3222_v17  }
 0x235   : > { %11342 = vst [vmem:[#allocation103_spill] sm:$0xff] %v8195_v19  ;;  %v1446_v24 = vadd.f32 %v7583_v55, %v1334_v28  ;;  %v1224_v21 = vmax.f32 %v1186_v30, 0.0  ;;  %v6089_v39 = vpop.f32.mrb[12].mxu1  ;;  %6346 = vmatprep.subr.bf16.mxu0 %v6345_v57  ;;  %6368 = vmatprep.subr.bf16.mxu1 %v6345_v57 }
 0x236   : > { %v1337_v46 = vmul.f32 %v7468_v29, %v1225_v4  ;;  %v1201_v5 = vadd.f32 %v6089_v39, %v7382_v32  ;;  %3503 = vperm.xlu0 %6424, %v3221_v14   ;;  %v1195_v61 = vpop.f32.mrb[13].mxu1  ;;  %6348 = vmatpush3.bf16.msra.mxu0 %v6345_v57  ;;  %v1455_v14 = vld [vmem:[%s11236_s9 + $0x8] sm:$0xff]  ;;  %v1456_v39 = vld [vmem:[%s11236_s9 + $0x10] sm:$0xff] }
 0x237   : > { %v6349_v10 = vpack.c.bf16 %v1447_v48, %v1446_v24  ;;  %v1336_v3 = vmul.f32 %v7472_v51, %v1224_v21  ;;  %v1196_v55 = vadd.f32 %v1195_v61, %v7384_v33  ;;  %6376 = vmatpush3.bf16.msra.mxu1 %v6345_v57  ;;  %v8205_v23 = vpop.permute.xlu1 %2237  ;;  %v3226_v33 = vld [vmem:[%s11238_s11 + $0x158] sm:$0xff]  ;;  %v1523_v4 = vld [vmem:[%s11236_s9 + $0x228] sm:$0xff]  ;;  %v3231_v24 = vld [vmem:[%s11238_s11 + $0x180] sm:$0xff] }
 0x238   : > { %11343 = vst [vmem:[#allocation104_spill] sm:$0xff] %v8205_v23  ;;  %v1449_v9 = vadd.f32 %v7595_v58, %v1337_v46  ;;  %v1227_v29 = vmax.f32 %v1201_v5, 0.0  ;;  %v8211_v15 = vpop.permute.xlu0 %2232  ;;  %3518 = vperm.xlu1 %6425, %v3224_v25   ;;  %v1524_v25 = vld [vmem:[%s11236_s9 + $0x230] sm:$0xff]  ;;  %v3234_v46 = vld [vmem:[%s11238_s11 + $0x198] sm:$0xff] }
 0x239   : > { %11344 = vst [vmem:[#allocation105_spill] sm:$0xff] %v8211_v15  ;;  %v1448_v32 = vadd.f32 %v7601_v12, %v1336_v3  ;;  %v1226_v50 = vmax.f32 %v1196_v55, 0.0  ;;  %v6092_v8 = vpop.f32.mrb[14].mxu1  ;;  %6350 = vmatprep.subr.bf16.mxu0 %v6349_v10  ;;  %6369 = vmatprep.subr.bf16.mxu1 %v6349_v10  ;;  %v1457_v5 = vld [vmem:[%s11236_s9 + $0x18] sm:$0xff]  ;;  %v3233_v3 = vld [vmem:[%s11238_s11 + $0x190] sm:$0xff] }
 0x23a   : > { %v1339_v51 = vmul.f32 %v7483_v60, %v1227_v29  ;;  %v1211_v1 = vadd.f32 %v6092_v8, %v7392_v40  ;;  %3513 = vperm.xlu0 %6424, %v3223_v11   ;;  %v1205_v58 = vpop.f32.mrb[15].mxu1  ;;  %6352 = vmatpush3.bf16.msra.mxu0 %v6349_v10  ;;  %v1458_v11 = vld [vmem:[%s11236_s9 + $0x20] sm:$0xff]  ;;  %v3236_v29 = vld [vmem:[%s11238_s11 + $0x1a8] sm:$0xff]  ;;  %v1581_v15 = vld [vmem:[%s11236_s9 + $0x3f8] sm:$0xff] }
 0x23b   : > { %v6353_v37 = vpack.c.bf16 %v1449_v9, %v1448_v32  ;;  %v1338_v20 = vmul.f32 %v7486_v18, %v1226_v50  ;;  %v1206_v12 = vadd.f32 %v1205_v58, %v7394_v41  ;;  %6377 = vmatpush3.bf16.msra.mxu1 %v6349_v10  ;;  %v8221_v63 = vpop.permute.xlu1 %2247  ;;  %v3228_v41 = vld [vmem:[%s11238_s11 + $0x168] sm:$0xff]  ;;  %v1525_v10 = vld [vmem:[%s11236_s9 + $0x238] sm:$0xff]  ;;  %v1526_v9 = vld [vmem:[%s11236_s9 + $0x240] sm:$0xff] }
 0x23c   : > { %11345 = vst [vmem:[#allocation106_spill] sm:$0xff] %v8221_v63  ;;  %v1451_v16 = vadd.f32 %v7613_v47, %v1339_v51  ;;  %v1229_v60 = vmax.f32 %v1211_v1, 0.0  ;;  %v8227_v56 = vpop.permute.xlu0 %2242  ;;  %3528 = vperm.xlu1 %6425, %v3226_v33   ;;  %v1459_v32 = vld [vmem:[%s11236_s9 + $0x28] sm:$0xff]  ;;  %v3235_v33 = vld [vmem:[%s11238_s11 + $0x1a0] sm:$0xff]  ;;  %v1460_v1 = vld [vmem:[%s11236_s9 + $0x30] sm:$0xff] }
 0x23d   : > { %11346 = vst [vmem:[#allocation107_spill] sm:$0xff] %v8227_v56  ;;  %v1450_v40 = vadd.f32 %v7619_v35, %v1338_v20  ;;  %v1228_v44 = vmax.f32 %v1206_v12, 0.0  ;;  %6354 = vmatprep.subr.bf16.mxu0 %v6353_v37  ;;  %6370 = vmatprep.subr.bf16.mxu1 %v6353_v37  ;;  %v3227_v35 = vld [vmem:[%s11238_s11 + $0x160] sm:$0xff]  ;;  %v1527_v8 = vld [vmem:[%s11236_s9 + $0x248] sm:$0xff]  ;;  %v1528_v58 = vld [vmem:[%s11236_s9 + $0x250] sm:$0xff] }
 0x23e   : > { %v1341_v18 = vmul.f32 %v7496_v43, %v1229_v60  ;;  %3523 = vperm.xlu0 %6424, %v3225_v36   ;;  %6356 = vmatpush3.bf16.msra.mxu0 %v6353_v37  ;;  %v3230_v43 = vld [vmem:[%s11238_s11 + $0x178] sm:$0xff]  ;;  %v1579_v56 = vld [vmem:[%s11236_s9 + $0x3e8] sm:$0xff] }
 0x23f   : > { %v6357_v17 = vpack.c.bf16 %v1451_v16, %v1450_v40  ;;  %v1340_v47 = vmul.f32 %v7498_v0, %v1228_v44  ;;  %6378 = vmatpush3.bf16.msra.mxu1 %v6353_v37  ;;  %v8235_v45 = vpop.permute.xlu1 %2257  ;;  %v3238_v37 = vld [vmem:[%s11238_s11 + $0x1b8] sm:$0xff]  ;;  %v3237_v16 = vld [vmem:[%s11238_s11 + $0x1b0] sm:$0xff]  ;;  %v1462_v40 = vld [vmem:[%s11236_s9 + $0x40] sm:$0xff] }
 0x240   : > { %11347 = vst [vmem:[#allocation108_spill] sm:$0xff] %v8235_v45  ;;  %v1453_v7 = vadd.f32 %v7631_v52, %v1341_v18  ;;  %v8241_v26 = vpop.permute.xlu0 %2252  ;;  %3538 = vperm.xlu1 %6425, %v3228_v41   ;;  %v3229_v52 = vld [vmem:[%s11238_s11 + $0x170] sm:$0xff]  ;;  %v1461_v20 = vld [vmem:[%s11236_s9 + $0x38] sm:$0xff]  ;;  %v1530_v44 = vld [vmem:[%s11236_s9 + $0x260] sm:$0xff] }
 0x241   : > { %11348 = vst [vmem:[#allocation109_spill] sm:$0xff] %v8241_v26  ;;  %v1452_v57 = vadd.f32 %v7637_v38, %v1340_v47  ;;  %6358 = vmatprep.subr.bf16.mxu0 %v6357_v17  ;;  %6371 = vmatprep.subr.bf16.mxu1 %v6357_v17  ;;  %v3232_v38 = vld [vmem:[%s11238_s11 + $0x188] sm:$0xff]  ;;  %v1529_v36 = vld [vmem:[%s11236_s9 + $0x258] sm:$0xff] }
 0x242   : > { %3533 = vperm.xlu0 %6424, %v3227_v35   ;;  %6360 = vmatpush3.bf16.msra.mxu0 %v6357_v17  ;;  %v3240_v41 = vld [vmem:[%s11238_s11 + $0x1c8] sm:$0xff]  ;;  %v3239_v35 = vld [vmem:[%s11238_s11 + $0x1c0] sm:$0xff]  ;;  %v1577_v26 = vld [vmem:[%s11236_s9 + $0x3d8] sm:$0xff] }
 0x243   : > { %v6361_v0 = vpack.c.bf16 %v1453_v7, %v1452_v57  ;;  %6379 = vmatpush3.bf16.msra.mxu1 %v6357_v17  ;;  %v8247_v28 = vpop.permute.xlu1 %2267  ;;  %v1463_v18 = vld [vmem:[%s11236_s9 + $0x48] sm:$0xff]  ;;  %v1464_v57 = vld [vmem:[%s11236_s9 + $0x50] sm:$0xff] }
 0x244   : > { %11349 = vst [vmem:[#allocation110_spill] sm:$0xff] %v8247_v28  ;;  %v8252_v30 = vpop.permute.xlu0 %2262  ;;  %3548 = vperm.xlu1 %6425, %v3230_v43   ;;  %v1531_v47 = vld [vmem:[%s11236_s9 + $0x268] sm:$0xff]  ;;  %v1532_v43 = vld [vmem:[%s11236_s9 + $0x270] sm:$0xff] }
 0x245   : > { %11350 = vst [vmem:[#allocation111_spill] sm:$0xff] %v8252_v30  ;;  %6362 = vmatprep.subr.bf16.mxu0 %v6361_v0  ;;  %6372 = vmatprep.subr.bf16.mxu1 %v6361_v0  ;;  %v1575_v30 = vld [vmem:[%s11236_s9 + $0x3c8] sm:$0xff] }
 0x246   : > { %3543 = vperm.xlu0 %6424, %v3229_v52   ;;  %6364 = vmatpush3.bf16.msra.mxu0 %v6361_v0  ;;  %v1465_v52 = vld [vmem:[%s11236_s9 + $0x58] sm:$0xff] }
 0x247   : > { %6380 = vmatpush3.bf16.msra.mxu1 %v6361_v0  ;;  %v8260_v48 = vpop.permute.xlu1 %2277  ;;  %v3242_v0 = vld [vmem:[%s11238_s11 + $0x1d8] sm:$0xff] }
 0x248   : > { %11351 = vst [vmem:[#allocation112_spill] sm:$0xff] %v8260_v48  ;;  %v8268_v21 = vpop.permute.xlu0 %2272  ;;  %3558 = vperm.xlu1 %6425, %v3232_v38  }
 0x249   : > { %11352 = vst [vmem:[#allocation113_spill] sm:$0xff] %v8268_v21  ;;  %6126 = vmatmul.mubr.f32.vlgmr.msra.gmra.mrb[8].mxu0 %v1455_v14  ;;  %v1533_v14 = vld [vmem:[%s11236_s9 + $0x278] sm:$0xff] }
 0x24a   : > { %6228 = vmatmul.mubr.f32.vlgmr.msra.gmra.mrb[16].mxu1 %v1523_v4  ;;  %3553 = vperm.xlu0 %6424, %v3231_v24   ;;  %v3241_v4 = vld [vmem:[%s11238_s11 + $0x1d0] sm:$0xff]  ;;  %v1573_v21 = vld [vmem:[%s11236_s9 + $0x3b8] sm:$0xff] }
 0x24b   : > { %6128 = vmatprep.mubr.f32.mxu0 %v1456_v39  ;;  %6230 = vmatprep.mubr.f32.mxu1 %v1524_v25  ;;  %v8282_v61 = vpop.permute.xlu1 %2287  ;;  %v1466_v39 = vld [vmem:[%s11236_s9 + $0x60] sm:$0xff] }
 0x24c   : > { %11353 = vst [vmem:[#allocation114_spill] sm:$0xff] %v8282_v61  ;;  %v8290_v55 = vpop.permute.xlu0 %2282  ;;  %3568 = vperm.xlu1 %6425, %v3234_v46   ;;  %v1534_v25 = vld [vmem:[%s11236_s9 + $0x280] sm:$0xff]  ;;  %v3244_v46 = vld [vmem:[%s11238_s11 + $0x1e8] sm:$0xff] }
 0x24d   : > { %11354 = vst [vmem:[#allocation115_spill] sm:$0xff] %v8290_v55  ;;  %6129 = vmatmul.mubr.f32.gmra.mrb[10].mxu0 %v1457_v5  ;;  %v1467_v5 = vld [vmem:[%s11236_s9 + $0x68] sm:$0xff] }
 0x24e   : > { %6231 = vmatmul.mubr.f32.gmra.mrb[18].mxu1 %v1525_v10  ;;  %3563 = vperm.xlu0 %6424, %v3233_v3   ;;  %v1535_v3 = vld [vmem:[%s11236_s9 + $0x288] sm:$0xff] }
 0x24f   : > { %6131 = vmatprep.mubr.f32.mxu0 %v1458_v11  ;;  %6233 = vmatprep.mubr.f32.mxu1 %v1526_v9  ;;  %v8304_v50 = vpop.permute.xlu1 %2297  ;;  %v3243_v11 = vld [vmem:[%s11238_s11 + $0x1e0] sm:$0xff]  ;;  %v1571_v55 = vld [vmem:[%s11236_s9 + $0x3a8] sm:$0xff] }
 0x250   : > { %11355 = vst [vmem:[#allocation116_spill] sm:$0xff] %v8304_v50  ;;  %v8312_v51 = vpop.permute.xlu0 %2292  ;;  %3578 = vperm.xlu1 %6425, %v3236_v29   ;;  %v1468_v29 = vld [vmem:[%s11236_s9 + $0x70] sm:$0xff] }
 0x251   : > { %11356 = vst [vmem:[#allocation117_spill] sm:$0xff] %v8312_v51  ;;  %6132 = vmatmul.mubr.f32.gmra.mrb[12].mxu0 %v1459_v32  ;;  %v1536_v32 = vld [vmem:[%s11236_s9 + $0x290] sm:$0xff]  ;;  %v1569_v51 = vld [vmem:[%s11236_s9 + $0x398] sm:$0xff] }
 0x252   : > { %6234 = vmatmul.mubr.f32.gmra.mrb[20].mxu1 %v1527_v8  ;;  %3573 = vperm.xlu0 %6424, %v3235_v33   ;;  %v3246_v8 = vld [vmem:[%s11238_s11 + $0x1f8] sm:$0xff] }
 0x253   : > { %6134 = vmatprep.mubr.f32.mxu0 %v1460_v1  ;;  %6236 = vmatprep.mubr.f32.mxu1 %v1528_v58  ;;  %v8326_v12 = vpop.permute.xlu1 %2307  ;;  %v1469_v33 = vld [vmem:[%s11236_s9 + $0x78] sm:$0xff] }
 0x254   : > { %11357 = vst [vmem:[#allocation118_spill] sm:$0xff] %v8326_v12  ;;  %v8334_v60 = vpop.permute.xlu0 %2302  ;;  %3588 = vperm.xlu1 %6425, %v3238_v37   ;;  %v1537_v58 = vld [vmem:[%s11236_s9 + $0x298] sm:$0xff]  ;;  %v3245_v37 = vld [vmem:[%s11238_s11 + $0x1f0] sm:$0xff] }
 0x255   : > { %11358 = vst [vmem:[#allocation119_spill] sm:$0xff] %v8334_v60  ;;  %6135 = vmatmul.mubr.f32.gmra.mrb[14].mxu0 %v1461_v20  ;;  %v1567_v60 = vld [vmem:[%s11236_s9 + $0x388] sm:$0xff] }
 0x256   : > { %6237 = vmatmul.mubr.f32.gmra.mrb[22].mxu1 %v1529_v36  ;;  %3583 = vperm.xlu0 %6424, %v3237_v16   ;;  %v1470_v36 = vld [vmem:[%s11236_s9 + $0x80] sm:$0xff] }
 0x257   : > { %6137 = vmatprep.mubr.f32.mxu0 %v1462_v40  ;;  %6239 = vmatprep.mubr.f32.mxu1 %v1530_v44  ;;  %v8348_v17 = vpop.permute.xlu1 %2317  ;;  %v1538_v16 = vld [vmem:[%s11236_s9 + $0x2a0] sm:$0xff]  ;;  %v3248_v40 = vld [vmem:[%s11238_s11 + $0x208] sm:$0xff] }
 0x258   : > { %11359 = vst [vmem:[#allocation120_spill] sm:$0xff] %v8348_v17  ;;  %v8356_v7 = vpop.permute.xlu0 %2312  ;;  %3598 = vperm.xlu1 %6425, %v3240_v41   ;;  %v1471_v44 = vld [vmem:[%s11236_s9 + $0x88] sm:$0xff] }
 0x259   : > { %11360 = vst [vmem:[#allocation121_spill] sm:$0xff] %v8356_v7  ;;  %6138 = vmatmul.mubr.f32.gmra.mrb[16].mxu0 %v1463_v18  ;;  %v1539_v18 = vld [vmem:[%s11236_s9 + $0x2a8] sm:$0xff]  ;;  %v1565_v7 = vld [vmem:[%s11236_s9 + $0x378] sm:$0xff] }
 0x25a   : > { %6240 = vmatmul.mubr.f32.gmra.mrb[24].mxu1 %v1531_v47  ;;  %3593 = vperm.xlu0 %6424, %v3239_v35   ;;  %v3247_v47 = vld [vmem:[%s11238_s11 + $0x200] sm:$0xff] }
 0x25b   : > { %6140 = vmatprep.mubr.f32.mxu0 %v1464_v57  ;;  %6242 = vmatprep.mubr.f32.mxu1 %v1532_v43  ;;  %v8370_v38 = vpop.permute.xlu1 %2327  ;;  %v1472_v57 = vld [vmem:[%s11236_s9 + $0x90] sm:$0xff] }
 0x25c   : > { %11361 = vst [vmem:[#allocation122_spill] sm:$0xff] %v8370_v38  ;;  %v8378_v24 = vpop.permute.xlu0 %2322  ;;  %3608 = vperm.xlu1 %6425, %v3242_v0   ;;  %v1540_v43 = vld [vmem:[%s11236_s9 + $0x2b0] sm:$0xff]  ;;  %v3250_v0 = vld [vmem:[%s11238_s11 + $0x218] sm:$0xff] }
 0x25d   : > { %11362 = vst [vmem:[#allocation123_spill] sm:$0xff] %v8378_v24  ;;  %6141 = vmatmul.mubr.f32.gmra.mrb[18].mxu0 %v1465_v52  ;;  %v1473_v52 = vld [vmem:[%s11236_s9 + $0x98] sm:$0xff]  ;;  %v1563_v24 = vld [vmem:[%s11236_s9 + $0x368] sm:$0xff] }
 0x25e   : > { %6243 = vmatmul.mubr.f32.gmra.mrb[26].mxu1 %v1533_v14  ;;  %3603 = vperm.xlu0 %6424, %v3241_v4   ;;  %v1541_v4 = vld [vmem:[%s11236_s9 + $0x2b8] sm:$0xff] }
 0x25f   : > { %6143 = vmatprep.mubr.f32.mxu0 %v1466_v39  ;;  %6245 = vmatprep.mubr.f32.mxu1 %v1534_v25  ;;  %v8392_v10 = vpop.permute.xlu1 %2337  ;;  %v3249_v39 = vld [vmem:[%s11238_s11 + $0x210] sm:$0xff] }
 0x260   : > { %11363 = vst [vmem:[#allocation124_spill] sm:$0xff] %v8392_v10  ;;  %v8400_v9 = vpop.permute.xlu0 %2332  ;;  %3618 = vperm.xlu1 %6425, %v3244_v46   ;;  %v1474_v46 = vld [vmem:[%s11236_s9 + $0xa0] sm:$0xff] }
 0x261   : > { %11364 = vst [vmem:[#allocation125_spill] sm:$0xff] %v8400_v9  ;;  %6144 = vmatmul.mubr.f32.gmra.mrb[20].mxu0 %v1467_v5  ;;  %v1542_v5 = vld [vmem:[%s11236_s9 + $0x2c0] sm:$0xff]  ;;  %v1561_v9 = vld [vmem:[%s11236_s9 + $0x358] sm:$0xff] }
 0x262   : > { %6246 = vmatmul.mubr.f32.gmra.mrb[28].mxu1 %v1535_v3  ;;  %3613 = vperm.xlu0 %6424, %v3243_v11   ;;  %v3252_v3 = vld [vmem:[%s11238_s11 + $0x228] sm:$0xff] }
 0x263   : > { %6146 = vmatprep.mubr.f32.mxu0 %v1468_v29  ;;  %6248 = vmatprep.mubr.f32.mxu1 %v1536_v32  ;;  %v8414_v1 = vpop.permute.xlu1 %2347  ;;  %v1475_v11 = vld [vmem:[%s11236_s9 + $0xa8] sm:$0xff] }
 0x264   : > { %11365 = vst [vmem:[#allocation126_spill] sm:$0xff] %v8414_v1  ;;  %v8422_v20 = vpop.permute.xlu0 %2342  ;;  %3628 = vperm.xlu1 %6425, %v3246_v8   ;;  %v1543_v32 = vld [vmem:[%s11236_s9 + $0x2c8] sm:$0xff]  ;;  %v3251_v8 = vld [vmem:[%s11238_s11 + $0x220] sm:$0xff]  ;;  %v1557_v1 = vld [vmem:[%s11236_s9 + $0x338] sm:$0xff] }
 0x265   : > { %11366 = vst [vmem:[#allocation127_spill] sm:$0xff] %v8422_v20  ;;  %6147 = vmatmul.mubr.f32.gmra.mrb[22].mxu0 %v1469_v33  ;;  %v1559_v20 = vld [vmem:[%s11236_s9 + $0x348] sm:$0xff] }
 0x266   : > { %6249 = vmatmul.mubr.f32.gmra.mrb[30].mxu1 %v1537_v58  ;;  %3623 = vperm.xlu0 %6424, %v3245_v37   ;;  %v1476_v58 = vld [vmem:[%s11236_s9 + $0xb0] sm:$0xff] }
 0x267   : > { %6149 = vmatprep.mubr.f32.mxu0 %v1470_v36  ;;  %6251 = vmatprep.mubr.f32.mxu1 %v1538_v16  ;;  %v8436_v41 = vpop.permute.xlu1 %3318  ;;  %v1544_v37 = vld [vmem:[%s11236_s9 + $0x2d0] sm:$0xff]  ;;  %v3254_v36 = vld [vmem:[%s11238_s11 + $0x238] sm:$0xff] }
 0x268   : > { %v8444_v35 = vpop.permute.xlu0 %3313  ;;  %3638 = vperm.xlu1 %6425, %v3248_v40   ;;  %v1477_v16 = vld [vmem:[%s11236_s9 + $0xb8] sm:$0xff] }
 0x269   : > { %6150 = vmatmul.mubr.f32.gmra.mrb[24].mxu0 %v1471_v44  ;;  %v1545_v44 = vld [vmem:[%s11236_s9 + $0x2d8] sm:$0xff] }
 0x26a   : > { %6252 = vmatmul.mubr.f32.gmra.mrb[32].mxu1 %v1539_v18  ;;  %3633 = vperm.xlu0 %6424, %v3247_v47   ;;  %v3253_v18 = vld [vmem:[%s11238_s11 + $0x230] sm:$0xff] }
 0x26b   : > { %6152 = vmatprep.mubr.f32.mxu0 %v1472_v57  ;;  %6254 = vmatprep.mubr.f32.mxu1 %v1540_v43  ;;  %v8458_v14 = vpop.permute.xlu1 %3328  ;;  %v1478_v57 = vld [vmem:[%s11236_s9 + $0xc0] sm:$0xff] }
 0x26c   : > { %v8466_v25 = vpop.permute.xlu0 %3323  ;;  %3648 = vperm.xlu1 %6425, %v3250_v0   ;;  %v1546_v43 = vld [vmem:[%s11236_s9 + $0x2e0] sm:$0xff]  ;;  %v3256_v0 = vld [vmem:[%s11238_s11 + $0x248] sm:$0xff] }
 0x26d   : > { %6153 = vmatmul.mubr.f32.gmra.mrb[26].mxu0 %v1473_v52  ;;  %v1479_v52 = vld [vmem:[%s11236_s9 + $0xc8] sm:$0xff] }
 0x26e   : > { %6255 = vmatmul.mubr.f32.gmra.mrb[34].mxu1 %v1541_v4  ;;  %3643 = vperm.xlu0 %6424, %v3249_v39   ;;  %v1547_v39 = vld [vmem:[%s11236_s9 + $0x2e8] sm:$0xff] }
 0x26f   : > { %6155 = vmatprep.mubr.f32.mxu0 %v1474_v46  ;;  %6257 = vmatprep.mubr.f32.mxu1 %v1542_v5  ;;  %v8480_v29 = vpop.permute.xlu1 %3338  ;;  %v3255_v46 = vld [vmem:[%s11238_s11 + $0x240] sm:$0xff] }
 0x270   : > { %v8488_v33 = vpop.permute.xlu0 %3333  ;;  %3658 = vperm.xlu1 %6425, %v3252_v3   ;;  %v1480_v3 = vld [vmem:[%s11236_s9 + $0xd0] sm:$0xff] }
 0x271   : > { %6156 = vmatmul.mubr.f32.gmra.mrb[28].mxu0 %v1475_v11  ;;  %v1548_v11 = vld [vmem:[%s11236_s9 + $0x2f0] sm:$0xff] }
 0x272   : > { %6258 = vmatmul.mubr.f32.gmra.mrb[36].mxu1 %v1543_v32  ;;  %3653 = vperm.xlu0 %6424, %v3251_v8   ;;  %v3258_v32 = vld [vmem:[%s11238_s11 + $0x258] sm:$0xff] }
 0x273   : > { %6158 = vmatprep.mubr.f32.mxu0 %v1476_v58  ;;  %6260 = vmatprep.mubr.f32.mxu1 %v1544_v37  ;;  %v8502_v40 = vpop.permute.xlu1 %3348  ;;  %v1481_v8 = vld [vmem:[%s11236_s9 + $0xd8] sm:$0xff] }
 0x274   : > { %v8510_v47 = vpop.permute.xlu0 %3343  ;;  %3668 = vperm.xlu1 %6425, %v3254_v36   ;;  %v1549_v37 = vld [vmem:[%s11236_s9 + $0x2f8] sm:$0xff]  ;;  %v3257_v36 = vld [vmem:[%s11238_s11 + $0x250] sm:$0xff] }
 0x275   : > { %6159 = vmatmul.mubr.f32.gmra.mrb[30].mxu0 %v1477_v16 }
 0x276   : > { %6261 = vmatmul.mubr.f32.gmra.mrb[38].mxu1 %v1545_v44  ;;  %3663 = vperm.xlu0 %6424, %v3253_v18   ;;  %v1482_v44 = vld [vmem:[%s11236_s9 + $0xe0] sm:$0xff] }
 0x277   : > { %6161 = vmatprep.mubr.f32.mxu0 %v1478_v57  ;;  %6263 = vmatprep.mubr.f32.mxu1 %v1546_v43  ;;  %v8524_v4 = vpop.permute.xlu1 %3358  ;;  %v1550_v18 = vld [vmem:[%s11236_s9 + $0x300] sm:$0xff]  ;;  %v3260_v57 = vld [vmem:[%s11238_s11 + $0x268] sm:$0xff] }
 0x278   : > { %v8532_v5 = vpop.permute.xlu0 %3353  ;;  %3678 = vperm.xlu1 %6425, %v3256_v0   ;;  %v1483_v43 = vld [vmem:[%s11236_s9 + $0xe8] sm:$0xff] }
 0x279   : > { %6162 = vmatmul.mubr.f32.gmra.mrb[32].mxu0 %v1479_v52  ;;  %v1551_v52 = vld [vmem:[%s11236_s9 + $0x308] sm:$0xff] }
 0x27a   : > { %6264 = vmatmul.mubr.f32.gmra.mrb[40].mxu1 %v1547_v39  ;;  %3673 = vperm.xlu0 %6424, %v3255_v46   ;;  %v3259_v39 = vld [vmem:[%s11238_s11 + $0x260] sm:$0xff] }
 0x27b   : > { %6164 = vmatprep.mubr.f32.mxu0 %v1480_v3  ;;  %6266 = vmatprep.mubr.f32.mxu1 %v1548_v11  ;;  %v8546_v58 = vpop.permute.xlu1 %3368  ;;  %v1484_v3 = vld [vmem:[%s11236_s9 + $0xf0] sm:$0xff] }
 0x27c   : > { %v8554_v16 = vpop.permute.xlu0 %3363  ;;  %3688 = vperm.xlu1 %6425, %v3258_v32   ;;  %v1552_v11 = vld [vmem:[%s11236_s9 + $0x310] sm:$0xff]  ;;  %v3262_v32 = vld [vmem:[%s11238_s11 + $0x278] sm:$0xff] }
 0x27d   : > { %6165 = vmatmul.mubr.f32.gmra.mrb[34].mxu0 %v1481_v8  ;;  %v1485_v8 = vld [vmem:[%s11236_s9 + $0xf8] sm:$0xff] }
 0x27e   : > { %6267 = vmatmul.mubr.f32.gmra.mrb[42].mxu1 %v1549_v37  ;;  %3683 = vperm.xlu0 %6424, %v3257_v36   ;;  %v1553_v36 = vld [vmem:[%s11236_s9 + $0x318] sm:$0xff] }
 0x27f   : > { %6167 = vmatprep.mubr.f32.mxu0 %v1482_v44  ;;  %6269 = vmatprep.mubr.f32.mxu1 %v1550_v18  ;;  %v8568_v0 = vpop.permute.xlu1 %3378  ;;  %v3261_v44 = vld [vmem:[%s11238_s11 + $0x270] sm:$0xff] }
 0x280   : > { %v8576_v46 = vpop.permute.xlu0 %3373  ;;  %3698 = vperm.xlu1 %6425, %v3260_v57   ;;  %v1486_v57 = vld [vmem:[%s11236_s9 + $0x100] sm:$0xff] }
 0x281   : > { %6168 = vmatmul.mubr.f32.gmra.mrb[36].mxu0 %v1483_v43  ;;  %v1554_v43 = vld [vmem:[%s11236_s9 + $0x320] sm:$0xff] }
 0x282   : > { %6270 = vmatmul.mubr.f32.gmra.mrb[44].mxu1 %v1551_v52  ;;  %3693 = vperm.xlu0 %6424, %v3259_v39   ;;  %v3264_v52 = vld [vmem:[%s11238_s11 + $0x288] sm:$0xff] }
 0x283   : > { %6170 = vmatprep.mubr.f32.mxu0 %v1484_v3  ;;  %6272 = vmatprep.mubr.f32.mxu1 %v1552_v11  ;;  %v8590_v37 = vpop.permute.xlu1 %3388  ;;  %v1487_v39 = vld [vmem:[%s11236_s9 + $0x108] sm:$0xff] }
 0x284   : > { %11367 = vst [vmem:[#allocation128_spill] sm:$0xff] %v8590_v37  ;;  %v8598_v18 = vpop.permute.xlu0 %3383  ;;  %3708 = vperm.xlu1 %6425, %v3262_v32   ;;  %v1555_v11 = vld [vmem:[%s11236_s9 + $0x328] sm:$0xff]  ;;  %v3263_v32 = vld [vmem:[%s11238_s11 + $0x280] sm:$0xff] }
 0x285   : > { %6171 = vmatmul.mubr.f32.gmra.mrb[38].mxu0 %v1485_v8 }
 0x286   : > { %6273 = vmatmul.mubr.f32.gmra.mrb[46].mxu1 %v1553_v36  ;;  %3703 = vperm.xlu0 %6424, %v3261_v44   ;;  %v1488_v36 = vld [vmem:[%s11236_s9 + $0x110] sm:$0xff] }
 0x287   : > { %6173 = vmatprep.mubr.f32.mxu0 %v1486_v57  ;;  %6275 = vmatprep.mubr.f32.mxu1 %v1554_v43  ;;  %v8612_v3 = vpop.permute.xlu1 %3398  ;;  %v1556_v44 = vld [vmem:[%s11236_s9 + $0x330] sm:$0xff]  ;;  %v3266_v57 = vld [vmem:[%s11238_s11 + $0x298] sm:$0xff] }
 0x288   : > { %11368 = vst [vmem:[#allocation129_spill] sm:$0xff] %v8612_v3  ;;  %v8620_v8 = vpop.permute.xlu0 %3393  ;;  %3718 = vperm.xlu1 %6425, %v3264_v52   ;;  %v1489_v43 = vld [vmem:[%s11236_s9 + $0x118] sm:$0xff] }
 0x289   : > { %11369 = vst [vmem:[#allocation130_spill] sm:$0xff] %v8620_v8  ;;  %6174 = vmatmul.mubr.f32.gmra.mrb[40].mxu0 %v1487_v39  ;;  %v3265_v39 = vld [vmem:[%s11238_s11 + $0x290] sm:$0xff] }
 0x28a   : > { %6276 = vmatmul.mubr.f32.gmra.mrb[48].mxu1 %v1555_v11  ;;  %3713 = vperm.xlu0 %6424, %v3263_v32   ;;  %v1490_v11 = vld [vmem:[%s11236_s9 + $0x120] sm:$0xff]  ;;  %v11649_v8 = vld [vmem:[#allocation5_spill] sm:$0xff] }
 0x28b   : > { %6176 = vmatprep.mubr.f32.mxu0 %v1488_v36  ;;  %6278 = vmatprep.mubr.f32.mxu1 %v1556_v44  ;;  %v8634_v52 = vpop.permute.xlu1 %3408  ;;  %v1558_v32 = vld [vmem:[%s11236_s9 + $0x340] sm:$0xff]  ;;  %v3268_v36 = vld [vmem:[%s11238_s11 + $0x2a8] sm:$0xff] }
 0x28c   : > { %11370 = vst [vmem:[#allocation131_spill] sm:$0xff] %v8634_v52  ;;  %v8642_v10 = vpop.permute.xlu0 %3403  ;;  %3728 = vperm.xlu1 %6425, %v3266_v57   ;;  %v1491_v44 = vld [vmem:[%s11236_s9 + $0x128] sm:$0xff] }
 0x28d   : > { %11371 = vst [vmem:[#allocation132_spill] sm:$0xff] %v8642_v10  ;;  %6177 = vmatmul.mubr.f32.gmra.mrb[42].mxu0 %v1489_v43  ;;  %v3267_v43 = vld [vmem:[%s11238_s11 + $0x2a0] sm:$0xff] }
 0x28e   : > { %6279 = vmatmul.mubr.f32.gmra.mrb[50].mxu1 %v1557_v1  ;;  %3723 = vperm.xlu0 %6424, %v3265_v39   ;;  %v1492_v1 = vld [vmem:[%s11236_s9 + $0x130] sm:$0xff] }
 0x28f   : > { %6179 = vmatprep.mubr.f32.mxu0 %v1490_v11  ;;  %6281 = vmatprep.mubr.f32.mxu1 %v1558_v32  ;;  %v8656_v57 = vpop.permute.xlu1 %3418  ;;  %v1560_v39 = vld [vmem:[%s11236_s9 + $0x350] sm:$0xff]  ;;  %v3270_v11 = vld [vmem:[%s11238_s11 + $0x2b8] sm:$0xff] }
 0x290   : > { %11372 = vst [vmem:[#allocation133_spill] sm:$0xff] %v8656_v57  ;;  %v8664_v38 = vpop.permute.xlu0 %3413  ;;  %3738 = vperm.xlu1 %6425, %v3268_v36   ;;  %v1493_v32 = vld [vmem:[%s11236_s9 + $0x138] sm:$0xff] }
 0x291   : > { %11373 = vst [vmem:[#allocation134_spill] sm:$0xff] %v8664_v38  ;;  %6180 = vmatmul.mubr.f32.gmra.mrb[44].mxu0 %v1491_v44  ;;  %v3269_v44 = vld [vmem:[%s11238_s11 + $0x2b0] sm:$0xff] }
 0x292   : > { %6282 = vmatmul.mubr.f32.gmra.mrb[52].mxu1 %v1559_v20  ;;  %3733 = vperm.xlu0 %6424, %v3267_v43   ;;  %v1494_v20 = vld [vmem:[%s11236_s9 + $0x140] sm:$0xff] }
 0x293   : > { %6182 = vmatprep.mubr.f32.mxu0 %v1492_v1  ;;  %6284 = vmatprep.mubr.f32.mxu1 %v1560_v39  ;;  %v8678_v36 = vpop.permute.xlu1 %3428  ;;  %v1562_v43 = vld [vmem:[%s11236_s9 + $0x360] sm:$0xff]  ;;  %v3272_v1 = vld [vmem:[%s11238_s11 + $0x2c8] sm:$0xff] }
 0x294   : > { %11374 = vst [vmem:[#allocation135_spill] sm:$0xff] %v8678_v36  ;;  %v8686_v17 = vpop.permute.xlu0 %3423  ;;  %3748 = vperm.xlu1 %6425, %v3270_v11   ;;  %v1495_v39 = vld [vmem:[%s11236_s9 + $0x148] sm:$0xff] }
 0x295   : > { %11375 = vst [vmem:[#allocation136_spill] sm:$0xff] %v8686_v17  ;;  %6183 = vmatmul.mubr.f32.gmra.mrb[46].mxu0 %v1493_v32  ;;  %v3271_v32 = vld [vmem:[%s11238_s11 + $0x2c0] sm:$0xff] }
 0x296   : > { %6285 = vmatmul.mubr.f32.gmra.mrb[54].mxu1 %v1561_v9  ;;  %3743 = vperm.xlu0 %6424, %v3269_v44   ;;  %v1496_v9 = vld [vmem:[%s11236_s9 + $0x150] sm:$0xff] }
 0x297   : > { %6185 = vmatprep.mubr.f32.mxu0 %v1494_v20  ;;  %6287 = vmatprep.mubr.f32.mxu1 %v1562_v43  ;;  %v8700_v11 = vpop.permute.xlu1 %3438  ;;  %v1564_v44 = vld [vmem:[%s11236_s9 + $0x370] sm:$0xff]  ;;  %v3274_v20 = vld [vmem:[%s11238_s11 + $0x2d8] sm:$0xff] }
 0x298   : > { %11376 = vst [vmem:[#allocation137_spill] sm:$0xff] %v8700_v11  ;;  %v8708_v12 = vpop.permute.xlu0 %3433  ;;  %3758 = vperm.xlu1 %6425, %v3272_v1   ;;  %v1497_v43 = vld [vmem:[%s11236_s9 + $0x158] sm:$0xff] }
 0x299   : > { %11377 = vst [vmem:[#allocation138_spill] sm:$0xff] %v8708_v12  ;;  %6186 = vmatmul.mubr.f32.gmra.mrb[48].mxu0 %v1495_v39  ;;  %v3273_v39 = vld [vmem:[%s11238_s11 + $0x2d0] sm:$0xff]  ;;  %v4134_v11 = vld [vmem:[%s11239_s12 + $0x1b8] sm:$0xff] }
 0x29a   : > { %6288 = vmatmul.mubr.f32.gmra.mrb[56].mxu1 %v1563_v24  ;;  %3753 = vperm.xlu0 %6424, %v3271_v32   ;;  %v1498_v24 = vld [vmem:[%s11236_s9 + $0x160] sm:$0xff] }
 0x29b   : > { %6188 = vmatprep.mubr.f32.mxu0 %v1496_v9  ;;  %6290 = vmatprep.mubr.f32.mxu1 %v1564_v44  ;;  %v8722_v1 = vpop.permute.xlu1 %3448  ;;  %v1566_v32 = vld [vmem:[%s11236_s9 + $0x380] sm:$0xff]  ;;  %v3276_v9 = vld [vmem:[%s11238_s11 + $0x2e8] sm:$0xff] }
 0x29c   : > { %11378 = vst [vmem:[#allocation139_spill] sm:$0xff] %v8722_v1  ;;  %v8730_v50 = vpop.permute.xlu0 %3443  ;;  %3768 = vperm.xlu1 %6425, %v3274_v20   ;;  %v1499_v44 = vld [vmem:[%s11236_s9 + $0x168] sm:$0xff] }
 0x29d   : > { %11379 = vst [vmem:[#allocation140_spill] sm:$0xff] %v8730_v50  ;;  %6189 = vmatmul.mubr.f32.gmra.mrb[50].mxu0 %v1497_v43  ;;  %v3275_v43 = vld [vmem:[%s11238_s11 + $0x2e0] sm:$0xff]  ;;  %v4132_v1 = vld [vmem:[%s11239_s12 + $0x1a8] sm:$0xff] }
 0x29e   : > { %6291 = vmatmul.mubr.f32.gmra.mrb[58].mxu1 %v1565_v7  ;;  %3763 = vperm.xlu0 %6424, %v3273_v39   ;;  %v1500_v7 = vld [vmem:[%s11236_s9 + $0x170] sm:$0xff] }
 0x29f   : > { %6191 = vmatprep.mubr.f32.mxu0 %v1498_v24  ;;  %6293 = vmatprep.mubr.f32.mxu1 %v1566_v32  ;;  %v8744_v20 = vpop.permute.xlu1 %3458  ;;  %v1568_v39 = vld [vmem:[%s11236_s9 + $0x390] sm:$0xff]  ;;  %v3278_v24 = vld [vmem:[%s11238_s11 + $0x2f8] sm:$0xff] }
 0x2a0   : > { %11380 = vst [vmem:[#allocation141_spill] sm:$0xff] %v8744_v20  ;;  %v8752_v61 = vpop.permute.xlu0 %3453  ;;  %3778 = vperm.xlu1 %6425, %v3276_v9   ;;  %v1501_v32 = vld [vmem:[%s11236_s9 + $0x178] sm:$0xff] }
 0x2a1   : > { %11381 = vst [vmem:[#allocation142_spill] sm:$0xff] %v8752_v61  ;;  %6192 = vmatmul.mubr.f32.gmra.mrb[52].mxu0 %v1499_v44  ;;  %v3277_v44 = vld [vmem:[%s11238_s11 + $0x2f0] sm:$0xff]  ;;  %v4130_v20 = vld [vmem:[%s11239_s12 + $0x198] sm:$0xff] }
 0x2a2   : > { %6294 = vmatmul.mubr.f32.gmra.mrb[60].mxu1 %v1567_v60  ;;  %3773 = vperm.xlu0 %6424, %v3275_v43   ;;  %v1502_v60 = vld [vmem:[%s11236_s9 + $0x180] sm:$0xff] }
 0x2a3   : > { %6194 = vmatprep.mubr.f32.mxu0 %v1500_v7  ;;  %6296 = vmatprep.mubr.f32.mxu1 %v1568_v39  ;;  %v8766_v9 = vpop.permute.xlu1 %3468  ;;  %v1570_v43 = vld [vmem:[%s11236_s9 + $0x3a0] sm:$0xff]  ;;  %v3280_v7 = vld [vmem:[%s11238_s11 + $0x308] sm:$0xff] }
 0x2a4   : > { %11382 = vst [vmem:[#allocation143_spill] sm:$0xff] %v8766_v9  ;;  %v8774_v48 = vpop.permute.xlu0 %3463  ;;  %3788 = vperm.xlu1 %6425, %v3278_v24   ;;  %v1503_v39 = vld [vmem:[%s11236_s9 + $0x188] sm:$0xff] }
 0x2a5   : > { %11383 = vst [vmem:[#allocation144_spill] sm:$0xff] %v8774_v48  ;;  %6195 = vmatmul.mubr.f32.gmra.mrb[54].mxu0 %v1501_v32  ;;  %v3279_v32 = vld [vmem:[%s11238_s11 + $0x300] sm:$0xff]  ;;  %v4128_v9 = vld [vmem:[%s11239_s12 + $0x188] sm:$0xff] }
 0x2a6   : > { %6297 = vmatmul.mubr.f32.gmra.mrb[62].mxu1 %v1569_v51  ;;  %3783 = vperm.xlu0 %6424, %v3277_v44   ;;  %v1504_v51 = vld [vmem:[%s11236_s9 + $0x190] sm:$0xff] }
 0x2a7   : > { %6197 = vmatprep.mubr.f32.mxu0 %v1502_v60  ;;  %6299 = vmatprep.mubr.f32.mxu1 %v1570_v43  ;;  %v8788_v24 = vpop.permute.xlu1 %3478  ;;  %v1572_v44 = vld [vmem:[%s11236_s9 + $0x3b0] sm:$0xff]  ;;  %v3282_v43 = vld [vmem:[%s11238_s11 + $0x318] sm:$0xff] }
 0x2a8   : > { %11384 = vst [vmem:[#allocation145_spill] sm:$0xff] %v8788_v24  ;;  %3798 = vperm.xlu1 %6425, %v3280_v7   ;;  %v1505_v7 = vld [vmem:[%s11236_s9 + $0x198] sm:$0xff] }
 0x2a9   : > { %v8802_v60 = vpop.permute.xlu0 %3473  ;;  %6198 = vmatmul.mubr.f32.gmra.mrb[56].mxu0 %v1503_v39  ;;  %v3281_v39 = vld [vmem:[%s11238_s11 + $0x310] sm:$0xff]  ;;  %v4126_v24 = vld [vmem:[%s11239_s12 + $0x178] sm:$0xff] }
 0x2aa   : > { %11385 = vst [vmem:[#allocation146_spill] sm:$0xff] %v8802_v60  ;;  %6300 = vmatmul.mubr.f32.gmra.mrb[64].mxu1 %v1571_v55  ;;  %3793 = vperm.xlu0 %6424, %v3279_v32   ;;  %v1506_v55 = vld [vmem:[%s11236_s9 + $0x1a0] sm:$0xff] }
 0x2ab   : > { %6200 = vmatprep.mubr.f32.mxu0 %v1504_v51  ;;  %6302 = vmatprep.mubr.f32.mxu1 %v1572_v44  ;;  %v8810_v28 = vpop.permute.xlu1 %3488  ;;  %v1574_v32 = vld [vmem:[%s11236_s9 + $0x3c0] sm:$0xff]  ;;  %v3284_v44 = vld [vmem:[%s11238_s11 + $0x328] sm:$0xff] }
 0x2ac   : > { %11386 = vst [vmem:[#allocation147_spill] sm:$0xff] %v8810_v28  ;;  %3808 = vperm.xlu1 %6425, %v3282_v43   ;;  %v1507_v43 = vld [vmem:[%s11236_s9 + $0x1a8] sm:$0xff] }
 0x2ad   : > { %v8824_v51 = vpop.permute.xlu0 %3483  ;;  %6201 = vmatmul.mubr.f32.gmra.mrb[58].mxu0 %v1505_v7  ;;  %v3283_v7 = vld [vmem:[%s11238_s11 + $0x320] sm:$0xff]  ;;  %v4124_v28 = vld [vmem:[%s11239_s12 + $0x168] sm:$0xff] }
 0x2ae   : > { %11387 = vst [vmem:[#allocation148_spill] sm:$0xff] %v8824_v51  ;;  %6303 = vmatmul.mubr.f32.gmra.mrb[66].mxu1 %v1573_v21  ;;  %3803 = vperm.xlu0 %6424, %v3281_v39   ;;  %v1508_v21 = vld [vmem:[%s11236_s9 + $0x1b0] sm:$0xff] }
 0x2af   : > { %6203 = vmatprep.mubr.f32.mxu0 %v1506_v55  ;;  %6305 = vmatprep.mubr.f32.mxu1 %v1574_v32  ;;  %v8832_v45 = vpop.permute.xlu1 %3498  ;;  %v1576_v39 = vld [vmem:[%s11236_s9 + $0x3d0] sm:$0xff]  ;;  %v3286_v32 = vld [vmem:[%s11238_s11 + $0x338] sm:$0xff] }
 0x2b0   : > { %11388 = vst [vmem:[#allocation149_spill] sm:$0xff] %v8832_v45  ;;  %3818 = vperm.xlu1 %6425, %v3284_v44   ;;  %v1509_v44 = vld [vmem:[%s11236_s9 + $0x1b8] sm:$0xff] }
 0x2b1   : > { %v8846_v55 = vpop.permute.xlu0 %3493  ;;  %6204 = vmatmul.mubr.f32.gmra.mrb[60].mxu0 %v1507_v43  ;;  %v3285_v43 = vld [vmem:[%s11238_s11 + $0x330] sm:$0xff]  ;;  %v4122_v45 = vld [vmem:[%s11239_s12 + $0x158] sm:$0xff] }
 0x2b2   : > { %11389 = vst [vmem:[#allocation150_spill] sm:$0xff] %v8846_v55  ;;  %6306 = vmatmul.mubr.f32.gmra.mrb[68].mxu1 %v1575_v30  ;;  %3813 = vperm.xlu0 %6424, %v3283_v7   ;;  %v1510_v30 = vld [vmem:[%s11236_s9 + $0x1c0] sm:$0xff] }
 0x2b3   : > { %6206 = vmatprep.mubr.f32.mxu0 %v1508_v21  ;;  %6308 = vmatprep.mubr.f32.mxu1 %v1576_v39  ;;  %v8854_v63 = vpop.permute.xlu1 %3508  ;;  %v1578_v7 = vld [vmem:[%s11236_s9 + $0x3e0] sm:$0xff]  ;;  %v3288_v39 = vld [vmem:[%s11238_s11 + $0x348] sm:$0xff] }
 0x2b4   : > { %11390 = vst [vmem:[#allocation151_spill] sm:$0xff] %v8854_v63  ;;  %3828 = vperm.xlu1 %6425, %v3286_v32   ;;  %v1511_v32 = vld [vmem:[%s11236_s9 + $0x1c8] sm:$0xff] }
 0x2b5   : > { %v8868_v21 = vpop.permute.xlu0 %3503  ;;  %6207 = vmatmul.mubr.f32.gmra.mrb[62].mxu0 %v1509_v44  ;;  %v3287_v44 = vld [vmem:[%s11238_s11 + $0x340] sm:$0xff]  ;;  %v4120_v63 = vld [vmem:[%s11239_s12 + $0x148] sm:$0xff] }
 0x2b6   : > { %11391 = vst [vmem:[#allocation152_spill] sm:$0xff] %v8868_v21  ;;  %6309 = vmatmul.mubr.f32.gmra.mrb[70].mxu1 %v1577_v26  ;;  %3823 = vperm.xlu0 %6424, %v3285_v43   ;;  %v1512_v26 = vld [vmem:[%s11236_s9 + $0x1d0] sm:$0xff] }
 0x2b7   : > { %6209 = vmatprep.mubr.f32.mxu0 %v1510_v30  ;;  %6311 = vmatprep.mubr.f32.mxu1 %v1578_v7  ;;  %v8876_v23 = vpop.permute.xlu1 %3518  ;;  %v1580_v43 = vld [vmem:[%s11236_s9 + $0x3f0] sm:$0xff]  ;;  %v3290_v7 = vld [vmem:[%s11238_s11 + $0x358] sm:$0xff] }
 0x2b8   : > { %11392 = vst [vmem:[#allocation153_spill] sm:$0xff] %v8876_v23  ;;  %3838 = vperm.xlu1 %6425, %v3288_v39   ;;  %v1513_v39 = vld [vmem:[%s11236_s9 + $0x1d8] sm:$0xff] }
 0x2b9   : > { %v8890_v30 = vpop.permute.xlu0 %3513  ;;  %6210 = vmatmul.mubr.f32.gmra.mrb[64].mxu0 %v1511_v32  ;;  %v3289_v32 = vld [vmem:[%s11238_s11 + $0x350] sm:$0xff]  ;;  %v4118_v23 = vld [vmem:[%s11239_s12 + $0x138] sm:$0xff] }
 0x2ba   : > { %11393 = vst [vmem:[#allocation154_spill] sm:$0xff] %v8890_v30  ;;  %6312 = vmatmul.mubr.f32.gmra.mrb[72].mxu1 %v1579_v56  ;;  %3833 = vperm.xlu0 %6424, %v3287_v44   ;;  %v1514_v56 = vld [vmem:[%s11236_s9 + $0x1e0] sm:$0xff] }
 0x2bb   : > { %6212 = vmatprep.mubr.f32.mxu0 %v1512_v26  ;;  %6314 = vmatprep.mubr.f32.mxu1 %v1580_v43  ;;  %v8898_v22 = vpop.permute.xlu1 %3528  ;;  %v3292_v26 = vld [vmem:[%s11238_s11 + $0x368] sm:$0xff] }
 0x2bc   : > { %11394 = vst [vmem:[#allocation155_spill] sm:$0xff] %v8898_v22  ;;  %3848 = vperm.xlu1 %6425, %v3290_v7   ;;  %v1515_v43 = vld [vmem:[%s11236_s9 + $0x1e8] sm:$0xff]  ;;  %v3291_v7 = vld [vmem:[%s11238_s11 + $0x360] sm:$0xff] }
 0x2bd   : > { %v8909_v44 = vpop.permute.xlu0 %3523  ;;  %6213 = vmatmul.mubr.f32.gmra.mrb[66].mxu0 %v1513_v39  ;;  %v1516_v39 = vld [vmem:[%s11236_s9 + $0x1f0] sm:$0xff]  ;;  %v4116_v22 = vld [vmem:[%s11239_s12 + $0x128] sm:$0xff] }
 0x2be   : > { %11395 = vst [vmem:[#allocation156_spill] sm:$0xff] %v8909_v44  ;;  %6315 = vmatmul.mubr.f32.gmra.mrb[74].mxu1 %v1581_v15  ;;  %3843 = vperm.xlu0 %6424, %v3289_v32   ;;  %v3294_v15 = vld [vmem:[%s11238_s11 + $0x378] sm:$0xff] }
 0x2bf   : > { %6215 = vmatprep.mubr.f32.mxu0 %v1514_v56  ;;  %v8917_v13 = vpop.permute.xlu1 %3538  ;;  %v1517_v32 = vld [vmem:[%s11236_s9 + $0x1f8] sm:$0xff] }
 0x2c0   : > { %11396 = vst [vmem:[#allocation157_spill] sm:$0xff] %v8917_v13  ;;  %3858 = vperm.xlu1 %6425, %v3292_v26   ;;  %v1518_v26 = vld [vmem:[%s11236_s9 + $0x200] sm:$0xff]  ;;  %v4114_v13 = vld [vmem:[%s11239_s12 + $0x118] sm:$0xff] }
 0x2c1   : > { %v8925_v19 = vpop.permute.xlu0 %3533  ;;  %6216 = vmatmul.mubr.f32.gmra.mrb[68].mxu0 %v1515_v43 }
 0x2c2   : > { %11397 = vst [vmem:[#allocation158_spill] sm:$0xff] %v8925_v19  ;;  %3853 = vperm.xlu0 %6424, %v3291_v7   ;;  %6218 = vmatprep.mubr.f32.mxu0 %v1516_v39  ;;  %v3296_v7 = vld [vmem:[%s11238_s11 + $0x388] sm:$0xff] }
 0x2c3   : > { %v8933_v56 = vpop.permute.xlu1 %3548  ;;  %v1519_v39 = vld [vmem:[%s11236_s9 + $0x208] sm:$0xff] }
 0x2c4   : > { %11398 = vst [vmem:[#allocation159_spill] sm:$0xff] %v8933_v56  ;;  %3868 = vperm.xlu1 %6425, %v3294_v15   ;;  %v1520_v15 = vld [vmem:[%s11236_s9 + $0x210] sm:$0xff]  ;;  %v4112_v56 = vld [vmem:[%s11239_s12 + $0x108] sm:$0xff] }
 0x2c5   : > { %v8941_v43 = vpop.permute.xlu0 %3543  ;;  %6219 = vmatmul.mubr.f32.gmra.mrb[70].mxu0 %v1517_v32 }
 0x2c6   : > { %11399 = vst [vmem:[#allocation160_spill] sm:$0xff] %v8941_v43  ;;  %3863 = vperm.xlu0 %6424, %v3293_v2   ;;  %6221 = vmatprep.mubr.f32.mxu0 %v1518_v26  ;;  %v3298_v2 = vld [vmem:[%s11238_s11 + $0x398] sm:$0xff] }
 0x2c7   : > { %v8949_v6 = vpop.permute.xlu1 %3558  ;;  %v1521_v26 = vld [vmem:[%s11236_s9 + $0x218] sm:$0xff] }
 0x2c8   : > { %11400 = vst [vmem:[#allocation161_spill] sm:$0xff] %v8949_v6  ;;  %3878 = vperm.xlu1 %6425, %v3296_v7   ;;  %v4110_v6 = vld [vmem:[%s11239_s12 + $0xf8] sm:$0xff] }
 0x2c9   : > { %v8957_v32 = vpop.permute.xlu0 %3553  ;;  %6222 = vmatmul.mubr.f32.gmra.mrb[72].mxu0 %v1519_v39  ;;  %v3300_v39 = vld [vmem:[%s11238_s11 + $0x3a8] sm:$0xff] }
 0x2ca   : > { %11401 = vst [vmem:[#allocation162_spill] sm:$0xff] %v8957_v32  ;;  %3873 = vperm.xlu0 %6424, %v3295_v62   ;;  %6224 = vmatprep.mubr.f32.mxu0 %v1520_v15  ;;  %v3299_v15 = vld [vmem:[%s11238_s11 + $0x3a0] sm:$0xff] }
 0x2cb   : > { %v8965_v49 = vpop.permute.xlu1 %3568 }
 0x2cc   : > { %11402 = vst [vmem:[#allocation163_spill] sm:$0xff] %v8965_v49  ;;  %3888 = vperm.xlu1 %6425, %v3298_v2   ;;  %v3302_v2 = vld [vmem:[%s11238_s11 + $0x3b8] sm:$0xff] }
 0x2cd   : > { %v8970_v7 = vpop.permute.xlu0 %3563  ;;  %6225 = vmatmul.mubr.f32.gmra.mrb[74].mxu0 %v1521_v26 }
 0x2ce   : > { %11403 = vst [vmem:[#allocation164_spill] sm:$0xff] %v8970_v7  ;;  %3883 = vperm.xlu0 %6424, %v3297_v34   ;;  %v3301_v34 = vld [vmem:[%s11238_s11 + $0x3b0] sm:$0xff] }
 0x2cf   : > { %v8975_v62 = vpop.permute.xlu1 %3578 }
 0x2d0   : > { %11404 = vst [vmem:[#allocation165_spill] sm:$0xff] %v8975_v62  ;;  %3898 = vperm.xlu1 %6425, %v3300_v39   ;;  %v3304_v39 = vld [vmem:[%s11238_s11 + $0x3c8] sm:$0xff] }
 0x2d1   : > { %v8980_v27 = vpop.permute.xlu0 %3573 }
 0x2d2   : > { %11405 = vst [vmem:[#allocation166_spill] sm:$0xff] %v8980_v27  ;;  %3893 = vperm.xlu0 %6424, %v3299_v15   ;;  %v3303_v15 = vld [vmem:[%s11238_s11 + $0x3c0] sm:$0xff] }
 0x2d3   : > { %v8985_v26 = vpop.permute.xlu1 %3588  ;;  %v4107_v27 = vld [vmem:[%s11239_s12 + $0xe0] sm:$0xff] }
 0x2d4   : > { %11406 = vst [vmem:[#allocation167_spill] sm:$0xff] %v8985_v26  ;;  %3908 = vperm.xlu1 %6425, %v3302_v2   ;;  %v3306_v2 = vld [vmem:[%s11238_s11 + $0x3d8] sm:$0xff] }
 0x2d5   : > { %v8990_v53 = vpop.permute.xlu0 %3583 }
 0x2d6   : > { %11407 = vst [vmem:[#allocation168_spill] sm:$0xff] %v8990_v53  ;;  %3903 = vperm.xlu0 %6424, %v3301_v34   ;;  %v3305_v34 = vld [vmem:[%s11238_s11 + $0x3d0] sm:$0xff] }
 0x2d7   : > { %v8995_v42 = vpop.permute.xlu1 %3598 }
 0x2d8   : > { %11408 = vst [vmem:[#allocation169_spill] sm:$0xff] %v8995_v42  ;;  %3918 = vperm.xlu1 %6425, %v3304_v39   ;;  %v3308_v39 = vld [vmem:[%s11238_s11 + $0x3e8] sm:$0xff] }
 0x2d9   : > { %v9000_v26 = vpop.permute.xlu0 %3593 }
 0x2da   : > { %11409 = vst [vmem:[#allocation170_spill] sm:$0xff] %v9000_v26  ;;  %3913 = vperm.xlu0 %6424, %v3303_v15   ;;  %v3307_v15 = vld [vmem:[%s11238_s11 + $0x3e0] sm:$0xff] }
 0x2db   : > { %v9005_v62 = vpop.permute.xlu1 %3608 }
 0x2dc   : > { %11410 = vst [vmem:[#allocation171_spill] sm:$0xff] %v9005_v62  ;;  %3928 = vperm.xlu1 %6425, %v3306_v2   ;;  %v3310_v2 = vld [vmem:[%s11238_s11 + $0x3f8] sm:$0xff] }
 0x2dd   : > { %v9010_v42 = vpop.permute.xlu0 %3603 }
 0x2de   : > { %11411 = vst [vmem:[#allocation172_spill] sm:$0xff] %v9010_v42  ;;  %3923 = vperm.xlu0 %6424, %v3305_v34   ;;  %v3309_v34 = vld [vmem:[%s11238_s11 + $0x3f0] sm:$0xff] }
 0x2df   : > { %v9015_v26 = vpop.permute.xlu1 %3618 }
 0x2e0   : > { %11412 = vst [vmem:[#allocation173_spill] sm:$0xff] %v9015_v26  ;;  %3938 = vperm.xlu1 %6425, %v3308_v39   ;;  %v4080_v39 = vld [vmem:[%s11239_s12 + $0x8] sm:$0xff] }
 0x2e1   : > { %v9020_v62 = vpop.permute.xlu0 %3613 }
 0x2e2   : > { %11413 = vst [vmem:[#allocation174_spill] sm:$0xff] %v9020_v62  ;;  %3933 = vperm.xlu0 %6424, %v3307_v15   ;;  %v4079_v15 = vld [vmem:[%s11239_s12] sm:$0xff] }
 0x2e3   : > { %v9025_v42 = vpop.permute.xlu1 %3628 }
 0x2e4   : > { %11414 = vst [vmem:[#allocation175_spill] sm:$0xff] %v9025_v42  ;;  %3948 = vperm.xlu1 %6425, %v3310_v2   ;;  %v4082_v2 = vld [vmem:[%s11239_s12 + $0x18] sm:$0xff] }
 0x2e5   : > { %v9030_v26 = vpop.permute.xlu0 %3623 }
 0x2e6   : > { %11415 = vst [vmem:[#allocation176_spill] sm:$0xff] %v9030_v26  ;;  %3943 = vperm.xlu0 %6424, %v3309_v34   ;;  %v4081_v34 = vld [vmem:[%s11239_s12 + $0x10] sm:$0xff] }
 0x2e7   : > { %v9035_v62 = vpop.permute.xlu1 %3638 }
 0x2e8   : > { %11416 = vst [vmem:[#allocation177_spill] sm:$0xff] %v9035_v62  ;;  %4214 = vperm.xlu1 %6425, %v4080_v39   ;;  %v4084_v39 = vld [vmem:[%s11239_s12 + $0x28] sm:$0xff] }
 0x2e9   : > { %v9040_v42 = vpop.permute.xlu0 %3633 }
 0x2ea   : > { %11417 = vst [vmem:[#allocation178_spill] sm:$0xff] %v9040_v42  ;;  %4209 = vperm.xlu0 %6424, %v4079_v15   ;;  %v4083_v15 = vld [vmem:[%s11239_s12 + $0x20] sm:$0xff] }
 0x2eb   : > { %v9045_v26 = vpop.permute.xlu1 %3648 }
 0x2ec   : > { %11418 = vst [vmem:[#allocation179_spill] sm:$0xff] %v9045_v26  ;;  %4224 = vperm.xlu1 %6425, %v4082_v2   ;;  %v4086_v2 = vld [vmem:[%s11239_s12 + $0x38] sm:$0xff] }
 0x2ed   : > { %v9050_v62 = vpop.permute.xlu0 %3643 }
 0x2ee   : > { %11419 = vst [vmem:[#allocation180_spill] sm:$0xff] %v9050_v62  ;;  %4219 = vperm.xlu0 %6424, %v4081_v34   ;;  %v4085_v34 = vld [vmem:[%s11239_s12 + $0x30] sm:$0xff] }
 0x2ef   : > { %v9055_v42 = vpop.permute.xlu1 %3658 }
 0x2f0   : > { %11420 = vst [vmem:[#allocation181_spill] sm:$0xff] %v9055_v42  ;;  %4234 = vperm.xlu1 %6425, %v4084_v39   ;;  %v4088_v39 = vld [vmem:[%s11239_s12 + $0x48] sm:$0xff] }
 0x2f1   : > { %v9060_v26 = vpop.permute.xlu0 %3653 }
 0x2f2   : > { %11421 = vst [vmem:[#allocation182_spill] sm:$0xff] %v9060_v26  ;;  %4229 = vperm.xlu0 %6424, %v4083_v15   ;;  %v4087_v15 = vld [vmem:[%s11239_s12 + $0x40] sm:$0xff] }
 0x2f3   : > { %v9065_v62 = vpop.permute.xlu1 %3668 }
 0x2f4   : > { %11422 = vst [vmem:[#allocation183_spill] sm:$0xff] %v9065_v62  ;;  %4244 = vperm.xlu1 %6425, %v4086_v2   ;;  %v4090_v2 = vld [vmem:[%s11239_s12 + $0x58] sm:$0xff] }
 0x2f5   : > { %v9070_v42 = vpop.permute.xlu0 %3663 }
 0x2f6   : > { %11423 = vst [vmem:[#allocation184_spill] sm:$0xff] %v9070_v42  ;;  %4239 = vperm.xlu0 %6424, %v4085_v34   ;;  %v4089_v34 = vld [vmem:[%s11239_s12 + $0x50] sm:$0xff] }
 0x2f7   : > { %v9075_v26 = vpop.permute.xlu1 %3678 }
 0x2f8   : > { %11424 = vst [vmem:[#allocation185_spill] sm:$0xff] %v9075_v26  ;;  %4254 = vperm.xlu1 %6425, %v4088_v39   ;;  %v4092_v39 = vld [vmem:[%s11239_s12 + $0x68] sm:$0xff] }
 0x2f9   : > { %v9080_v62 = vpop.permute.xlu0 %3673 }
 0x2fa   : > { %11425 = vst [vmem:[#allocation186_spill] sm:$0xff] %v9080_v62  ;;  %4249 = vperm.xlu0 %6424, %v4087_v15   ;;  %v4091_v15 = vld [vmem:[%s11239_s12 + $0x60] sm:$0xff] }
 0x2fb   : > { %v9085_v42 = vpop.permute.xlu1 %3688 }
 0x2fc   : > { %11426 = vst [vmem:[#allocation187_spill] sm:$0xff] %v9085_v42  ;;  %4264 = vperm.xlu1 %6425, %v4090_v2   ;;  %v4094_v2 = vld [vmem:[%s11239_s12 + $0x78] sm:$0xff] }
 0x2fd   : > { %v9090_v26 = vpop.permute.xlu0 %3683 }
 0x2fe   : > { %11427 = vst [vmem:[#allocation188_spill] sm:$0xff] %v9090_v26  ;;  %4259 = vperm.xlu0 %6424, %v4089_v34   ;;  %v4093_v34 = vld [vmem:[%s11239_s12 + $0x70] sm:$0xff] }
 0x2ff   : > { %v9095_v62 = vpop.permute.xlu1 %3698 }
 0x300   : > { %11428 = vst [vmem:[#allocation189_spill] sm:$0xff] %v9095_v62  ;;  %4274 = vperm.xlu1 %6425, %v4092_v39   ;;  %v4096_v39 = vld [vmem:[%s11239_s12 + $0x88] sm:$0xff] }
 0x301   : > { %v9100_v42 = vpop.permute.xlu0 %3693 }
 0x302   : > { %11429 = vst [vmem:[#allocation190_spill] sm:$0xff] %v9100_v42  ;;  %4269 = vperm.xlu0 %6424, %v4091_v15   ;;  %v4095_v15 = vld [vmem:[%s11239_s12 + $0x80] sm:$0xff] }
 0x303   : > { %v9105_v26 = vpop.permute.xlu1 %3708 }
 0x304   : > { %11430 = vst [vmem:[#allocation191_spill] sm:$0xff] %v9105_v26  ;;  %4284 = vperm.xlu1 %6425, %v4094_v2   ;;  %v4098_v2 = vld [vmem:[%s11239_s12 + $0x98] sm:$0xff] }
 0x305   : > { %v9110_v62 = vpop.permute.xlu0 %3703 }
 0x306   : > { %11431 = vst [vmem:[#allocation192_spill] sm:$0xff] %v9110_v62  ;;  %4279 = vperm.xlu0 %6424, %v4093_v34   ;;  %v4097_v34 = vld [vmem:[%s11239_s12 + $0x90] sm:$0xff] }
 0x307   : > { %v9115_v42 = vpop.permute.xlu1 %3718 }
 0x308   : > { %11432 = vst [vmem:[#allocation193_spill] sm:$0xff] %v9115_v42  ;;  %4294 = vperm.xlu1 %6425, %v4096_v39   ;;  %v4100_v39 = vld [vmem:[%s11239_s12 + $0xa8] sm:$0xff] }
 0x309   : > { %v9120_v26 = vpop.permute.xlu0 %3713 }
 0x30a   : > { %11433 = vst [vmem:[#allocation194_spill] sm:$0xff] %v9120_v26  ;;  %4289 = vperm.xlu0 %6424, %v4095_v15   ;;  %v4099_v15 = vld [vmem:[%s11239_s12 + $0xa0] sm:$0xff] }
 0x30b   : > { %v9125_v62 = vpop.permute.xlu1 %3728 }
 0x30c   : > { %11434 = vst [vmem:[#allocation195_spill] sm:$0xff] %v9125_v62  ;;  %4304 = vperm.xlu1 %6425, %v4098_v2   ;;  %v4102_v2 = vld [vmem:[%s11239_s12 + $0xb8] sm:$0xff] }
 0x30d   : > { %v9130_v42 = vpop.permute.xlu0 %3723 }
 0x30e   : > { %11435 = vst [vmem:[#allocation196_spill] sm:$0xff] %v9130_v42  ;;  %4299 = vperm.xlu0 %6424, %v4097_v34   ;;  %v4101_v34 = vld [vmem:[%s11239_s12 + $0xb0] sm:$0xff] }
 0x30f   : > { %v9135_v26 = vpop.permute.xlu1 %3738 }
 0x310   : > { %11436 = vst [vmem:[#allocation197_spill] sm:$0xff] %v9135_v26  ;;  %4314 = vperm.xlu1 %6425, %v4100_v39   ;;  %v4104_v39 = vld [vmem:[%s11239_s12 + $0xc8] sm:$0xff] }
 0x311   : > { %v9140_v62 = vpop.permute.xlu0 %3733 }
 0x312   : > { %11437 = vst [vmem:[#allocation198_spill] sm:$0xff] %v9140_v62  ;;  %4309 = vperm.xlu0 %6424, %v4099_v15   ;;  %v4103_v15 = vld [vmem:[%s11239_s12 + $0xc0] sm:$0xff] }
 0x313   : > { %v9145_v42 = vpop.permute.xlu1 %3748 }
 0x314   : > { %11438 = vst [vmem:[#allocation199_spill] sm:$0xff] %v9145_v42  ;;  %4324 = vperm.xlu1 %6425, %v4102_v2   ;;  %v4106_v2 = vld [vmem:[%s11239_s12 + $0xd8] sm:$0xff] }
 0x315   : > { %v9150_v26 = vpop.permute.xlu0 %3743 }
 0x316   : > { %11439 = vst [vmem:[#allocation200_spill] sm:$0xff] %v9150_v26  ;;  %4319 = vperm.xlu0 %6424, %v4101_v34   ;;  %v4105_v34 = vld [vmem:[%s11239_s12 + $0xd0] sm:$0xff] }
 0x317   : > { %v9155_v62 = vpop.permute.xlu1 %3758 }
 0x318   : > { %11440 = vst [vmem:[#allocation201_spill] sm:$0xff] %v9155_v62  ;;  %4334 = vperm.xlu1 %6425, %v4104_v39   ;;  %v4108_v39 = vld [vmem:[%s11239_s12 + $0xe8] sm:$0xff] }
 0x319   : > { %v9160_v42 = vpop.permute.xlu0 %3753 }
 0x31a   : > { %11441 = vst [vmem:[#allocation202_spill] sm:$0xff] %v9160_v42  ;;  %4329 = vperm.xlu0 %6424, %v4103_v15  }
 0x31b   : > { %v9165_v26 = vpop.permute.xlu1 %3768 }
 0x31c   : > { %11442 = vst [vmem:[#allocation203_spill] sm:$0xff] %v9165_v26  ;;  %v9170_v53 = vpop.f32.mrb[8].mxu0  ;;  %4344 = vperm.xlu1 %6425, %v4106_v2  }
 0x31d   : > { %v9172_v62 = vpop.f32.mrb[16].mxu1  ;;  %v9174_v49 = vpop.permute.xlu0 %3763 }
 0x31e   : > { %11443 = vst [vmem:[#allocation204_spill] sm:$0xff] %v9172_v62  ;;  %11444 = vst [vmem:[#allocation205_spill] sm:$0xff] %v9174_v49  ;;  %v9179_v42 = vpop.f32.mrb[9].mxu0  ;;  %v9181_v15 = vpop.f32.mrb[17].mxu1  ;;  %4339 = vperm.xlu0 %6424, %v4105_v34  }
 0x31f   : > { %11445 = vst [vmem:[#allocation206_spill] sm:$0xff] %v9181_v15  ;;  %v9183_v26 = vpop.permute.xlu1 %3778  ;;  %v4109_v15 = vld [vmem:[%s11239_s12 + $0xf0] sm:$0xff] }
 0x320   : > { %11446 = vst [vmem:[#allocation207_spill] sm:$0xff] %v9183_v26  ;;  %v9188_v2 = vpop.f32.mrb[10].mxu0  ;;  %4354 = vperm.xlu1 %6425, %v4108_v39  }
 0x321   : > { %v9190_v62 = vpop.f32.mrb[18].mxu1  ;;  %v9192_v49 = vpop.permute.xlu0 %3773 }
 0x322   : > { %11447 = vst [vmem:[#allocation208_spill] sm:$0xff] %v9190_v62  ;;  %11448 = vst [vmem:[#allocation209_spill] sm:$0xff] %v9192_v49  ;;  %v9197_v7 = vpop.f32.mrb[11].mxu0  ;;  %v9199_v34 = vpop.f32.mrb[19].mxu1  ;;  %4349 = vperm.xlu0 %6424, %v4107_v27  }
 0x323   : > { %11449 = vst [vmem:[#allocation210_spill] sm:$0xff] %v9199_v34  ;;  %v9201_v26 = vpop.permute.xlu1 %3788  ;;  %v4111_v34 = vld [vmem:[%s11239_s12 + $0x100] sm:$0xff] }
 0x324   : > { %11450 = vst [vmem:[#allocation211_spill] sm:$0xff] %v9201_v26  ;;  %v9206_v39 = vpop.f32.mrb[12].mxu0  ;;  %4364 = vperm.xlu1 %6425, %v4110_v6  }
 0x325   : > { %v9208_v62 = vpop.f32.mrb[20].mxu1  ;;  %v9210_v49 = vpop.permute.xlu0 %3783 }
 0x326   : > { %11451 = vst [vmem:[#allocation212_spill] sm:$0xff] %v9208_v62  ;;  %11452 = vst [vmem:[#allocation213_spill] sm:$0xff] %v9210_v49  ;;  %v9215_v32 = vpop.f32.mrb[13].mxu0  ;;  %v9217_v27 = vpop.f32.mrb[21].mxu1  ;;  %4359 = vperm.xlu0 %6424, %v4109_v15  }
 0x327   : > { %11453 = vst [vmem:[#allocation214_spill] sm:$0xff] %v9217_v27  ;;  %v9219_v26 = vpop.permute.xlu1 %3798  ;;  %v4113_v27 = vld [vmem:[%s11239_s12 + $0x110] sm:$0xff] }
 0x328   : > { %11454 = vst [vmem:[#allocation215_spill] sm:$0xff] %v9219_v26  ;;  %v9224_v6 = vpop.f32.mrb[14].mxu0  ;;  %4374 = vperm.xlu1 %6425, %v4112_v56  }
 0x329   : > { %v9226_v62 = vpop.f32.mrb[22].mxu1  ;;  %v9228_v49 = vpop.permute.xlu0 %3793 }
 0x32a   : > { %11455 = vst [vmem:[#allocation216_spill] sm:$0xff] %v9226_v62  ;;  %11456 = vst [vmem:[#allocation217_spill] sm:$0xff] %v9228_v49  ;;  %v9233_v43 = vpop.f32.mrb[15].mxu0  ;;  %v9235_v15 = vpop.f32.mrb[23].mxu1  ;;  %4369 = vperm.xlu0 %6424, %v4111_v34  }
 0x32b   : > { %11457 = vst [vmem:[#allocation218_spill] sm:$0xff] %v9235_v15  ;;  %v9237_v26 = vpop.permute.xlu1 %3808  ;;  %v4115_v15 = vld [vmem:[%s11239_s12 + $0x120] sm:$0xff] }
 0x32c   : > { %11458 = vst [vmem:[#allocation219_spill] sm:$0xff] %v9237_v26  ;;  %v9242_v56 = vpop.f32.mrb[16].mxu0  ;;  %4384 = vperm.xlu1 %6425, %v4114_v13  }
 0x32d   : > { %v9244_v62 = vpop.f32.mrb[24].mxu1  ;;  %v9246_v49 = vpop.permute.xlu0 %3803 }
 0x32e   : > { %11459 = vst [vmem:[#allocation220_spill] sm:$0xff] %v9244_v62  ;;  %11460 = vst [vmem:[#allocation221_spill] sm:$0xff] %v9246_v49  ;;  %v9251_v19 = vpop.f32.mrb[17].mxu0  ;;  %v9253_v34 = vpop.f32.mrb[25].mxu1  ;;  %4379 = vperm.xlu0 %6424, %v4113_v27  }
 0x32f   : > { %11461 = vst [vmem:[#allocation222_spill] sm:$0xff] %v9253_v34  ;;  %v9255_v26 = vpop.permute.xlu1 %3818  ;;  %v4117_v34 = vld [vmem:[%s11239_s12 + $0x130] sm:$0xff] }
 0x330   : > { %11462 = vst [vmem:[#allocation223_spill] sm:$0xff] %v9255_v26  ;;  %v9260_v13 = vpop.f32.mrb[18].mxu0  ;;  %4394 = vperm.xlu1 %6425, %v4116_v22  }
 0x331   : > { %v9262_v62 = vpop.f32.mrb[26].mxu1  ;;  %v9264_v49 = vpop.permute.xlu0 %3813 }
 0x332   : > { %11463 = vst [vmem:[#allocation224_spill] sm:$0xff] %v9262_v62  ;;  %11464 = vst [vmem:[#allocation225_spill] sm:$0xff] %v9264_v49  ;;  %v9269_v44 = vpop.f32.mrb[19].mxu0  ;;  %v9271_v27 = vpop.f32.mrb[27].mxu1  ;;  %4389 = vperm.xlu0 %6424, %v4115_v15  }
 0x333   : > { %11465 = vst [vmem:[#allocation226_spill] sm:$0xff] %v9271_v27  ;;  %v9273_v26 = vpop.permute.xlu1 %3828  ;;  %v4119_v27 = vld [vmem:[%s11239_s12 + $0x140] sm:$0xff] }
 0x334   : > { %11466 = vst [vmem:[#allocation227_spill] sm:$0xff] %v9273_v26  ;;  %v9278_v22 = vpop.f32.mrb[20].mxu0  ;;  %4404 = vperm.xlu1 %6425, %v4118_v23  }
 0x335   : > { %v9280_v62 = vpop.f32.mrb[28].mxu1  ;;  %v9282_v49 = vpop.permute.xlu0 %3823 }
 0x336   : > { %11467 = vst [vmem:[#allocation228_spill] sm:$0xff] %v9280_v62  ;;  %11468 = vst [vmem:[#allocation229_spill] sm:$0xff] %v9282_v49  ;;  %v9287_v30 = vpop.f32.mrb[21].mxu0  ;;  %v9289_v15 = vpop.f32.mrb[29].mxu1  ;;  %4399 = vperm.xlu0 %6424, %v4117_v34  }
 0x337   : > { %11469 = vst [vmem:[#allocation230_spill] sm:$0xff] %v9289_v15  ;;  %v9291_v26 = vpop.permute.xlu1 %3838  ;;  %v4121_v15 = vld [vmem:[%s11239_s12 + $0x150] sm:$0xff] }
 0x338   : > { %11470 = vst [vmem:[#allocation231_spill] sm:$0xff] %v9291_v26  ;;  %v9296_v23 = vpop.f32.mrb[22].mxu0  ;;  %4414 = vperm.xlu1 %6425, %v4120_v63  }
 0x339   : > { %v9298_v62 = vpop.f32.mrb[30].mxu1  ;;  %v9300_v49 = vpop.permute.xlu0 %3833 }
 0x33a   : > { %11471 = vst [vmem:[#allocation232_spill] sm:$0xff] %v9298_v62  ;;  %11472 = vst [vmem:[#allocation233_spill] sm:$0xff] %v9300_v49  ;;  %v9305_v21 = vpop.f32.mrb[23].mxu0  ;;  %v9307_v34 = vpop.f32.mrb[31].mxu1  ;;  %4409 = vperm.xlu0 %6424, %v4119_v27  }
 0x33b   : > { %11473 = vst [vmem:[#allocation234_spill] sm:$0xff] %v9307_v34  ;;  %v9309_v26 = vpop.permute.xlu1 %3848  ;;  %v4123_v34 = vld [vmem:[%s11239_s12 + $0x160] sm:$0xff] }
 0x33c   : > { %11474 = vst [vmem:[#allocation235_spill] sm:$0xff] %v9309_v26  ;;  %v9314_v63 = vpop.f32.mrb[24].mxu0  ;;  %4424 = vperm.xlu1 %6425, %v4122_v45  }
 0x33d   : > { %v9316_v62 = vpop.f32.mrb[32].mxu1  ;;  %v9318_v49 = vpop.permute.xlu0 %3843 }
 0x33e   : > { %11475 = vst [vmem:[#allocation236_spill] sm:$0xff] %v9316_v62  ;;  %11476 = vst [vmem:[#allocation237_spill] sm:$0xff] %v9318_v49  ;;  %v9323_v55 = vpop.f32.mrb[25].mxu0  ;;  %v9325_v27 = vpop.f32.mrb[33].mxu1  ;;  %4419 = vperm.xlu0 %6424, %v4121_v15  }
 0x33f   : > { %11477 = vst [vmem:[#allocation238_spill] sm:$0xff] %v9325_v27  ;;  %v9327_v26 = vpop.permute.xlu1 %3858  ;;  %v4125_v27 = vld [vmem:[%s11239_s12 + $0x170] sm:$0xff] }
 0x340   : > { %11478 = vst [vmem:[#allocation239_spill] sm:$0xff] %v9327_v26  ;;  %v9332_v45 = vpop.f32.mrb[26].mxu0  ;;  %4434 = vperm.xlu1 %6425, %v4124_v28  }
 0x341   : > { %11479 = vst [vmem:[#allocation240_spill] sm:$0xff] %v9332_v45  ;;  %v9334_v62 = vpop.f32.mrb[34].mxu1  ;;  %v9336_v49 = vpop.permute.xlu0 %3853 }
 0x342   : > { %11480 = vst [vmem:[#allocation241_spill] sm:$0xff] %v9334_v62  ;;  %11481 = vst [vmem:[#allocation242_spill] sm:$0xff] %v9336_v49  ;;  %v9341_v51 = vpop.f32.mrb[27].mxu0  ;;  %v9343_v15 = vpop.f32.mrb[35].mxu1  ;;  %4429 = vperm.xlu0 %6424, %v4123_v34  }
 0x343   : > { %11482 = vst [vmem:[#allocation243_spill] sm:$0xff] %v9343_v15  ;;  %v9345_v26 = vpop.permute.xlu1 %3868  ;;  %v4127_v15 = vld [vmem:[%s11239_s12 + $0x180] sm:$0xff] }
 0x344   : > { %11483 = vst [vmem:[#allocation244_spill] sm:$0xff] %v9345_v26  ;;  %v9350_v28 = vpop.f32.mrb[28].mxu0  ;;  %4444 = vperm.xlu1 %6425, %v4126_v24  }
 0x345   : > { %11484 = vst [vmem:[#allocation245_spill] sm:$0xff] %v9350_v28  ;;  %v9352_v62 = vpop.f32.mrb[36].mxu1  ;;  %v9354_v49 = vpop.permute.xlu0 %3863 }
 0x346   : > { %11485 = vst [vmem:[#allocation246_spill] sm:$0xff] %v9352_v62  ;;  %11486 = vst [vmem:[#allocation247_spill] sm:$0xff] %v9354_v49  ;;  %v9359_v60 = vpop.f32.mrb[29].mxu0  ;;  %v9361_v34 = vpop.f32.mrb[37].mxu1  ;;  %4439 = vperm.xlu0 %6424, %v4125_v27  }
 0x347   : > { %11487 = vst [vmem:[#allocation248_spill] sm:$0xff] %v9359_v60  ;;  %11488 = vst [vmem:[#allocation249_spill] sm:$0xff] %v9361_v34  ;;  %v9363_v26 = vpop.permute.xlu1 %3878  ;;  %v4129_v34 = vld [vmem:[%s11239_s12 + $0x190] sm:$0xff] }
 0x348   : > { %11489 = vst [vmem:[#allocation250_spill] sm:$0xff] %v9363_v26  ;;  %v9368_v24 = vpop.f32.mrb[30].mxu0  ;;  %4454 = vperm.xlu1 %6425, %v4128_v9  }
 0x349   : > { %11490 = vst [vmem:[#allocation251_spill] sm:$0xff] %v9368_v24  ;;  %v9370_v62 = vpop.f32.mrb[38].mxu1  ;;  %v9372_v49 = vpop.permute.xlu0 %3873 }
 0x34a   : > { %11491 = vst [vmem:[#allocation252_spill] sm:$0xff] %v9370_v62  ;;  %11492 = vst [vmem:[#allocation253_spill] sm:$0xff] %v9372_v49  ;;  %v9377_v48 = vpop.f32.mrb[31].mxu0  ;;  %v9379_v27 = vpop.f32.mrb[39].mxu1  ;;  %4449 = vperm.xlu0 %6424, %v4127_v15  }
 0x34b   : > { %11493 = vst [vmem:[#allocation254_spill] sm:$0xff] %v9377_v48  ;;  %11494 = vst [vmem:[#allocation255_spill] sm:$0xff] %v9379_v27  ;;  %v9381_v26 = vpop.permute.xlu1 %3888  ;;  %v4131_v27 = vld [vmem:[%s11239_s12 + $0x1a0] sm:$0xff] }
 0x34c   : > { %11495 = vst [vmem:[#allocation256_spill] sm:$0xff] %v9381_v26  ;;  %v9386_v9 = vpop.f32.mrb[32].mxu0  ;;  %4464 = vperm.xlu1 %6425, %v4130_v20  }
 0x34d   : > { %11496 = vst [vmem:[#allocation257_spill] sm:$0xff] %v9386_v9  ;;  %v9388_v62 = vpop.f32.mrb[40].mxu1  ;;  %v9390_v49 = vpop.permute.xlu0 %3883 }
 0x34e   : > { %11497 = vst [vmem:[#allocation258_spill] sm:$0xff] %v9388_v62  ;;  %11498 = vst [vmem:[#allocation259_spill] sm:$0xff] %v9390_v49  ;;  %v9395_v61 = vpop.f32.mrb[33].mxu0  ;;  %v9397_v15 = vpop.f32.mrb[41].mxu1  ;;  %4459 = vperm.xlu0 %6424, %v4129_v34  }
 0x34f   : > { %11499 = vst [vmem:[#allocation260_spill] sm:$0xff] %v9395_v61  ;;  %11500 = vst [vmem:[#allocation261_spill] sm:$0xff] %v9397_v15  ;;  %v9399_v26 = vpop.permute.xlu1 %3898  ;;  %v4133_v15 = vld [vmem:[%s11239_s12 + $0x1b0] sm:$0xff] }
 0x350   : > { %11501 = vst [vmem:[#allocation262_spill] sm:$0xff] %v9399_v26  ;;  %v9404_v20 = vpop.f32.mrb[34].mxu0  ;;  %4474 = vperm.xlu1 %6425, %v4132_v1  }
 0x351   : > { %11502 = vst [vmem:[#allocation263_spill] sm:$0xff] %v9404_v20  ;;  %v9406_v62 = vpop.f32.mrb[42].mxu1  ;;  %v9408_v49 = vpop.permute.xlu0 %3893  ;;  %v4136_v20 = vld [vmem:[%s11239_s12 + $0x1c8] sm:$0xff] }
 0x352   : > { %11503 = vst [vmem:[#allocation264_spill] sm:$0xff] %v9406_v62  ;;  %11504 = vst [vmem:[#allocation265_spill] sm:$0xff] %v9408_v49  ;;  %v9413_v50 = vpop.f32.mrb[35].mxu0  ;;  %v9415_v34 = vpop.f32.mrb[43].mxu1  ;;  %4469 = vperm.xlu0 %6424, %v4131_v27  }
 0x353   : > { %11505 = vst [vmem:[#allocation266_spill] sm:$0xff] %v9413_v50  ;;  %11506 = vst [vmem:[#allocation267_spill] sm:$0xff] %v9415_v34  ;;  %v9417_v26 = vpop.permute.xlu1 %3908  ;;  %v4135_v34 = vld [vmem:[%s11239_s12 + $0x1c0] sm:$0xff] }
 0x354   : > { %11507 = vst [vmem:[#allocation268_spill] sm:$0xff] %v9417_v26  ;;  %v9422_v1 = vpop.f32.mrb[36].mxu0  ;;  %4484 = vperm.xlu1 %6425, %v4134_v11  }
 0x355   : > { %11508 = vst [vmem:[#allocation269_spill] sm:$0xff] %v9422_v1  ;;  %v9424_v62 = vpop.f32.mrb[44].mxu1  ;;  %v9426_v49 = vpop.permute.xlu0 %3903  ;;  %v4138_v1 = vld [vmem:[%s11239_s12 + $0x1d8] sm:$0xff] }
 0x356   : > { %11509 = vst [vmem:[#allocation270_spill] sm:$0xff] %v9424_v62  ;;  %11510 = vst [vmem:[#allocation271_spill] sm:$0xff] %v9426_v49  ;;  %v9431_v36 = vpop.f32.mrb[37].mxu0  ;;  %v9433_v27 = vpop.f32.mrb[45].mxu1  ;;  %4479 = vperm.xlu0 %6424, %v4133_v15  }
 0x357   : > { %11511 = vst [vmem:[#allocation272_spill] sm:$0xff] %v9431_v36  ;;  %11512 = vst [vmem:[#allocation273_spill] sm:$0xff] %v9433_v27  ;;  %v9435_v26 = vpop.permute.xlu1 %3918  ;;  %v4137_v27 = vld [vmem:[%s11239_s12 + $0x1d0] sm:$0xff] }
 0x358   : > { %11513 = vst [vmem:[#allocation274_spill] sm:$0xff] %v9435_v26  ;;  %v9440_v11 = vpop.f32.mrb[38].mxu0  ;;  %4494 = vperm.xlu1 %6425, %v4136_v20  }
 0x359   : > { %11514 = vst [vmem:[#allocation275_spill] sm:$0xff] %v9440_v11  ;;  %v9442_v62 = vpop.f32.mrb[46].mxu1  ;;  %v9444_v49 = vpop.permute.xlu0 %3913  ;;  %v4140_v11 = vld [vmem:[%s11239_s12 + $0x1e8] sm:$0xff] }
 0x35a   : > { %11515 = vst [vmem:[#allocation276_spill] sm:$0xff] %v9442_v62  ;;  %11516 = vst [vmem:[#allocation277_spill] sm:$0xff] %v9444_v49  ;;  %v9449_v36 = vpop.f32.mrb[39].mxu0  ;;  %v9451_v15 = vpop.f32.mrb[47].mxu1  ;;  %4489 = vperm.xlu0 %6424, %v4135_v34  }
 0x35b   : > { %11517 = vst [vmem:[#allocation278_spill] sm:$0xff] %v9449_v36  ;;  %11518 = vst [vmem:[#allocation279_spill] sm:$0xff] %v9451_v15  ;;  %v9453_v26 = vpop.permute.xlu1 %3928  ;;  %v4139_v15 = vld [vmem:[%s11239_s12 + $0x1e0] sm:$0xff] }
 0x35c   : > { %11519 = vst [vmem:[#allocation280_spill] sm:$0xff] %v9453_v26  ;;  %v9458_v20 = vpop.f32.mrb[40].mxu0  ;;  %4504 = vperm.xlu1 %6425, %v4138_v1  }
 0x35d   : > { %11520 = vst [vmem:[#allocation281_spill] sm:$0xff] %v9458_v20  ;;  %v9460_v62 = vpop.f32.mrb[48].mxu1  ;;  %v9462_v49 = vpop.permute.xlu0 %3923  ;;  %v4142_v20 = vld [vmem:[%s11239_s12 + $0x1f8] sm:$0xff] }
 0x35e   : > { %11521 = vst [vmem:[#allocation282_spill] sm:$0xff] %v9460_v62  ;;  %11522 = vst [vmem:[#allocation283_spill] sm:$0xff] %v9462_v49  ;;  %v9467_v36 = vpop.f32.mrb[41].mxu0  ;;  %v9469_v34 = vpop.f32.mrb[49].mxu1  ;;  %4499 = vperm.xlu0 %6424, %v4137_v27  }
 0x35f   : > { %11523 = vst [vmem:[#allocation284_spill] sm:$0xff] %v9467_v36  ;;  %11524 = vst [vmem:[#allocation285_spill] sm:$0xff] %v9469_v34  ;;  %v9471_v26 = vpop.permute.xlu1 %3938  ;;  %v4141_v34 = vld [vmem:[%s11239_s12 + $0x1f0] sm:$0xff] }
 0x360   : > { %11525 = vst [vmem:[#allocation286_spill] sm:$0xff] %v9471_v26  ;;  %v9476_v1 = vpop.f32.mrb[42].mxu0  ;;  %4514 = vperm.xlu1 %6425, %v4140_v11  }
 0x361   : > { %11526 = vst [vmem:[#allocation287_spill] sm:$0xff] %v9476_v1  ;;  %v9478_v62 = vpop.f32.mrb[50].mxu1  ;;  %v9480_v49 = vpop.permute.xlu0 %3933  ;;  %v4144_v1 = vld [vmem:[%s11239_s12 + $0x208] sm:$0xff] }
 0x362   : > { %11527 = vst [vmem:[#allocation288_spill] sm:$0xff] %v9478_v62  ;;  %11528 = vst [vmem:[#allocation289_spill] sm:$0xff] %v9480_v49  ;;  %v9485_v36 = vpop.f32.mrb[43].mxu0  ;;  %v9487_v27 = vpop.f32.mrb[51].mxu1  ;;  %4509 = vperm.xlu0 %6424, %v4139_v15  }
 0x363   : > { %11529 = vst [vmem:[#allocation290_spill] sm:$0xff] %v9485_v36  ;;  %11530 = vst [vmem:[#allocation291_spill] sm:$0xff] %v9487_v27  ;;  %v9489_v26 = vpop.permute.xlu1 %3948  ;;  %v4143_v27 = vld [vmem:[%s11239_s12 + $0x200] sm:$0xff] }
 0x364   : > { %11531 = vst [vmem:[#allocation292_spill] sm:$0xff] %v9489_v26  ;;  %v9494_v11 = vpop.f32.mrb[44].mxu0  ;;  %4524 = vperm.xlu1 %6425, %v4142_v20  }
 0x365   : > { %11532 = vst [vmem:[#allocation293_spill] sm:$0xff] %v9494_v11  ;;  %v9496_v62 = vpop.f32.mrb[52].mxu1  ;;  %v9498_v49 = vpop.permute.xlu0 %3943  ;;  %v4146_v11 = vld [vmem:[%s11239_s12 + $0x218] sm:$0xff] }
 0x366   : > { %11533 = vst [vmem:[#allocation294_spill] sm:$0xff] %v9496_v62  ;;  %11534 = vst [vmem:[#allocation295_spill] sm:$0xff] %v9498_v49  ;;  %v9503_v36 = vpop.f32.mrb[45].mxu0  ;;  %v9505_v15 = vpop.f32.mrb[53].mxu1  ;;  %4519 = vperm.xlu0 %6424, %v4141_v34  }
 0x367   : > { %11535 = vst [vmem:[#allocation296_spill] sm:$0xff] %v9503_v36  ;;  %11536 = vst [vmem:[#allocation297_spill] sm:$0xff] %v9505_v15  ;;  %v9507_v26 = vpop.permute.xlu1 %4214 }
 0x368   : > { %v9512_v20 = vpop.f32.mrb[46].mxu0  ;;  %4534 = vperm.xlu1 %6425, %v4144_v1  }
 0x369   : > { %11537 = vst [vmem:[#allocation298_spill] sm:$0xff] %v9512_v20  ;;  %v9514_v62 = vpop.f32.mrb[54].mxu1  ;;  %v9516_v49 = vpop.permute.xlu0 %4209  ;;  %v4145_v20 = vld [vmem:[%s11239_s12 + $0x210] sm:$0xff] }
 0x36a   : > { %11538 = vst [vmem:[#allocation299_spill] sm:$0xff] %v9514_v62  ;;  %v9521_v36 = vpop.f32.mrb[47].mxu0  ;;  %v9523_v34 = vpop.f32.mrb[55].mxu1  ;;  %4529 = vperm.xlu0 %6424, %v4143_v27  }
 0x36b   : > { %11539 = vst [vmem:[#allocation300_spill] sm:$0xff] %v9521_v36  ;;  %11540 = vst [vmem:[#allocation301_spill] sm:$0xff] %v9523_v34  ;;  %v9525_v15 = vpop.permute.xlu1 %4224  ;;  %v4148_v36 = vld [vmem:[%s11239_s12 + $0x228] sm:$0xff] }
 0x36c   : > { %v9530_v1 = vpop.f32.mrb[48].mxu0  ;;  %4544 = vperm.xlu1 %6425, %v4146_v11  }
 0x36d   : > { %11541 = vst [vmem:[#allocation302_spill] sm:$0xff] %v9530_v1  ;;  %v9532_v62 = vpop.f32.mrb[56].mxu1  ;;  %v9534_v12 = vpop.permute.xlu0 %4219  ;;  %v4147_v1 = vld [vmem:[%s11239_s12 + $0x220] sm:$0xff] }
 0x36e   : > { %11542 = vst [vmem:[#allocation303_spill] sm:$0xff] %v9532_v62  ;;  %v9539_v9 = vpop.f32.mrb[49].mxu0  ;;  %v9541_v27 = vpop.f32.mrb[57].mxu1  ;;  %4539 = vperm.xlu0 %6424, %v4145_v20  }
 0x36f   : > { %11543 = vst [vmem:[#allocation304_spill] sm:$0xff] %v9539_v9  ;;  %11544 = vst [vmem:[#allocation305_spill] sm:$0xff] %v9541_v27  ;;  %v9543_v34 = vpop.permute.xlu1 %4234  ;;  %v4150_v9 = vld [vmem:[%s11239_s12 + $0x238] sm:$0xff] }
 0x370   : > { %v9548_v11 = vpop.f32.mrb[50].mxu0  ;;  %4554 = vperm.xlu1 %6425, %v4148_v36  }
 0x371   : > { %11545 = vst [vmem:[#allocation306_spill] sm:$0xff] %v9548_v11  ;;  %v9550_v62 = vpop.f32.mrb[58].mxu1  ;;  %v9552_v57 = vpop.permute.xlu0 %4229  ;;  %v4149_v11 = vld [vmem:[%s11239_s12 + $0x230] sm:$0xff] }
 0x372   : > { %11546 = vst [vmem:[#allocation307_spill] sm:$0xff] %v9550_v62  ;;  %v9557_v50 = vpop.f32.mrb[51].mxu0  ;;  %v9559_v20 = vpop.f32.mrb[59].mxu1  ;;  %4549 = vperm.xlu0 %6424, %v4147_v1  }
 0x373   : > { %11547 = vst [vmem:[#allocation308_spill] sm:$0xff] %v9557_v50  ;;  %11548 = vst [vmem:[#allocation309_spill] sm:$0xff] %v9559_v20  ;;  %v9561_v27 = vpop.permute.xlu1 %4244  ;;  %v4152_v50 = vld [vmem:[%s11239_s12 + $0x248] sm:$0xff] }
 0x374   : > { %v9566_v36 = vpop.f32.mrb[52].mxu0  ;;  %4564 = vperm.xlu1 %6425, %v4150_v9  }
 0x375   : > { %11549 = vst [vmem:[#allocation310_spill] sm:$0xff] %v9566_v36  ;;  %v9568_v62 = vpop.f32.mrb[60].mxu1  ;;  %v9570_v17 = vpop.permute.xlu0 %4239  ;;  %v4151_v36 = vld [vmem:[%s11239_s12 + $0x240] sm:$0xff] }
 0x376   : > { %11550 = vst [vmem:[#allocation311_spill] sm:$0xff] %v9568_v62  ;;  %v9575_v24 = vpop.f32.mrb[53].mxu0  ;;  %v9577_v1 = vpop.f32.mrb[61].mxu1  ;;  %4559 = vperm.xlu0 %6424, %v4149_v11  }
 0x377   : > { %11551 = vst [vmem:[#allocation312_spill] sm:$0xff] %v9575_v24  ;;  %11552 = vst [vmem:[#allocation313_spill] sm:$0xff] %v9577_v1  ;;  %v9579_v20 = vpop.permute.xlu1 %4254  ;;  %v4154_v24 = vld [vmem:[%s11239_s12 + $0x258] sm:$0xff] }
 0x378   : > { %v9584_v9 = vpop.f32.mrb[54].mxu0  ;;  %4574 = vperm.xlu1 %6425, %v4152_v50  }
 0x379   : > { %11553 = vst [vmem:[#allocation314_spill] sm:$0xff] %v9584_v9  ;;  %v9586_v62 = vpop.f32.mrb[62].mxu1  ;;  %v9588_v52 = vpop.permute.xlu0 %4249  ;;  %v4153_v9 = vld [vmem:[%s11239_s12 + $0x250] sm:$0xff] }
 0x37a   : > { %11554 = vst [vmem:[#allocation315_spill] sm:$0xff] %v9586_v62  ;;  %v9593_v61 = vpop.f32.mrb[55].mxu0  ;;  %v9595_v11 = vpop.f32.mrb[63].mxu1  ;;  %4569 = vperm.xlu0 %6424, %v4151_v36  }
 0x37b   : > { %11555 = vst [vmem:[#allocation316_spill] sm:$0xff] %v9593_v61  ;;  %11556 = vst [vmem:[#allocation317_spill] sm:$0xff] %v9595_v11  ;;  %v9597_v1 = vpop.permute.xlu1 %4264  ;;  %v4156_v61 = vld [vmem:[%s11239_s12 + $0x268] sm:$0xff] }
 0x37c   : > { %v9602_v50 = vpop.f32.mrb[56].mxu0  ;;  %4584 = vperm.xlu1 %6425, %v4154_v24  }
 0x37d   : > { %11557 = vst [vmem:[#allocation318_spill] sm:$0xff] %v9602_v50  ;;  %v9604_v62 = vpop.f32.mrb[64].mxu1  ;;  %v9606_v38 = vpop.permute.xlu0 %4259  ;;  %v4155_v50 = vld [vmem:[%s11239_s12 + $0x260] sm:$0xff] }
 0x37e   : > { %11558 = vst [vmem:[#allocation319_spill] sm:$0xff] %v9604_v62  ;;  %v9611_v28 = vpop.f32.mrb[57].mxu0  ;;  %v9613_v36 = vpop.f32.mrb[65].mxu1  ;;  %4579 = vperm.xlu0 %6424, %v4153_v9  }
 0x37f   : > { %11559 = vst [vmem:[#allocation320_spill] sm:$0xff] %v9611_v28  ;;  %11560 = vst [vmem:[#allocation321_spill] sm:$0xff] %v9613_v36  ;;  %v9615_v11 = vpop.permute.xlu1 %4274  ;;  %v4158_v28 = vld [vmem:[%s11239_s12 + $0x278] sm:$0xff] }
 0x380   : > { %v9620_v24 = vpop.f32.mrb[58].mxu0  ;;  %4594 = vperm.xlu1 %6425, %v4156_v61  }
 0x381   : > { %11561 = vst [vmem:[#allocation322_spill] sm:$0xff] %v9620_v24  ;;  %v9622_v62 = vpop.f32.mrb[66].mxu1  ;;  %v9624_v3 = vpop.permute.xlu0 %4269  ;;  %v4157_v24 = vld [vmem:[%s11239_s12 + $0x270] sm:$0xff] }
 0x382   : > { %11562 = vst [vmem:[#allocation323_spill] sm:$0xff] %v9622_v62  ;;  %v9629_v48 = vpop.f32.mrb[59].mxu0  ;;  %v9631_v9 = vpop.f32.mrb[67].mxu1  ;;  %4589 = vperm.xlu0 %6424, %v4155_v50  }
 0x383   : > { %11563 = vst [vmem:[#allocation324_spill] sm:$0xff] %v9629_v48  ;;  %11564 = vst [vmem:[#allocation325_spill] sm:$0xff] %v9631_v9  ;;  %v9633_v36 = vpop.permute.xlu1 %4284  ;;  %v4160_v48 = vld [vmem:[%s11239_s12 + $0x288] sm:$0xff] }
 0x384   : > { %11565 = vst [vmem:[#allocation326_spill] sm:$0xff] %v9633_v36  ;;  %v9638_v61 = vpop.f32.mrb[60].mxu0  ;;  %4604 = vperm.xlu1 %6425, %v4158_v28  }
 0x385   : > { %11566 = vst [vmem:[#allocation327_spill] sm:$0xff] %v9638_v61  ;;  %v9640_v62 = vpop.f32.mrb[68].mxu1  ;;  %v9642_v10 = vpop.permute.xlu0 %4279  ;;  %v4159_v61 = vld [vmem:[%s11239_s12 + $0x280] sm:$0xff] }
 0x386   : > { %11567 = vst [vmem:[#allocation328_spill] sm:$0xff] %v9640_v62  ;;  %v9647_v45 = vpop.f32.mrb[61].mxu0  ;;  %v9649_v50 = vpop.f32.mrb[69].mxu1  ;;  %4599 = vperm.xlu0 %6424, %v4157_v24  }
 0x387   : > { %11568 = vst [vmem:[#allocation329_spill] sm:$0xff] %v9647_v45  ;;  %11569 = vst [vmem:[#allocation330_spill] sm:$0xff] %v9649_v50  ;;  %v9651_v9 = vpop.permute.xlu1 %4294  ;;  %v4162_v45 = vld [vmem:[%s11239_s12 + $0x298] sm:$0xff] }
 0x388   : > { %11570 = vst [vmem:[#allocation331_spill] sm:$0xff] %v9651_v9  ;;  %v9656_v28 = vpop.f32.mrb[62].mxu0  ;;  %4614 = vperm.xlu1 %6425, %v4160_v48  }
 0x389   : > { %11571 = vst [vmem:[#allocation332_spill] sm:$0xff] %v9656_v28  ;;  %v9658_v62 = vpop.f32.mrb[70].mxu1  ;;  %v9660_v36 = vpop.permute.xlu0 %4289  ;;  %v4161_v28 = vld [vmem:[%s11239_s12 + $0x290] sm:$0xff] }
 0x38a   : > { %11572 = vst [vmem:[#allocation333_spill] sm:$0xff] %v9658_v62  ;;  %11573 = vst [vmem:[#allocation334_spill] sm:$0xff] %v9660_v36  ;;  %v9665_v37 = vpop.f32.mrb[63].mxu0  ;;  %v9667_v24 = vpop.f32.mrb[71].mxu1  ;;  %4609 = vperm.xlu0 %6424, %v4159_v61  }
 0x38b   : > { %11574 = vst [vmem:[#allocation335_spill] sm:$0xff] %v9665_v37  ;;  %11575 = vst [vmem:[#allocation336_spill] sm:$0xff] %v9667_v24  ;;  %v9669_v50 = vpop.permute.xlu1 %4304  ;;  %v4164_v37 = vld [vmem:[%s11239_s12 + $0x2a8] sm:$0xff] }
 0x38c   : > { %11576 = vst [vmem:[#allocation337_spill] sm:$0xff] %v9669_v50  ;;  %v9674_v48 = vpop.f32.mrb[64].mxu0  ;;  %4624 = vperm.xlu1 %6425, %v4162_v45  }
 0x38d   : > { %11577 = vst [vmem:[#allocation338_spill] sm:$0xff] %v9674_v48  ;;  %v9676_v62 = vpop.f32.mrb[72].mxu1  ;;  %v9678_v9 = vpop.permute.xlu0 %4299  ;;  %v4163_v48 = vld [vmem:[%s11239_s12 + $0x2a0] sm:$0xff] }
 0x38e   : > { %11578 = vst [vmem:[#allocation339_spill] sm:$0xff] %v9676_v62  ;;  %11579 = vst [vmem:[#allocation340_spill] sm:$0xff] %v9678_v9  ;;  %v9683_v36 = vpop.f32.mrb[65].mxu0  ;;  %v9685_v61 = vpop.f32.mrb[73].mxu1  ;;  %4619 = vperm.xlu0 %6424, %v4161_v28  }
 0x38f   : > { %11580 = vst [vmem:[#allocation341_spill] sm:$0xff] %v9683_v36  ;;  %11581 = vst [vmem:[#allocation342_spill] sm:$0xff] %v9685_v61  ;;  %v9687_v24 = vpop.permute.xlu1 %4314  ;;  %v4166_v36 = vld [vmem:[%s11239_s12 + $0x2b8] sm:$0xff] }
 0x390   : > { %11582 = vst [vmem:[#allocation343_spill] sm:$0xff] %v9687_v24  ;;  %v9692_v45 = vpop.f32.mrb[66].mxu0  ;;  %4634 = vperm.xlu1 %6425, %v4164_v37  }
 0x391   : > { %11583 = vst [vmem:[#allocation344_spill] sm:$0xff] %v9692_v45  ;;  %v9694_v62 = vpop.f32.mrb[74].mxu1  ;;  %v9696_v50 = vpop.permute.xlu0 %4309  ;;  %v4165_v45 = vld [vmem:[%s11239_s12 + $0x2b0] sm:$0xff] }
 0x392   : > { %11584 = vst [vmem:[#allocation345_spill] sm:$0xff] %v9694_v62  ;;  %11585 = vst [vmem:[#allocation346_spill] sm:$0xff] %v9696_v50  ;;  %v9701_v9 = vpop.f32.mrb[67].mxu0  ;;  %v9703_v28 = vpop.f32.mrb[75].mxu1  ;;  %4629 = vperm.xlu0 %6424, %v4163_v48   ;;  %v4167_v48 = vld [vmem:[%s11239_s12 + $0x2c0] sm:$0xff] }
 0x393   : > { %11586 = vst [vmem:[#allocation347_spill] sm:$0xff] %v9701_v9  ;;  %11587 = vst [vmem:[#allocation348_spill] sm:$0xff] %v9703_v28  ;;  %v9705_v61 = vpop.permute.xlu1 %4324  ;;  %v4168_v9 = vld [vmem:[%s11239_s12 + $0x2c8] sm:$0xff] }
 0x394   : > { %11588 = vst [vmem:[#allocation349_spill] sm:$0xff] %v9705_v61  ;;  %v9710_v37 = vpop.f32.mrb[68].mxu0  ;;  %4644 = vperm.xlu1 %6425, %v4166_v36  }
 0x395   : > { %11589 = vst [vmem:[#allocation350_spill] sm:$0xff] %v9710_v37  ;;  %v9712_v62 = vpop.permute.xlu0 %4319  ;;  %v9714_v24 = vpop.f32.mrb[69].mxu0 }
 0x396   : > { %11590 = vst [vmem:[#allocation351_spill] sm:$0xff] %v9712_v62  ;;  %11591 = vst [vmem:[#allocation352_spill] sm:$0xff] %v9714_v24  ;;  %4639 = vperm.xlu0 %6424, %v4165_v45   ;;  %v4170_v24 = vld [vmem:[%s11239_s12 + $0x2d8] sm:$0xff]  ;;  %v4169_v45 = vld [vmem:[%s11239_s12 + $0x2d0] sm:$0xff] }
 0x397   : > { %v9719_v28 = vpop.permute.xlu1 %4334 }
 0x398   : > { %11592 = vst [vmem:[#allocation353_spill] sm:$0xff] %v9719_v28  ;;  %v9724_v61 = vpop.f32.mrb[70].mxu0  ;;  %4654 = vperm.xlu1 %6425, %v4168_v9  }
 0x399   : > { %11593 = vst [vmem:[#allocation354_spill] sm:$0xff] %v9724_v61  ;;  %v9726_v37 = vpop.permute.xlu0 %4329  ;;  %v9728_v36 = vpop.f32.mrb[71].mxu0 }
 0x39a   : > { %11594 = vst [vmem:[#allocation355_spill] sm:$0xff] %v9726_v37  ;;  %11595 = vst [vmem:[#allocation356_spill] sm:$0xff] %v9728_v36  ;;  %4649 = vperm.xlu0 %6424, %v4167_v48   ;;  %v4172_v36 = vld [vmem:[%s11239_s12 + $0x2e8] sm:$0xff]  ;;  %v4171_v48 = vld [vmem:[%s11239_s12 + $0x2e0] sm:$0xff] }
 0x39b   : > { %v9733_v62 = vpop.permute.xlu1 %4344 }
 0x39c   : > { %11596 = vst [vmem:[#allocation357_spill] sm:$0xff] %v9733_v62  ;;  %v9738_v28 = vpop.f32.mrb[72].mxu0  ;;  %4664 = vperm.xlu1 %6425, %v4170_v24  }
 0x39d   : > { %11597 = vst [vmem:[#allocation358_spill] sm:$0xff] %v9738_v28  ;;  %v9740_v61 = vpop.permute.xlu0 %4339  ;;  %v9742_v9 = vpop.f32.mrb[73].mxu0 }
 0x39e   : > { %11598 = vst [vmem:[#allocation359_spill] sm:$0xff] %v9740_v61  ;;  %11599 = vst [vmem:[#allocation360_spill] sm:$0xff] %v9742_v9  ;;  %4659 = vperm.xlu0 %6424, %v4169_v45   ;;  %v4174_v9 = vld [vmem:[%s11239_s12 + $0x2f8] sm:$0xff]  ;;  %v4173_v45 = vld [vmem:[%s11239_s12 + $0x2f0] sm:$0xff] }
 0x39f   : > { %v9747_v37 = vpop.permute.xlu1 %4354 }
 0x3a0   : > { %11600 = vst [vmem:[#allocation361_spill] sm:$0xff] %v9747_v37  ;;  %v9752_v62 = vpop.f32.mrb[74].mxu0  ;;  %4674 = vperm.xlu1 %6425, %v4172_v36   ;;  %v4176_v36 = vld [vmem:[%s11239_s12 + $0x308] sm:$0xff] }
 0x3a1   : > { %11601 = vst [vmem:[#allocation362_spill] sm:$0xff] %v9752_v62  ;;  %v9754_v28 = vpop.permute.xlu0 %4349  ;;  %v9756_v24 = vpop.f32.mrb[75].mxu0 }
 0x3a2   : > { %11602 = vst [vmem:[#allocation363_spill] sm:$0xff] %v9754_v28  ;;  %11603 = vst [vmem:[#allocation364_spill] sm:$0xff] %v9756_v24  ;;  %4669 = vperm.xlu0 %6424, %v4171_v48   ;;  %v4175_v48 = vld [vmem:[%s11239_s12 + $0x300] sm:$0xff] }
 0x3a3   : > { %v9761_v61 = vpop.permute.xlu1 %4364 }
 0x3a4   : > { %11604 = vst [vmem:[#allocation365_spill] sm:$0xff] %v9761_v61  ;;  %4684 = vperm.xlu1 %6425, %v4174_v9   ;;  %v4178_v9 = vld [vmem:[%s11239_s12 + $0x318] sm:$0xff] }
 0x3a5   : > { %v9766_v37 = vpop.permute.xlu0 %4359 }
 0x3a6   : > { %11605 = vst [vmem:[#allocation366_spill] sm:$0xff] %v9766_v37  ;;  %4679 = vperm.xlu0 %6424, %v4173_v45   ;;  %v4177_v45 = vld [vmem:[%s11239_s12 + $0x310] sm:$0xff] }
 0x3a7   : > { %v9771_v62 = vpop.permute.xlu1 %4374 }
 0x3a8   : > { %11606 = vst [vmem:[#allocation367_spill] sm:$0xff] %v9771_v62  ;;  %4694 = vperm.xlu1 %6425, %v4176_v36   ;;  %v4180_v36 = vld [vmem:[%s11239_s12 + $0x328] sm:$0xff] }
 0x3a9   : > { %v9776_v24 = vpop.permute.xlu0 %4369 }
 0x3aa   : > { %11607 = vst [vmem:[#allocation368_spill] sm:$0xff] %v9776_v24  ;;  %4689 = vperm.xlu0 %6424, %v4175_v48   ;;  %v4179_v48 = vld [vmem:[%s11239_s12 + $0x320] sm:$0xff] }
 0x3ab   : > { %v9781_v61 = vpop.permute.xlu1 %4384 }
 0x3ac   : > { %11608 = vst [vmem:[#allocation369_spill] sm:$0xff] %v9781_v61  ;;  %4704 = vperm.xlu1 %6425, %v4178_v9   ;;  %v4182_v9 = vld [vmem:[%s11239_s12 + $0x338] sm:$0xff] }
 0x3ad   : > { %v9786_v62 = vpop.permute.xlu0 %4379 }
 0x3ae   : > { %11609 = vst [vmem:[#allocation370_spill] sm:$0xff] %v9786_v62  ;;  %4699 = vperm.xlu0 %6424, %v4177_v45   ;;  %v4181_v45 = vld [vmem:[%s11239_s12 + $0x330] sm:$0xff] }
 0x3af   : > { %v9791_v24 = vpop.permute.xlu1 %4394 }
 0x3b0   : > { %11610 = vst [vmem:[#allocation371_spill] sm:$0xff] %v9791_v24  ;;  %4714 = vperm.xlu1 %6425, %v4180_v36   ;;  %v4184_v36 = vld [vmem:[%s11239_s12 + $0x348] sm:$0xff] }
 0x3b1   : > { %v9796_v61 = vpop.permute.xlu0 %4389 }
 0x3b2   : > { %11611 = vst [vmem:[#allocation372_spill] sm:$0xff] %v9796_v61  ;;  %4709 = vperm.xlu0 %6424, %v4179_v48   ;;  %v4183_v48 = vld [vmem:[%s11239_s12 + $0x340] sm:$0xff] }
 0x3b3   : > { %v9801_v62 = vpop.permute.xlu1 %4404 }
 0x3b4   : > { %11612 = vst [vmem:[#allocation373_spill] sm:$0xff] %v9801_v62  ;;  %4724 = vperm.xlu1 %6425, %v4182_v9   ;;  %v4186_v9 = vld [vmem:[%s11239_s12 + $0x358] sm:$0xff] }
 0x3b5   : > { %v9806_v24 = vpop.permute.xlu0 %4399 }
 0x3b6   : > { %11613 = vst [vmem:[#allocation374_spill] sm:$0xff] %v9806_v24  ;;  %4719 = vperm.xlu0 %6424, %v4181_v45   ;;  %v4185_v45 = vld [vmem:[%s11239_s12 + $0x350] sm:$0xff] }
 0x3b7   : > { %v9811_v61 = vpop.permute.xlu1 %4414 }
 0x3b8   : > { %11614 = vst [vmem:[#allocation375_spill] sm:$0xff] %v9811_v61  ;;  %4734 = vperm.xlu1 %6425, %v4184_v36   ;;  %v4188_v36 = vld [vmem:[%s11239_s12 + $0x368] sm:$0xff] }
 0x3b9   : > { %v9816_v62 = vpop.permute.xlu0 %4409 }
 0x3ba   : > { %11615 = vst [vmem:[#allocation376_spill] sm:$0xff] %v9816_v62  ;;  %4729 = vperm.xlu0 %6424, %v4183_v48   ;;  %v4187_v48 = vld [vmem:[%s11239_s12 + $0x360] sm:$0xff] }
 0x3bb   : > { %v9821_v24 = vpop.permute.xlu1 %4424 }
 0x3bc   : > { %11616 = vst [vmem:[#allocation377_spill] sm:$0xff] %v9821_v24  ;;  %4744 = vperm.xlu1 %6425, %v4186_v9   ;;  %v4190_v9 = vld [vmem:[%s11239_s12 + $0x378] sm:$0xff] }
 0x3bd   : > { %v9826_v61 = vpop.permute.xlu0 %4419 }
 0x3be   : > { %11617 = vst [vmem:[#allocation378_spill] sm:$0xff] %v9826_v61  ;;  %4739 = vperm.xlu0 %6424, %v4185_v45   ;;  %v4189_v45 = vld [vmem:[%s11239_s12 + $0x370] sm:$0xff] }
 0x3bf   : > { %v9831_v62 = vpop.permute.xlu1 %4434 }
 0x3c0   : > { %11618 = vst [vmem:[#allocation379_spill] sm:$0xff] %v9831_v62  ;;  %4754 = vperm.xlu1 %6425, %v4188_v36   ;;  %v4192_v36 = vld [vmem:[%s11239_s12 + $0x388] sm:$0xff] }
 0x3c1   : > { %v9836_v24 = vpop.permute.xlu0 %4429 }
 0x3c2   : > { %11619 = vst [vmem:[#allocation380_spill] sm:$0xff] %v9836_v24  ;;  %4749 = vperm.xlu0 %6424, %v4187_v48   ;;  %v4191_v48 = vld [vmem:[%s11239_s12 + $0x380] sm:$0xff] }
 0x3c3   : > { %v9841_v61 = vpop.permute.xlu1 %4444 }
 0x3c4   : > { %11620 = vst [vmem:[#allocation381_spill] sm:$0xff] %v9841_v61  ;;  %4764 = vperm.xlu1 %6425, %v4190_v9   ;;  %v4194_v9 = vld [vmem:[%s11239_s12 + $0x398] sm:$0xff] }
 0x3c5   : > { %v9846_v62 = vpop.permute.xlu0 %4439 }
 0x3c6   : > { %11621 = vst [vmem:[#allocation382_spill] sm:$0xff] %v9846_v62  ;;  %4759 = vperm.xlu0 %6424, %v4189_v45   ;;  %v4193_v45 = vld [vmem:[%s11239_s12 + $0x390] sm:$0xff] }
 0x3c7   : > { %v9851_v24 = vpop.permute.xlu1 %4454 }
 0x3c8   : > { %11622 = vst [vmem:[#allocation383_spill] sm:$0xff] %v9851_v24  ;;  %4774 = vperm.xlu1 %6425, %v4192_v36   ;;  %v4196_v36 = vld [vmem:[%s11239_s12 + $0x3a8] sm:$0xff] }
 0x3c9   : > { %v9856_v61 = vpop.permute.xlu0 %4449 }
 0x3ca   : > { %11623 = vst [vmem:[#allocation384_spill] sm:$0xff] %v9856_v61  ;;  %4769 = vperm.xlu0 %6424, %v4191_v48   ;;  %v4195_v48 = vld [vmem:[%s11239_s12 + $0x3a0] sm:$0xff] }
 0x3cb   : > { %v9861_v62 = vpop.permute.xlu1 %4464 }
 0x3cc   : > { %11624 = vst [vmem:[#allocation385_spill] sm:$0xff] %v9861_v62  ;;  %4784 = vperm.xlu1 %6425, %v4194_v9   ;;  %v4198_v9 = vld [vmem:[%s11239_s12 + $0x3b8] sm:$0xff] }
 0x3cd   : > { %v9866_v24 = vpop.permute.xlu0 %4459 }
 0x3ce   : > { %11625 = vst [vmem:[#allocation386_spill] sm:$0xff] %v9866_v24  ;;  %4779 = vperm.xlu0 %6424, %v4193_v45   ;;  %v4197_v45 = vld [vmem:[%s11239_s12 + $0x3b0] sm:$0xff] }
 0x3cf   : > { %v9871_v61 = vpop.permute.xlu1 %4474 }
 0x3d0   : > { %11626 = vst [vmem:[#allocation387_spill] sm:$0xff] %v9871_v61  ;;  %4794 = vperm.xlu1 %6425, %v4196_v36   ;;  %v4200_v36 = vld [vmem:[%s11239_s12 + $0x3c8] sm:$0xff] }
 0x3d1   : > { %v9876_v62 = vpop.permute.xlu0 %4469 }
 0x3d2   : > { %11627 = vst [vmem:[#allocation388_spill] sm:$0xff] %v9876_v62  ;;  %4789 = vperm.xlu0 %6424, %v4195_v48   ;;  %v4199_v48 = vld [vmem:[%s11239_s12 + $0x3c0] sm:$0xff] }
 0x3d3   : > { %v9881_v24 = vpop.permute.xlu1 %4484 }
 0x3d4   : > { %11628 = vst [vmem:[#allocation389_spill] sm:$0xff] %v9881_v24  ;;  %4804 = vperm.xlu1 %6425, %v4198_v9   ;;  %v4202_v9 = vld [vmem:[%s11239_s12 + $0x3d8] sm:$0xff] }
 0x3d5   : > { %v9886_v61 = vpop.permute.xlu0 %4479 }
 0x3d6   : > { %11629 = vst [vmem:[#allocation390_spill] sm:$0xff] %v9886_v61  ;;  %4799 = vperm.xlu0 %6424, %v4197_v45   ;;  %v4201_v45 = vld [vmem:[%s11239_s12 + $0x3d0] sm:$0xff] }
 0x3d7   : > { %v9891_v62 = vpop.permute.xlu1 %4494 }
 0x3d8   : > { %11630 = vst [vmem:[#allocation391_spill] sm:$0xff] %v9891_v62  ;;  %4814 = vperm.xlu1 %6425, %v4200_v36   ;;  %v4204_v36 = vld [vmem:[%s11239_s12 + $0x3e8] sm:$0xff] }
 0x3d9   : > { %v9896_v24 = vpop.permute.xlu0 %4489 }
 0x3da   : > { %11631 = vst [vmem:[#allocation392_spill] sm:$0xff] %v9896_v24  ;;  %4809 = vperm.xlu0 %6424, %v4199_v48   ;;  %v4203_v48 = vld [vmem:[%s11239_s12 + $0x3e0] sm:$0xff] }
 0x3db   : > { %v9901_v61 = vpop.permute.xlu1 %4504 }
 0x3dc   : > { %11632 = vst [vmem:[#allocation393_spill] sm:$0xff] %v9901_v61  ;;  %4824 = vperm.xlu1 %6425, %v4202_v9   ;;  %v4206_v9 = vld [vmem:[%s11239_s12 + $0x3f8] sm:$0xff] }
 0x3dd   : > { %v9906_v62 = vpop.permute.xlu0 %4499 }
 0x3de   : > { %11633 = vst [vmem:[#allocation394_spill] sm:$0xff] %v9906_v62  ;;  %4819 = vperm.xlu0 %6424, %v4201_v45   ;;  %v4205_v45 = vld [vmem:[%s11239_s12 + $0x3f0] sm:$0xff] }
 0x3df   : > { %v9911_v24 = vpop.permute.xlu1 %4514 }
 0x3e0   : > { %11634 = vst [vmem:[#allocation395_spill] sm:$0xff] %v9911_v24  ;;  %4834 = vperm.xlu1 %6425, %v4204_v36  }
 0x3e1   : > { %v9916_v61 = vpop.permute.xlu0 %4509 }
 0x3e2   : > { %11635 = vst [vmem:[#allocation396_spill] sm:$0xff] %v9916_v61  ;;  %4829 = vperm.xlu0 %6424, %v4203_v48  }
 0x3e3   : > { %v9921_v62 = vpop.permute.xlu1 %4524 }
 0x3e4   : > { %11636 = vst [vmem:[#allocation397_spill] sm:$0xff] %v9921_v62  ;;  %4844 = vperm.xlu1 %6425, %v4206_v9   ;;  %v4976_v9 = vlaneseq }
 0x3e5   : > { %v9926_v24 = vpop.permute.xlu0 %4519 }
 0x3e6   : > { %11637 = vst [vmem:[#allocation398_spill] sm:$0xff] %v9926_v24  ;;  %4839 = vperm.xlu0 %6424, %v4205_v45   ;;  %v2417_v45 = vadd.f32 %v9179_v42, %v7648_v31  ;;  %v2437_v31 = vadd.f32 %v9215_v32, %v11649_v8 }
 0x3e7   : > { %v9928_v37 = vpop.permute.xlu1 %4534 }
 0x3e8   : > { %11638 = vst [vmem:[#allocation399_spill] sm:$0xff] %v9928_v37 }
 0x3e9   : > { %v9930_v36 = vpop.permute.xlu0 %4529 }
 0x3ea   : > { %11639 = vst [vmem:[#allocation400_spill] sm:$0xff] %v9930_v36 }
 0x3eb   : > { %v9932_v61 = vpop.permute.xlu1 %4544 }
 0x3ec   : > { %11640 = vst [vmem:[#allocation401_spill] sm:$0xff] %v9932_v61  ;;  %v2422_v61 = vadd.f32 %v9170_v53, %v7646_v54  ;;  %v11650_v53 = vld [vmem:[#allocation3_spill] sm:$0xff] }
 0x3ed   : > { %v9934_v28 = vpop.permute.xlu0 %4539 }
 0x3ee   : > { %11641 = vst [vmem:[#allocation402_spill] sm:$0xff] %v9934_v28  ;;  %v4977_v28 = vand.u32 127, %v4976_v9  ;;  %v2432_v9 = vadd.f32 %v9188_v2, %v11650_v53 }
 0x3ef   : > { %v9936_v48 = vpop.permute.xlu1 %4554 }
 0x3f0   : > { %11642 = vst [vmem:[#allocation403_spill] sm:$0xff] %v9936_v48  ;;  %v3055_v48 = vmax.f32 %v2417_v45, 0.0 }
 0x3f1   : > { %v9938_v62 = vpop.permute.xlu0 %4549 }
 0x3f2   : > { %11643 = vst [vmem:[#allocation404_spill] sm:$0xff] %v9938_v62  ;;  %v2427_v62 = vadd.f32 %v9197_v7, %v7658_v59  ;;  %v3951_v54 = vmul.f32 %v8444_v35, %v3055_v48 }
 0x3f3   : > { %v9940_v50 = vpop.permute.xlu1 %4564 }
 0x3f4   : > { %11644 = vst [vmem:[#allocation405_spill] sm:$0xff] %v9940_v50  ;;  %v4978_v50 = vstv %s5858_s14  ;;  %v3057_v45 = vmax.f32 %v2427_v62, 0.0  ;;  %v4847_v59 = vadd.f32 %v9516_v49, %v3951_v54 }
 0x3f5   : > { %v9942_v60 = vpop.permute.xlu0 %4559 }
 0x3f6   : > { %11645 = vst [vmem:[#allocation406_spill] sm:$0xff] %v9942_v60  ;;  %v3056_v60 = vmax.f32 %v2422_v61, 0.0  ;;  %v3059_v61 = vmax.f32 %v2437_v31, 0.0  ;;  %v3953_v35 = vmul.f32 %v8466_v25, %v3057_v45 }
 0x3f7   : > { %v9946_v24 = vpop.permute.xlu1 %4574 }
 0x3f8   : > { %11646 = vst [vmem:[#allocation407_spill] sm:$0xff] %v9946_v24  ;;  %v9961_v24 = vadd.s32 %v4978_v50, %v4977_v28  ;;  %v3952_v7 = vmul.f32 %v8436_v41, %v3056_v60  ;;  %v3058_v50 = vmax.f32 %v2432_v9, 0.0  ;;  %v11652_v28 = vld [vmem:[#allocation4_spill] sm:$0xff]  ;;  %v4849_v49 = vadd.f32 %v9534_v12, %v3953_v35 }
 0x3f9   : > { %v9951_v37 = vpop.permute.xlu0 %4569  ;;  %v2442_v62 = vadd.f32 %v9206_v39, %v11652_v28  ;;  %v3955_v60 = vmul.f32 %v8488_v33, %v3059_v61 }
 0x3fa   : > { %11647 = vst [vmem:[#allocation408_spill] sm:$0xff] %v9951_v37  ;;  %vm4980_vm4 = vcmp.lt.s32.totalorder %v9961_v24, 300  ;;  %v4848_v2 = vadd.f32 %v9507_v26, %v3952_v7  ;;  %v3954_v25 = vmul.f32 %v8458_v14, %v3058_v50  ;;  %v11654_v26 = vld [vmem:[#allocation6_spill] sm:$0xff]  ;;  %v11655_v7 = vld [vmem:[#allocation11_spill] sm:$0xff]  ;;  %v11656_v50 = vld [vmem:[#allocation8_spill] sm:$0xff] }
 0x3fb   : > { %v9955_v36 = vpop.permute.xlu1 %4584  ;;  %v4983_v41 = vsel %vm4980_vm4, %v4847_v59, -inf  ;;  %v3060_v39 = vmax.f32 %v2442_v62, 0.0  ;;  %v2452_v53 = vadd.f32 %v9224_v6, %v11654_v26  ;;  %v4851_v12 = vadd.f32 %v9552_v57, %v3955_v60  ;;  %v11659_v26 = vld [vmem:[#allocation15_spill] sm:$0xff] }
 0x3fc   : > { %11648 = vst [vmem:[#allocation409_spill] sm:$0xff] %v9955_v36  ;;  %v11651_v36 = vld [vmem:[#allocation7_spill] sm:$0xff]  ;;  %v4984_v33 = vsel %vm4980_vm4, %v4848_v2, -inf  ;;  %v4850_v45 = vadd.f32 %v9525_v15, %v3954_v25  ;;  %v2467_v61 = vadd.f32 %v9269_v44, %v11655_v7  ;;  %v2462_v35 = vadd.f32 %v9242_v56, %v11656_v50 }
 0x3fd   : > { %v9959_v42 = vpop.permute.xlu0 %4579  ;;  %v2447_v8 = vadd.f32 %v9233_v43, %v11651_v36  ;;  %v11653_v36 = vld [vmem:[#allocation9_spill] sm:$0xff]  ;;  %v3956_v57 = vmul.f32 %v8480_v29, %v3060_v39  ;;  %v4987_v28 = vsel %vm4980_vm4, %v4851_v12, -inf  ;;  %v11660_v12 = vld [vmem:[#allocation12_spill] sm:$0xff] }
 0x3fe   : > { %v2457_v31 = vadd.f32 %v9251_v19, %v11653_v36  ;;  %v4985_v19 = vsel %vm4980_vm4, %v4849_v49, -inf  ;;  %v4986_v62 = vsel %vm4980_vm4, %v4850_v45, -inf  ;;  %v3065_v2 = vmax.f32 %v2467_v61, 0.0  ;;  %v11657_v49 = vld [vmem:[#allocation13_spill] sm:$0xff]  ;;  %v11662_v61 = vld [vmem:[#allocation14_spill] sm:$0xff] }
 0x3ff   : > { %v9966_v37 = vpop.permute.xlu1 %4594  ;;  %v3061_v43 = vmax.f32 %v2447_v8, 0.0  ;;  %v3062_v8 = vmax.f32 %v2452_v53, 0.0  ;;  %v2477_v29 = vadd.f32 %v9287_v30, %v11657_v49  ;;  %v3064_v60 = vmax.f32 %v2462_v35, 0.0 }
 0x400   : > { %v3063_v14 = vmax.f32 %v2457_v31, 0.0  ;;  %v3961_v25 = vmul.f32 %v8554_v16, %v3065_v2 }
 0x401   : > { %v9972_v32 = vpop.permute.xlu0 %4589  ;;  %v3957_v59 = vmul.f32 %v8510_v47, %v3061_v43  ;;  %v4852_v47 = vadd.f32 %v9543_v34, %v3956_v57  ;;  %v11658_v43 = vld [vmem:[#allocation10_spill] sm:$0xff]  ;;  %v3067_v39 = vmax.f32 %v2477_v29, 0.0  ;;  %v2492_v57 = vadd.f32 %v9296_v23, %v11662_v61 }
 0x402   : > { %v3959_v44 = vmul.f32 %v8532_v5, %v3063_v14  ;;  %v2472_v34 = vadd.f32 %v9260_v13, %v11658_v43  ;;  %v11661_v14 = vld [vmem:[#allocation17_spill] sm:$0xff]  ;;  %v11665_v29 = vld [vmem:[#allocation130_spill] sm:$0xff]  ;;  %v11667_v43 = vld [vmem:[#allocation248_spill] sm:$0xff] }
 0x403   : > { %v9979_v48 = vpop.permute.xlu1 %4604  ;;  %v4853_v15 = vadd.f32 %v9570_v17, %v3957_v59  ;;  %v3958_v17 = vmul.f32 %v8502_v40, %v3062_v8  ;;  %v4988_v30 = vsel %vm4980_vm4, %v4852_v47, -inf  ;;  %v2487_v40 = vadd.f32 %v9305_v21, %v11659_v26 }
 0x404   : > { %v4855_v36 = vadd.f32 %v9588_v52, %v3959_v44  ;;  %v3960_v52 = vmul.f32 %v8524_v4, %v3064_v60  ;;  %v3066_v13 = vmax.f32 %v2472_v34, 0.0  ;;  %v3963_v59 = vmul.f32 %v8576_v46, %v3067_v39  ;;  %v11666_v60 = vld [vmem:[#allocation21_spill] sm:$0xff] }
 0x405   : > { %v9987_v54 = vpop.permute.xlu0 %4599  ;;  %5239 = vmax.xlane.f32.xlu0 %v4983_v41  ;;  %v4989_v5 = vsel %vm4980_vm4, %v4853_v15, -inf  ;;  %v4854_v31 = vadd.f32 %v9561_v27, %v3958_v17  ;;  %v4857_v27 = vadd.f32 %v9606_v38, %v3961_v25  ;;  %v3069_v4 = vmax.f32 %v2487_v40, 0.0  ;;  %v11663_v15 = vld [vmem:[#allocation19_spill] sm:$0xff]  ;;  %v11672_v40 = vld [vmem:[#allocation326_spill] sm:$0xff] }
 0x406   : > { %v4991_v16 = vsel %vm4980_vm4, %v4855_v36, -inf  ;;  %v2497_v7 = vadd.f32 %v9323_v55, %v11661_v14  ;;  %v3962_v38 = vmul.f32 %v8546_v58, %v3066_v13  ;;  %v3070_v47 = vmax.f32 %v2492_v57, 0.0  ;;  %v11679_v57 = vld [vmem:[#allocation340_spill] sm:$0xff] }
 0x407   : > { %v9993_v9 = vpop.permute.xlu1 %4614  ;;  %v4990_v21 = vsel %vm4980_vm4, %v4854_v31, -inf  ;;  %v4993_v50 = vsel %vm4980_vm4, %v4857_v27, -inf  ;;  %v3965_v55 = vmul.f32 %v8598_v18, %v3069_v4  ;;  %v2517_v34 = vadd.f32 %v11667_v43, %v11666_v60  ;;  %v11670_v31 = vld [vmem:[#allocation240_spill] sm:$0xff] }
 0x408   : > { %5241 = vmax.xlane.f32.xlu1 %v4984_v33  ;;  %v2482_v33 = vadd.f32 %v9278_v22, %v11660_v12  ;;  %v4858_v46 = vadd.f32 %v9597_v1, %v3962_v38  ;;  %v3071_v58 = vmax.f32 %v2497_v7, 0.0  ;;  %v11673_v12 = vld [vmem:[#allocation132_spill] sm:$0xff]  ;;  %v11678_v38 = vld [vmem:[#allocation245_spill] sm:$0xff] }
 0x409   : > { %v10003_v6 = vpop.permute.xlu0 %4609  ;;  %5243 = vmax.xlane.f32.xlu0 %v4985_v19  ;;  %v4856_v19 = vadd.f32 %v9579_v20, %v3960_v52  ;;  %v4859_v20 = vadd.f32 %v9624_v3, %v3963_v59  ;;  %v4861_v1 = vadd.f32 %v9642_v10, %v3965_v55  ;;  %v3075_v27 = vmax.f32 %v2517_v34, 0.0  ;;  %v11676_v59 = vld [vmem:[#allocation129_spill] sm:$0xff]  ;;  %v11677_v7 = vld [vmem:[#allocation20_spill] sm:$0xff] }
 0x40a   : > { %v3068_v22 = vmax.f32 %v2482_v33, 0.0  ;;  %v3967_v17 = vmul.f32 %v11665_v29, %v3071_v58  ;;  %v11681_v58 = vld [vmem:[#allocation134_spill] sm:$0xff]  ;;  %v11686_v29 = vld [vmem:[#allocation251_spill] sm:$0xff]  ;;  %v11688_v34 = vld [vmem:[#allocation337_spill] sm:$0xff] }
 0x40b   : > { %v10017_v41 = vpop.permute.xlu1 %4624  ;;  %v4992_v35 = vsel %vm4980_vm4, %v4856_v19, -inf  ;;  %v4995_v2 = vsel %vm4980_vm4, %v4859_v20, -inf  ;;  %v4997_v26 = vsel %vm4980_vm4, %v4861_v1, -inf  ;;  %v11675_v19 = vld [vmem:[#allocation254_spill] sm:$0xff]  ;;  %v11684_v1 = vld [vmem:[#allocation131_spill] sm:$0xff] }
 0x40c   : > { %5247 = vmax.xlane.f32.xlu1 %v4987_v28  ;;  %v2507_v28 = vadd.f32 %v9341_v51, %v11663_v15  ;;  %v3964_v3 = vmul.f32 %v8568_v0, %v3068_v22  ;;  %v4994_v51 = vsel %vm4980_vm4, %v4858_v46, -inf  ;;  %v2522_v22 = vadd.f32 %v11678_v38, %v11677_v7  ;;  %v11680_v46 = vld [vmem:[#allocation331_spill] sm:$0xff]  ;;  %v11697_v38 = vld [vmem:[#allocation138_spill] sm:$0xff] }
 0x40d   : > { %v10019_v56 = vpop.permute.xlu0 %4619  ;;  %5245 = vmax.xlane.f32.xlu0 %v4986_v62  ;;  %v11664_v62 = vld [vmem:[#allocation16_spill] sm:$0xff]  ;;  %v3971_v15 = vmul.f32 %v11681_v58, %v3075_v27 }
 0x40e   : > { %v2502_v44 = vadd.f32 %v9314_v63, %v11664_v62  ;;  %v4860_v18 = vadd.f32 %v9615_v11, %v3964_v3  ;;  %v3073_v0 = vmax.f32 %v2507_v28, 0.0  ;;  %v11668_v63 = vld [vmem:[#allocation128_spill] sm:$0xff]  ;;  %v11671_v11 = vld [vmem:[#allocation334_spill] sm:$0xff]  ;;  %v11682_v3 = vld [vmem:[#allocation25_spill] sm:$0xff] }
 0x40f   : > { %v10039_v45 = vpop.permute.xlu1 %4634  ;;  %v3966_v10 = vmul.f32 %v11668_v63, %v3070_v47  ;;  %v4863_v25 = vadd.f32 %v11671_v11, %v3967_v17  ;;  %v11683_v47 = vld [vmem:[#allocation260_spill] sm:$0xff]  ;;  %v11690_v11 = vld [vmem:[#allocation27_spill] sm:$0xff] }
 0x410   : > { %5251 = vmax.xlane.f32.xlu1 %v4989_v5  ;;  %v3072_v36 = vmax.f32 %v2502_v44, 0.0  ;;  %v11669_v5 = vld [vmem:[#allocation18_spill] sm:$0xff]  ;;  %v4996_v13 = vsel %vm4980_vm4, %v4860_v18, -inf  ;;  %v3969_v33 = vmul.f32 %v11673_v12, %v3073_v0  ;;  %v2537_v62 = vadd.f32 %v11683_v47, %v11682_v3  ;;  %v11693_v12 = vld [vmem:[#allocation24_spill] sm:$0xff] }
 0x411   : > { %v10033_v53 = vpop.permute.xlu0 %4629  ;;  %5249 = vmax.xlane.f32.xlu0 %v4988_v30  ;;  %v2512_v30 = vadd.f32 %v11670_v31, %v11669_v5  ;;  %v4862_v52 = vadd.f32 %v11672_v40, %v3966_v10  ;;  %v3076_v18 = vmax.f32 %v2522_v22, 0.0  ;;  %v11687_v0 = vld [vmem:[#allocation346_spill] sm:$0xff]  ;;  %v11689_v5 = vld [vmem:[#allocation136_spill] sm:$0xff]  ;;  %v11692_v40 = vld [vmem:[#allocation133_spill] sm:$0xff] }
 0x412   : > { %v3968_v4 = vmul.f32 %v11676_v59, %v3072_v36  ;;  %v4865_v20 = vadd.f32 %v11679_v57, %v3969_v33  ;;  %v4867_v60 = vadd.f32 %v11687_v0, %v3971_v15  ;;  %v11694_v33 = vld [vmem:[#allocation257_spill] sm:$0xff]  ;;  %v11701_v15 = vld [vmem:[#allocation26_spill] sm:$0xff] }
 0x413   : > { %v10063_v23 = vpop.permute.xlu1 %4644  ;;  %v3074_v14 = vmax.f32 %v2512_v30, 0.0  ;;  %v4998_v55 = vsel %vm4980_vm4, %v4862_v52, -inf  ;;  %v3079_v30 = vmax.f32 %v2537_v62, 0.0  ;;  %v3972_v52 = vmul.f32 %v11692_v40, %v3076_v18  ;;  %v11703_v62 = vld [vmem:[#allocation355_spill] sm:$0xff]  ;;  %v11704_v18 = vld [vmem:[#allocation349_spill] sm:$0xff] }
 0x414   : > { %5255 = vmax.xlane.f32.xlu1 %v4991_v16  ;;  %v11674_v16 = vld [vmem:[#allocation23_spill] sm:$0xff]  ;;  %v5001_v43 = vsel %vm4980_vm4, %v4865_v20, -inf  ;;  %v2542_v27 = vadd.f32 %v11694_v33, %v11693_v12  ;;  %v5003_v59 = vsel %vm4980_vm4, %v4867_v60, -inf  ;;  %v11698_v20 = vld [vmem:[#allocation29_spill] sm:$0xff] }
 0x415   : > { %5253 = vmax.xlane.f32.xlu0 %v4990_v21  ;;  %v10052_v8 = vpop.permute.xlu0 %4639  ;;  %v2527_v21 = vadd.f32 %v11675_v19, %v11674_v16  ;;  %v11695_v16 = vld [vmem:[#allocation351_spill] sm:$0xff]  ;;  %v3975_v22 = vmul.f32 %v11697_v38, %v3079_v30  ;;  %v11712_v12 = vld [vmem:[#allocation353_spill] sm:$0xff] }
 0x416   : > { %v3080_v58 = vmax.f32 %v2542_v27, 0.0  ;;  %v11711_v40 = vld [vmem:[#allocation359_spill] sm:$0xff] }
 0x417   : > { %v10083_v39 = vpop.permute.xlu1 %4654  ;;  %v3077_v28 = vmax.f32 %v2527_v21, 0.0 }
 0x418   : > { %5259 = vmax.xlane.f32.xlu1 %v4993_v50  ;;  %v4999_v50 = vsel %vm4980_vm4, %v4863_v25, -inf  ;;  %v11691_v25 = vld [vmem:[#allocation266_spill] sm:$0xff] }
 0x419   : > { %5257 = vmax.xlane.f32.xlu0 %v4992_v35  ;;  %v10072_v49 = vpop.permute.xlu0 %4649  ;;  %v4864_v35 = vadd.f32 %v11680_v46, %v3968_v4  ;;  %v3973_v31 = vmul.f32 %v11689_v5, %v3077_v28  ;;  %v11696_v4 = vld [vmem:[#allocation343_spill] sm:$0xff]  ;;  %v11708_v5 = vld [vmem:[#allocation137_spill] sm:$0xff] }
 0x41a   : > { %v11702_v28 = vld [vmem:[#allocation263_spill] sm:$0xff] }
 0x41b   : > { %v10107_v44 = vpop.permute.xlu1 %4664  ;;  %v5000_v36 = vsel %vm4980_vm4, %v4864_v35, -inf  ;;  %v4869_v19 = vadd.f32 %v11695_v16, %v3973_v31  ;;  %v11700_v35 = vld [vmem:[#allocation135_spill] sm:$0xff]  ;;  %v2552_v3 = vadd.f32 %v11702_v28, %v11701_v15  ;;  %v3976_v31 = vmul.f32 %v11708_v5, %v3080_v58  ;;  %v11726_v5 = vld [vmem:[#allocation281_spill] sm:$0xff] }
 0x41c   : > { %5263 = vmax.xlane.f32.xlu1 %v4995_v2  ;;  %v3970_v2 = vmul.f32 %v11684_v1, %v3074_v14  ;;  %v4868_v14 = vadd.f32 %v11696_v4, %v3972_v52  ;;  %v4871_v1 = vadd.f32 %v11703_v62, %v3975_v22  ;;  %v11716_v22 = vld [vmem:[#allocation139_spill] sm:$0xff] }
 0x41d   : > { %5261 = vmax.xlane.f32.xlu0 %v4994_v51  ;;  %v10096_v61 = vpop.permute.xlu0 %4659  ;;  %v11685_v51 = vld [vmem:[#allocation22_spill] sm:$0xff]  ;;  %v3082_v30 = vmax.f32 %v2552_v3, 0.0  ;;  %v4872_v33 = vadd.f32 %v11712_v12, %v3976_v31  ;;  %v11720_v3 = vld [vmem:[#allocation357_spill] sm:$0xff] }
 0x41e   : > { %v2532_v17 = vadd.f32 %v11686_v29, %v11685_v51  ;;  %v4866_v63 = vadd.f32 %v11688_v34, %v3970_v2  ;;  %v5005_v2 = vsel %vm4980_vm4, %v4869_v19, -inf  ;;  %v5004_v29 = vsel %vm4980_vm4, %v4868_v14, -inf  ;;  %v11707_v34 = vld [vmem:[#allocation278_spill] sm:$0xff]  ;;  %v11714_v14 = vld [vmem:[#allocation33_spill] sm:$0xff] }
 0x41f   : > { %v10127_v21 = vpop.permute.xlu1 %4674  ;;  %v11713_v19 = vld [vmem:[#allocation142_spill] sm:$0xff] }
 0x420   : > { %5267 = vmax.xlane.f32.xlu1 %v4997_v26  ;;  %v2547_v26 = vadd.f32 %v11691_v25, %v11690_v11  ;;  %v5002_v7 = vsel %vm4980_vm4, %v4866_v63, -inf  ;;  %v11709_v11 = vld [vmem:[#allocation28_spill] sm:$0xff]  ;;  %v11710_v25 = vld [vmem:[#allocation269_spill] sm:$0xff]  ;;  %v11729_v12 = vld [vmem:[#allocation146_spill] sm:$0xff] }
 0x421   : > { %5265 = vmax.xlane.f32.xlu0 %v4996_v13  ;;  %v10116_v10 = vpop.permute.xlu0 %4669  ;;  %v3078_v13 = vmax.f32 %v2532_v17, 0.0  ;;  %v11705_v17 = vld [vmem:[#allocation140_spill] sm:$0xff] }
 0x422   : > { %v3081_v57 = vmax.f32 %v2547_v26, 0.0  ;;  %v2562_v26 = vadd.f32 %v11710_v25, %v11709_v11  ;;  %v11727_v11 = vld [vmem:[#allocation366_spill] sm:$0xff] }
 0x424   : > { %5271 = vmax.xlane.f32.xlu1 %v4999_v50  ;;  %v11699_v50 = vld [vmem:[#allocation272_spill] sm:$0xff]  ;;  %v3977_v0 = vmul.f32 %v11705_v17, %v3081_v57  ;;  %v3978_v57 = vmul.f32 %v11716_v22, %v3082_v30  ;;  %v11723_v17 = vld [vmem:[#allocation290_spill] sm:$0xff] }
 0x425   : > { %5269 = vmax.xlane.f32.xlu0 %v4998_v55  ;;  %v2557_v46 = vadd.f32 %v11699_v50, %v11698_v20  ;;  %v3974_v55 = vmul.f32 %v11700_v35, %v3078_v13  ;;  %v10140_v47 = vpop.permute.xlu0 %4679  ;;  %v5007_v13 = vsel %vm4980_vm4, %v4871_v1, -inf  ;;  %v3084_v20 = vmax.f32 %v2562_v26, 0.0  ;;  %v11717_v50 = vld [vmem:[#allocation30_spill] sm:$0xff] }
 0x426   : > { %v4873_v52 = vadd.f32 %v11711_v40, %v3977_v0  ;;  %v4874_v62 = vadd.f32 %v11720_v3, %v3978_v57  ;;  %v5008_v1 = vsel %vm4980_vm4, %v4872_v33, -inf  ;;  %v11728_v40 = vld [vmem:[#allocation361_spill] sm:$0xff]  ;;  %v11733_v57 = vld [vmem:[#allocation34_spill] sm:$0xff] }
 0x427   : > { %v4870_v51 = vadd.f32 %v11704_v18, %v3974_v55  ;;  %v3083_v60 = vmax.f32 %v2557_v46, 0.0  ;;  %v11718_v46 = vld [vmem:[#allocation275_spill] sm:$0xff] }
 0x428   : > { %5275 = vmax.xlane.f32.xlu1 %v5001_v43  ;;  %v11706_v43 = vld [vmem:[#allocation31_spill] sm:$0xff]  ;;  %v2572_v35 = vadd.f32 %v11718_v46, %v11717_v50  ;;  %v5009_v28 = vsel %vm4980_vm4, %v4873_v52, -inf  ;;  %v11735_v46 = vld [vmem:[#allocation368_spill] sm:$0xff] }
 0x429   : > { %5273 = vmax.xlane.f32.xlu0 %v5000_v36  ;;  %v2567_v63 = vadd.f32 %v11707_v34, %v11706_v43  ;;  %v10151_v36 = vpop.permute.xlu1 %4684  ;;  %v10160_v27 = vpop.permute.xlu0 %4689  ;;  %v5006_v16 = vsel %vm4980_vm4, %v4870_v51, -inf  ;;  %v11719_v55 = vld [vmem:[#allocation363_spill] sm:$0xff] }
 0x42a   : > { %v3086_v34 = vmax.f32 %v2572_v35, 0.0 }
 0x42b   : > { %v3085_v4 = vmax.f32 %v2567_v63, 0.0  ;;  %v11725_v63 = vld [vmem:[#allocation32_spill] sm:$0xff] }
 0x42c   : > { %5279 = vmax.xlane.f32.xlu1 %v5003_v59  ;;  %v3979_v59 = vmul.f32 %v11713_v19, %v3083_v60  ;;  %v11724_v60 = vld [vmem:[#allocation141_spill] sm:$0xff]  ;;  %v2582_v31 = vadd.f32 %v11726_v5, %v11725_v63 }
 0x42d   : > { %5277 = vmax.xlane.f32.xlu0 %v5002_v7  ;;  %v11715_v7 = vld [vmem:[#allocation284_spill] sm:$0xff]  ;;  %v10171_v15 = vpop.permute.xlu1 %4694  ;;  %v3980_v43 = vmul.f32 %v11724_v60, %v3084_v20  ;;  %v10184_v30 = vpop.permute.xlu0 %4699  ;;  %v11730_v19 = vld [vmem:[#allocation37_spill] sm:$0xff]  ;;  %v11734_v20 = vld [vmem:[#allocation287_spill] sm:$0xff] }
 0x42e   : > { %v2577_v38 = vadd.f32 %v11715_v7, %v11714_v14  ;;  %v4875_v58 = vadd.f32 %v11719_v55, %v3979_v59  ;;  %v11731_v59 = vld [vmem:[#allocation296_spill] sm:$0xff]  ;;  %v11732_v7 = vld [vmem:[#allocation143_spill] sm:$0xff]  ;;  %v3088_v22 = vmax.f32 %v2582_v31, 0.0  ;;  %v2592_v50 = vadd.f32 %v11734_v20, %v11733_v57  ;;  %v11742_v63 = vld [vmem:[#allocation293_spill] sm:$0xff] }
 0x42f   : > { %v4876_v52 = vadd.f32 %v11728_v40, %v3980_v43  ;;  %v11743_v31 = vld [vmem:[#allocation370_spill] sm:$0xff]  ;;  %v11744_v40 = vld [vmem:[#allocation367_spill] sm:$0xff] }
 0x430   : > { %5283 = vmax.xlane.f32.xlu1 %v5005_v2  ;;  %v11721_v2 = vld [vmem:[#allocation144_spill] sm:$0xff]  ;;  %v3087_v51 = vmax.f32 %v2577_v38, 0.0  ;;  %v5011_v26 = vsel %vm4980_vm4, %v4875_v58, -inf  ;;  %v3982_v38 = vmul.f32 %v11732_v7, %v3086_v34  ;;  %v11736_v58 = vld [vmem:[#allocation365_spill] sm:$0xff]  ;;  %v3090_v43 = vmax.f32 %v2592_v50, 0.0  ;;  %v11748_v7 = vld [vmem:[#allocation147_spill] sm:$0xff] }
 0x431   : > { %5281 = vmax.xlane.f32.xlu0 %v5004_v29  ;;  %v3981_v18 = vmul.f32 %v11721_v2, %v3085_v4  ;;  %v11722_v29 = vld [vmem:[#allocation35_spill] sm:$0xff]  ;;  %v2597_v4 = vadd.f32 %v11731_v59, %v11730_v19  ;;  %v10195_v14 = vpop.permute.xlu1 %4704  ;;  %v10204_v3 = vpop.permute.xlu0 %4709  ;;  %v11741_v34 = vld [vmem:[#allocation36_spill] sm:$0xff]  ;;  %v11746_v19 = vld [vmem:[#allocation41_spill] sm:$0xff] }
 0x432   : > { %v2587_v0 = vadd.f32 %v11723_v17, %v11722_v29  ;;  %v3983_v33 = vmul.f32 %v11729_v12, %v3087_v51  ;;  %v11738_v51 = vld [vmem:[#allocation39_spill] sm:$0xff]  ;;  %v11739_v29 = vld [vmem:[#allocation300_spill] sm:$0xff]  ;;  %v2602_v5 = vadd.f32 %v11742_v63, %v11741_v34  ;;  %v11745_v12 = vld [vmem:[#allocation150_spill] sm:$0xff] }
 0x433   : > { %v4877_v25 = vadd.f32 %v11727_v11, %v3981_v18  ;;  %v3091_v18 = vmax.f32 %v2597_v4, 0.0  ;;  %v2607_v17 = vadd.f32 %v11739_v29, %v11738_v51  ;;  %v11747_v59 = vld [vmem:[#allocation304_spill] sm:$0xff]  ;;  %v11749_v57 = vld [vmem:[#allocation38_spill] sm:$0xff]  ;;  %v11754_v29 = vld [vmem:[#allocation43_spill] sm:$0xff] }
 0x434   : > { %5287 = vmax.xlane.f32.xlu1 %v5007_v13  ;;  %v5010_v13 = vsel %vm4980_vm4, %v4874_v62, -inf  ;;  %v4879_v35 = vadd.f32 %v11735_v46, %v3983_v33  ;;  %v5012_v62 = vsel %vm4980_vm4, %v4876_v52, -inf  ;;  %v2617_v4 = vadd.f32 %v11747_v59, %v11746_v19  ;;  %v11750_v20 = vld [vmem:[#allocation298_spill] sm:$0xff] }
 0x435   : > { %5285 = vmax.xlane.f32.xlu0 %v5006_v16  ;;  %v3089_v16 = vmax.f32 %v2587_v0, 0.0  ;;  %v5013_v55 = vsel %vm4980_vm4, %v4877_v25, -inf  ;;  %v11740_v0 = vld [vmem:[#allocation145_spill] sm:$0xff]  ;;  %v10215_v25 = vpop.permute.xlu1 %4714  ;;  %v3987_v33 = vmul.f32 %v11745_v12, %v3091_v18  ;;  %v2612_v50 = vadd.f32 %v11750_v20, %v11749_v57  ;;  %v10228_v46 = vpop.permute.xlu0 %4719  ;;  %v11761_v19 = vld [vmem:[#allocation154_spill] sm:$0xff]  ;;  %v11764_v57 = vld [vmem:[#allocation151_spill] sm:$0xff] }
 0x436   : > { %v3984_v60 = vmul.f32 %v11740_v0, %v3088_v22  ;;  %v3092_v22 = vmax.f32 %v2602_v5, 0.0  ;;  %v3095_v51 = vmax.f32 %v2617_v4, 0.0  ;;  %v11757_v5 = vld [vmem:[#allocation40_spill] sm:$0xff] }
 0x437   : > { %v3094_v63 = vmax.f32 %v2612_v50, 0.0 }
 0x438   : > { %5291 = vmax.xlane.f32.xlu1 %v5009_v28  ;;  %v4878_v28 = vadd.f32 %v11736_v58, %v3982_v38  ;;  %v4880_v52 = vadd.f32 %v11744_v40, %v3984_v60  ;;  %v3986_v38 = vmul.f32 %v11748_v7, %v3090_v43  ;;  %v11756_v43 = vld [vmem:[#allocation149_spill] sm:$0xff]  ;;  %v3991_v59 = vmul.f32 %v11761_v19, %v3095_v51  ;;  %v11775_v19 = vld [vmem:[#allocation378_spill] sm:$0xff] }
 0x439   : > { %5289 = vmax.xlane.f32.xlu0 %v5008_v1  ;;  %v11737_v1 = vld [vmem:[#allocation148_spill] sm:$0xff]  ;;  %v10239_v60 = vpop.permute.xlu1 %4724  ;;  %v3988_v34 = vmul.f32 %v11756_v43, %v3092_v22  ;;  %v11762_v7 = vld [vmem:[#allocation45_spill] sm:$0xff]  ;;  %v3990_v20 = vmul.f32 %v11764_v57, %v3094_v63 }
 0x43a   : > { %v3985_v2 = vmul.f32 %v11737_v1, %v3089_v16  ;;  %v3093_v16 = vmax.f32 %v2607_v17, 0.0  ;;  %v5016_v1 = vsel %vm4980_vm4, %v4880_v52, -inf  ;;  %v11755_v17 = vld [vmem:[#allocation308_spill] sm:$0xff] }
 0x43b   : > { %v2627_v0 = vadd.f32 %v11755_v17, %v11754_v29  ;;  %v11769_v17 = vld [vmem:[#allocation156_spill] sm:$0xff] }
 0x43c   : > { %5295 = vmax.xlane.f32.xlu1 %v5011_v26  ;;  %v4881_v11 = vadd.f32 %v11743_v31, %v3985_v2  ;;  %v5015_v26 = vsel %vm4980_vm4, %v4879_v35, -inf  ;;  %v11751_v35 = vld [vmem:[#allocation372_spill] sm:$0xff]  ;;  %v11758_v31 = vld [vmem:[#allocation302_spill] sm:$0xff] }
 0x43d   : > { %5293 = vmax.xlane.f32.xlu0 %v5010_v13  ;;  %v5014_v13 = vsel %vm4980_vm4, %v4878_v28, -inf  ;;  %v11752_v28 = vld [vmem:[#allocation369_spill] sm:$0xff]  ;;  %v11753_v2 = vld [vmem:[#allocation152_spill] sm:$0xff]  ;;  %v3097_v4 = vmax.f32 %v2627_v0, 0.0 }
 0x43e   : > { %v5017_v58 = vsel %vm4980_vm4, %v4881_v11, -inf  ;;  %v3989_v18 = vmul.f32 %v11753_v2, %v3093_v16  ;;  %v2622_v11 = vadd.f32 %v11758_v31, %v11757_v5  ;;  %v10259_v2 = vpop.permute.xlu1 %4734  ;;  %v11771_v63 = vld [vmem:[#allocation316_spill] sm:$0xff]  ;;  %v11772_v31 = vld [vmem:[#allocation153_spill] sm:$0xff] }
 0x43f   : > { %v3993_v0 = vmul.f32 %v11769_v17, %v3097_v4 }
 0x440   : > { %5299 = vmax.xlane.f32.xlu1 %v5013_v55  ;;  %v4883_v55 = vadd.f32 %v11751_v35, %v3987_v33  ;;  %v10248_v33 = vpop.permute.xlu0 %4729  ;;  %v3096_v50 = vmax.f32 %v2622_v11, 0.0  ;;  %v11765_v35 = vld [vmem:[#allocation42_spill] sm:$0xff] }
 0x441   : > { %5297 = vmax.xlane.f32.xlu0 %v5012_v62  ;;  %v4882_v62 = vadd.f32 %v11752_v28, %v3986_v38  ;;  %v11763_v38 = vld [vmem:[#allocation312_spill] sm:$0xff] }
 0x442   : > { %v5019_v52 = vsel %vm4980_vm4, %v4883_v55, -inf  ;;  %v2637_v22 = vadd.f32 %v11763_v38, %v11762_v7  ;;  %v11766_v55 = vld [vmem:[#allocation306_spill] sm:$0xff]  ;;  %v11767_v28 = vld [vmem:[#allocation376_spill] sm:$0xff]  ;;  %v3992_v11 = vmul.f32 %v11772_v31, %v3096_v50  ;;  %v11776_v7 = vld [vmem:[#allocation375_spill] sm:$0xff] }
 0x443   : > { %v5018_v16 = vsel %vm4980_vm4, %v4882_v62, -inf  ;;  %v11778_v50 = vld [vmem:[#allocation49_spill] sm:$0xff] }
 0x444   : > { %5303 = vmax.xlane.f32.xlu1 %v5015_v26  ;;  %v11759_v26 = vld [vmem:[#allocation374_spill] sm:$0xff]  ;;  %v3099_v43 = vmax.f32 %v2637_v22, 0.0  ;;  %v4888_v4 = vadd.f32 %v11776_v7, %v3992_v11  ;;  %v11785_v11 = vld [vmem:[#allocation160_spill] sm:$0xff] }
 0x445   : > { %5301 = vmax.xlane.f32.xlu0 %v5014_v13  ;;  %v4885_v40 = vadd.f32 %v11759_v26, %v3989_v18  ;;  %v11760_v13 = vld [vmem:[#allocation371_spill] sm:$0xff]  ;;  %v11768_v18 = vld [vmem:[#allocation373_spill] sm:$0xff]  ;;  %v11777_v22 = vld [vmem:[#allocation158_spill] sm:$0xff] }
 0x446   : > { %v4884_v12 = vadd.f32 %v11760_v13, %v3988_v34  ;;  %v4886_v51 = vadd.f32 %v11768_v18, %v3990_v20  ;;  %v11770_v34 = vld [vmem:[#allocation47_spill] sm:$0xff]  ;;  %v11774_v13 = vld [vmem:[#allocation310_spill] sm:$0xff]  ;;  %v3995_v57 = vmul.f32 %v11777_v22, %v3099_v43  ;;  %v5024_v31 = vsel %vm4980_vm4, %v4888_v4, -inf  ;;  %v11789_v22 = vld [vmem:[#allocation48_spill] sm:$0xff] }
 0x447   : > { %v5021_v62 = vsel %vm4980_vm4, %v4885_v40, -inf  ;;  %v2647_v5 = vadd.f32 %v11771_v63, %v11770_v34  ;;  %v10272_v40 = vpop.permute.xlu0 %4739  ;;  %v11784_v63 = vld [vmem:[#allocation377_spill] sm:$0xff] }
 0x448   : > { %5307 = vmax.xlane.f32.xlu1 %v5017_v58  ;;  %v2632_v58 = vadd.f32 %v11766_v55, %v11765_v35  ;;  %v5020_v29 = vsel %vm4980_vm4, %v4884_v12, -inf  ;;  %v5022_v38 = vsel %vm4980_vm4, %v4886_v51, -inf  ;;  %v11779_v35 = vld [vmem:[#allocation320_spill] sm:$0xff] }
 0x449   : > { %5305 = vmax.xlane.f32.xlu0 %v5016_v1  ;;  %v4887_v1 = vadd.f32 %v11767_v28, %v3991_v59  ;;  %v4889_v59 = vadd.f32 %v11775_v19, %v3993_v0  ;;  %v3101_v20 = vmax.f32 %v2647_v5, 0.0  ;;  %v2657_v55 = vadd.f32 %v11779_v35, %v11778_v50  ;;  %v11780_v28 = vld [vmem:[#allocation155_spill] sm:$0xff]  ;;  %v11783_v0 = vld [vmem:[#allocation380_spill] sm:$0xff]  ;;  %v11791_v50 = vld [vmem:[#allocation382_spill] sm:$0xff] }
 0x44a   : > { %v3098_v26 = vmax.f32 %v2632_v58, 0.0  ;;  %v10283_v58 = vpop.permute.xlu1 %4744  ;;  %v4891_v34 = vadd.f32 %v11783_v0, %v3995_v57  ;;  %v11795_v0 = vld [vmem:[#allocation329_spill] sm:$0xff] }
 0x44b   : > { %v5023_v12 = vsel %vm4980_vm4, %v4887_v1, -inf  ;;  %v11782_v1 = vld [vmem:[#allocation314_spill] sm:$0xff]  ;;  %v5025_v51 = vsel %vm4980_vm4, %v4889_v59, -inf  ;;  %v10292_v5 = vpop.permute.xlu0 %4749 }
 0x44c   : > { %5311 = vmax.xlane.f32.xlu1 %v5019_v52  ;;  %v11773_v52 = vld [vmem:[#allocation44_spill] sm:$0xff]  ;;  %v11790_v59 = vld [vmem:[#allocation318_spill] sm:$0xff]  ;;  %v5027_v4 = vsel %vm4980_vm4, %v4891_v34, -inf }
 0x44d   : > { %5309 = vmax.xlane.f32.xlu0 %v5018_v16  ;;  %v2642_v16 = vadd.f32 %v11774_v13, %v11773_v52  ;;  %v3997_v52 = vmul.f32 %v11785_v11, %v3101_v20  ;;  %v11786_v13 = vld [vmem:[#allocation51_spill] sm:$0xff]  ;;  %v2662_v57 = vadd.f32 %v11790_v59, %v11789_v22  ;;  %v11800_v22 = vld [vmem:[#allocation381_spill] sm:$0xff]  ;;  %v11801_v59 = vld [vmem:[#allocation164_spill] sm:$0xff] }
 0x44f   : > { %v3100_v18 = vmax.f32 %v2642_v16, 0.0  ;;  %v11787_v16 = vld [vmem:[#allocation324_spill] sm:$0xff]  ;;  %v4893_v35 = vadd.f32 %v11791_v50, %v3997_v52  ;;  %v3104_v11 = vmax.f32 %v2662_v57, 0.0  ;;  %v11797_v52 = vld [vmem:[#allocation50_spill] sm:$0xff]  ;;  %v10316_v34 = vpop.permute.xlu0 %4759  ;;  %v11802_v57 = vld [vmem:[#allocation55_spill] sm:$0xff] }
 0x450   : > { %5315 = vmax.xlane.f32.xlu1 %v5021_v62  ;;  %v3994_v62 = vmul.f32 %v11780_v28, %v3098_v26  ;;  %v3103_v26 = vmax.f32 %v2657_v55, 0.0  ;;  %v2667_v19 = vadd.f32 %v11787_v16, %v11786_v13  ;;  %v10303_v28 = vpop.permute.xlu1 %4754  ;;  %v11798_v13 = vld [vmem:[#allocation322_spill] sm:$0xff] }
 0x451   : > { %5313 = vmax.xlane.f32.xlu0 %v5020_v29  ;;  %v11781_v29 = vld [vmem:[#allocation46_spill] sm:$0xff]  ;;  %v2672_v16 = vadd.f32 %v11798_v13, %v11797_v52  ;;  %v11808_v13 = vld [vmem:[#allocation383_spill] sm:$0xff] }
 0x452   : > { %v2652_v17 = vadd.f32 %v11782_v1, %v11781_v29  ;;  %v4890_v43 = vadd.f32 %v11784_v63, %v3994_v62  ;;  %v11792_v62 = vld [vmem:[#allocation379_spill] sm:$0xff]  ;;  %v11793_v29 = vld [vmem:[#allocation162_spill] sm:$0xff] }
 0x453   : > { %v3999_v1 = vmul.f32 %v11793_v29, %v3103_v26  ;;  %v11796_v63 = vld [vmem:[#allocation159_spill] sm:$0xff]  ;;  %v11804_v29 = vld [vmem:[#allocation161_spill] sm:$0xff] }
 0x454   : > { %5319 = vmax.xlane.f32.xlu1 %v5023_v12  ;;  %v11788_v12 = vld [vmem:[#allocation157_spill] sm:$0xff]  ;;  %v5026_v55 = vsel %vm4980_vm4, %v4890_v43, -inf  ;;  %v5029_v43 = vsel %vm4980_vm4, %v4893_v35, -inf  ;;  %v11806_v35 = vld [vmem:[#allocation327_spill] sm:$0xff] }
 0x455   : > { %5317 = vmax.xlane.f32.xlu0 %v5022_v38  ;;  %v3996_v7 = vmul.f32 %v11788_v12, %v3100_v18  ;;  %v3102_v38 = vmax.f32 %v2652_v17, 0.0  ;;  %v3105_v18 = vmax.f32 %v2667_v19, 0.0  ;;  %v11794_v17 = vld [vmem:[#allocation53_spill] sm:$0xff]  ;;  %v11799_v12 = vld [vmem:[#allocation384_spill] sm:$0xff] }
 0x457   : > { %v4892_v20 = vadd.f32 %v11792_v62, %v3996_v7  ;;  %v4895_v7 = vadd.f32 %v11799_v12, %v3999_v1  ;;  %v4001_v50 = vmul.f32 %v11801_v59, %v3105_v18  ;;  %v4000_v1 = vmul.f32 %v11804_v29, %v3104_v11  ;;  %v11813_v29 = vld [vmem:[#allocation54_spill] sm:$0xff] }
 0x458   : > { %5323 = vmax.xlane.f32.xlu1 %v5025_v51  ;;  %v2677_v51 = vadd.f32 %v11795_v0, %v11794_v17  ;;  %v3106_v17 = vmax.f32 %v2672_v16, 0.0  ;;  %v11805_v0 = vld [vmem:[#allocation52_spill] sm:$0xff]  ;;  %v11810_v16 = vld [vmem:[#allocation57_spill] sm:$0xff] }
 0x459   : > { %5321 = vmax.xlane.f32.xlu0 %v5024_v31  ;;  %v3998_v31 = vmul.f32 %v11796_v63, %v3102_v38  ;;  %v5028_v19 = vsel %vm4980_vm4, %v4892_v20, -inf  ;;  %v2682_v63 = vadd.f32 %v11806_v35, %v11805_v0  ;;  %v5031_v20 = vsel %vm4980_vm4, %v4895_v7, -inf  ;;  %v11814_v7 = vld [vmem:[#allocation332_spill] sm:$0xff] }
 0x45a   : > { %v3107_v38 = vmax.f32 %v2677_v51, 0.0  ;;  %v4896_v18 = vadd.f32 %v11808_v13, %v4000_v1  ;;  %v10336_v51 = vpop.permute.xlu0 %4769  ;;  %v2692_v0 = vadd.f32 %v11814_v7, %v11813_v29  ;;  %v11815_v1 = vld [vmem:[#allocation388_spill] sm:$0xff]  ;;  %v11823_v7 = vld [vmem:[#allocation338_spill] sm:$0xff] }
 0x45b   : > { %v4894_v26 = vadd.f32 %v11800_v22, %v3998_v31  ;;  %v11807_v31 = vld [vmem:[#allocation386_spill] sm:$0xff]  ;;  %v11818_v13 = vld [vmem:[#allocation168_spill] sm:$0xff] }
 0x45c   : > { %5327 = vmax.xlane.f32.xlu1 %v5027_v4  ;;  %v11803_v4 = vld [vmem:[#allocation335_spill] sm:$0xff]  ;;  %v4897_v52 = vadd.f32 %v11807_v31, %v4001_v50  ;;  %v11822_v29 = vld [vmem:[#allocation56_spill] sm:$0xff] }
 0x45d   : > { %5325 = vmax.xlane.f32.xlu0 %v5026_v55  ;;  %v2687_v62 = vadd.f32 %v11803_v4, %v11802_v57  ;;  %v10327_v55 = vpop.permute.xlu1 %4764  ;;  %v5030_v12 = vsel %vm4980_vm4, %v4894_v26, -inf  ;;  %v11812_v57 = vld [vmem:[#allocation163_spill] sm:$0xff]  ;;  %v3108_v4 = vmax.f32 %v2682_v63, 0.0 }
 0x45e   : > { %v4002_v50 = vmul.f32 %v11812_v57, %v3106_v17  ;;  %v5033_v26 = vsel %vm4980_vm4, %v4897_v52, -inf  ;;  %v11819_v63 = vld [vmem:[#allocation59_spill] sm:$0xff]  ;;  %v3110_v57 = vmax.f32 %v2692_v0, 0.0  ;;  %v10360_v52 = vpop.permute.xlu0 %4779  ;;  %v11828_v0 = vld [vmem:[#allocation61_spill] sm:$0xff] }
 0x45f   : > { %v3109_v11 = vmax.f32 %v2687_v62, 0.0  ;;  %v5032_v62 = vsel %vm4980_vm4, %v4896_v18, -inf  ;;  %11824 = vst [vmem:[#allocation3_spill] sm:$0xff] %v10360_v52 }
 0x460   : > { %5331 = vmax.xlane.f32.xlu1 %v5029_v43  ;;  %v11809_v43 = vld [vmem:[#allocation166_spill] sm:$0xff] }
 0x461   : > { %5329 = vmax.xlane.f32.xlu0 %v5028_v19  ;;  %v4003_v22 = vmul.f32 %v11809_v43, %v3107_v38  ;;  %v11811_v19 = vld [vmem:[#allocation341_spill] sm:$0xff]  ;;  %v10347_v31 = vpop.permute.xlu1 %4774  ;;  %v11820_v43 = vld [vmem:[#allocation347_spill] sm:$0xff] }
 0x462   : > { %v2697_v59 = vadd.f32 %v11811_v19, %v11810_v16  ;;  %11816 = vst [vmem:[#allocation5_spill] sm:$0xff] %v10347_v31  ;;  %v2707_v16 = vadd.f32 %v11820_v43, %v11819_v63  ;;  %v11821_v19 = vld [vmem:[#allocation165_spill] sm:$0xff]  ;;  %v11829_v63 = vld [vmem:[#allocation352_spill] sm:$0xff] }
 0x463   : > { %v4899_v35 = vadd.f32 %v11815_v1, %v4003_v22  ;;  %v4004_v22 = vmul.f32 %v11821_v19, %v3108_v4  ;;  %v2702_v1 = vadd.f32 %v11823_v7, %v11822_v29  ;;  %v2717_v43 = vadd.f32 %v11829_v63, %v11828_v0  ;;  %v11831_v29 = vld [vmem:[#allocation167_spill] sm:$0xff]  ;;  %v11839_v63 = vld [vmem:[#allocation356_spill] sm:$0xff] }
 0x464   : > { %5335 = vmax.xlane.f32.xlu1 %v5031_v20  ;;  %v11817_v20 = vld [vmem:[#allocation385_spill] sm:$0xff]  ;;  %v3111_v17 = vmax.f32 %v2697_v59, 0.0  ;;  %v3113_v4 = vmax.f32 %v2707_v16, 0.0  ;;  %v10380_v16 = vpop.permute.xlu0 %4789 }
 0x465   : > { %5333 = vmax.xlane.f32.xlu0 %v5030_v12  ;;  %v4898_v38 = vadd.f32 %v11817_v20, %v4002_v50  ;;  %v4005_v12 = vmul.f32 %v11818_v13, %v3109_v11  ;;  %v11825_v50 = vld [vmem:[#allocation390_spill] sm:$0xff]  ;;  %v5035_v18 = vsel %vm4980_vm4, %v4899_v35, -inf  ;;  %v10371_v19 = vpop.permute.xlu1 %4784  ;;  %v3112_v7 = vmax.f32 %v2702_v1, 0.0  ;;  %v11833_v35 = vld [vmem:[#allocation344_spill] sm:$0xff]  ;;  %11836 = vst [vmem:[#allocation4_spill] sm:$0xff] %v10380_v16  ;;  %v11838_v1 = vld [vmem:[#allocation63_spill] sm:$0xff] }
 0x466   : > { %11830 = vst [vmem:[#allocation7_spill] sm:$0xff] %v10371_v19 }
 0x467   : > { %v4901_v20 = vadd.f32 %v11825_v50, %v4005_v12  ;;  %v5034_v59 = vsel %vm4980_vm4, %v4898_v38, -inf  ;;  %v4006_v12 = vmul.f32 %v11831_v29, %v3110_v57  ;;  %v11832_v50 = vld [vmem:[#allocation58_spill] sm:$0xff]  ;;  %v3115_v57 = vmax.f32 %v2717_v43, 0.0 }
 0x468   : > { %5339 = vmax.xlane.f32.xlu1 %v5033_v26  ;;  %v11826_v26 = vld [vmem:[#allocation387_spill] sm:$0xff]  ;;  %v2712_v31 = vadd.f32 %v11833_v35, %v11832_v50  ;;  %v2727_v29 = vadd.f32 %v11839_v63, %v11838_v1  ;;  %v11840_v50 = vld [vmem:[#allocation169_spill] sm:$0xff]  ;;  %v11848_v1 = vld [vmem:[#allocation360_spill] sm:$0xff] }
 0x469   : > { %5337 = vmax.xlane.f32.xlu0 %v5032_v62  ;;  %v4900_v11 = vadd.f32 %v11826_v26, %v4004_v22  ;;  %v11827_v62 = vld [vmem:[#allocation170_spill] sm:$0xff]  ;;  %v11834_v22 = vld [vmem:[#allocation392_spill] sm:$0xff]  ;;  %v5037_v38 = vsel %vm4980_vm4, %v4901_v20, -inf  ;;  %v10391_v16 = vpop.permute.xlu1 %4794 }
 0x46a   : > { %v4007_v13 = vmul.f32 %v11827_v62, %v3111_v17  ;;  %v3114_v35 = vmax.f32 %v2712_v31, 0.0  ;;  %v11842_v20 = vld [vmem:[#allocation350_spill] sm:$0xff]  ;;  %11844 = vst [vmem:[#allocation9_spill] sm:$0xff] %v10391_v16  ;;  %v11847_v31 = vld [vmem:[#allocation65_spill] sm:$0xff] }
 0x46b   : > { %v5036_v62 = vsel %vm4980_vm4, %v4900_v11, -inf  ;;  %v2737_v63 = vadd.f32 %v11848_v1, %v11847_v31  ;;  %v11857_v31 = vld [vmem:[#allocation364_spill] sm:$0xff] }
 0x46c   : > { %5343 = vmax.xlane.f32.xlu1 %v5035_v18  ;;  %v4903_v26 = vadd.f32 %v11834_v22, %v4007_v13  ;;  %v11835_v18 = vld [vmem:[#allocation389_spill] sm:$0xff]  ;;  %v4008_v13 = vmul.f32 %v11840_v50, %v3112_v7  ;;  %v11841_v22 = vld [vmem:[#allocation60_spill] sm:$0xff]  ;;  %v3117_v7 = vmax.f32 %v2727_v29, 0.0  ;;  %v11849_v50 = vld [vmem:[#allocation171_spill] sm:$0xff] }
 0x46d   : > { %5341 = vmax.xlane.f32.xlu0 %v5034_v59  ;;  %v4902_v17 = vadd.f32 %v11835_v18, %v4006_v12  ;;  %v11837_v59 = vld [vmem:[#allocation172_spill] sm:$0xff]  ;;  %v2722_v19 = vadd.f32 %v11842_v20, %v11841_v22  ;;  %v11843_v12 = vld [vmem:[#allocation394_spill] sm:$0xff] }
 0x46e   : > { %v4009_v0 = vmul.f32 %v11837_v59, %v3113_v4  ;;  %v5039_v11 = vsel %vm4980_vm4, %v4903_v26, -inf  ;;  %v11850_v20 = vld [vmem:[#allocation62_spill] sm:$0xff]  ;;  %v10404_v26 = vpop.permute.xlu0 %4799 }
 0x46f   : > { %v5038_v43 = vsel %vm4980_vm4, %v4902_v17, -inf  ;;  %v3116_v22 = vmax.f32 %v2722_v19, 0.0  ;;  %11852 = vst [vmem:[#allocation6_spill] sm:$0xff] %v10404_v26  ;;  %v11856_v19 = vld [vmem:[#allocation67_spill] sm:$0xff] }
 0x470   : > { %5347 = vmax.xlane.f32.xlu1 %v5037_v38  ;;  %v4905_v18 = vadd.f32 %v11843_v12, %v4009_v0  ;;  %v11845_v38 = vld [vmem:[#allocation391_spill] sm:$0xff]  ;;  %v4010_v0 = vmul.f32 %v11849_v50, %v3114_v35  ;;  %v11851_v12 = vld [vmem:[#allocation354_spill] sm:$0xff]  ;;  %v3119_v35 = vmax.f32 %v2737_v63, 0.0  ;;  %v2747_v1 = vadd.f32 %v11857_v31, %v11856_v19  ;;  %v10415_v50 = vpop.permute.xlu1 %4804 }
 0x471   : > { %5345 = vmax.xlane.f32.xlu0 %v5036_v62  ;;  %v4904_v4 = vadd.f32 %v11845_v38, %v4008_v13  ;;  %v11846_v62 = vld [vmem:[#allocation174_spill] sm:$0xff]  ;;  %v2732_v16 = vadd.f32 %v11851_v12, %v11850_v20  ;;  %v11853_v13 = vld [vmem:[#allocation396_spill] sm:$0xff]  ;;  %11858 = vst [vmem:[#allocation11_spill] sm:$0xff] %v10415_v50  ;;  %v11859_v20 = vld [vmem:[#allocation173_spill] sm:$0xff] }
 0x472   : > { %v4011_v59 = vmul.f32 %v11846_v62, %v3115_v57  ;;  %v5041_v17 = vsel %vm4980_vm4, %v4905_v18, -inf  ;;  %v11861_v18 = vld [vmem:[#allocation358_spill] sm:$0xff]  ;;  %v10424_v63 = vpop.permute.xlu0 %4809 }
 0x473   : > { %v5040_v29 = vsel %vm4980_vm4, %v4904_v4, -inf  ;;  %v3118_v12 = vmax.f32 %v2732_v16, 0.0  ;;  %11864 = vst [vmem:[#allocation8_spill] sm:$0xff] %v10424_v63  ;;  %v11866_v19 = vld [vmem:[#allocation206_spill] sm:$0xff] }
 0x474   : > { %5351 = vmax.xlane.f32.xlu1 %v5039_v11  ;;  %v4907_v38 = vadd.f32 %v11853_v13, %v4011_v59  ;;  %v11854_v11 = vld [vmem:[#allocation393_spill] sm:$0xff]  ;;  %v4012_v59 = vmul.f32 %v11859_v20, %v3116_v22  ;;  %v11860_v13 = vld [vmem:[#allocation64_spill] sm:$0xff]  ;;  %v11867_v16 = vld [vmem:[#allocation178_spill] sm:$0xff]  ;;  %v3121_v20 = vmax.f32 %v2747_v1, 0.0  ;;  %v10435_v63 = vpop.permute.xlu1 %4814 }
 0x475   : > { %5349 = vmax.xlane.f32.xlu0 %v5038_v43  ;;  %v4906_v57 = vadd.f32 %v11854_v11, %v4010_v0  ;;  %v11855_v43 = vld [vmem:[#allocation176_spill] sm:$0xff]  ;;  %v2742_v26 = vadd.f32 %v11861_v18, %v11860_v13  ;;  %v11862_v0 = vld [vmem:[#allocation398_spill] sm:$0xff]  ;;  %v4015_v31 = vmul.f32 %v11867_v16, %v3119_v35  ;;  %v11868_v13 = vld [vmem:[#allocation175_spill] sm:$0xff]  ;;  %11872 = vst [vmem:[#allocation13_spill] sm:$0xff] %v10435_v63 }
 0x476   : > { %v4013_v62 = vmul.f32 %v11855_v43, %v3117_v7  ;;  %v5043_v4 = vsel %vm4980_vm4, %v4907_v38, -inf  ;;  %v11870_v38 = vld [vmem:[#allocation362_spill] sm:$0xff]  ;;  %v11877_v16 = vld [vmem:[#allocation68_spill] sm:$0xff] }
 0x477   : > { %v5042_v43 = vsel %vm4980_vm4, %v4906_v57, -inf  ;;  %v3120_v18 = vmax.f32 %v2742_v26, 0.0 }
 0x478   : > { %5355 = vmax.xlane.f32.xlu1 %v5041_v17  ;;  %v4909_v11 = vadd.f32 %v11862_v0, %v4013_v62  ;;  %v11863_v17 = vld [vmem:[#allocation395_spill] sm:$0xff]  ;;  %v4014_v62 = vmul.f32 %v11868_v13, %v3118_v12  ;;  %v11869_v0 = vld [vmem:[#allocation66_spill] sm:$0xff] }
 0x479   : > { %5353 = vmax.xlane.f32.xlu0 %v5040_v29  ;;  %v4908_v7 = vadd.f32 %v11863_v17, %v4012_v59  ;;  %v11865_v29 = vld [vmem:[#allocation69_spill] sm:$0xff]  ;;  %v2752_v50 = vadd.f32 %v11870_v38, %v11869_v0  ;;  %v11871_v59 = vld [vmem:[#allocation400_spill] sm:$0xff]  ;;  %v11875_v12 = vld [vmem:[#allocation210_spill] sm:$0xff] }
 0x47a   : > { %v2757_v22 = vadd.f32 %v11866_v19, %v11865_v29  ;;  %v4911_v17 = vadd.f32 %v11871_v59, %v4015_v31  ;;  %v5045_v57 = vsel %vm4980_vm4, %v4909_v11, -inf  ;;  %v11876_v29 = vld [vmem:[#allocation180_spill] sm:$0xff]  ;;  %v11879_v0 = vld [vmem:[#allocation177_spill] sm:$0xff]  ;;  %v10448_v11 = vpop.permute.xlu0 %4819 }
 0x47b   : > { %v5044_v35 = vsel %vm4980_vm4, %v4908_v7, -inf  ;;  %v4017_v19 = vmul.f32 %v11876_v29, %v3121_v20  ;;  %v11878_v31 = vld [vmem:[#allocation204_spill] sm:$0xff]  ;;  %v4016_v38 = vmul.f32 %v11879_v0, %v3120_v18  ;;  %v3122_v59 = vmax.f32 %v2752_v50, 0.0  ;;  %v11882_v20 = vld [vmem:[#allocation182_spill] sm:$0xff]  ;;  %v11883_v29 = vld [vmem:[#allocation73_spill] sm:$0xff]  ;;  %v10459_v50 = vpop.permute.xlu1 %4824 }
 0x47c   : > { %5359 = vmax.xlane.f32.xlu1 %v5043_v4  ;;  %v11873_v4 = vld [vmem:[#allocation397_spill] sm:$0xff]  ;;  %v3123_v1 = vmax.f32 %v2757_v22, 0.0  ;;  %v2762_v13 = vadd.f32 %v11878_v31, %v11877_v16  ;;  %v5047_v7 = vsel %vm4980_vm4, %v4911_v17, -inf  ;;  %v11881_v22 = vld [vmem:[#allocation399_spill] sm:$0xff]  ;;  %v11884_v16 = vld [vmem:[#allocation214_spill] sm:$0xff]  ;;  %11885 = vst [vmem:[#allocation10_spill] sm:$0xff] %v10459_v50 }
 0x47d   : > { %5357 = vmax.xlane.f32.xlu0 %v5042_v43  ;;  %v4910_v52 = vadd.f32 %v11873_v4, %v4014_v62  ;;  %v11874_v43 = vld [vmem:[#allocation71_spill] sm:$0xff]  ;;  %v11880_v62 = vld [vmem:[#allocation402_spill] sm:$0xff]  ;;  %v2777_v18 = vadd.f32 %v11884_v16, %v11883_v29  ;;  %v11887_v0 = vld [vmem:[#allocation208_spill] sm:$0xff] }
 0x47e   : > { %v2767_v26 = vadd.f32 %v11875_v12, %v11874_v43  ;;  %v4913_v4 = vadd.f32 %v11880_v62, %v4017_v19  ;;  %v3124_v31 = vmax.f32 %v2762_v13, 0.0  ;;  %v11886_v19 = vld [vmem:[#allocation70_spill] sm:$0xff]  ;;  %v11888_v17 = vld [vmem:[#allocation179_spill] sm:$0xff] }
 0x47f   : > { %v5046_v43 = vsel %vm4980_vm4, %v4910_v52, -inf  ;;  %v2772_v62 = vadd.f32 %v11887_v0, %v11886_v19  ;;  %v4018_v63 = vmul.f32 %v11888_v17, %v3122_v59  ;;  %v3127_v29 = vmax.f32 %v2777_v18, 0.0  ;;  %v11893_v16 = vld [vmem:[#allocation75_spill] sm:$0xff]  ;;  %v11894_v19 = vld [vmem:[#allocation218_spill] sm:$0xff]  ;;  %v11895_v59 = vld [vmem:[#allocation181_spill] sm:$0xff] }
 0x480   : > { %5363 = vmax.xlane.f32.xlu1 %v5045_v57  ;;  %v4912_v57 = vadd.f32 %v11881_v22, %v4016_v38  ;;  %v3125_v12 = vmax.f32 %v2767_v26, 0.0  ;;  %v11889_v38 = vld [vmem:[#allocation404_spill] sm:$0xff]  ;;  %v5049_v52 = vsel %vm4980_vm4, %v4913_v4, -inf  ;;  %v10468_v26 = vpop.permute.xlu0 %4829  ;;  %v2787_v0 = vadd.f32 %v11894_v19, %v11893_v16  ;;  %v11903_v16 = vld [vmem:[#allocation222_spill] sm:$0xff] }
 0x481   : > { %5361 = vmax.xlane.f32.xlu0 %v5044_v35  ;;  %v4019_v35 = vmul.f32 %v11882_v20, %v3123_v1  ;;  %11891 = vst [vmem:[#allocation15_spill] sm:$0xff] %v10468_v26  ;;  %v3126_v17 = vmax.f32 %v2772_v62, 0.0  ;;  %v11897_v4 = vld [vmem:[#allocation212_spill] sm:$0xff]  ;;  %v10479_v26 = vpop.permute.xlu1 %4834 }
 0x482   : > { %v5048_v20 = vsel %vm4980_vm4, %v4912_v57, -inf  ;;  %11899 = vst [vmem:[#allocation12_spill] sm:$0xff] %v10479_v26  ;;  %v3129_v62 = vmax.f32 %v2787_v0, 0.0 }
 0x483   : > { %v4915_v22 = vadd.f32 %v11889_v38, %v4019_v35  ;;  %v4020_v35 = vmul.f32 %v11895_v59, %v3124_v31  ;;  %v11896_v38 = vld [vmem:[#allocation72_spill] sm:$0xff] }
 0x484   : > { %5367 = vmax.xlane.f32.xlu1 %v5047_v7  ;;  %v11890_v7 = vld [vmem:[#allocation401_spill] sm:$0xff]  ;;  %v2782_v50 = vadd.f32 %v11897_v4, %v11896_v38  ;;  %v11905_v4 = vld [vmem:[#allocation74_spill] sm:$0xff]  ;;  %v10492_v26 = vpop.permute.xlu0 %4839 }
 0x485   : > { %5365 = vmax.xlane.f32.xlu0 %v5046_v43  ;;  %v4914_v1 = vadd.f32 %v11890_v7, %v4018_v63  ;;  %v11892_v43 = vld [vmem:[#allocation184_spill] sm:$0xff]  ;;  %v11898_v63 = vld [vmem:[#allocation406_spill] sm:$0xff]  ;;  %v5051_v57 = vsel %vm4980_vm4, %v4915_v22, -inf  ;;  %11907 = vst [vmem:[#allocation17_spill] sm:$0xff] %v10492_v26 }
 0x486   : > { %v4021_v13 = vmul.f32 %v11892_v43, %v3125_v12  ;;  %v11902_v43 = vld [vmem:[#allocation77_spill] sm:$0xff]  ;;  %v3128_v38 = vmax.f32 %v2782_v50, 0.0 }
 0x487   : > { %v5050_v18 = vsel %vm4980_vm4, %v4914_v1, -inf  ;;  %v2797_v19 = vadd.f32 %v11903_v16, %v11902_v43  ;;  %v11911_v43 = vld [vmem:[#allocation79_spill] sm:$0xff]  ;;  %v11912_v16 = vld [vmem:[#allocation226_spill] sm:$0xff] }
 0x488   : > { %5371 = vmax.xlane.f32.xlu1 %v5049_v52  ;;  %v4917_v7 = vadd.f32 %v11898_v63, %v4021_v13  ;;  %v11900_v52 = vld [vmem:[#allocation403_spill] sm:$0xff]  ;;  %v11906_v63 = vld [vmem:[#allocation216_spill] sm:$0xff] }
 0x489   : > { %5369 = vmax.xlane.f32.xlu0 %v5048_v20  ;;  %v4916_v12 = vadd.f32 %v11900_v52, %v4020_v35  ;;  %v11901_v20 = vld [vmem:[#allocation186_spill] sm:$0xff]  ;;  %v11904_v13 = vld [vmem:[#allocation183_spill] sm:$0xff]  ;;  %v2792_v22 = vadd.f32 %v11906_v63, %v11905_v4  ;;  %v11908_v35 = vld [vmem:[#allocation408_spill] sm:$0xff]  ;;  %v10504_v4 = vpop.permute.xlu1 %4844 }
 0x48a   : > { %v4023_v31 = vmul.f32 %v11901_v20, %v3127_v29  ;;  %v4022_v59 = vmul.f32 %v11904_v13, %v3126_v17  ;;  %v5053_v1 = vsel %vm4980_vm4, %v4917_v7, -inf  ;;  %v11910_v17 = vld [vmem:[#allocation188_spill] sm:$0xff]  ;;  %v3131_v20 = vmax.f32 %v2797_v19, 0.0  ;;  %11913 = vst [vmem:[#allocation14_spill] sm:$0xff] %v10504_v4  ;;  %v11920_v4 = vld [vmem:[#allocation230_spill] sm:$0xff] }
 0x48b   : > { %v5052_v0 = vsel %vm4980_vm4, %v4916_v12, -inf  ;;  %v4025_v50 = vmul.f32 %v11910_v17, %v3129_v62  ;;  %v2807_v13 = vadd.f32 %v11912_v16, %v11911_v43  ;;  %v11915_v63 = vld [vmem:[#allocation76_spill] sm:$0xff]  ;;  %v11917_v43 = vld [vmem:[#allocation407_spill] sm:$0xff] }
 0x48c   : > { %5375 = vmax.xlane.f32.xlu1 %v5051_v57  ;;  %v4919_v52 = vadd.f32 %v11908_v35, %v4023_v31  ;;  %v11909_v57 = vld [vmem:[#allocation405_spill] sm:$0xff]  ;;  %v11916_v35 = vld [vmem:[#allocation220_spill] sm:$0xff] }
 0x48d   : > { %5373 = vmax.xlane.f32.xlu0 %v5050_v18  ;;  %v4918_v29 = vadd.f32 %v11909_v57, %v4022_v59  ;;  %v5111_v18 = vld [vmem:[%s6575_s20] sm:$0xff]  ;;  %v11914_v31 = vld [vmem:[#allocation185_spill] sm:$0xff]  ;;  %v3130_v59 = vmax.f32 %v2792_v22, 0.0  ;;  %v2802_v12 = vadd.f32 %v11916_v35, %v11915_v63  ;;  %v4921_v57 = vadd.f32 %v9959_v42, %v4025_v50  ;;  %v5112_v17 = vld [vmem:[%s6575_s20 + $0x8] sm:$0xff] }
 0x48e   : > { %v4024_v7 = vmul.f32 %v11914_v31, %v3128_v38  ;;  %v5055_v19 = vsel %vm4980_vm4, %v4919_v52, -inf  ;;  %v5113_v38 = vld [vmem:[%s6575_s20 + $0x10] sm:$0xff]  ;;  %v11918_v22 = vld [vmem:[#allocation190_spill] sm:$0xff]  ;;  %v3133_v63 = vmax.f32 %v2807_v13, 0.0 }
 0x48f   : > { %v4027_v31 = vmul.f32 %v11918_v22, %v3131_v20  ;;  %v11919_v35 = vld [vmem:[#allocation81_spill] sm:$0xff]  ;;  %v5115_v22 = vld [vmem:[%s6575_s20 + $0x20] sm:$0xff] }
 0x490   : > { %5379 = vmax.xlane.f32.xlu1 %v5053_v1  ;;  %v4920_v16 = vadd.f32 %v11917_v43, %v4024_v7  ;;  %v2817_v42 = vadd.f32 %v11920_v4, %v11919_v35  ;;  %v3132_v7 = vmax.f32 %v2802_v12, 0.0  ;;  %v5057_v4 = vsel %vm4980_vm4, %v4921_v57, -inf  ;;  %v5114_v12 = vld [vmem:[%s6575_s20 + $0x18] sm:$0xff] }
 0x491   : > { %5377 = vmax.xlane.f32.xlu0 %v5052_v0  ;;  %v5054_v0 = vsel %vm4980_vm4, %v4918_v29, -inf  ;;  %v11923_v29 = vld [vmem:[#allocation224_spill] sm:$0xff]  ;;  %v4923_v20 = vadd.f32 %v9972_v32, %v4027_v31  ;;  %v11926_v32 = vld [vmem:[#allocation83_spill] sm:$0xff] }
 0x492   : > { %v5240_v1 = vpop.xlane.xlu0 %5239 }
 0x493   : > { %v5495_v62 = vmax.f32 %v5111_v18, %v5240_v1  ;;  %v11921_v18 = vld [vmem:[#allocation187_spill] sm:$0xff]  ;;  %v11922_v1 = vld [vmem:[#allocation78_spill] sm:$0xff] }
 0x494   : > { %5383 = vmax.xlane.f32.xlu1 %v5055_v19  ;;  %v4026_v50 = vmul.f32 %v11921_v18, %v3130_v59  ;;  %v2812_v19 = vadd.f32 %v11923_v29, %v11922_v1  ;;  %v5056_v59 = vsel %vm4980_vm4, %v4920_v16, -inf  ;;  %v11929_v1 = vld [vmem:[#allocation80_spill] sm:$0xff] }
 0x495   : > { %5624 = vst.msk [vmem:[%s6575_s20] sm:$0xff] %vm5623_vm5, %v5495_v62  ;;  %5381 = vmax.xlane.f32.xlu0 %v5054_v0  ;;  %v5242_v52 = vpop.xlane.xlu1 %5241  ;;  %v11924_v62 = vld [vmem:[#allocation409_spill] sm:$0xff]  ;;  %v11925_v0 = vld [vmem:[#allocation192_spill] sm:$0xff] }
 0x496   : > { %v5244_v43 = vpop.xlane.xlu0 %5243  ;;  %v5496_v26 = vmax.f32 %v5112_v17, %v5242_v52  ;;  %v4922_v35 = vadd.f32 %v11924_v62, %v4026_v50  ;;  %v4029_v18 = vmul.f32 %v11925_v0, %v3133_v63  ;;  %v3135_v17 = vmax.f32 %v2817_v42, 0.0  ;;  %v11928_v52 = vld [vmem:[#allocation189_spill] sm:$0xff]  ;;  %v11930_v16 = vld [vmem:[#allocation228_spill] sm:$0xff] }
 0x497   : > { %v5497_v13 = vmax.f32 %v5113_v38, %v5244_v43  ;;  %v11927_v38 = vld [vmem:[#allocation234_spill] sm:$0xff]  ;;  %v3134_v50 = vmax.f32 %v2812_v19, 0.0  ;;  %v2822_v29 = vadd.f32 %v11930_v16, %v11929_v1  ;;  %v5059_v62 = vsel %vm4980_vm4, %v4923_v20, -inf  ;;  %v5117_v0 = vld [vmem:[%s6575_s20 + $0x30] sm:$0xff]  ;;  %v5116_v19 = vld [vmem:[%s6575_s20 + $0x28] sm:$0xff] }
 0x498   : > { %5625 = vst.msk [vmem:[%s6575_s20 + $0x8] sm:$0xff] %vm5623_vm5, %v5496_v26  ;;  %5387 = vmax.xlane.f32.xlu1 %v5057_v4  ;;  %v2827_v31 = vadd.f32 %v11927_v38, %v11926_v32  ;;  %v4028_v26 = vmul.f32 %v11928_v52, %v3132_v7  ;;  %v4925_v63 = vadd.f32 %v9987_v54, %v4029_v18  ;;  %v5058_v7 = vsel %vm4980_vm4, %v4922_v35, -inf  ;;  %v11932_v54 = vld [vmem:[#allocation85_spill] sm:$0xff]  ;;  %v11934_v20 = vld [vmem:[#allocation191_spill] sm:$0xff]  ;;  %v11935_v52 = vld [vmem:[#allocation82_spill] sm:$0xff] }
 0x499   : > { %5626 = vst.msk [vmem:[%s6575_s20 + $0x10] sm:$0xff] %vm5623_vm5, %v5497_v13  ;;  %5385 = vmax.xlane.f32.xlu0 %v5056_v59  ;;  %v5248_v57 = vpop.xlane.xlu1 %5247  ;;  %v11931_v59 = vld [vmem:[#allocation194_spill] sm:$0xff]  ;;  %v4030_v38 = vmul.f32 %v11934_v20, %v3134_v50  ;;  %v11936_v35 = vld [vmem:[#allocation232_spill] sm:$0xff] }
 0x49a   : > { %v5246_v43 = vpop.xlane.xlu0 %5245  ;;  %v5499_v4 = vmax.f32 %v5115_v22, %v5248_v57  ;;  %v4924_v13 = vadd.f32 %v9966_v37, %v4028_v26  ;;  %v4031_v32 = vmul.f32 %v11931_v59, %v3135_v17  ;;  %v3137_v22 = vmax.f32 %v2827_v31, 0.0 }
 0x49b   : > { %v5498_v42 = vmax.f32 %v5114_v12, %v5246_v43  ;;  %v11933_v12 = vld [vmem:[#allocation238_spill] sm:$0xff]  ;;  %v3136_v57 = vmax.f32 %v2822_v29, 0.0  ;;  %v2832_v26 = vadd.f32 %v11936_v35, %v11935_v52  ;;  %v5061_v43 = vsel %vm4980_vm4, %v4925_v63, -inf  ;;  %v11940_v63 = vld [vmem:[#allocation193_spill] sm:$0xff] }
 0x49c   : > { %5628 = vst.msk [vmem:[%s6575_s20 + $0x20] sm:$0xff] %vm5623_vm5, %v5499_v4  ;;  %5391 = vmax.xlane.f32.xlu1 %v5059_v62  ;;  %v2837_v18 = vadd.f32 %v11933_v12, %v11932_v54  ;;  %v4927_v17 = vadd.f32 %v10003_v6, %v4031_v32  ;;  %v5119_v4 = vld [vmem:[%s6575_s20 + $0x40] sm:$0xff]  ;;  %v5060_v50 = vsel %vm4980_vm4, %v4924_v13, -inf  ;;  %v5118_v29 = vld [vmem:[%s6575_s20 + $0x38] sm:$0xff]  ;;  %v11937_v62 = vld [vmem:[#allocation196_spill] sm:$0xff] }
 0x49d   : > { %5627 = vst.msk [vmem:[%s6575_s20 + $0x18] sm:$0xff] %vm5623_vm5, %v5498_v42  ;;  %5389 = vmax.xlane.f32.xlu0 %v5058_v7  ;;  %v5252_v37 = vpop.xlane.xlu1 %5251  ;;  %v4926_v42 = vadd.f32 %v9979_v48, %v4030_v38  ;;  %v4033_v7 = vmul.f32 %v11937_v62, %v3137_v22  ;;  %v11938_v6 = vld [vmem:[#allocation87_spill] sm:$0xff]  ;;  %v4032_v32 = vmul.f32 %v11940_v63, %v3136_v57  ;;  %v3138_v54 = vmax.f32 %v2832_v26, 0.0  ;;  %v11941_v12 = vld [vmem:[#allocation84_spill] sm:$0xff]  ;;  %v5121_v35 = vld [vmem:[%s6575_s20 + $0x50] sm:$0xff] }
 0x49e   : > { %v5250_v1 = vpop.xlane.xlu0 %5249  ;;  %v5501_v16 = vmax.f32 %v5117_v0, %v5252_v37  ;;  %v3139_v0 = vmax.f32 %v2837_v18, 0.0  ;;  %v11942_v13 = vld [vmem:[#allocation236_spill] sm:$0xff]  ;;  %v5063_v52 = vsel %vm4980_vm4, %v4927_v17, -inf  ;;  %v11946_v17 = vld [vmem:[#allocation195_spill] sm:$0xff] }
 0x49f   : > { %v5500_v31 = vmax.f32 %v5116_v19, %v5250_v1  ;;  %v11939_v19 = vld [vmem:[#allocation243_spill] sm:$0xff]  ;;  %v2842_v37 = vadd.f32 %v11942_v13, %v11941_v12  ;;  %v4929_v22 = vadd.f32 %v10019_v56, %v4033_v7  ;;  %v4928_v1 = vadd.f32 %v9993_v9, %v4032_v32  ;;  %v5120_v26 = vld [vmem:[%s6575_s20 + $0x48] sm:$0xff]  ;;  %v11944_v56 = vld [vmem:[#allocation89_spill] sm:$0xff] }
 0x4a0   : > { %5630 = vst.msk [vmem:[%s6575_s20 + $0x30] sm:$0xff] %vm5623_vm5, %v5501_v16  ;;  %5395 = vmax.xlane.f32.xlu1 %v5061_v43  ;;  %v2847_v59 = vadd.f32 %v11939_v19, %v11938_v6  ;;  %v5062_v57 = vsel %vm4980_vm4, %v4926_v42, -inf  ;;  %v11943_v16 = vld [vmem:[#allocation198_spill] sm:$0xff]  ;;  %v11948_v42 = vld [vmem:[#allocation241_spill] sm:$0xff]  ;;  %v5123_v32 = vld [vmem:[%s6575_s20 + $0x60] sm:$0xff] }
 0x4a1   : > { %5629 = vst.msk [vmem:[%s6575_s20 + $0x28] sm:$0xff] %vm5623_vm5, %v5500_v31  ;;  %5393 = vmax.xlane.f32.xlu0 %v5060_v50  ;;  %v5256_v48 = vpop.xlane.xlu1 %5255  ;;  %v4035_v31 = vmul.f32 %v11943_v16, %v3139_v0  ;;  %v3140_v62 = vmax.f32 %v2842_v37, 0.0  ;;  %v11947_v7 = vld [vmem:[#allocation86_spill] sm:$0xff]  ;;  %v5065_v63 = vsel %vm4980_vm4, %v4929_v22, -inf  ;;  %v11949_v37 = vld [vmem:[#allocation200_spill] sm:$0xff]  ;;  %v11952_v22 = vld [vmem:[#allocation197_spill] sm:$0xff] }
 0x4a2   : > { %v5254_v20 = vpop.xlane.xlu0 %5253  ;;  %v5503_v38 = vmax.f32 %v5119_v4, %v5256_v48  ;;  %v3141_v43 = vmax.f32 %v2847_v59, 0.0  ;;  %v11945_v4 = vld [vmem:[#allocation249_spill] sm:$0xff]  ;;  %v2852_v6 = vadd.f32 %v11948_v42, %v11947_v7  ;;  %v5122_v13 = vld [vmem:[%s6575_s20 + $0x58] sm:$0xff] }
 0x4a3   : > { %v5502_v18 = vmax.f32 %v5118_v29, %v5254_v20  ;;  %v2857_v50 = vadd.f32 %v11945_v4, %v11944_v56  ;;  %v4034_v29 = vmul.f32 %v11946_v17, %v3138_v54  ;;  %v4931_v0 = vadd.f32 %v10033_v53, %v4035_v31  ;;  %v11950_v53 = vld [vmem:[#allocation91_spill] sm:$0xff]  ;;  %v11955_v7 = vld [vmem:[#allocation202_spill] sm:$0xff] }
 0x4a4   : > { %5632 = vst.msk [vmem:[%s6575_s20 + $0x40] sm:$0xff] %vm5623_vm5, %v5503_v38  ;;  %5399 = vmax.xlane.f32.xlu1 %v5063_v52  ;;  %v5064_v54 = vsel %vm4980_vm4, %v4928_v1, -inf  ;;  %v4037_v20 = vmul.f32 %v11949_v37, %v3141_v43  ;;  %v11954_v1 = vld [vmem:[#allocation246_spill] sm:$0xff] }
 0x4a5   : > { %5631 = vst.msk [vmem:[%s6575_s20 + $0x38] sm:$0xff] %vm5623_vm5, %v5502_v18  ;;  %5397 = vmax.xlane.f32.xlu0 %v5062_v57  ;;  %v5260_v9 = vpop.xlane.xlu1 %5259  ;;  %v4930_v12 = vadd.f32 %v10017_v41, %v4034_v29  ;;  %v3143_v38 = vmax.f32 %v2857_v50, 0.0  ;;  %v11951_v18 = vld [vmem:[#allocation255_spill] sm:$0xff]  ;;  %v3142_v57 = vmax.f32 %v2852_v6, 0.0  ;;  %v5067_v50 = vsel %vm4980_vm4, %v4931_v0, -inf }
 0x4a6   : > { %v5258_v19 = vpop.xlane.xlu0 %5257  ;;  %v5505_v48 = vmax.f32 %v5121_v35, %v5260_v9  ;;  %v2867_v52 = vadd.f32 %v11951_v18, %v11950_v53  ;;  %v4036_v35 = vmul.f32 %v11952_v22, %v3140_v62  ;;  %v4933_v43 = vadd.f32 %v10052_v8, %v4037_v20  ;;  %v5125_v9 = vld [vmem:[%s6575_s20 + $0x70] sm:$0xff]  ;;  %v5124_v62 = vld [vmem:[%s6575_s20 + $0x68] sm:$0xff]  ;;  %v11958_v0 = vld [vmem:[#allocation199_spill] sm:$0xff] }
 0x4a7   : > { %v5504_v59 = vmax.f32 %v5120_v26, %v5258_v19  ;;  %v11953_v26 = vld [vmem:[#allocation88_spill] sm:$0xff]  ;;  %v5066_v29 = vsel %vm4980_vm4, %v4930_v12, -inf  ;;  %v4039_v42 = vmul.f32 %v11955_v7, %v3143_v38  ;;  %v11956_v8 = vld [vmem:[#allocation93_spill] sm:$0xff]  ;;  %v5127_v18 = vld [vmem:[%s6575_s20 + $0x80] sm:$0xff] }
 0x4a8   : > { %5634 = vst.msk [vmem:[%s6575_s20 + $0x50] sm:$0xff] %vm5623_vm5, %v5505_v48  ;;  %5403 = vmax.xlane.f32.xlu1 %v5065_v63  ;;  %v2862_v16 = vadd.f32 %v11954_v1, %v11953_v26  ;;  %v4932_v17 = vadd.f32 %v10039_v45, %v4036_v35  ;;  %v3145_v6 = vmax.f32 %v2867_v52, 0.0  ;;  %v11957_v19 = vld [vmem:[#allocation261_spill] sm:$0xff]  ;;  %v11960_v12 = vld [vmem:[#allocation252_spill] sm:$0xff]  ;;  %v5069_v53 = vsel %vm4980_vm4, %v4933_v43, -inf  ;;  %v5126_v22 = vld [vmem:[%s6575_s20 + $0x78] sm:$0xff] }
 0x4a9   : > { %5633 = vst.msk [vmem:[%s6575_s20 + $0x48] sm:$0xff] %vm5623_vm5, %v5504_v59  ;;  %5401 = vmax.xlane.f32.xlu0 %v5064_v54  ;;  %v5264_v41 = vpop.xlane.xlu1 %5263  ;;  %v2877_v48 = vadd.f32 %v11957_v19, %v11956_v8  ;;  %v4038_v59 = vmul.f32 %v11958_v0, %v3142_v57  ;;  %v4935_v20 = vadd.f32 %v10072_v49, %v4039_v42  ;;  %v11961_v35 = vld [vmem:[#allocation205_spill] sm:$0xff]  ;;  %v11962_v49 = vld [vmem:[#allocation95_spill] sm:$0xff] }
 0x4aa   : > { %v5262_v31 = vpop.xlane.xlu0 %5261  ;;  %v5507_v56 = vmax.f32 %v5123_v32, %v5264_v41  ;;  %v3144_v63 = vmax.f32 %v2862_v16, 0.0  ;;  %v11959_v32 = vld [vmem:[#allocation90_spill] sm:$0xff]  ;;  %v5068_v41 = vsel %vm4980_vm4, %v4932_v17, -inf  ;;  %v4041_v57 = vmul.f32 %v11961_v35, %v3145_v6  ;;  %v11963_v1 = vld [vmem:[#allocation267_spill] sm:$0xff]  ;;  %v5129_v6 = vld [vmem:[%s6575_s20 + $0x90] sm:$0xff] }
 0x4ab   : > { %v5506_v4 = vmax.f32 %v5122_v13, %v5262_v31  ;;  %v2872_v54 = vadd.f32 %v11960_v12, %v11959_v32  ;;  %v4934_v52 = vadd.f32 %v10063_v23, %v4038_v59  ;;  %v3147_v26 = vmax.f32 %v2877_v48, 0.0  ;;  %v11964_v31 = vld [vmem:[#allocation201_spill] sm:$0xff]  ;;  %v5128_v48 = vld [vmem:[%s6575_s20 + $0x88] sm:$0xff]  ;;  %v11970_v12 = vld [vmem:[#allocation203_spill] sm:$0xff] }
 0x4ac   : > { %5636 = vst.msk [vmem:[%s6575_s20 + $0x60] sm:$0xff] %vm5623_vm5, %v5507_v56  ;;  %5407 = vmax.xlane.f32.xlu1 %v5067_v50  ;;  %v2887_v16 = vadd.f32 %v11963_v1, %v11962_v49  ;;  %v4040_v56 = vmul.f32 %v11964_v31, %v3144_v63  ;;  %v11966_v50 = vld [vmem:[#allocation258_spill] sm:$0xff]  ;;  %v5071_v42 = vsel %vm4980_vm4, %v4935_v20, -inf  ;;  %v11969_v63 = vld [vmem:[#allocation273_spill] sm:$0xff]  ;;  %v11972_v20 = vld [vmem:[#allocation264_spill] sm:$0xff] }
 0x4ad   : > { %5635 = vst.msk [vmem:[%s6575_s20 + $0x58] sm:$0xff] %vm5623_vm5, %v5506_v4  ;;  %5405 = vmax.xlane.f32.xlu0 %v5066_v29  ;;  %v5268_v45 = vpop.xlane.xlu1 %5267  ;;  %v3146_v43 = vmax.f32 %v2872_v54, 0.0  ;;  %v11965_v4 = vld [vmem:[#allocation92_spill] sm:$0xff]  ;;  %v5070_v19 = vsel %vm4980_vm4, %v4934_v52, -inf  ;;  %v5131_v35 = vld [vmem:[%s6575_s20 + $0xa0] sm:$0xff]  ;;  %v5130_v49 = vld [vmem:[%s6575_s20 + $0x98] sm:$0xff] }
 0x4ae   : > { %v5266_v13 = vpop.xlane.xlu0 %5265  ;;  %v5509_v37 = vmax.f32 %v5125_v9, %v5268_v45  ;;  %v2882_v9 = vadd.f32 %v11966_v50, %v11965_v4  ;;  %v4936_v8 = vadd.f32 %v10083_v39, %v4040_v56  ;;  %v11967_v45 = vld [vmem:[#allocation209_spill] sm:$0xff]  ;;  %v3149_v59 = vmax.f32 %v2887_v16, 0.0  ;;  %v11975_v31 = vld [vmem:[#allocation279_spill] sm:$0xff] }
 0x4af   : > { %v5508_v38 = vmax.f32 %v5124_v62, %v5266_v13  ;;  %v4937_v62 = vadd.f32 %v10096_v61, %v4041_v57  ;;  %v4043_v0 = vmul.f32 %v11967_v45, %v3147_v26  ;;  %v11968_v61 = vld [vmem:[#allocation97_spill] sm:$0xff]  ;;  %v4042_v54 = vmul.f32 %v11970_v12, %v3146_v43  ;;  %v11976_v43 = vld [vmem:[#allocation207_spill] sm:$0xff] }
 0x4b0   : > { %5638 = vst.msk [vmem:[%s6575_s20 + $0x70] sm:$0xff] %vm5623_vm5, %v5509_v37  ;;  %5411 = vmax.xlane.f32.xlu1 %v5069_v53  ;;  %v2897_v32 = vadd.f32 %v11969_v63, %v11968_v61  ;;  %v3148_v13 = vmax.f32 %v2882_v9, 0.0  ;;  %v11971_v37 = vld [vmem:[#allocation94_spill] sm:$0xff]  ;;  %v5072_v26 = vsel %vm4980_vm4, %v4936_v8, -inf  ;;  %v11973_v1 = vld [vmem:[#allocation213_spill] sm:$0xff]  ;;  %v11977_v9 = vld [vmem:[#allocation96_spill] sm:$0xff] }
 0x4b1   : > { %5637 = vst.msk [vmem:[%s6575_s20 + $0x68] sm:$0xff] %vm5623_vm5, %v5508_v38  ;;  %5409 = vmax.xlane.f32.xlu0 %v5068_v41  ;;  %v5272_v23 = vpop.xlane.xlu1 %5271  ;;  %v2892_v38 = vadd.f32 %v11972_v20, %v11971_v37  ;;  %v4939_v52 = vadd.f32 %v10116_v10, %v4043_v0  ;;  %v4938_v57 = vadd.f32 %v10107_v44, %v4042_v54  ;;  %v11974_v10 = vld [vmem:[#allocation99_spill] sm:$0xff]  ;;  %v5132_v0 = vld [vmem:[%s6575_s20 + $0xa8] sm:$0xff]  ;;  %v11983_v37 = vld [vmem:[#allocation98_spill] sm:$0xff] }
 0x4b2   : > { %v5270_v17 = vpop.xlane.xlu0 %5269  ;;  %v5511_v29 = vmax.f32 %v5127_v18, %v5272_v23  ;;  %v4045_v16 = vmul.f32 %v11973_v1, %v3149_v59  ;;  %v3151_v23 = vmax.f32 %v2897_v32, 0.0  ;;  %v2907_v56 = vadd.f32 %v11975_v31, %v11974_v10  ;;  %v11979_v59 = vld [vmem:[#allocation217_spill] sm:$0xff]  ;;  %v11982_v12 = vld [vmem:[#allocation211_spill] sm:$0xff]  ;;  %v11984_v20 = vld [vmem:[#allocation276_spill] sm:$0xff] }
 0x4b3   : > { %v5510_v7 = vmax.f32 %v5126_v22, %v5270_v17  ;;  %v5073_v22 = vsel %vm4980_vm4, %v4937_v62, -inf  ;;  %v4044_v4 = vmul.f32 %v11976_v43, %v3148_v13  ;;  %v3150_v50 = vmax.f32 %v2892_v38, 0.0  ;;  %v11978_v17 = vld [vmem:[#allocation270_spill] sm:$0xff]  ;;  %v11981_v32 = vld [vmem:[#allocation285_spill] sm:$0xff]  ;;  %v11987_v10 = vld [vmem:[#allocation291_spill] sm:$0xff] }
 0x4b4   : > { %5640 = vst.msk [vmem:[%s6575_s20 + $0x80] sm:$0xff] %vm5623_vm5, %v5511_v29  ;;  %5415 = vmax.xlane.f32.xlu1 %v5071_v42  ;;  %v2902_v29 = vadd.f32 %v11978_v17, %v11977_v9  ;;  %v4941_v42 = vadd.f32 %v10140_v47, %v4045_v16  ;;  %v5075_v8 = vsel %vm4980_vm4, %v4939_v52, -inf  ;;  %v5074_v45 = vsel %vm4980_vm4, %v4938_v57, -inf  ;;  %v11980_v47 = vld [vmem:[#allocation101_spill] sm:$0xff] }
 0x4b5   : > { %5639 = vst.msk [vmem:[%s6575_s20 + $0x78] sm:$0xff] %vm5623_vm5, %v5510_v7  ;;  %5413 = vmax.xlane.f32.xlu0 %v5070_v19  ;;  %v5276_v39 = vpop.xlane.xlu1 %5275  ;;  %v5133_v19 = vld [vmem:[%s6575_s20 + $0xb0] sm:$0xff]  ;;  %v4047_v61 = vmul.f32 %v11979_v59, %v3151_v23  ;;  %v3153_v63 = vmax.f32 %v2907_v56, 0.0  ;;  %v4046_v54 = vmul.f32 %v11982_v12, %v3150_v50  ;;  %v2912_v38 = vadd.f32 %v11984_v20, %v11983_v37  ;;  %v11988_v56 = vld [vmem:[#allocation215_spill] sm:$0xff]  ;;  %v11990_v50 = vld [vmem:[#allocation282_spill] sm:$0xff] }
 0x4b6   : > { %v5274_v53 = vpop.xlane.xlu0 %5273  ;;  %v5513_v18 = vmax.f32 %v5129_v6, %v5276_v39  ;;  %v2917_v39 = vadd.f32 %v11981_v32, %v11980_v47  ;;  %v3152_v13 = vmax.f32 %v2902_v29, 0.0  ;;  %v11985_v1 = vld [vmem:[#allocation221_spill] sm:$0xff]  ;;  %v11994_v47 = vld [vmem:[#allocation219_spill] sm:$0xff]  ;;  %v11996_v12 = vld [vmem:[#allocation288_spill] sm:$0xff] }
 0x4b7   : > { %v5512_v41 = vmax.f32 %v5128_v48, %v5274_v53  ;;  %v4940_v48 = vadd.f32 %v10127_v21, %v4044_v4  ;;  %v4943_v52 = vadd.f32 %v10160_v27, %v4047_v61  ;;  %v4942_v57 = vadd.f32 %v10151_v36, %v4046_v54  ;;  %v11986_v27 = vld [vmem:[#allocation103_spill] sm:$0xff]  ;;  %v11989_v4 = vld [vmem:[#allocation100_spill] sm:$0xff]  ;;  %v11993_v61 = vld [vmem:[#allocation297_spill] sm:$0xff] }
 0x4b8   : > { %5642 = vst.msk [vmem:[%s6575_s20 + $0x90] sm:$0xff] %vm5623_vm5, %v5513_v18  ;;  %5419 = vmax.xlane.f32.xlu1 %v5073_v22  ;;  %v5077_v22 = vsel %vm4980_vm4, %v4941_v42, -inf  ;;  %v4049_v16 = vmul.f32 %v11985_v1, %v3153_v63  ;;  %v3155_v23 = vmax.f32 %v2917_v39, 0.0  ;;  %v2927_v31 = vadd.f32 %v11987_v10, %v11986_v27  ;;  %v12001_v10 = vld [vmem:[#allocation104_spill] sm:$0xff] }
 0x4b9   : > { %5641 = vst.msk [vmem:[%s6575_s20 + $0x88] sm:$0xff] %vm5623_vm5, %v5512_v41  ;;  %5417 = vmax.xlane.f32.xlu0 %v5072_v26  ;;  %v5280_v44 = vpop.xlane.xlu1 %5279  ;;  %v5076_v26 = vsel %vm4980_vm4, %v4940_v48, -inf  ;;  %v3154_v43 = vmax.f32 %v2912_v38, 0.0  ;;  %v2922_v9 = vadd.f32 %v11990_v50, %v11989_v4  ;;  %v5079_v42 = vsel %vm4980_vm4, %v4943_v52, -inf  ;;  %v5136_v48 = vld [vmem:[%s6575_s20 + $0xc8] sm:$0xff] }
 0x4ba   : > { %v5278_v62 = vpop.xlane.xlu0 %5277  ;;  %v5515_v7 = vmax.f32 %v5131_v35, %v5280_v44  ;;  %v5135_v35 = vld [vmem:[%s6575_s20 + $0xc0] sm:$0xff]  ;;  %v4048_v44 = vmul.f32 %v11988_v56, %v3152_v13  ;;  %v3157_v59 = vmax.f32 %v2927_v31, 0.0  ;;  %v12002_v31 = vld [vmem:[#allocation294_spill] sm:$0xff] }
 0x4bb   : > { %v5514_v6 = vmax.f32 %v5130_v49, %v5278_v62  ;;  %v5134_v49 = vld [vmem:[%s6575_s20 + $0xb8] sm:$0xff]  ;;  %v4945_v62 = vadd.f32 %v10184_v30, %v4049_v16  ;;  %v11992_v30 = vld [vmem:[#allocation105_spill] sm:$0xff]  ;;  %v4050_v32 = vmul.f32 %v11994_v47, %v3154_v43  ;;  %v3156_v39 = vmax.f32 %v2922_v9, 0.0  ;;  %v12000_v16 = vld [vmem:[#allocation223_spill] sm:$0xff] }
 0x4bc   : > { %5644 = vst.msk [vmem:[%s6575_s20 + $0xa0] sm:$0xff] %vm5623_vm5, %v5515_v7  ;;  %5423 = vmax.xlane.f32.xlu1 %v5075_v8  ;;  %v4944_v8 = vadd.f32 %v10171_v15, %v4048_v44  ;;  %v2937_v63 = vadd.f32 %v11993_v61, %v11992_v30  ;;  %v5141_v9 = vld [vmem:[%s6575_s20 + $0xf0] sm:$0xff]  ;;  %v12008_v30 = vld [vmem:[#allocation299_spill] sm:$0xff] }
 0x4bd   : > { %5643 = vst.msk [vmem:[%s6575_s20 + $0x98] sm:$0xff] %vm5623_vm5, %v5514_v6  ;;  %5421 = vmax.xlane.f32.xlu0 %v5074_v45  ;;  %v5284_v21 = vpop.xlane.xlu1 %5283  ;;  %v5137_v6 = vld [vmem:[%s6575_s20 + $0xd0] sm:$0xff]  ;;  %v4946_v52 = vadd.f32 %v10195_v14, %v4050_v32 }
 0x4be   : > { %v5282_v53 = vpop.xlane.xlu0 %5281  ;;  %v5517_v18 = vmax.f32 %v5133_v19, %v5284_v21  ;;  %v5078_v19 = vsel %vm4980_vm4, %v4942_v57, -inf  ;;  %v11991_v45 = vld [vmem:[#allocation225_spill] sm:$0xff]  ;;  %v11995_v21 = vld [vmem:[#allocation102_spill] sm:$0xff] }
 0x4bf   : > { %v5516_v41 = vmax.f32 %v5132_v0, %v5282_v53  ;;  %v4051_v0 = vmul.f32 %v11991_v45, %v3155_v23  ;;  %v2932_v54 = vadd.f32 %v11996_v12, %v11995_v21  ;;  %v5081_v53 = vsel %vm4980_vm4, %v4945_v62, -inf  ;;  %v5140_v62 = vld [vmem:[%s6575_s20 + $0xe8] sm:$0xff]  ;;  %v5143_v21 = vld [vmem:[%s6575_s20 + $0x100] sm:$0xff] }
 0x4c0   : > { %5646 = vst.msk [vmem:[%s6575_s20 + $0xb0] sm:$0xff] %vm5623_vm5, %v5517_v18  ;;  %5427 = vmax.xlane.f32.xlu1 %v5077_v22  ;;  %v5139_v18 = vld [vmem:[%s6575_s20 + $0xe0] sm:$0xff]  ;;  %v5138_v22 = vld [vmem:[%s6575_s20 + $0xd8] sm:$0xff]  ;;  %v4052_v23 = vmul.f32 %v12000_v16, %v3156_v39 }
 0x4c1   : > { %5645 = vst.msk [vmem:[%s6575_s20 + $0xa8] sm:$0xff] %vm5623_vm5, %v5516_v41  ;;  %5425 = vmax.xlane.f32.xlu0 %v5076_v26  ;;  %v5288_v36 = vpop.xlane.xlu1 %5287  ;;  %v4947_v20 = vadd.f32 %v10204_v3, %v4051_v0  ;;  %v5080_v41 = vsel %vm4980_vm4, %v4944_v8, -inf  ;;  %v3159_v26 = vmax.f32 %v2937_v63, 0.0  ;;  %v11998_v3 = vld [vmem:[#allocation107_spill] sm:$0xff]  ;;  %v3158_v27 = vmax.f32 %v2932_v54, 0.0  ;;  %v12005_v8 = vld [vmem:[#allocation305_spill] sm:$0xff] }
 0x4c2   : > { %v5286_v17 = vpop.xlane.xlu0 %5285  ;;  %v5519_v29 = vmax.f32 %v5135_v35, %v5288_v36  ;;  %v11997_v35 = vld [vmem:[#allocation229_spill] sm:$0xff]  ;;  %v2942_v36 = vadd.f32 %v12002_v31, %v12001_v10  ;;  %v5144_v31 = vld [vmem:[%s6575_s20 + $0x108] sm:$0xff] }
 0x4c3   : > { %v5518_v7 = vmax.f32 %v5134_v49, %v5286_v17  ;;  %v4053_v57 = vmul.f32 %v11997_v35, %v3157_v59  ;;  %v11999_v49 = vld [vmem:[#allocation301_spill] sm:$0xff]  ;;  %v5083_v50 = vsel %vm4980_vm4, %v4947_v20, -inf  ;;  %v4948_v17 = vadd.f32 %v10215_v25, %v4052_v23  ;;  %v12007_v59 = vld [vmem:[#allocation106_spill] sm:$0xff]  ;;  %v12013_v35 = vld [vmem:[#allocation108_spill] sm:$0xff] }
 0x4c4   : > { %5648 = vst.msk [vmem:[%s6575_s20 + $0xc0] sm:$0xff] %vm5623_vm5, %v5519_v29  ;;  %5431 = vmax.xlane.f32.xlu1 %v5079_v42  ;;  %v2947_v1 = vadd.f32 %v11999_v49, %v11998_v3  ;;  %v5082_v29 = vsel %vm4980_vm4, %v4946_v52, -inf  ;;  %v3160_v0 = vmax.f32 %v2942_v36, 0.0  ;;  %v2952_v61 = vadd.f32 %v12008_v30, %v12007_v59  ;;  %v12012_v52 = vld [vmem:[#allocation231_spill] sm:$0xff]  ;;  %v5145_v23 = vld [vmem:[%s6575_s20 + $0x110] sm:$0xff]  ;;  %v12015_v36 = vld [vmem:[#allocation242_spill] sm:$0xff] }
 0x4c5   : > { %5647 = vst.msk [vmem:[%s6575_s20 + $0xb8] sm:$0xff] %vm5623_vm5, %v5518_v7  ;;  %5429 = vmax.xlane.f32.xlu0 %v5078_v19  ;;  %v5292_v15 = vpop.xlane.xlu1 %5291  ;;  %v4949_v43 = vadd.f32 %v10228_v46, %v4053_v57  ;;  %v12003_v7 = vld [vmem:[#allocation233_spill] sm:$0xff]  ;;  %v5084_v54 = vsel %vm4980_vm4, %v4948_v17, -inf  ;;  %v12014_v57 = vld [vmem:[#allocation303_spill] sm:$0xff] }
 0x4c6   : > { %v5290_v13 = vpop.xlane.xlu0 %5289  ;;  %v5521_v37 = vmax.f32 %v5137_v6, %v5292_v15  ;;  %v4055_v42 = vmul.f32 %v12003_v7, %v3159_v26  ;;  %v3161_v6 = vmax.f32 %v2947_v1, 0.0  ;;  %v12004_v46 = vld [vmem:[#allocation109_spill] sm:$0xff]  ;;  %v2962_v26 = vadd.f32 %v12014_v57, %v12013_v35  ;;  %v12021_v59 = vld [vmem:[#allocation247_spill] sm:$0xff] }
 0x4c7   : > { %v5520_v38 = vmax.f32 %v5136_v48, %v5290_v13  ;;  %v2957_v19 = vadd.f32 %v12005_v8, %v12004_v46  ;;  %v12006_v48 = vld [vmem:[#allocation227_spill] sm:$0xff]  ;;  %v5085_v39 = vsel %vm4980_vm4, %v4949_v43, -inf  ;;  %v5142_v13 = vld [vmem:[%s6575_s20 + $0xf8] sm:$0xff]  ;;  %v12017_v43 = vld [vmem:[#allocation313_spill] sm:$0xff] }
 0x4c8   : > { %5650 = vst.msk [vmem:[%s6575_s20 + $0xd0] sm:$0xff] %vm5623_vm5, %v5521_v37  ;;  %5435 = vmax.xlane.f32.xlu1 %v5081_v53  ;;  %v4054_v45 = vmul.f32 %v12006_v48, %v3158_v27  ;;  %v4951_v47 = vadd.f32 %v10248_v33, %v4055_v42  ;;  %v12009_v37 = vld [vmem:[#allocation237_spill] sm:$0xff]  ;;  %v12010_v33 = vld [vmem:[#allocation111_spill] sm:$0xff]  ;;  %v3164_v17 = vmax.f32 %v2962_v26, 0.0 }
 0x4c9   : > { %5649 = vst.msk [vmem:[%s6575_s20 + $0xc8] sm:$0xff] %vm5623_vm5, %v5520_v38  ;;  %5433 = vmax.xlane.f32.xlu0 %v5080_v41  ;;  %v5296_v14 = vpop.xlane.xlu1 %5295  ;;  %v4057_v20 = vmul.f32 %v12009_v37, %v3161_v6  ;;  %v3163_v38 = vmax.f32 %v2957_v19, 0.0  ;;  %v12011_v53 = vld [vmem:[#allocation309_spill] sm:$0xff]  ;;  %v4056_v41 = vmul.f32 %v12012_v52, %v3160_v0  ;;  %v5146_v0 = vld [vmem:[%s6575_s20 + $0x118] sm:$0xff]  ;;  %v5148_v52 = vld [vmem:[%s6575_s20 + $0x128] sm:$0xff] }
 0x4ca   : > { %v5294_v56 = vpop.xlane.xlu0 %5293  ;;  %v5523_v44 = vmax.f32 %v5139_v18, %v5296_v14  ;;  %v4950_v12 = vadd.f32 %v10239_v60, %v4054_v45  ;;  %v2967_v18 = vadd.f32 %v12011_v53, %v12010_v33  ;;  %v5087_v16 = vsel %vm4980_vm4, %v4951_v47, -inf  ;;  %v12024_v47 = vld [vmem:[#allocation239_spill] sm:$0xff]  ;;  %v5149_v53 = vld [vmem:[%s6575_s20 + $0x130] sm:$0xff] }
 0x4cb   : > { %v5522_v4 = vmax.f32 %v5138_v22, %v5294_v56  ;;  %v3162_v22 = vmax.f32 %v2952_v61, 0.0  ;;  %v4953_v1 = vadd.f32 %v10272_v40, %v4057_v20  ;;  %v4952_v27 = vadd.f32 %v10259_v2, %v4056_v41  ;;  %v12016_v40 = vld [vmem:[#allocation113_spill] sm:$0xff] }
 0x4cc   : > { %5652 = vst.msk [vmem:[%s6575_s20 + $0xe0] sm:$0xff] %vm5623_vm5, %v5523_v44  ;;  %5439 = vmax.xlane.f32.xlu1 %v5083_v50  ;;  %v5086_v10 = vsel %vm4980_vm4, %v4950_v12, -inf  ;;  %v4059_v56 = vmul.f32 %v12015_v36, %v3163_v38  ;;  %v3165_v44 = vmax.f32 %v2967_v18, 0.0  ;;  %v12018_v50 = vld [vmem:[#allocation235_spill] sm:$0xff]  ;;  %v12027_v41 = vld [vmem:[#allocation253_spill] sm:$0xff] }
 0x4cd   : > { %5651 = vst.msk [vmem:[%s6575_s20 + $0xd8] sm:$0xff] %vm5623_vm5, %v5522_v4  ;;  %5437 = vmax.xlane.f32.xlu0 %v5082_v29  ;;  %v5300_v25 = vpop.xlane.xlu1 %5299  ;;  %v2977_v4 = vadd.f32 %v12017_v43, %v12016_v40  ;;  %v12019_v29 = vld [vmem:[#allocation110_spill] sm:$0xff]  ;;  %v5089_v19 = vsel %vm4980_vm4, %v4953_v1, -inf  ;;  %v5088_v45 = vsel %vm4980_vm4, %v4952_v27, -inf  ;;  %v12026_v12 = vld [vmem:[#allocation311_spill] sm:$0xff]  ;;  %v12029_v57 = vld [vmem:[#allocation321_spill] sm:$0xff] }
 0x4ce   : > { %v5298_v63 = vpop.xlane.xlu0 %5297  ;;  %v5525_v15 = vmax.f32 %v5141_v9, %v5300_v25  ;;  %v4058_v9 = vmul.f32 %v12018_v50, %v3162_v22  ;;  %v4955_v46 = vadd.f32 %v10292_v5, %v4059_v56  ;;  %v5147_v25 = vld [vmem:[%s6575_s20 + $0x120] sm:$0xff]  ;;  %v4061_v30 = vmul.f32 %v12021_v59, %v3165_v44 }
 0x4cf   : > { %v5524_v32 = vmax.f32 %v5140_v62, %v5298_v63  ;;  %v12020_v62 = vld [vmem:[#allocation307_spill] sm:$0xff]  ;;  %v3167_v61 = vmax.f32 %v2977_v4, 0.0  ;;  %v12023_v63 = vld [vmem:[#allocation317_spill] sm:$0xff]  ;;  %v5150_v4 = vld [vmem:[%s6575_s20 + $0x138] sm:$0xff] }
 0x4d0   : > { %5654 = vst.msk [vmem:[%s6575_s20 + $0xf0] sm:$0xff] %vm5623_vm5, %v5525_v15  ;;  %5443 = vmax.xlane.f32.xlu1 %v5085_v39  ;;  %v2972_v7 = vadd.f32 %v12020_v62, %v12019_v29  ;;  %v4954_v48 = vadd.f32 %v10283_v58, %v4058_v9  ;;  %v12022_v5 = vld [vmem:[#allocation115_spill] sm:$0xff]  ;;  %v4957_v20 = vadd.f32 %v10316_v34, %v4061_v30  ;;  %v5091_v33 = vsel %vm4980_vm4, %v4955_v46, -inf  ;;  %v12028_v34 = vld [vmem:[#allocation117_spill] sm:$0xff]  ;;  %v12036_v62 = vld [vmem:[#allocation250_spill] sm:$0xff] }
 0x4d1   : > { %5653 = vst.msk [vmem:[%s6575_s20 + $0xe8] sm:$0xff] %vm5623_vm5, %v5524_v32  ;;  %5441 = vmax.xlane.f32.xlu0 %v5084_v54  ;;  %v5304_v60 = vpop.xlane.xlu1 %5303  ;;  %v2987_v15 = vadd.f32 %v12023_v63, %v12022_v5  ;;  %v4060_v32 = vmul.f32 %v12024_v47, %v3164_v17  ;;  %v4063_v22 = vmul.f32 %v12027_v41, %v3167_v61  ;;  %v5151_v44 = vld [vmem:[%s6575_s20 + $0x140] sm:$0xff]  ;;  %v12035_v17 = vld [vmem:[#allocation325_spill] sm:$0xff] }
 0x4d2   : > { %v5302_v3 = vpop.xlane.xlu0 %5301  ;;  %v5527_v49 = vmax.f32 %v5143_v21, %v5304_v60  ;;  %v3166_v39 = vmax.f32 %v2972_v7, 0.0  ;;  %v12025_v21 = vld [vmem:[#allocation112_spill] sm:$0xff]  ;;  %v5090_v60 = vsel %vm4980_vm4, %v4954_v48, -inf  ;;  %v2997_v26 = vadd.f32 %v12029_v57, %v12028_v34  ;;  %v12038_v46 = vld [vmem:[#allocation319_spill] sm:$0xff]  ;;  %v5153_v30 = vld [vmem:[%s6575_s20 + $0x150] sm:$0xff] }
 0x4d3   : > { %v5526_v14 = vmax.f32 %v5142_v13, %v5302_v3  ;;  %v2982_v54 = vadd.f32 %v12026_v12, %v12025_v21  ;;  %v4956_v18 = vadd.f32 %v10303_v28, %v4060_v32  ;;  %v3169_v35 = vmax.f32 %v2987_v15, 0.0  ;;  %v12030_v3 = vld [vmem:[#allocation244_spill] sm:$0xff]  ;;  %v12039_v48 = vld [vmem:[#allocation3_spill] sm:$0xff]  ;;  %v12040_v61 = vld [vmem:[#allocation5_spill] sm:$0xff] }
 0x4d4   : > { %5656 = vst.msk [vmem:[%s6575_s20 + $0x100] sm:$0xff] %vm5623_vm5, %v5527_v49  ;;  %5447 = vmax.xlane.f32.xlu1 %v5087_v16  ;;  %v4062_v49 = vmul.f32 %v12030_v3, %v3166_v39  ;;  %v12032_v16 = vld [vmem:[#allocation315_spill] sm:$0xff]  ;;  %v5093_v56 = vsel %vm4980_vm4, %v4957_v20, -inf  ;;  %v3171_v9 = vmax.f32 %v2997_v26, 0.0  ;;  %v5152_v15 = vld [vmem:[%s6575_s20 + $0x148] sm:$0xff]  ;;  %v12042_v39 = vld [vmem:[#allocation121_spill] sm:$0xff] }
 0x4d5   : > { %5655 = vst.msk [vmem:[%s6575_s20 + $0xf8] sm:$0xff] %vm5623_vm5, %v5526_v14  ;;  %5445 = vmax.xlane.f32.xlu0 %v5086_v10  ;;  %v5308_v2 = vpop.xlane.xlu1 %5307  ;;  %v3168_v1 = vmax.f32 %v2982_v54, 0.0  ;;  %v12031_v14 = vld [vmem:[#allocation114_spill] sm:$0xff]  ;;  %v5092_v43 = vsel %vm4980_vm4, %v4956_v18, -inf  ;;  %v5155_v34 = vld [vmem:[%s6575_s20 + $0x160] sm:$0xff] }
 0x4d6   : > { %v5306_v42 = vpop.xlane.xlu0 %5305  ;;  %v5529_v6 = vmax.f32 %v5145_v23, %v5308_v2  ;;  %v2992_v23 = vadd.f32 %v12032_v16, %v12031_v14  ;;  %v4958_v40 = vadd.f32 %v10327_v55, %v4062_v49  ;;  %v12033_v2 = vld [vmem:[#allocation259_spill] sm:$0xff]  ;;  %v12043_v21 = vld [vmem:[#allocation330_spill] sm:$0xff] }
 0x4d7   : > { %v5528_v8 = vmax.f32 %v5144_v31, %v5306_v42  ;;  %v4959_v31 = vadd.f32 %v10336_v51, %v4063_v22  ;;  %v4065_v50 = vmul.f32 %v12033_v2, %v3169_v35  ;;  %v12034_v51 = vld [vmem:[#allocation119_spill] sm:$0xff]  ;;  %v4064_v7 = vmul.f32 %v12036_v62, %v3168_v1  ;;  %v5154_v3 = vld [vmem:[%s6575_s20 + $0x158] sm:$0xff] }
 0x4d8   : > { %5658 = vst.msk [vmem:[%s6575_s20 + $0x110] sm:$0xff] %vm5623_vm5, %v5529_v6  ;;  %5451 = vmax.xlane.f32.xlu1 %v5089_v19  ;;  %v3007_v29 = vadd.f32 %v12035_v17, %v12034_v51  ;;  %v3170_v42 = vmax.f32 %v2992_v23, 0.0  ;;  %v12037_v6 = vld [vmem:[#allocation116_spill] sm:$0xff]  ;;  %v5094_v63 = vsel %vm4980_vm4, %v4958_v40, -inf  ;;  %v3017_v12 = vadd.f32 %v12043_v21, %v12042_v39  ;;  %v12048_v57 = vld [vmem:[#allocation7_spill] sm:$0xff] }
 0x4d9   : > { %5657 = vst.msk [vmem:[%s6575_s20 + $0x108] sm:$0xff] %vm5623_vm5, %v5528_v8  ;;  %5449 = vmax.xlane.f32.xlu0 %v5088_v45  ;;  %v5312_v58 = vpop.xlane.xlu1 %5311  ;;  %v3002_v8 = vadd.f32 %v12038_v46, %v12037_v6  ;;  %v4961_v45 = vadd.f32 %v12039_v48, %v4065_v50  ;;  %v5095_v59 = vsel %vm4980_vm4, %v4959_v31, -inf  ;;  %v4960_v5 = vadd.f32 %v12040_v61, %v4064_v7  ;;  %v12049_v49 = vld [vmem:[#allocation271_spill] sm:$0xff]  ;;  %v12051_v23 = vld [vmem:[#allocation336_spill] sm:$0xff]  ;;  %v12052_v31 = vld [vmem:[#allocation262_spill] sm:$0xff] }
 0x4da   : > { %v5310_v13 = vpop.xlane.xlu0 %5309  ;;  %v5531_v37 = vmax.f32 %v5147_v25, %v5312_v58  ;;  %v12041_v58 = vld [vmem:[#allocation265_spill] sm:$0xff]  ;;  %v3173_v32 = vmax.f32 %v3007_v29, 0.0  ;;  %v3175_v14 = vmax.f32 %v3017_v12, 0.0  ;;  %v12050_v16 = vld [vmem:[#allocation123_spill] sm:$0xff]  ;;  %v12054_v40 = vld [vmem:[#allocation328_spill] sm:$0xff] }
 0x4db   : > { %v5530_v38 = vmax.f32 %v5146_v0, %v5310_v13  ;;  %v4067_v47 = vmul.f32 %v12041_v58, %v3171_v9  ;;  %v12044_v13 = vld [vmem:[#allocation256_spill] sm:$0xff]  ;;  %v3172_v20 = vmax.f32 %v3002_v8, 0.0  ;;  %v5097_v35 = vsel %vm4980_vm4, %v4961_v45, -inf  ;;  %v12055_v50 = vld [vmem:[#allocation6_spill] sm:$0xff]  ;;  %v5157_v29 = vld [vmem:[%s6575_s20 + $0x170] sm:$0xff] }
 0x4dc   : > { %5660 = vst.msk [vmem:[%s6575_s20 + $0x120] sm:$0xff] %vm5623_vm5, %v5531_v37  ;;  %5455 = vmax.xlane.f32.xlu1 %v5091_v33  ;;  %v4066_v37 = vmul.f32 %v12044_v13, %v3170_v42  ;;  %v12046_v33 = vld [vmem:[#allocation323_spill] sm:$0xff]  ;;  %v4069_v1 = vmul.f32 %v12049_v49, %v3173_v32  ;;  %v5156_v42 = vld [vmem:[%s6575_s20 + $0x168] sm:$0xff]  ;;  %v12057_v6 = vld [vmem:[#allocation277_spill] sm:$0xff] }
 0x4dd   : > { %5659 = vst.msk [vmem:[%s6575_s20 + $0x118] sm:$0xff] %vm5623_vm5, %v5530_v38  ;;  %5453 = vmax.xlane.f32.xlu0 %v5090_v60  ;;  %v5316_v28 = vpop.xlane.xlu1 %5315  ;;  %v12045_v38 = vld [vmem:[#allocation118_spill] sm:$0xff]  ;;  %v4071_v46 = vmul.f32 %v12057_v6, %v3175_v14  ;;  %v5159_v12 = vld [vmem:[%s6575_s20 + $0x180] sm:$0xff] }
 0x4de   : > { %v5314_v27 = vpop.xlane.xlu0 %5313  ;;  %v5533_v10 = vmax.f32 %v5149_v53, %v5316_v28  ;;  %v3012_v53 = vadd.f32 %v12046_v33, %v12045_v38  ;;  %v4962_v26 = vadd.f32 %v12048_v57, %v4066_v37  ;;  %v5096_v28 = vsel %vm4980_vm4, %v4960_v5, -inf  ;;  %v12061_v61 = vld [vmem:[#allocation122_spill] sm:$0xff]  ;;  %v12062_v5 = vld [vmem:[#allocation333_spill] sm:$0xff]  ;;  %v12065_v38 = vld [vmem:[#allocation283_spill] sm:$0xff] }
 0x4df   : > { %v5532_v36 = vmax.f32 %v5148_v52, %v5314_v27  ;;  %v12047_v52 = vld [vmem:[#allocation4_spill] sm:$0xff]  ;;  %v3027_v27 = vadd.f32 %v12051_v23, %v12050_v16  ;;  %v4965_v9 = vadd.f32 %v12055_v50, %v4069_v1  ;;  %v5161_v23 = vld [vmem:[%s6575_s20 + $0x190] sm:$0xff]  ;;  %v12074_v50 = vld [vmem:[#allocation126_spill] sm:$0xff] }
 0x4e0   : > { %5662 = vst.msk [vmem:[%s6575_s20 + $0x130] sm:$0xff] %vm5623_vm5, %v5533_v10  ;;  %5459 = vmax.xlane.f32.xlu1 %v5093_v56  ;;  %v4963_v41 = vadd.f32 %v12047_v52, %v4067_v47  ;;  %v3174_v56 = vmax.f32 %v3012_v53, 0.0  ;;  %v5098_v7 = vsel %vm4980_vm4, %v4962_v26, -inf  ;;  %v12063_v47 = vld [vmem:[#allocation8_spill] sm:$0xff]  ;;  %v12070_v26 = vld [vmem:[#allocation339_spill] sm:$0xff] }
 0x4e1   : > { %5661 = vst.msk [vmem:[%s6575_s20 + $0x128] sm:$0xff] %vm5623_vm5, %v5532_v36  ;;  %5457 = vmax.xlane.f32.xlu0 %v5092_v43  ;;  %v5320_v55 = vpop.xlane.xlu1 %5319  ;;  %v4068_v36 = vmul.f32 %v12052_v31, %v3172_v20  ;;  %v3177_v8 = vmax.f32 %v3027_v27, 0.0  ;;  %v4967_v32 = vadd.f32 %v12063_v47, %v4071_v46  ;;  %v5101_v21 = vsel %vm4980_vm4, %v4965_v9, -inf  ;;  %v5158_v20 = vld [vmem:[%s6575_s20 + $0x178] sm:$0xff]  ;;  %v12069_v57 = vld [vmem:[#allocation124_spill] sm:$0xff]  ;;  %v12071_v27 = vld [vmem:[#allocation13_spill] sm:$0xff] }
 0x4e2   : > { %v5318_v19 = vpop.xlane.xlu0 %5317  ;;  %v5535_v25 = vmax.f32 %v5151_v44, %v5320_v55  ;;  %v12053_v44 = vld [vmem:[#allocation120_spill] sm:$0xff]  ;;  %v5099_v17 = vsel %vm4980_vm4, %v4963_v41, -inf  ;;  %v12056_v55 = vld [vmem:[#allocation9_spill] sm:$0xff]  ;;  %v5163_v6 = vld [vmem:[%s6575_s20 + $0x1a0] sm:$0xff] }
 0x4e3   : > { %v5534_v0 = vmax.f32 %v5150_v4, %v5318_v19  ;;  %v3022_v43 = vadd.f32 %v12054_v40, %v12053_v44  ;;  %v4964_v62 = vadd.f32 %v12056_v55, %v4068_v36  ;;  %v12058_v19 = vld [vmem:[#allocation125_spill] sm:$0xff]  ;;  %v4073_v33 = vmul.f32 %v12065_v38, %v3177_v8  ;;  %v5160_v36 = vld [vmem:[%s6575_s20 + $0x188] sm:$0xff]  ;;  %v12076_v55 = vld [vmem:[#allocation15_spill] sm:$0xff] }
 0x4e4   : > { %5664 = vst.msk [vmem:[%s6575_s20 + $0x140] sm:$0xff] %vm5623_vm5, %v5535_v25  ;;  %5463 = vmax.xlane.f32.xlu1 %v5095_v59  ;;  %v12059_v25 = vld [vmem:[#allocation342_spill] sm:$0xff]  ;;  %v5103_v16 = vsel %vm4980_vm4, %v4967_v32, -inf  ;;  %v12075_v9 = vld [vmem:[#allocation345_spill] sm:$0xff] }
 0x4e5   : > { %5663 = vst.msk [vmem:[%s6575_s20 + $0x138] sm:$0xff] %vm5623_vm5, %v5534_v0  ;;  %5461 = vmax.xlane.f32.xlu0 %v5094_v63  ;;  %v5324_v54 = vpop.xlane.xlu1 %5323  ;;  %v3037_v48 = vadd.f32 %v12059_v25, %v12058_v19  ;;  %v12060_v0 = vld [vmem:[#allocation268_spill] sm:$0xff]  ;;  %v3032_v63 = vadd.f32 %v12062_v5, %v12061_v61  ;;  %v5100_v37 = vsel %vm4980_vm4, %v4964_v62, -inf  ;;  %v4969_v1 = vadd.f32 %v10448_v11, %v4073_v33  ;;  %v12077_v46 = vld [vmem:[#allocation10_spill] sm:$0xff] }
 0x4e6   : > { %v5322_v18 = vpop.xlane.xlu0 %5321  ;;  %v5537_v60 = vmax.f32 %v5153_v30, %v5324_v54  ;;  %v4070_v59 = vmul.f32 %v12060_v0, %v3174_v56  ;;  %v3176_v30 = vmax.f32 %v3022_v43, 0.0  ;;  %v12064_v54 = vld [vmem:[#allocation11_spill] sm:$0xff]  ;;  %v12072_v56 = vld [vmem:[#allocation289_spill] sm:$0xff]  ;;  %v12073_v43 = vld [vmem:[#allocation280_spill] sm:$0xff] }
 0x4e7   : > { %v5536_v22 = vmax.f32 %v5152_v15, %v5322_v18  ;;  %v3179_v53 = vmax.f32 %v3037_v48, 0.0  ;;  %v12066_v18 = vld [vmem:[#allocation127_spill] sm:$0xff]  ;;  %v5162_v25 = vld [vmem:[%s6575_s20 + $0x198] sm:$0xff] }
 0x4e8   : > { %5666 = vst.msk [vmem:[%s6575_s20 + $0x150] sm:$0xff] %vm5623_vm5, %v5537_v60  ;;  %5467 = vmax.xlane.f32.xlu1 %v5097_v35  ;;  %v4966_v13 = vadd.f32 %v12064_v54, %v4070_v59  ;;  %v12067_v60 = vld [vmem:[#allocation348_spill] sm:$0xff]  ;;  %v12078_v48 = vld [vmem:[#allocation295_spill] sm:$0xff]  ;;  %v12079_v59 = vld [vmem:[#allocation286_spill] sm:$0xff] }
 0x4e9   : > { %5665 = vst.msk [vmem:[%s6575_s20 + $0x148] sm:$0xff] %vm5623_vm5, %v5536_v22  ;;  %5465 = vmax.xlane.f32.xlu0 %v5096_v28  ;;  %v5328_v10 = vpop.xlane.xlu1 %5327  ;;  %v3047_v52 = vadd.f32 %v12067_v60, %v12066_v18  ;;  %v12068_v22 = vld [vmem:[#allocation274_spill] sm:$0xff]  ;;  %v3042_v28 = vadd.f32 %v12070_v26, %v12069_v57  ;;  %v4075_v44 = vmul.f32 %v12072_v56, %v3179_v53 }
 0x4ea   : > { %v5326_v4 = vpop.xlane.xlu0 %5325  ;;  %v5539_v2 = vmax.f32 %v5155_v34, %v5328_v10  ;;  %v4072_v35 = vmul.f32 %v12068_v22, %v3176_v30  ;;  %v3178_v34 = vmax.f32 %v3032_v63, 0.0  ;;  %v5102_v31 = vsel %vm4980_vm4, %v4966_v13, -inf  ;;  %v5164_v13 = vld [vmem:[%s6575_s20 + $0x1a8] sm:$0xff] }
 0x4eb   : > { %v5538_v51 = vmax.f32 %v5154_v3, %v5326_v4  ;;  %v3181_v40 = vmax.f32 %v3047_v52, 0.0  ;;  %v4971_v62 = vadd.f32 %v12076_v55, %v4075_v44  ;;  %v5167_v52 = vld [vmem:[%s6575_s20 + $0x1c0] sm:$0xff] }
 0x4ec   : > { %5668 = vst.msk [vmem:[%s6575_s20 + $0x160] sm:$0xff] %vm5623_vm5, %v5539_v2  ;;  %5471 = vmax.xlane.f32.xlu1 %v5099_v17  ;;  %v4968_v10 = vadd.f32 %v12071_v27, %v4072_v35  ;;  %v4074_v4 = vmul.f32 %v12073_v43, %v3178_v34  ;;  %v3180_v2 = vmax.f32 %v3042_v28, 0.0  ;;  %v5166_v34 = vld [vmem:[%s6575_s20 + $0x1b8] sm:$0xff]  ;;  %v5172_v43 = vld [vmem:[%s6575_s20 + $0x1e8] sm:$0xff] }
 0x4ed   : > { %5667 = vst.msk [vmem:[%s6575_s20 + $0x158] sm:$0xff] %vm5623_vm5, %v5538_v51  ;;  %5469 = vmax.xlane.f32.xlu0 %v5098_v7  ;;  %v5332_v45 = vpop.xlane.xlu1 %5331  ;;  %v3052_v51 = vadd.f32 %v12075_v9, %v12074_v50  ;;  %v5107_v32 = vsel %vm4980_vm4, %v4971_v62, -inf }
 0x4ee   : > { %v5330_v15 = vpop.xlane.xlu0 %5329  ;;  %v5541_v58 = vmax.f32 %v5157_v29, %v5332_v45  ;;  %v4970_v8 = vadd.f32 %v12077_v46, %v4074_v4  ;;  %v5104_v19 = vsel %vm4980_vm4, %v4968_v10, -inf  ;;  %v4077_v45 = vmul.f32 %v12078_v48, %v3181_v40  ;;  %v5179_v48 = vld [vmem:[%s6575_s20 + $0x220] sm:$0xff] }
 0x4ef   : > { %v5540_v39 = vmax.f32 %v5156_v42, %v5330_v15  ;;  %v5105_v42 = vsel %vm4980_vm4, %v4969_v1, -inf  ;;  %v4076_v30 = vmul.f32 %v12079_v59, %v3180_v2  ;;  %v3182_v61 = vmax.f32 %v3052_v51, 0.0  ;;  %v12080_v15 = vld [vmem:[#allocation17_spill] sm:$0xff]  ;;  %v5175_v51 = vld [vmem:[%s6575_s20 + $0x200] sm:$0xff] }
 0x4f0   : > { %5670 = vst.msk [vmem:[%s6575_s20 + $0x170] sm:$0xff] %vm5623_vm5, %v5541_v58  ;;  %5475 = vmax.xlane.f32.xlu1 %v5101_v21  ;;  %v4973_v58 = vadd.f32 %v12080_v15, %v4077_v45  ;;  %v12081_v21 = vld [vmem:[#allocation12_spill] sm:$0xff]  ;;  %v5106_v54 = vsel %vm4980_vm4, %v4970_v8, -inf  ;;  %v5178_v45 = vld [vmem:[%s6575_s20 + $0x218] sm:$0xff] }
 0x4f1   : > { %5669 = vst.msk [vmem:[%s6575_s20 + $0x168] sm:$0xff] %vm5623_vm5, %v5540_v39  ;;  %5473 = vmax.xlane.f32.xlu0 %v5100_v37  ;;  %v5336_v41 = vpop.xlane.xlu1 %5335  ;;  %v5165_v39 = vld [vmem:[%s6575_s20 + $0x1b0] sm:$0xff] }
 0x4f2   : > { %v5334_v3 = vpop.xlane.xlu0 %5333  ;;  %v5543_v49 = vmax.f32 %v5159_v12, %v5336_v41  ;;  %v4972_v12 = vadd.f32 %v12081_v21, %v4076_v30  ;;  %v5109_v60 = vsel %vm4980_vm4, %v4973_v58, -inf  ;;  %v12083_v41 = vld [vmem:[#allocation14_spill] sm:$0xff] }
 0x4f3   : > { %v5542_v14 = vmax.f32 %v5158_v20, %v5334_v3  ;;  %v12082_v20 = vld [vmem:[#allocation292_spill] sm:$0xff]  ;;  %v5182_v21 = vld [vmem:[%s6575_s20 + $0x238] sm:$0xff] }
 0x4f4   : > { %5672 = vst.msk [vmem:[%s6575_s20 + $0x180] sm:$0xff] %vm5623_vm5, %v5543_v49  ;;  %5479 = vmax.xlane.f32.xlu1 %v5103_v16  ;;  %v4078_v38 = vmul.f32 %v12082_v20, %v3182_v61  ;;  %v5108_v35 = vsel %vm4980_vm4, %v4972_v12, -inf  ;;  %v5169_v49 = vld [vmem:[%s6575_s20 + $0x1d0] sm:$0xff] }
 0x4f5   : > { %5671 = vst.msk [vmem:[%s6575_s20 + $0x178] sm:$0xff] %vm5623_vm5, %v5542_v14  ;;  %5477 = vmax.xlane.f32.xlu0 %v5102_v31  ;;  %v5340_v11 = vpop.xlane.xlu1 %5339  ;;  %v5168_v14 = vld [vmem:[%s6575_s20 + $0x1c8] sm:$0xff]  ;;  %v5171_v31 = vld [vmem:[%s6575_s20 + $0x1e0] sm:$0xff]  ;;  %v5185_v20 = vld [vmem:[%s6575_s20 + $0x250] sm:$0xff] }
 0x4f6   : > { %v5338_v17 = vpop.xlane.xlu0 %5337  ;;  %v5545_v29 = vmax.f32 %v5161_v23, %v5340_v11  ;;  %v4974_v22 = vadd.f32 %v12083_v41, %v4078_v38  ;;  %v5173_v11 = vld [vmem:[%s6575_s20 + $0x1f0] sm:$0xff]  ;;  %v5184_v38 = vld [vmem:[%s6575_s20 + $0x248] sm:$0xff]  ;;  %v5186_v41 = vld [vmem:[%s6575_s20 + $0x258] sm:$0xff] }
 0x4f7   : > { %v5544_v7 = vmax.f32 %v5160_v36, %v5338_v17  ;;  %v5170_v36 = vld [vmem:[%s6575_s20 + $0x1d8] sm:$0xff] }
 0x4f8   : > { %5674 = vst.msk [vmem:[%s6575_s20 + $0x190] sm:$0xff] %vm5623_vm5, %v5545_v29  ;;  %5483 = vmax.xlane.f32.xlu1 %v5105_v42  ;;  %v5110_v1 = vsel %vm4980_vm4, %v4974_v22, -inf  ;;  %v5174_v17 = vld [vmem:[%s6575_s20 + $0x1f8] sm:$0xff]  ;;  %v5177_v42 = vld [vmem:[%s6575_s20 + $0x210] sm:$0xff] }
 0x4f9   : > { %5673 = vst.msk [vmem:[%s6575_s20 + $0x188] sm:$0xff] %vm5623_vm5, %v5544_v7  ;;  %5481 = vmax.xlane.f32.xlu0 %v5104_v19  ;;  %v5344_v0 = vpop.xlane.xlu1 %5343 }
 0x4fa   : > { %v5342_v5 = vpop.xlane.xlu0 %5341  ;;  %v5547_v63 = vmax.f32 %v5163_v6, %v5344_v0  ;;  %v5176_v6 = vld [vmem:[%s6575_s20 + $0x208] sm:$0xff] }
 0x4fb   : > { %v5546_v47 = vmax.f32 %v5162_v25, %v5342_v5  ;;  %v5181_v5 = vld [vmem:[%s6575_s20 + $0x230] sm:$0xff] }
 0x4fc   : > { %5676 = vst.msk [vmem:[%s6575_s20 + $0x1a0] sm:$0xff] %vm5623_vm5, %v5547_v63  ;;  %5487 = vmax.xlane.f32.xlu1 %v5107_v32  ;;  %v5180_v63 = vld [vmem:[%s6575_s20 + $0x228] sm:$0xff] }
 0x4fd   : > { %5675 = vst.msk [vmem:[%s6575_s20 + $0x198] sm:$0xff] %vm5623_vm5, %v5546_v47  ;;  %5485 = vmax.xlane.f32.xlu0 %v5106_v54  ;;  %v5348_v37 = vpop.xlane.xlu1 %5347 }
 0x4fe   : > { %v5346_v33 = vpop.xlane.xlu0 %5345  ;;  %v5549_v53 = vmax.f32 %v5165_v39, %v5348_v37  ;;  %v5183_v39 = vld [vmem:[%s6575_s20 + $0x240] sm:$0xff] }
 0x4ff   : > { %v5548_v18 = vmax.f32 %v5164_v13, %v5346_v33 }
 0x500   : > { %5678 = vst.msk [vmem:[%s6575_s20 + $0x1b0] sm:$0xff] %vm5623_vm5, %v5549_v53  ;;  %5491 = vmax.xlane.f32.xlu1 %v5109_v60 }
 0x501   : > { %5677 = vst.msk [vmem:[%s6575_s20 + $0x1a8] sm:$0xff] %vm5623_vm5, %v5548_v18  ;;  %5489 = vmax.xlane.f32.xlu0 %v5108_v35  ;;  %v5352_v57 = vpop.xlane.xlu1 %5351 }
 0x502   : > { %v5350_v26 = vpop.xlane.xlu0 %5349  ;;  %v5551_v28 = vmax.f32 %v5167_v52, %v5352_v57  ;;  %v5187_v52 = vld [vmem:[%s6575_s20 + $0x260] sm:$0xff] }
 0x503   : > { %v5550_v3 = vmax.f32 %v5166_v34, %v5350_v26  ;;  %v5189_v26 = vld [vmem:[%s6575_s20 + $0x270] sm:$0xff] }
 0x504   : > { %5680 = vst.msk [vmem:[%s6575_s20 + $0x1c0] sm:$0xff] %vm5623_vm5, %v5551_v28  ;;  %v5188_v28 = vld [vmem:[%s6575_s20 + $0x268] sm:$0xff] }
 0x505   : > { %5679 = vst.msk [vmem:[%s6575_s20 + $0x1b8] sm:$0xff] %vm5623_vm5, %v5550_v3  ;;  %5493 = vmax.xlane.f32.xlu0 %v5110_v1  ;;  %v5356_v16 = vpop.xlane.xlu1 %5355 }
 0x506   : > { %v5354_v23 = vpop.xlane.xlu0 %5353  ;;  %v5553_v27 = vmax.f32 %v5169_v49, %v5356_v16  ;;  %v5191_v16 = vld [vmem:[%s6575_s20 + $0x280] sm:$0xff] }
 0x507   : > { %v5552_v10 = vmax.f32 %v5168_v14, %v5354_v23  ;;  %v5190_v23 = vld [vmem:[%s6575_s20 + $0x278] sm:$0xff] }
 0x508   : > { %5682 = vst.msk [vmem:[%s6575_s20 + $0x1d0] sm:$0xff] %vm5623_vm5, %v5553_v27 }
 0x509   : > { %5681 = vst.msk [vmem:[%s6575_s20 + $0x1c8] sm:$0xff] %vm5623_vm5, %v5552_v10  ;;  %v5360_v24 = vpop.xlane.xlu1 %5359 }
 0x50a   : > { %v5358_v56 = vpop.xlane.xlu0 %5357  ;;  %v5555_v44 = vmax.f32 %v5171_v31, %v5360_v24  ;;  %v5193_v24 = vld [vmem:[%s6575_s20 + $0x290] sm:$0xff] }
 0x50b   : > { %v5554_v40 = vmax.f32 %v5170_v36, %v5358_v56  ;;  %v5192_v56 = vld [vmem:[%s6575_s20 + $0x288] sm:$0xff] }
 0x50c   : > { %5684 = vst.msk [vmem:[%s6575_s20 + $0x1e0] sm:$0xff] %vm5623_vm5, %v5555_v44 }
 0x50d   : > { %5683 = vst.msk [vmem:[%s6575_s20 + $0x1d8] sm:$0xff] %vm5623_vm5, %v5554_v40  ;;  %v5364_v4 = vpop.xlane.xlu1 %5363 }
 0x50e   : > { %v5362_v2 = vpop.xlane.xlu0 %5361  ;;  %v5557_v50 = vmax.f32 %v5173_v11, %v5364_v4  ;;  %v5195_v4 = vld [vmem:[%s6575_s20 + $0x2a0] sm:$0xff] }
 0x50f   : > { %v5556_v9 = vmax.f32 %v5172_v43, %v5362_v2  ;;  %v5194_v2 = vld [vmem:[%s6575_s20 + $0x298] sm:$0xff] }
 0x510   : > { %5686 = vst.msk [vmem:[%s6575_s20 + $0x1f0] sm:$0xff] %vm5623_vm5, %v5557_v50 }
 0x511   : > { %5685 = vst.msk [vmem:[%s6575_s20 + $0x1e8] sm:$0xff] %vm5623_vm5, %v5556_v9  ;;  %v5368_v29 = vpop.xlane.xlu1 %5367 }
 0x512   : > { %v5366_v55 = vpop.xlane.xlu0 %5365  ;;  %v5559_v62 = vmax.f32 %v5175_v51, %v5368_v29  ;;  %v5197_v29 = vld [vmem:[%s6575_s20 + $0x2b0] sm:$0xff] }
 0x513   : > { %v5558_v7 = vmax.f32 %v5174_v17, %v5366_v55  ;;  %v5196_v55 = vld [vmem:[%s6575_s20 + $0x2a8] sm:$0xff] }
 0x514   : > { %5688 = vst.msk [vmem:[%s6575_s20 + $0x200] sm:$0xff] %vm5623_vm5, %v5559_v62 }
 0x515   : > { %5687 = vst.msk [vmem:[%s6575_s20 + $0x1f8] sm:$0xff] %vm5623_vm5, %v5558_v7  ;;  %v5372_v46 = vpop.xlane.xlu1 %5371 }
 0x516   : > { %v5370_v8 = vpop.xlane.xlu0 %5369  ;;  %v5561_v19 = vmax.f32 %v5177_v42, %v5372_v46  ;;  %v5199_v46 = vld [vmem:[%s6575_s20 + $0x2c0] sm:$0xff] }
 0x517   : > { %v5560_v25 = vmax.f32 %v5176_v6, %v5370_v8  ;;  %v5198_v8 = vld [vmem:[%s6575_s20 + $0x2b8] sm:$0xff] }
 0x518   : > { %5690 = vst.msk [vmem:[%s6575_s20 + $0x210] sm:$0xff] %vm5623_vm5, %v5561_v19 }
 0x519   : > { %5689 = vst.msk [vmem:[%s6575_s20 + $0x208] sm:$0xff] %vm5623_vm5, %v5560_v25  ;;  %v5376_v0 = vpop.xlane.xlu1 %5375 }
 0x51a   : > { %v5374_v59 = vpop.xlane.xlu0 %5373  ;;  %v5563_v30 = vmax.f32 %v5179_v48, %v5376_v0  ;;  %v5201_v0 = vld [vmem:[%s6575_s20 + $0x2d0] sm:$0xff] }
 0x51b   : > { %v5562_v61 = vmax.f32 %v5178_v45, %v5374_v59  ;;  %v5200_v59 = vld [vmem:[%s6575_s20 + $0x2c8] sm:$0xff] }
 0x51c   : > { %5692 = vst.msk [vmem:[%s6575_s20 + $0x220] sm:$0xff] %vm5623_vm5, %v5563_v30 }
 0x51d   : > { %5691 = vst.msk [vmem:[%s6575_s20 + $0x218] sm:$0xff] %vm5623_vm5, %v5562_v61  ;;  %v5380_v15 = vpop.xlane.xlu1 %5379 }
 0x51e   : > { %v5378_v58 = vpop.xlane.xlu0 %5377  ;;  %v5565_v47 = vmax.f32 %v5181_v5, %v5380_v15  ;;  %v5203_v15 = vld [vmem:[%s6575_s20 + $0x2e0] sm:$0xff] }
 0x51f   : > { %v5564_v32 = vmax.f32 %v5180_v63, %v5378_v58  ;;  %v5202_v58 = vld [vmem:[%s6575_s20 + $0x2d8] sm:$0xff] }
 0x520   : > { %5694 = vst.msk [vmem:[%s6575_s20 + $0x230] sm:$0xff] %vm5623_vm5, %v5565_v47 }
 0x521   : > { %5693 = vst.msk [vmem:[%s6575_s20 + $0x228] sm:$0xff] %vm5623_vm5, %v5564_v32  ;;  %v5384_v12 = vpop.xlane.xlu1 %5383 }
 0x522   : > { %v5382_v54 = vpop.xlane.xlu0 %5381  ;;  %v5567_v13 = vmax.f32 %v5183_v39, %v5384_v12  ;;  %v5205_v12 = vld [vmem:[%s6575_s20 + $0x2f0] sm:$0xff] }
 0x523   : > { %v5566_v37 = vmax.f32 %v5182_v21, %v5382_v54  ;;  %v5204_v54 = vld [vmem:[%s6575_s20 + $0x2e8] sm:$0xff] }
 0x524   : > { %5696 = vst.msk [vmem:[%s6575_s20 + $0x240] sm:$0xff] %vm5623_vm5, %v5567_v13 }
 0x525   : > { %5695 = vst.msk [vmem:[%s6575_s20 + $0x238] sm:$0xff] %vm5623_vm5, %v5566_v37  ;;  %v5388_v33 = vpop.xlane.xlu1 %5387 }
 0x526   : > { %v5386_v53 = vpop.xlane.xlu0 %5385  ;;  %v5569_v18 = vmax.f32 %v5185_v20, %v5388_v33  ;;  %v5207_v33 = vld [vmem:[%s6575_s20 + $0x300] sm:$0xff] }
 0x527   : > { %v5568_v60 = vmax.f32 %v5184_v38, %v5386_v53  ;;  %v5206_v53 = vld [vmem:[%s6575_s20 + $0x2f8] sm:$0xff] }
 0x528   : > { %5698 = vst.msk [vmem:[%s6575_s20 + $0x250] sm:$0xff] %vm5623_vm5, %v5569_v18 }
 0x529   : > { %5697 = vst.msk [vmem:[%s6575_s20 + $0x248] sm:$0xff] %vm5623_vm5, %v5568_v60  ;;  %v5392_v22 = vpop.xlane.xlu1 %5391 }
 0x52a   : > { %v5390_v35 = vpop.xlane.xlu0 %5389  ;;  %v5571_v34 = vmax.f32 %v5187_v52, %v5392_v22  ;;  %v5209_v22 = vld [vmem:[%s6575_s20 + $0x310] sm:$0xff] }
 0x52b   : > { %v5570_v57 = vmax.f32 %v5186_v41, %v5390_v35  ;;  %v5208_v35 = vld [vmem:[%s6575_s20 + $0x308] sm:$0xff] }
 0x52c   : > { %5700 = vst.msk [vmem:[%s6575_s20 + $0x260] sm:$0xff] %vm5623_vm5, %v5571_v34 }
 0x52d   : > { %5699 = vst.msk [vmem:[%s6575_s20 + $0x258] sm:$0xff] %vm5623_vm5, %v5570_v57  ;;  %v5396_v3 = vpop.xlane.xlu1 %5395 }
 0x52e   : > { %v5394_v49 = vpop.xlane.xlu0 %5393  ;;  %v5573_v1 = vmax.f32 %v5189_v26, %v5396_v3  ;;  %v5211_v3 = vld [vmem:[%s6575_s20 + $0x320] sm:$0xff] }
 0x52f   : > { %v5572_v14 = vmax.f32 %v5188_v28, %v5394_v49  ;;  %v5210_v49 = vld [vmem:[%s6575_s20 + $0x318] sm:$0xff] }
 0x530   : > { %5702 = vst.msk [vmem:[%s6575_s20 + $0x270] sm:$0xff] %vm5623_vm5, %v5573_v1 }
 0x531   : > { %5701 = vst.msk [vmem:[%s6575_s20 + $0x268] sm:$0xff] %vm5623_vm5, %v5572_v14  ;;  %v5400_v27 = vpop.xlane.xlu1 %5399 }
 0x532   : > { %v5398_v10 = vpop.xlane.xlu0 %5397  ;;  %v5575_v31 = vmax.f32 %v5191_v16, %v5400_v27  ;;  %v5213_v27 = vld [vmem:[%s6575_s20 + $0x330] sm:$0xff] }
 0x533   : > { %v5574_v36 = vmax.f32 %v5190_v23, %v5398_v10  ;;  %v5212_v10 = vld [vmem:[%s6575_s20 + $0x328] sm:$0xff] }
 0x534   : > { %5704 = vst.msk [vmem:[%s6575_s20 + $0x280] sm:$0xff] %vm5623_vm5, %v5575_v31 }
 0x535   : > { %5703 = vst.msk [vmem:[%s6575_s20 + $0x278] sm:$0xff] %vm5623_vm5, %v5574_v36  ;;  %v5404_v44 = vpop.xlane.xlu1 %5403 }
 0x536   : > { %v5402_v40 = vpop.xlane.xlu0 %5401  ;;  %v5577_v11 = vmax.f32 %v5193_v24, %v5404_v44  ;;  %v5215_v44 = vld [vmem:[%s6575_s20 + $0x340] sm:$0xff] }
 0x537   : > { %v5576_v43 = vmax.f32 %v5192_v56, %v5402_v40  ;;  %v5214_v40 = vld [vmem:[%s6575_s20 + $0x338] sm:$0xff] }
 0x538   : > { %5706 = vst.msk [vmem:[%s6575_s20 + $0x290] sm:$0xff] %vm5623_vm5, %v5577_v11 }
 0x539   : > { %5705 = vst.msk [vmem:[%s6575_s20 + $0x288] sm:$0xff] %vm5623_vm5, %v5576_v43  ;;  %v5408_v50 = vpop.xlane.xlu1 %5407 }
 0x53a   : > { %v5406_v9 = vpop.xlane.xlu0 %5405  ;;  %v5579_v51 = vmax.f32 %v5195_v4, %v5408_v50  ;;  %v5217_v50 = vld [vmem:[%s6575_s20 + $0x350] sm:$0xff] }
 0x53b   : > { %v5578_v17 = vmax.f32 %v5194_v2, %v5406_v9  ;;  %v5216_v9 = vld [vmem:[%s6575_s20 + $0x348] sm:$0xff] }
 0x53c   : > { %5708 = vst.msk [vmem:[%s6575_s20 + $0x2a0] sm:$0xff] %vm5623_vm5, %v5579_v51 }
 0x53d   : > { %5707 = vst.msk [vmem:[%s6575_s20 + $0x298] sm:$0xff] %vm5623_vm5, %v5578_v17  ;;  %v5412_v62 = vpop.xlane.xlu1 %5411 }
 0x53e   : > { %v5410_v7 = vpop.xlane.xlu0 %5409  ;;  %v5581_v42 = vmax.f32 %v5197_v29, %v5412_v62  ;;  %v5219_v62 = vld [vmem:[%s6575_s20 + $0x360] sm:$0xff] }
 0x53f   : > { %v5580_v6 = vmax.f32 %v5196_v55, %v5410_v7  ;;  %v5218_v7 = vld [vmem:[%s6575_s20 + $0x358] sm:$0xff] }
 0x540   : > { %5710 = vst.msk [vmem:[%s6575_s20 + $0x2b0] sm:$0xff] %vm5623_vm5, %v5581_v42 }
 0x541   : > { %5709 = vst.msk [vmem:[%s6575_s20 + $0x2a8] sm:$0xff] %vm5623_vm5, %v5580_v6  ;;  %v5416_v19 = vpop.xlane.xlu1 %5415 }
 0x542   : > { %v5414_v25 = vpop.xlane.xlu0 %5413  ;;  %v5583_v48 = vmax.f32 %v5199_v46, %v5416_v19  ;;  %v5221_v19 = vld [vmem:[%s6575_s20 + $0x370] sm:$0xff] }
 0x543   : > { %v5582_v45 = vmax.f32 %v5198_v8, %v5414_v25  ;;  %v5220_v25 = vld [vmem:[%s6575_s20 + $0x368] sm:$0xff] }
 0x544   : > { %5712 = vst.msk [vmem:[%s6575_s20 + $0x2c0] sm:$0xff] %vm5623_vm5, %v5583_v48 }
 0x545   : > { %5711 = vst.msk [vmem:[%s6575_s20 + $0x2b8] sm:$0xff] %vm5623_vm5, %v5582_v45  ;;  %v5420_v30 = vpop.xlane.xlu1 %5419 }
 0x546   : > { %v5418_v61 = vpop.xlane.xlu0 %5417  ;;  %v5585_v5 = vmax.f32 %v5201_v0, %v5420_v30  ;;  %v5223_v30 = vld [vmem:[%s6575_s20 + $0x380] sm:$0xff] }
 0x547   : > { %v5584_v63 = vmax.f32 %v5200_v59, %v5418_v61  ;;  %v5222_v61 = vld [vmem:[%s6575_s20 + $0x378] sm:$0xff] }
 0x548   : > { %5714 = vst.msk [vmem:[%s6575_s20 + $0x2d0] sm:$0xff] %vm5623_vm5, %v5585_v5 }
 0x549   : > { %5713 = vst.msk [vmem:[%s6575_s20 + $0x2c8] sm:$0xff] %vm5623_vm5, %v5584_v63  ;;  %v5424_v47 = vpop.xlane.xlu1 %5423 }
 0x54a   : > { %v5422_v32 = vpop.xlane.xlu0 %5421  ;;  %v5587_v39 = vmax.f32 %v5203_v15, %v5424_v47  ;;  %v5225_v47 = vld [vmem:[%s6575_s20 + $0x390] sm:$0xff] }
 0x54b   : > { %v5586_v21 = vmax.f32 %v5202_v58, %v5422_v32  ;;  %v5224_v32 = vld [vmem:[%s6575_s20 + $0x388] sm:$0xff] }
 0x54c   : > { %5716 = vst.msk [vmem:[%s6575_s20 + $0x2e0] sm:$0xff] %vm5623_vm5, %v5587_v39 }
 0x54d   : > { %5715 = vst.msk [vmem:[%s6575_s20 + $0x2d8] sm:$0xff] %vm5623_vm5, %v5586_v21  ;;  %v5428_v13 = vpop.xlane.xlu1 %5427 }
 0x54e   : > { %v5426_v37 = vpop.xlane.xlu0 %5425  ;;  %v5589_v20 = vmax.f32 %v5205_v12, %v5428_v13  ;;  %v5227_v13 = vld [vmem:[%s6575_s20 + $0x3a0] sm:$0xff] }
 0x54f   : > { %v5588_v38 = vmax.f32 %v5204_v54, %v5426_v37  ;;  %v5226_v37 = vld [vmem:[%s6575_s20 + $0x398] sm:$0xff] }
 0x550   : > { %5718 = vst.msk [vmem:[%s6575_s20 + $0x2f0] sm:$0xff] %vm5623_vm5, %v5589_v20 }
 0x551   : > { %5717 = vst.msk [vmem:[%s6575_s20 + $0x2e8] sm:$0xff] %vm5623_vm5, %v5588_v38  ;;  %v5432_v18 = vpop.xlane.xlu1 %5431 }
 0x552   : > { %v5430_v60 = vpop.xlane.xlu0 %5429  ;;  %v5591_v52 = vmax.f32 %v5207_v33, %v5432_v18  ;;  %v5229_v18 = vld [vmem:[%s6575_s20 + $0x3b0] sm:$0xff] }
 0x553   : > { %v5590_v41 = vmax.f32 %v5206_v53, %v5430_v60  ;;  %v5228_v60 = vld [vmem:[%s6575_s20 + $0x3a8] sm:$0xff] }
 0x554   : > { %5720 = vst.msk [vmem:[%s6575_s20 + $0x300] sm:$0xff] %vm5623_vm5, %v5591_v52 }
 0x555   : > { %5719 = vst.msk [vmem:[%s6575_s20 + $0x2f8] sm:$0xff] %vm5623_vm5, %v5590_v41  ;;  %v5436_v34 = vpop.xlane.xlu1 %5435 }
 0x556   : > { %v5434_v57 = vpop.xlane.xlu0 %5433  ;;  %v5593_v26 = vmax.f32 %v5209_v22, %v5436_v34  ;;  %v5231_v34 = vld [vmem:[%s6575_s20 + $0x3c0] sm:$0xff] }
 0x557   : > { %v5592_v28 = vmax.f32 %v5208_v35, %v5434_v57  ;;  %v5230_v57 = vld [vmem:[%s6575_s20 + $0x3b8] sm:$0xff] }
 0x558   : > { %5722 = vst.msk [vmem:[%s6575_s20 + $0x310] sm:$0xff] %vm5623_vm5, %v5593_v26 }
 0x559   : > { %5721 = vst.msk [vmem:[%s6575_s20 + $0x308] sm:$0xff] %vm5623_vm5, %v5592_v28  ;;  %v5440_v1 = vpop.xlane.xlu1 %5439 }
 0x55a   : > { %v5438_v14 = vpop.xlane.xlu0 %5437  ;;  %v5595_v16 = vmax.f32 %v5211_v3, %v5440_v1  ;;  %v5233_v1 = vld [vmem:[%s6575_s20 + $0x3d0] sm:$0xff] }
 0x55b   : > { %v5594_v23 = vmax.f32 %v5210_v49, %v5438_v14  ;;  %v5232_v14 = vld [vmem:[%s6575_s20 + $0x3c8] sm:$0xff] }
 0x55c   : > { %5724 = vst.msk [vmem:[%s6575_s20 + $0x320] sm:$0xff] %vm5623_vm5, %v5595_v16 }
 0x55d   : > { %5723 = vst.msk [vmem:[%s6575_s20 + $0x318] sm:$0xff] %vm5623_vm5, %v5594_v23  ;;  %v5444_v31 = vpop.xlane.xlu1 %5443 }
 0x55e   : > { %v5442_v36 = vpop.xlane.xlu0 %5441  ;;  %v5597_v24 = vmax.f32 %v5213_v27, %v5444_v31  ;;  %v5235_v31 = vld [vmem:[%s6575_s20 + $0x3e0] sm:$0xff] }
 0x55f   : > { %v5596_v56 = vmax.f32 %v5212_v10, %v5442_v36  ;;  %v5234_v36 = vld [vmem:[%s6575_s20 + $0x3d8] sm:$0xff] }
 0x560   : > { %5726 = vst.msk [vmem:[%s6575_s20 + $0x330] sm:$0xff] %vm5623_vm5, %v5597_v24 }
 0x561   : > { %5725 = vst.msk [vmem:[%s6575_s20 + $0x328] sm:$0xff] %vm5623_vm5, %v5596_v56  ;;  %v5448_v11 = vpop.xlane.xlu1 %5447 }
 0x562   : > { %v5446_v43 = vpop.xlane.xlu0 %5445  ;;  %v5599_v4 = vmax.f32 %v5215_v44, %v5448_v11  ;;  %v5237_v11 = vld [vmem:[%s6575_s20 + $0x3f0] sm:$0xff] }
 0x563   : > { %v5598_v2 = vmax.f32 %v5214_v40, %v5446_v43  ;;  %v5236_v43 = vld [vmem:[%s6575_s20 + $0x3e8] sm:$0xff] }
 0x564   : > { %5728 = vst.msk [vmem:[%s6575_s20 + $0x340] sm:$0xff] %vm5623_vm5, %v5599_v4 }
 0x565   : > { %5727 = vst.msk [vmem:[%s6575_s20 + $0x338] sm:$0xff] %vm5623_vm5, %v5598_v2  ;;  %v5452_v51 = vpop.xlane.xlu1 %5451 }
 0x566   : > { %v5450_v17 = vpop.xlane.xlu0 %5449  ;;  %v5601_v29 = vmax.f32 %v5217_v50, %v5452_v51  ;;  %v5238_v51 = vld [vmem:[%s6575_s20 + $0x3f8] sm:$0xff] }
 0x567   : > { %v5600_v55 = vmax.f32 %v5216_v9, %v5450_v17 }
 0x568   : > { %5730 = vst.msk [vmem:[%s6575_s20 + $0x350] sm:$0xff] %vm5623_vm5, %v5601_v29 }
 0x569   : > { %5729 = vst.msk [vmem:[%s6575_s20 + $0x348] sm:$0xff] %vm5623_vm5, %v5600_v55  ;;  %v5456_v42 = vpop.xlane.xlu1 %5455 }
 0x56a   : > { %v5454_v6 = vpop.xlane.xlu0 %5453  ;;  %v5603_v46 = vmax.f32 %v5219_v62, %v5456_v42 }
 0x56b   : > { %v5602_v8 = vmax.f32 %v5218_v7, %v5454_v6 }
 0x56c   : > { %5732 = vst.msk [vmem:[%s6575_s20 + $0x360] sm:$0xff] %vm5623_vm5, %v5603_v46 }
 0x56d   : > { %5731 = vst.msk [vmem:[%s6575_s20 + $0x358] sm:$0xff] %vm5623_vm5, %v5602_v8  ;;  %v5460_v48 = vpop.xlane.xlu1 %5459 }
 0x56e   : > { %v5458_v45 = vpop.xlane.xlu0 %5457  ;;  %v5605_v0 = vmax.f32 %v5221_v19, %v5460_v48 }
 0x56f   : > { %v5604_v59 = vmax.f32 %v5220_v25, %v5458_v45 }
 0x570   : > { %5734 = vst.msk [vmem:[%s6575_s20 + $0x370] sm:$0xff] %vm5623_vm5, %v5605_v0 }
 0x571   : > { %5733 = vst.msk [vmem:[%s6575_s20 + $0x368] sm:$0xff] %vm5623_vm5, %v5604_v59  ;;  %v5464_v5 = vpop.xlane.xlu1 %5463 }
 0x572   : > { %v5462_v63 = vpop.xlane.xlu0 %5461  ;;  %v5607_v15 = vmax.f32 %v5223_v30, %v5464_v5 }
 0x573   : > { %v5606_v58 = vmax.f32 %v5222_v61, %v5462_v63 }
 0x574   : > { %5736 = vst.msk [vmem:[%s6575_s20 + $0x380] sm:$0xff] %vm5623_vm5, %v5607_v15 }
 0x575   : > { %5735 = vst.msk [vmem:[%s6575_s20 + $0x378] sm:$0xff] %vm5623_vm5, %v5606_v58  ;;  %v5468_v39 = vpop.xlane.xlu1 %5467 }
 0x576   : > { %v5466_v21 = vpop.xlane.xlu0 %5465  ;;  %v5609_v12 = vmax.f32 %v5225_v47, %v5468_v39 }
 0x577   : > { %v5608_v54 = vmax.f32 %v5224_v32, %v5466_v21 }
 0x578   : > { %5738 = vst.msk [vmem:[%s6575_s20 + $0x390] sm:$0xff] %vm5623_vm5, %v5609_v12 }
 0x579   : > { %5737 = vst.msk [vmem:[%s6575_s20 + $0x388] sm:$0xff] %vm5623_vm5, %v5608_v54  ;;  %v5472_v20 = vpop.xlane.xlu1 %5471 }
 0x57a   : > { %v5470_v38 = vpop.xlane.xlu0 %5469  ;;  %v5611_v33 = vmax.f32 %v5227_v13, %v5472_v20 }
 0x57b   : > { %v5610_v53 = vmax.f32 %v5226_v37, %v5470_v38 }
 0x57c   : > { %5740 = vst.msk [vmem:[%s6575_s20 + $0x3a0] sm:$0xff] %vm5623_vm5, %v5611_v33 }
 0x57d   : > { %5739 = vst.msk [vmem:[%s6575_s20 + $0x398] sm:$0xff] %vm5623_vm5, %v5610_v53  ;;  %v5476_v52 = vpop.xlane.xlu1 %5475 }
 0x57e   : > { %v5474_v41 = vpop.xlane.xlu0 %5473  ;;  %v5613_v22 = vmax.f32 %v5229_v18, %v5476_v52 }
 0x57f   : > { %v5612_v35 = vmax.f32 %v5228_v60, %v5474_v41 }
 0x580   : > { %5742 = vst.msk [vmem:[%s6575_s20 + $0x3b0] sm:$0xff] %vm5623_vm5, %v5613_v22 }
 0x581   : > { %5741 = vst.msk [vmem:[%s6575_s20 + $0x3a8] sm:$0xff] %vm5623_vm5, %v5612_v35  ;;  %v5480_v26 = vpop.xlane.xlu1 %5479 }
 0x582   : > { %v5478_v28 = vpop.xlane.xlu0 %5477  ;;  %v5615_v3 = vmax.f32 %v5231_v34, %v5480_v26 }
 0x583   : > { %v5614_v49 = vmax.f32 %v5230_v57, %v5478_v28 }
 0x584   : > { %5744 = vst.msk [vmem:[%s6575_s20 + $0x3c0] sm:$0xff] %vm5623_vm5, %v5615_v3 }
 0x585   : > { %5743 = vst.msk [vmem:[%s6575_s20 + $0x3b8] sm:$0xff] %vm5623_vm5, %v5614_v49  ;;  %v5484_v16 = vpop.xlane.xlu1 %5483 }
 0x586   : > { %v5482_v23 = vpop.xlane.xlu0 %5481  ;;  %v5617_v27 = vmax.f32 %v5233_v1, %v5484_v16 }
 0x587   : > { %v5616_v10 = vmax.f32 %v5232_v14, %v5482_v23 }
 0x588   : > { %5746 = vst.msk [vmem:[%s6575_s20 + $0x3d0] sm:$0xff] %vm5623_vm5, %v5617_v27 }
 0x589   : > { %5745 = vst.msk [vmem:[%s6575_s20 + $0x3c8] sm:$0xff] %vm5623_vm5, %v5616_v10  ;;  %v5488_v24 = vpop.xlane.xlu1 %5487 }
 0x58a   : > { %v5486_v56 = vpop.xlane.xlu0 %5485  ;;  %v5619_v44 = vmax.f32 %v5235_v31, %v5488_v24 }
 0x58b   : > { %v5618_v40 = vmax.f32 %v5234_v36, %v5486_v56 }
 0x58c   : > { %5748 = vst.msk [vmem:[%s6575_s20 + $0x3e0] sm:$0xff] %vm5623_vm5, %v5619_v44 }
 0x58d   : > { %5747 = vst.msk [vmem:[%s6575_s20 + $0x3d8] sm:$0xff] %vm5623_vm5, %v5618_v40  ;;  %v5492_v4 = vpop.xlane.xlu1 %5491 }
 0x58e   : > { %v5490_v2 = vpop.xlane.xlu0 %5489  ;;  %v5621_v50 = vmax.f32 %v5237_v11, %v5492_v4 }
 0x58f   : > { %v5620_v9 = vmax.f32 %v5236_v43, %v5490_v2 }
 0x590   : > { %5750 = vst.msk [vmem:[%s6575_s20 + $0x3f0] sm:$0xff] %vm5623_vm5, %v5621_v50 }
 0x591   : > { %5749 = vst.msk [vmem:[%s6575_s20 + $0x3e8] sm:$0xff] %vm5623_vm5, %v5620_v9 }
 0x592   : > { %v5494_v17 = vpop.xlane.xlu0 %5493 }
 0x593   : > { %v5622_v29 = vmax.f32 %v5238_v51, %v5494_v17 }
 0x595   : > { %5751 = vst.msk [vmem:[%s6575_s20 + $0x3f8] sm:$0xff] %vm5623_vm5, %v5622_v29 }
 0x596 PF: > { %s23_s29 = sadd.s32 1, %s6464_s29   ;;  %s12084_s21 = sld [smem:[#allocation2_spill]] }
 0x597   : > { %p20_p8 = scmp.ge.s32.totalorder %s23_s29, 8   ;;  %s12085_s25 = smov %s6456_s27 }
 0x598   : > { %s12086_s26 = smov %s6460_s28  ;;  %s12087_s27 = smov %s12090_s30 }
 0x599   :  { %22 = sbr.rel (!%p20_p8) target bundleno = 3 (0x3), region = 106 }
 0x59c   : > { %s12088_s28 = smov %s12084_s21 }

</bundles_post_ra>
